<compile_context>
chip_gen: v7x
topology: tpu7x:2x2x1
jax: 0.10.0
libtpu: 0.0.40
codegen_flags: <defaults>
</compile_context>

<pallas_src>
import numpy as np
import jax
import jax.numpy as jnp
from jax.experimental import pallas as pl
from jax.experimental.pallas import tpu as pltpu

# ----- small synthetic stand-in shapes (real SD: C=1280, TEMB=1280, G=32) -----
B = 2                        # batch
IMG_C, IMG_H, IMG_W = 3, 32, 32
LAT_C = 4                    # VAE latent channels
H = W = 8                    # spatial size seen by the extraction module
HW = H * W
ROWS = B * HW                # matmul M dimension (batch folded in) = 128
C = 256                      # channels of the extraction ResnetBlock2D (toy)
G = 32                       # GroupNorm groups
TEMB = 128                   # time-embedding width
TN = 128                     # streamed output-channel tile (lane-aligned)
NT = C // TN                 # number of weight N-tiles per conv
EPS = 1e-5


# --------------------------- Pallas kernel -----------------------------------
def resnet_block_kernel(x_full_ref, x_tile_ref, te_ref,
                        gnw_ref, gnb_ref, w_ref, cb_ref, m_ref,
                        o_ref,
                        pad_ref, col_ref, h1_ref):
    """diffusers ResnetBlock2D forward.

    grid = (phase, n_tile):
      phase 0: h1 = conv1(silu(gn1(x))) + bias1 + temb_proj   (per N-tile)
      phase 1: out = x + conv2(silu(gn2(h1))) + bias2         (per N-tile)

    x_full_ref [ROWS, C] resident;  x_tile_ref/o_ref [ROWS, TN];
    te_ref [B, TN];  gnw/gnb_ref [1,1,C] (phase-indexed);  w_ref [1,9C,TN] bf16
    (streamed per step);  cb_ref [1,1,TN];  m_ref [C,G] one-hot channel->group.
    pad_ref [B,H+2,W+2,C] f32 scratch;  col_ref [ROWS,9C] bf16 im2col slab;
    h1_ref [NT,ROWS,TN] f32 conv1 output tiles.
    """
    f32 = jnp.float32
    p = pl.program_id(0)                       # phase: 0 -> conv1, 1 -> conv2
    n = pl.program_id(1)                       # output-channel tile

    m = m_ref[...].astype(f32)                 # [C, G]
    inv_n = 1.0 / float(HW * (C // G))

    def silu(v):
        return v * jax.nn.sigmoid(v)

    def group_norm(h2d):
        # one sample [HW, C]; reductions on VPU, tiny one-hot dots combine/scatter.
        # one-pass E[x^2]-E[x]^2 in f32 with >=0 guard.
        gamma = gnw_ref[0].astype(f32)                                # [1, C]
        beta = gnb_ref[0].astype(f32)
        ch_sum = jnp.sum(h2d, axis=0, keepdims=True)                  # [1, C]
        ch_sq = jnp.sum(h2d * h2d, axis=0, keepdims=True)             # [1, C]
        g_sum = jnp.dot(ch_sum, m, preferred_element_type=f32)        # [1, G]
        g_sq = jnp.dot(ch_sq, m, preferred_element_type=f32)          # [1, G]
        mean_g = g_sum * inv_n
        var_g = jnp.maximum(g_sq * inv_n - mean_g * mean_g, 0.0)
        # scatter group stats back to channels: [1,G] x [C,G]^T -> [1,C]
        mean_c = jax.lax.dot_general(mean_g, m, (((1,), (1,)), ((), ())),
                                     preferred_element_type=f32)
        var_c = jax.lax.dot_general(var_g, m, (((1,), (1,)), ((), ())),
                                    preferred_element_type=f32)
        hn = (h2d - mean_c) * jax.lax.rsqrt(var_c + EPS)
        return hn * gamma + beta

    def build_slab(h_all):
        # GN + SiLU per sample, pad in f32, then write the bf16 im2col slab
        # directly (no later full-slab cast).
        for b in range(B):
            hb = silu(group_norm(h_all[b * HW:(b + 1) * HW]))         # [HW, C]
            pad_ref[b, 1:H + 1, 1:W + 1, :] = hb.reshape(H, W, C)
        for b in range(B):
            for k in range(9):
                ky, kx = divmod(k, 3)
                col_ref[b * HW:(b + 1) * HW, k * C:(k + 1) * C] = (
                    pad_ref[b, ky:ky + H, kx:kx + W, :]
                    .reshape(HW, C).astype(jnp.bfloat16))

    # ---- once per phase (first N-tile): GN + SiLU + bf16 im2col slab --------
    @pl.when(n == 0)
    def _():
        @pl.when(p == 0)
        def _():
            # zero only the halo ring, once per invocation (interior rewritten
            # by every phase's slab build).
            zrow = jnp.zeros((B, 1, W + 2, C), jnp.float32)
            zcol = jnp.zeros((B, H + 2, 1, C), jnp.float32)
            pad_ref[:, 0:1, :, :] = zrow
            pad_ref[:, H + 1:H + 2, :, :] = zrow
            pad_ref[:, :, 0:1, :] = zcol
            pad_ref[:, :, W + 1:W + 2, :] = zcol
            build_slab(x_full_ref[...].astype(f32))

        @pl.when(p == 1)
        def _():
            # reconstruct the full conv1 output (+bias +temb) from its tiles
            h_full = jnp.concatenate([h1_ref[i] for i in range(NT)], axis=-1)
            build_slab(h_full)

    # ---- one streamed [ROWS, 9C] @ [9C, TN] MXU matmul per grid step --------
    w = w_ref[0]                                                      # [9C, TN] bf16
    acc = jnp.dot(col_ref[...], w, preferred_element_type=f32)       # [ROWS, TN]
    acc = acc + cb_ref[0, 0, :].astype(f32)

    @pl.when(p == 0)
    def _():
        # broadcast the [B, TN] time-embedding tile over the HW rows of each
        # sample (pure VPU, nothing materialized in HBM).
        te = te_ref[...].astype(f32)                                  # [B, TN]
        te_rows = jnp.concatenate(
            [jnp.broadcast_to(te[b:b + 1, :], (HW, TN)) for b in range(B)],
            axis=0)                                                   # [ROWS, TN]
        h_tile = acc + te_rows
        h1_ref[n] = h_tile
        o_ref[...] = h_tile.astype(o_ref.dtype)   # keeps HBM defined; phase 1 rewrites

    @pl.when(p == 1)
    def _():
        o_ref[...] = (x_tile_ref[...].astype(f32) + acc).astype(o_ref.dtype)


def resnet_block(x_nhwc, temb, params):
    """Pallas call wrapper: x_nhwc [B,H,W,C], temb [B,TEMB] -> [B,H,W,C]."""
    assert x_nhwc.shape == (B, H, W, C)
    x2d = x_nhwc.reshape(ROWS, C).astype(jnp.float32)

    # hoisted time-embedding path: SiLU -> Linear, kept at [B, C] (broadcast in-kernel)
    te = (jnp.dot(jax.nn.silu(temb.astype(jnp.float32)), params["temb_w"],
                  precision=jax.lax.Precision.HIGHEST) + params["temb_b"])

    # bf16 matmul operands (f32 accumulation in-kernel).
    # TODO(synk): at real SD scale pre-cast offline; consider fp8 weights on v7x
    # and int8 on v5e/v6e (kernel is weight-HBM-bandwidth bound at C=1280).
    w_stack = params["conv_w"].astype(jnp.bfloat16)      # [2, 9C, C]

    # TODO(synk): at real scale set pltpu.CompilerParams(vmem_limit_bytes=...)
    # with headroom and size TN per generation (v7x: 2*9C*TN*2B well under
    # ~24 MiB); for megacore, replicate the slab build per core before marking
    # the N-tile axis "parallel" (scratch is per-core).
    out2d = pl.pallas_call(
        resnet_block_kernel,
        out_shape=jax.ShapeDtypeStruct((ROWS, C), jnp.float32),
        grid_spec=pltpu.PrefetchScalarGridSpec(
            num_scalar_prefetch=0,
            grid=(2, NT),                                  # (phase, output-channel tile)
            in_specs=[
                pl.BlockSpec((ROWS, C), lambda p, n: (0, 0)),        # x (full, resident)
                pl.BlockSpec((ROWS, TN), lambda p, n: (0, n)),       # x (N-tile, residual)
                pl.BlockSpec((B, TN), lambda p, n: (0, n)),          # temb proj N-tile
                pl.BlockSpec((1, 1, C), lambda p, n: (p, 0, 0)),     # GN gamma (per phase)
                pl.BlockSpec((1, 1, C), lambda p, n: (p, 0, 0)),     # GN beta
                pl.BlockSpec((1, 9 * C, TN), lambda p, n: (p, 0, n)),  # conv weight tile
                pl.BlockSpec((1, 1, TN), lambda p, n: (p, 0, n)),    # conv bias tile
                pl.BlockSpec((C, G), lambda p, n: (0, 0)),           # channel->group map
            ],
            out_specs=pl.BlockSpec((ROWS, TN), lambda p, n: (0, n)),
            scratch_shapes=[
                pltpu.VMEM((B, H + 2, W + 2, C), jnp.float32),       # padded GN+SiLU act
                pltpu.VMEM((ROWS, 9 * C), jnp.bfloat16),             # bf16 im2col slab
                pltpu.VMEM((NT, ROWS, TN), jnp.float32),             # conv1(+temb) tiles
            ],
        ),
        compiler_params=pltpu.CompilerParams(
            dimension_semantics=("arbitrary", "arbitrary")),
    )(x2d, x2d, te,
      params["gn_w"], params["gn_b"], w_stack, params["conv_b"],
      params["group_map"])
    return out2d.reshape(B, H, W, C)


# ---------------------- deterministic parameter init -------------------------
def init_params(key):
    ks = jax.random.split(key, 10)

    def normal(k, shape, scale):
        return scale * jax.random.normal(k, shape, jnp.float32)

    # one-hot channel -> group map (contiguous groups, as torch.nn.GroupNorm)
    idx = jnp.arange(C)
    group_map = jnp.zeros((C, G), jnp.float32).at[idx, idx // (C // G)].set(1.0)

    # conv weights stored as [(ky*3+kx)*C_in + c_in, c_out]
    # (== torch weight.permute(2, 3, 1, 0).reshape(9*C_in, C_out)); stacked [conv1, conv2]
    conv_w = jnp.stack([normal(ks[0], (9 * C, C), 1.0 / np.sqrt(9 * C)),
                        normal(ks[1], (9 * C, C), 1.0 / np.sqrt(9 * C))])
    conv_b = jnp.stack([normal(ks[2], (1, C), 0.02),
                        normal(ks[3], (1, C), 0.02)])
    gn_w = 1.0 + 0.1 * normal(ks[4], (2, 1, C), 1.0)
    gn_b = 0.05 * normal(ks[5], (2, 1, C), 1.0)

    return dict(
        gn_w=gn_w, gn_b=gn_b, conv_w=conv_w, conv_b=conv_b,
        group_map=group_map,
        temb_w=normal(ks[6], (TEMB, C), 1.0 / np.sqrt(TEMB)),
        temb_b=normal(ks[7], (1, C), 0.02),
        # glue stubs
        vae_proj=normal(ks[8], (IMG_C, LAT_C), 1.0 / np.sqrt(IMG_C)),
        down_proj=normal(ks[9], (LAT_C, C), 1.0 / np.sqrt(LAT_C)),
    )


# ------------------------------- glue -----------------------------------------
def sinusoidal_timestep_embedding(t, dim):
    half = dim // 2
    freqs = jnp.exp(-np.log(10000.0) * jnp.arange(half, dtype=jnp.float32) / half)
    args = t.astype(jnp.float32)[:, None] * freqs[None, :]
    return jnp.concatenate([jnp.cos(args), jnp.sin(args)], axis=-1)


def stable_diffusion_encoder_forward(params, x_nchw, *, noise_level=50,
                                     num_inference_steps=20, seed=42):
    """Mirrors StableDiffusionEncoder.forward with prompt=None (unconditional)."""
    strength = noise_level / 100.0
    if 1.0 / num_inference_steps > strength / 100.0:   # same (quirky) check as PyTorch
        num_inference_steps = 100
    conditional = False                                 # prompt=None -> guidance 0

    # NCHW -> NHWC
    x = jnp.transpose(x_nchw, (0, 2, 3, 1))

    # TODO(synk): real SD VAE encoder; stand-in = 4x4 average pool + 1x1 projection.
    pooled = x.reshape(B, H, 4, W, 4, IMG_C).mean(axis=(2, 4))
    latents = 0.18215 * jnp.einsum("bhwc,cd->bhwd", pooled, params["vae_proj"])

    # scheduler add_noise at the first retained timestep (DDPM linear beta schedule)
    betas = jnp.linspace(1e-4, 0.02, 1000, dtype=jnp.float32)
    alphas_cumprod = jnp.cumprod(1.0 - betas)
    t = int(round(1000 * strength)) - 1
    ab = alphas_cumprod[t]
    noise = jax.random.normal(jax.random.PRNGKey(seed), latents.shape, jnp.float32)
    noisy = jnp.sqrt(ab) * latents + jnp.sqrt(1.0 - ab) * noise

    # TODO(synk): full UNet down path (conv_in, attention/resnet/downsample blocks);
    # stand-in = 1x1 projection to the extraction block's channel count.
    feats = jnp.einsum("bhwc,cd->bhwd", noisy, params["down_proj"])

    # TODO(synk): UNet time-MLP omitted; sinusoidal timestep embedding only.
    temb = jnp.tile(sinusoidal_timestep_embedding(jnp.array([t]), TEMB), (B, 1))

    out_nhwc = resnet_block(feats, temb, params)        # Pallas extraction module
    # hook returns output.detach()[int(conditional)], NCHW layout -> [C, H, W]
    return jnp.transpose(out_nhwc[int(conditional)], (2, 0, 1))


# ----------------------- pure-JAX reference (for check) ----------------------
def resnet_block_ref(x_nhwc, temb, params):
    hp_prec = jax.lax.Precision.HIGHEST

    def gn(h, w, b):
        hh = h.reshape(B, H * W, G, C // G)
        mean = hh.mean(axis=(1, 3), keepdims=True)
        var = ((hh - mean) ** 2).mean(axis=(1, 3), keepdims=True)
        hn = ((hh - mean) / jnp.sqrt(var + EPS)).reshape(B, H, W, C)
        return hn * w[0] + b[0]

    def silu(v):
        return v * jax.nn.sigmoid(v)

    def conv(h, w, b):
        wk = w.reshape(3, 3, C, C)
        hp = jnp.pad(h, ((0, 0), (1, 1), (1, 1), (0, 0)))
        out = jnp.zeros((B, H, W, C), jnp.float32)
        for ky in range(3):
            for kx in range(3):
                out = out + jnp.einsum("bhwc,cd->bhwd",
                                       hp[:, ky:ky + H, kx:kx + W, :], wk[ky, kx],
                                       precision=hp_prec)
        return out + b[0]

    h = conv(silu(gn(x_nhwc, params["gn_w"][0], params["gn_b"][0])),
             params["conv_w"][0], params["conv_b"][0])
    te = jnp.dot(silu(temb), params["temb_w"], precision=hp_prec) + params["temb_b"][0]
    h = h + te[:, None, None, :]
    h = conv(silu(gn(h, params["gn_w"][1], params["gn_b"][1])),
             params["conv_w"][1], params["conv_b"][1])
    return x_nhwc + h


# ---------------------------------- main --------------------------------------
if __name__ == "__main__":
    root = jax.random.PRNGKey(0)
    pkey, xkey, fkey, tkey = jax.random.split(root, 4)
    params = init_params(pkey)

    # correctness check of the Pallas extraction block vs pure-JAX (f32) reference
    # (bf16 matmul operands in the kernel -> slightly looser tolerance)
    feats = jax.random.normal(fkey, (B, H, W, C), jnp.float32)
    temb = jax.random.normal(tkey, (B, TEMB), jnp.float32)
    got = jax.block_until_ready(resnet_block(feats, temb, params))
    want = resnet_block_ref(feats, temb, params)
    assert got.shape == (B, H, W, C)
    max_err = float(jnp.max(jnp.abs(got - want)))
    assert jnp.allclose(got, want, atol=5e-2, rtol=5e-2), max_err

    # full encoder forward (prompt=None path): input image in PyTorch NCHW
    x = jax.random.normal(xkey, (B, IMG_C, IMG_H, IMG_W), jnp.float32)
    emb = jax.block_until_ready(
        stable_diffusion_encoder_forward(params, x, noise_level=50,
                                         num_inference_steps=20, seed=42))
    assert emb.shape == (C, H, W)
    assert bool(jnp.all(jnp.isfinite(emb)))
    print("KERNEL_OK")
</pallas_src>

<mosaic_0001>
module attributes {stable_mosaic.version = 11 : i64} {
  func.func @resnet_block_kernel(%arg0: i32, %arg1: i32, %arg2: memref<128x256xf32, #tpu.memory_space<vmem>>, %arg3: memref<128x128xf32, #tpu.memory_space<vmem>>, %arg4: memref<2x128xf32, #tpu.memory_space<vmem>>, %arg5: memref<1x1x256xf32, #tpu.memory_space<vmem>>, %arg6: memref<1x1x256xf32, #tpu.memory_space<vmem>>, %arg7: memref<1x2304x128xbf16, #tpu.memory_space<vmem>>, %arg8: memref<1x1x128xf32, #tpu.memory_space<vmem>>, %arg9: memref<256x32xf32, #tpu.memory_space<vmem>>, %arg10: memref<128x128xf32, #tpu.memory_space<vmem>>, %arg11: memref<2x10x10x256xf32, #tpu.memory_space<vmem>>, %arg12: memref<128x2304xbf16, #tpu.memory_space<vmem>>, %arg13: memref<2x128x128xf32, #tpu.memory_space<vmem>>) attributes {dimension_semantics = [#tpu.dimension_semantics<arbitrary>, #tpu.dimension_semantics<arbitrary>], iteration_bounds = array<i64: 2, 2>, scalar_prefetch = 0 : i64, scratch_operands = 3 : i64, tpu.core_type = #tpu.core_type<tc>, window_params = [{pipeline_mode = #tpu.pipeline_mode<synchronous>, transform_indices = @transform_0, window_bounds = array<i64: 128, 256>}, {transform_indices = @transform_1, window_bounds = array<i64: 128, 128>}, {transform_indices = @transform_2, window_bounds = array<i64: 2, 128>}, {transform_indices = @transform_3, window_bounds = array<i64: 1, 1, 256>}, {transform_indices = @transform_4, window_bounds = array<i64: 1, 1, 256>}, {transform_indices = @transform_5, window_bounds = array<i64: 1, 2304, 128>}, {transform_indices = @transform_6, window_bounds = array<i64: 1, 1, 128>}, {pipeline_mode = #tpu.pipeline_mode<synchronous>, transform_indices = @transform_7, window_bounds = array<i64: 256, 32>}, {transform_indices = @transform_8, window_bounds = array<i64: 128, 128>}]} {
    %c0 = arith.constant 0 : index
    %c0_0 = arith.constant 0 : index
    %0 = vector.load %arg9[%c0, %c0_0] : memref<256x32xf32, #tpu.memory_space<vmem>>, vector<256x32xf32>
    %c0_i32 = arith.constant 0 : i32
    %1 = arith.cmpi eq, %arg1, %c0_i32 : i32
    %2 = arith.extui %1 : i1 to i32
    %c0_i32_1 = arith.constant 0 : i32
    %3 = arith.cmpi ne, %2, %c0_i32_1 : i32
    scf.if %3 {
      %c0_i32_13 = arith.constant 0 : i32
      %19 = arith.cmpi eq, %arg0, %c0_i32_13 : i32
      %20 = arith.extui %19 : i1 to i32
      %c0_i32_14 = arith.constant 0 : i32
      %21 = arith.cmpi ne, %20, %c0_i32_14 : i32
      scf.if %21 {
        %cst_17 = arith.constant 0.000000e+00 : f32
        %25 = vector.broadcast %cst_17 : f32 to vector<2x1x10x256xf32>
        %cst_18 = arith.constant 0.000000e+00 : f32
        %26 = vector.broadcast %cst_18 : f32 to vector<2x10x1x256xf32>
        %c0_19 = arith.constant 0 : index
        %c0_20 = arith.constant 0 : index
        %c0_21 = arith.constant 0 : index
        %c0_22 = arith.constant 0 : index
        %27 = vector.load %arg11[%c0_19, %c0_20, %c0_21, %c0_22] : memref<2x10x10x256xf32, #tpu.memory_space<vmem>>, vector<2x1x10x256xf32>
        tpu.vector_store %arg11[%c0_19, %c0_20, %c0_21, %c0_22], %25 {strides = array<i32>} : memref<2x10x10x256xf32, #tpu.memory_space<vmem>>, vector<2x1x10x256xf32>,
        %c0_23 = arith.constant 0 : index
        %c9 = arith.constant 9 : index
        %c0_24 = arith.constant 0 : index
        %c0_25 = arith.constant 0 : index
        %28 = vector.load %arg11[%c0_23, %c9, %c0_24, %c0_25] : memref<2x10x10x256xf32, #tpu.memory_space<vmem>>, vector<2x1x10x256xf32>
        tpu.vector_store %arg11[%c0_23, %c9, %c0_24, %c0_25], %25 {strides = array<i32>} : memref<2x10x10x256xf32, #tpu.memory_space<vmem>>, vector<2x1x10x256xf32>,
        %c0_26 = arith.constant 0 : index
        %c0_27 = arith.constant 0 : index
        %c0_28 = arith.constant 0 : index
        %c0_29 = arith.constant 0 : index
        %29 = vector.load %arg11[%c0_26, %c0_27, %c0_28, %c0_29] : memref<2x10x10x256xf32, #tpu.memory_space<vmem>>, vector<2x10x1x256xf32>
        tpu.vector_store %arg11[%c0_26, %c0_27, %c0_28, %c0_29], %26 {strides = array<i32>} : memref<2x10x10x256xf32, #tpu.memory_space<vmem>>, vector<2x10x1x256xf32>,
        %c0_30 = arith.constant 0 : index
        %c0_31 = arith.constant 0 : index
        %c9_32 = arith.constant 9 : index
        %c0_33 = arith.constant 0 : index
        %30 = vector.load %arg11[%c0_30, %c0_31, %c9_32, %c0_33] : memref<2x10x10x256xf32, #tpu.memory_space<vmem>>, vector<2x10x1x256xf32>
        tpu.vector_store %arg11[%c0_30, %c0_31, %c9_32, %c0_33], %26 {strides = array<i32>} : memref<2x10x10x256xf32, #tpu.memory_space<vmem>>, vector<2x10x1x256xf32>,
        %c0_34 = arith.constant 0 : index
        %c0_35 = arith.constant 0 : index
        %31 = vector.load %arg2[%c0_34, %c0_35] : memref<128x256xf32, #tpu.memory_space<vmem>>, vector<128x256xf32>
        %32 = vector.extract_strided_slice %31 {offsets = [0, 0], sizes = [64, 256], strides = [1, 1]} : vector<128x256xf32> to vector<64x256xf32>
        %c0_36 = arith.constant 0 : index
        %c0_37 = arith.constant 0 : index
        %c0_38 = arith.constant 0 : index
        %33 = vector.load %arg5[%c0_36, %c0_37, %c0_38] : memref<1x1x256xf32, #tpu.memory_space<vmem>>, vector<1x1x256xf32>
        %34 = vector.shape_cast %33 : vector<1x1x256xf32> to vector<1x256xf32>
        %c0_39 = arith.constant 0 : index
        %c0_40 = arith.constant 0 : index
        %c0_41 = arith.constant 0 : index
        %35 = vector.load %arg6[%c0_39, %c0_40, %c0_41] : memref<1x1x256xf32, #tpu.memory_space<vmem>>, vector<1x1x256xf32>
        %36 = vector.shape_cast %35 : vector<1x1x256xf32> to vector<1x256xf32>
        %cst_42 = arith.constant dense<0.000000e+00> : vector<256xf32>
        %37 = vector.multi_reduction <add>, %32, %cst_42 [0] : vector<64x256xf32> to vector<256xf32>
        %38 = vector.shape_cast %37 : vector<256xf32> to vector<1x256xf32>
        %39 = arith.mulf %32, %32 : vector<64x256xf32>
        %cst_43 = arith.constant dense<0.000000e+00> : vector<256xf32>
        %40 = vector.multi_reduction <add>, %39, %cst_43 [0] : vector<64x256xf32> to vector<256xf32>
        %41 = vector.shape_cast %40 : vector<256xf32> to vector<1x256xf32>
        %cst_44 = arith.constant dense<0.000000e+00> : vector<1x32xf32>
        %42 = tpu.matmul %38, %0, %cst_44 {dimension_numbers = #tpu.dot_dimension_numbers<[1], [0], [0], [1], [0, 0, 1, 1], [], []>} : vector<1x256xf32>, vector<256x32xf32>, vector<1x32xf32> -> vector<1x32xf32>
        %cst_45 = arith.constant dense<0.000000e+00> : vector<1x32xf32>
        %43 = tpu.matmul %41, %0, %cst_45 {dimension_numbers = #tpu.dot_dimension_numbers<[1], [0], [0], [1], [0, 0, 1, 1], [], []>} : vector<1x256xf32>, vector<256x32xf32>, vector<1x32xf32> -> vector<1x32xf32>
        %cst_46 = arith.constant 0.001953125 : f32
        %44 = vector.broadcast %cst_46 : f32 to vector<1x32xf32>
        %45 = arith.mulf %42, %44 : vector<1x32xf32>
        %cst_47 = arith.constant 0.001953125 : f32
        %46 = vector.broadcast %cst_47 : f32 to vector<1x32xf32>
        %47 = arith.mulf %43, %46 : vector<1x32xf32>
        %48 = arith.mulf %45, %45 : vector<1x32xf32>
        %49 = arith.subf %47, %48 : vector<1x32xf32>
        %cst_48 = arith.constant 0.000000e+00 : f32
        %50 = vector.broadcast %cst_48 : f32 to vector<1x32xf32>
        %51 = arith.maximumf %49, %50 : vector<1x32xf32>
        %cst_49 = arith.constant dense<0.000000e+00> : vector<1x256xf32>
        %52 = tpu.matmul %45, %0, %cst_49 {dimension_numbers = #tpu.dot_dimension_numbers<[1], [1], [0], [0], [0, 0, 1, 0], [], []>} : vector<1x32xf32>, vector<256x32xf32>, vector<1x256xf32> -> vector<1x256xf32>
        %cst_50 = arith.constant dense<0.000000e+00> : vector<1x256xf32>
        %53 = tpu.matmul %51, %0, %cst_50 {dimension_numbers = #tpu.dot_dimension_numbers<[1], [1], [0], [0], [0, 0, 1, 0], [], []>} : vector<1x32xf32>, vector<256x32xf32>, vector<1x256xf32> -> vector<1x256xf32>
        %54 = vector.broadcast %52 : vector<1x256xf32> to vector<64x256xf32>
        %55 = arith.subf %32, %54 : vector<64x256xf32>
        %cst_51 = arith.constant 9.99999974E-6 : f32
        %56 = vector.broadcast %cst_51 : f32 to vector<1x256xf32>
        %57 = arith.addf %53, %56 : vector<1x256xf32>
        %58 = math.rsqrt %57 : vector<1x256xf32>
        %59 = vector.broadcast %58 : vector<1x256xf32> to vector<64x256xf32>
        %60 = arith.mulf %55, %59 : vector<64x256xf32>
        %61 = vector.broadcast %34 : vector<1x256xf32> to vector<64x256xf32>
        %62 = arith.mulf %60, %61 : vector<64x256xf32>
        %63 = vector.broadcast %36 : vector<1x256xf32> to vector<64x256xf32>
        %64 = arith.addf %62, %63 : vector<64x256xf32>
        %65 = arith.negf %64 : vector<64x256xf32>
        %66 = math.exp %65 : vector<64x256xf32>
        %cst_52 = arith.constant 1.000000e+00 : f32
        %67 = vector.broadcast %cst_52 : f32 to vector<64x256xf32>
        %68 = arith.addf %67, %66 : vector<64x256xf32>
        %69 = arith.divf %67, %68 : vector<64x256xf32>
        %70 = arith.mulf %64, %69 : vector<64x256xf32>
        %71 = vector.shape_cast %70 : vector<64x256xf32> to vector<8x8x256xf32>
        %c0_53 = arith.constant 0 : index
        %c1 = arith.constant 1 : index
        %c1_54 = arith.constant 1 : index
        %c0_55 = arith.constant 0 : index
        %72 = vector.load %arg11[%c0_53, %c1, %c1_54, %c0_55] : memref<2x10x10x256xf32, #tpu.memory_space<vmem>>, vector<1x8x8x256xf32>
        %73 = vector.shape_cast %72 : vector<1x8x8x256xf32> to vector<8x8x256xf32>
        %74 = vector.shape_cast %71 : vector<8x8x256xf32> to vector<1x8x8x256xf32>
        tpu.vector_store %arg11[%c0_53, %c1, %c1_54, %c0_55], %74 {strides = array<i32>} : memref<2x10x10x256xf32, #tpu.memory_space<vmem>>, vector<1x8x8x256xf32>,
        %75 = vector.extract_strided_slice %31 {offsets = [64, 0], sizes = [64, 256], strides = [1, 1]} : vector<128x256xf32> to vector<64x256xf32>
        %c0_56 = arith.constant 0 : index
        %c0_57 = arith.constant 0 : index
        %c0_58 = arith.constant 0 : index
        %76 = vector.load %arg5[%c0_56, %c0_57, %c0_58] : memref<1x1x256xf32, #tpu.memory_space<vmem>>, vector<1x1x256xf32>
        %77 = vector.shape_cast %76 : vector<1x1x256xf32> to vector<1x256xf32>
        %c0_59 = arith.constant 0 : index
        %c0_60 = arith.constant 0 : index
        %c0_61 = arith.constant 0 : index
        %78 = vector.load %arg6[%c0_59, %c0_60, %c0_61] : memref<1x1x256xf32, #tpu.memory_space<vmem>>, vector<1x1x256xf32>
        %79 = vector.shape_cast %78 : vector<1x1x256xf32> to vector<1x256xf32>
        %cst_62 = arith.constant dense<0.000000e+00> : vector<256xf32>
        %80 = vector.multi_reduction <add>, %75, %cst_62 [0] : vector<64x256xf32> to vector<256xf32>
        %81 = vector.shape_cast %80 : vector<256xf32> to vector<1x256xf32>
        %82 = arith.mulf %75, %75 : vector<64x256xf32>
        %cst_63 = arith.constant dense<0.000000e+00> : vector<256xf32>
        %83 = vector.multi_reduction <add>, %82, %cst_63 [0] : vector<64x256xf32> to vector<256xf32>
        %84 = vector.shape_cast %83 : vector<256xf32> to vector<1x256xf32>
        %cst_64 = arith.constant dense<0.000000e+00> : vector<1x32xf32>
        %85 = tpu.matmul %81, %0, %cst_64 {dimension_numbers = #tpu.dot_dimension_numbers<[1], [0], [0], [1], [0, 0, 1, 1], [], []>} : vector<1x256xf32>, vector<256x32xf32>, vector<1x32xf32> -> vector<1x32xf32>
        %cst_65 = arith.constant dense<0.000000e+00> : vector<1x32xf32>
        %86 = tpu.matmul %84, %0, %cst_65 {dimension_numbers = #tpu.dot_dimension_numbers<[1], [0], [0], [1], [0, 0, 1, 1], [], []>} : vector<1x256xf32>, vector<256x32xf32>, vector<1x32xf32> -> vector<1x32xf32>
        %cst_66 = arith.constant 0.001953125 : f32
        %87 = vector.broadcast %cst_66 : f32 to vector<1x32xf32>
        %88 = arith.mulf %85, %87 : vector<1x32xf32>
        %cst_67 = arith.constant 0.001953125 : f32
        %89 = vector.broadcast %cst_67 : f32 to vector<1x32xf32>
        %90 = arith.mulf %86, %89 : vector<1x32xf32>
        %91 = arith.mulf %88, %88 : vector<1x32xf32>
        %92 = arith.subf %90, %91 : vector<1x32xf32>
        %cst_68 = arith.constant 0.000000e+00 : f32
        %93 = vector.broadcast %cst_68 : f32 to vector<1x32xf32>
        %94 = arith.maximumf %92, %93 : vector<1x32xf32>
        %cst_69 = arith.constant dense<0.000000e+00> : vector<1x256xf32>
        %95 = tpu.matmul %88, %0, %cst_69 {dimension_numbers = #tpu.dot_dimension_numbers<[1], [1], [0], [0], [0, 0, 1, 0], [], []>} : vector<1x32xf32>, vector<256x32xf32>, vector<1x256xf32> -> vector<1x256xf32>
        %cst_70 = arith.constant dense<0.000000e+00> : vector<1x256xf32>
        %96 = tpu.matmul %94, %0, %cst_70 {dimension_numbers = #tpu.dot_dimension_numbers<[1], [1], [0], [0], [0, 0, 1, 0], [], []>} : vector<1x32xf32>, vector<256x32xf32>, vector<1x256xf32> -> vector<1x256xf32>
        %97 = vector.broadcast %95 : vector<1x256xf32> to vector<64x256xf32>
        %98 = arith.subf %75, %97 : vector<64x256xf32>
        %cst_71 = arith.constant 9.99999974E-6 : f32
        %99 = vector.broadcast %cst_71 : f32 to vector<1x256xf32>
        %100 = arith.addf %96, %99 : vector<1x256xf32>
        %101 = math.rsqrt %100 : vector<1x256xf32>
        %102 = vector.broadcast %101 : vector<1x256xf32> to vector<64x256xf32>
        %103 = arith.mulf %98, %102 : vector<64x256xf32>
        %104 = vector.broadcast %77 : vector<1x256xf32> to vector<64x256xf32>
        %105 = arith.mulf %103, %104 : vector<64x256xf32>
        %106 = vector.broadcast %79 : vector<1x256xf32> to vector<64x256xf32>
        %107 = arith.addf %105, %106 : vector<64x256xf32>
        %108 = arith.negf %107 : vector<64x256xf32>
        %109 = math.exp %108 : vector<64x256xf32>
        %cst_72 = arith.constant 1.000000e+00 : f32
        %110 = vector.broadcast %cst_72 : f32 to vector<64x256xf32>
        %111 = arith.addf %110, %109 : vector<64x256xf32>
        %112 = arith.divf %110, %111 : vector<64x256xf32>
        %113 = arith.mulf %107, %112 : vector<64x256xf32>
        %114 = vector.shape_cast %113 : vector<64x256xf32> to vector<8x8x256xf32>
        %c1_73 = arith.constant 1 : index
        %c1_74 = arith.constant 1 : index
        %c1_75 = arith.constant 1 : index
        %c0_76 = arith.constant 0 : index
        %115 = vector.load %arg11[%c1_73, %c1_74, %c1_75, %c0_76] : memref<2x10x10x256xf32, #tpu.memory_space<vmem>>, vector<1x8x8x256xf32>
        %116 = vector.shape_cast %115 : vector<1x8x8x256xf32> to vector<8x8x256xf32>
        %117 = vector.shape_cast %114 : vector<8x8x256xf32> to vector<1x8x8x256xf32>
        tpu.vector_store %arg11[%c1_73, %c1_74, %c1_75, %c0_76], %117 {strides = array<i32>} : memref<2x10x10x256xf32, #tpu.memory_space<vmem>>, vector<1x8x8x256xf32>,
        %c0_77 = arith.constant 0 : index
        %c0_78 = arith.constant 0 : index
        %c0_79 = arith.constant 0 : index
        %c0_80 = arith.constant 0 : index
        %118 = vector.load %arg11[%c0_77, %c0_78, %c0_79, %c0_80] : memref<2x10x10x256xf32, #tpu.memory_space<vmem>>, vector<1x8x8x256xf32>
        %119 = vector.shape_cast %118 : vector<1x8x8x256xf32> to vector<8x8x256xf32>
        %120 = vector.shape_cast %119 : vector<8x8x256xf32> to vector<64x256xf32>
        %121 = arith.truncf %120 : vector<64x256xf32> to vector<64x256xbf16>
        %c0_81 = arith.constant 0 : index
        %c0_82 = arith.constant 0 : index
        %122 = vector.load %arg12[%c0_81, %c0_82] : memref<128x2304xbf16, #tpu.memory_space<vmem>>, vector<64x256xbf16>
        tpu.vector_store %arg12[%c0_81, %c0_82], %121 {strides = array<i32>} : memref<128x2304xbf16, #tpu.memory_space<vmem>>, vector<64x256xbf16>,
        %c0_83 = arith.constant 0 : index
        %c0_84 = arith.constant 0 : index
        %c1_85 = arith.constant 1 : index
        %c0_86 = arith.constant 0 : index
        %123 = vector.load %arg11[%c0_83, %c0_84, %c1_85, %c0_86] : memref<2x10x10x256xf32, #tpu.memory_space<vmem>>, vector<1x8x8x256xf32>
        %124 = vector.shape_cast %123 : vector<1x8x8x256xf32> to vector<8x8x256xf32>
        %125 = vector.shape_cast %124 : vector<8x8x256xf32> to vector<64x256xf32>
        %126 = arith.truncf %125 : vector<64x256xf32> to vector<64x256xbf16>
        %c0_87 = arith.constant 0 : index
        %c256 = arith.constant 256 : index
        %127 = vector.load %arg12[%c0_87, %c256] : memref<128x2304xbf16, #tpu.memory_space<vmem>>, vector<64x256xbf16>
        tpu.vector_store %arg12[%c0_87, %c256], %126 {strides = array<i32>} : memref<128x2304xbf16, #tpu.memory_space<vmem>>, vector<64x256xbf16>,
        %c0_88 = arith.constant 0 : index
        %c0_89 = arith.constant 0 : index
        %c2 = arith.constant 2 : index
        %c0_90 = arith.constant 0 : index
        %128 = vector.load %arg11[%c0_88, %c0_89, %c2, %c0_90] : memref<2x10x10x256xf32, #tpu.memory_space<vmem>>, vector<1x8x8x256xf32>
        %129 = vector.shape_cast %128 : vector<1x8x8x256xf32> to vector<8x8x256xf32>
        %130 = vector.shape_cast %129 : vector<8x8x256xf32> to vector<64x256xf32>
        %131 = arith.truncf %130 : vector<64x256xf32> to vector<64x256xbf16>
        %c0_91 = arith.constant 0 : index
        %c512 = arith.constant 512 : index
        %132 = vector.load %arg12[%c0_91, %c512] : memref<128x2304xbf16, #tpu.memory_space<vmem>>, vector<64x256xbf16>
        tpu.vector_store %arg12[%c0_91, %c512], %131 {strides = array<i32>} : memref<128x2304xbf16, #tpu.memory_space<vmem>>, vector<64x256xbf16>,
        %c0_92 = arith.constant 0 : index
        %c1_93 = arith.constant 1 : index
        %c0_94 = arith.constant 0 : index
        %c0_95 = arith.constant 0 : index
        %133 = vector.load %arg11[%c0_92, %c1_93, %c0_94, %c0_95] : memref<2x10x10x256xf32, #tpu.memory_space<vmem>>, vector<1x8x8x256xf32>
        %134 = vector.shape_cast %133 : vector<1x8x8x256xf32> to vector<8x8x256xf32>
        %135 = vector.shape_cast %134 : vector<8x8x256xf32> to vector<64x256xf32>
        %136 = arith.truncf %135 : vector<64x256xf32> to vector<64x256xbf16>
        %c0_96 = arith.constant 0 : index
        %c768 = arith.constant 768 : index
        %137 = vector.load %arg12[%c0_96, %c768] : memref<128x2304xbf16, #tpu.memory_space<vmem>>, vector<64x256xbf16>
        tpu.vector_store %arg12[%c0_96, %c768], %136 {strides = array<i32>} : memref<128x2304xbf16, #tpu.memory_space<vmem>>, vector<64x256xbf16>,
        %c0_97 = arith.constant 0 : index
        %c1_98 = arith.constant 1 : index
        %c1_99 = arith.constant 1 : index
        %c0_100 = arith.constant 0 : index
        %138 = vector.load %arg11[%c0_97, %c1_98, %c1_99, %c0_100] : memref<2x10x10x256xf32, #tpu.memory_space<vmem>>, vector<1x8x8x256xf32>
        %139 = vector.shape_cast %138 : vector<1x8x8x256xf32> to vector<8x8x256xf32>
        %140 = vector.shape_cast %139 : vector<8x8x256xf32> to vector<64x256xf32>
        %141 = arith.truncf %140 : vector<64x256xf32> to vector<64x256xbf16>
        %c0_101 = arith.constant 0 : index
        %c1024 = arith.constant 1024 : index
        %142 = vector.load %arg12[%c0_101, %c1024] : memref<128x2304xbf16, #tpu.memory_space<vmem>>, vector<64x256xbf16>
        tpu.vector_store %arg12[%c0_101, %c1024], %141 {strides = array<i32>} : memref<128x2304xbf16, #tpu.memory_space<vmem>>, vector<64x256xbf16>,
        %c0_102 = arith.constant 0 : index
        %c1_103 = arith.constant 1 : index
        %c2_104 = arith.constant 2 : index
        %c0_105 = arith.constant 0 : index
        %143 = vector.load %arg11[%c0_102, %c1_103, %c2_104, %c0_105] : memref<2x10x10x256xf32, #tpu.memory_space<vmem>>, vector<1x8x8x256xf32>
        %144 = vector.shape_cast %143 : vector<1x8x8x256xf32> to vector<8x8x256xf32>
        %145 = vector.shape_cast %144 : vector<8x8x256xf32> to vector<64x256xf32>
        %146 = arith.truncf %145 : vector<64x256xf32> to vector<64x256xbf16>
        %c0_106 = arith.constant 0 : index
        %c1280 = arith.constant 1280 : index
        %147 = vector.load %arg12[%c0_106, %c1280] : memref<128x2304xbf16, #tpu.memory_space<vmem>>, vector<64x256xbf16>
        tpu.vector_store %arg12[%c0_106, %c1280], %146 {strides = array<i32>} : memref<128x2304xbf16, #tpu.memory_space<vmem>>, vector<64x256xbf16>,
        %c0_107 = arith.constant 0 : index
        %c2_108 = arith.constant 2 : index
        %c0_109 = arith.constant 0 : index
        %c0_110 = arith.constant 0 : index
        %148 = vector.load %arg11[%c0_107, %c2_108, %c0_109, %c0_110] : memref<2x10x10x256xf32, #tpu.memory_space<vmem>>, vector<1x8x8x256xf32>
        %149 = vector.shape_cast %148 : vector<1x8x8x256xf32> to vector<8x8x256xf32>
        %150 = vector.shape_cast %149 : vector<8x8x256xf32> to vector<64x256xf32>
        %151 = arith.truncf %150 : vector<64x256xf32> to vector<64x256xbf16>
        %c0_111 = arith.constant 0 : index
        %c1536 = arith.constant 1536 : index
        %152 = vector.load %arg12[%c0_111, %c1536] : memref<128x2304xbf16, #tpu.memory_space<vmem>>, vector<64x256xbf16>
        tpu.vector_store %arg12[%c0_111, %c1536], %151 {strides = array<i32>} : memref<128x2304xbf16, #tpu.memory_space<vmem>>, vector<64x256xbf16>,
        %c0_112 = arith.constant 0 : index
        %c2_113 = arith.constant 2 : index
        %c1_114 = arith.constant 1 : index
        %c0_115 = arith.constant 0 : index
        %153 = vector.load %arg11[%c0_112, %c2_113, %c1_114, %c0_115] : memref<2x10x10x256xf32, #tpu.memory_space<vmem>>, vector<1x8x8x256xf32>
        %154 = vector.shape_cast %153 : vector<1x8x8x256xf32> to vector<8x8x256xf32>
        %155 = vector.shape_cast %154 : vector<8x8x256xf32> to vector<64x256xf32>
        %156 = arith.truncf %155 : vector<64x256xf32> to vector<64x256xbf16>
        %c0_116 = arith.constant 0 : index
        %c1792 = arith.constant 1792 : index
        %157 = vector.load %arg12[%c0_116, %c1792] : memref<128x2304xbf16, #tpu.memory_space<vmem>>, vector<64x256xbf16>
        tpu.vector_store %arg12[%c0_116, %c1792], %156 {strides = array<i32>} : memref<128x2304xbf16, #tpu.memory_space<vmem>>, vector<64x256xbf16>,
        %c0_117 = arith.constant 0 : index
        %c2_118 = arith.constant 2 : index
        %c2_119 = arith.constant 2 : index
        %c0_120 = arith.constant 0 : index
        %158 = vector.load %arg11[%c0_117, %c2_118, %c2_119, %c0_120] : memref<2x10x10x256xf32, #tpu.memory_space<vmem>>, vector<1x8x8x256xf32>
        %159 = vector.shape_cast %158 : vector<1x8x8x256xf32> to vector<8x8x256xf32>
        %160 = vector.shape_cast %159 : vector<8x8x256xf32> to vector<64x256xf32>
        %161 = arith.truncf %160 : vector<64x256xf32> to vector<64x256xbf16>
        %c0_121 = arith.constant 0 : index
        %c2048 = arith.constant 2048 : index
        %162 = vector.load %arg12[%c0_121, %c2048] : memref<128x2304xbf16, #tpu.memory_space<vmem>>, vector<64x256xbf16>
        tpu.vector_store %arg12[%c0_121, %c2048], %161 {strides = array<i32>} : memref<128x2304xbf16, #tpu.memory_space<vmem>>, vector<64x256xbf16>,
        %c1_122 = arith.constant 1 : index
        %c0_123 = arith.constant 0 : index
        %c0_124 = arith.constant 0 : index
        %c0_125 = arith.constant 0 : index
        %163 = vector.load %arg11[%c1_122, %c0_123, %c0_124, %c0_125] : memref<2x10x10x256xf32, #tpu.memory_space<vmem>>, vector<1x8x8x256xf32>
        %164 = vector.shape_cast %163 : vector<1x8x8x256xf32> to vector<8x8x256xf32>
        %165 = vector.shape_cast %164 : vector<8x8x256xf32> to vector<64x256xf32>
        %166 = arith.truncf %165 : vector<64x256xf32> to vector<64x256xbf16>
        %c64 = arith.constant 64 : index
        %c0_126 = arith.constant 0 : index
        %167 = vector.load %arg12[%c64, %c0_126] : memref<128x2304xbf16, #tpu.memory_space<vmem>>, vector<64x256xbf16>
        tpu.vector_store %arg12[%c64, %c0_126], %166 {strides = array<i32>} : memref<128x2304xbf16, #tpu.memory_space<vmem>>, vector<64x256xbf16>,
        %c1_127 = arith.constant 1 : index
        %c0_128 = arith.constant 0 : index
        %c1_129 = arith.constant 1 : index
        %c0_130 = arith.constant 0 : index
        %168 = vector.load %arg11[%c1_127, %c0_128, %c1_129, %c0_130] : memref<2x10x10x256xf32, #tpu.memory_space<vmem>>, vector<1x8x8x256xf32>
        %169 = vector.shape_cast %168 : vector<1x8x8x256xf32> to vector<8x8x256xf32>
        %170 = vector.shape_cast %169 : vector<8x8x256xf32> to vector<64x256xf32>
        %171 = arith.truncf %170 : vector<64x256xf32> to vector<64x256xbf16>
        %c64_131 = arith.constant 64 : index
        %c256_132 = arith.constant 256 : index
        %172 = vector.load %arg12[%c64_131, %c256_132] : memref<128x2304xbf16, #tpu.memory_space<vmem>>, vector<64x256xbf16>
        tpu.vector_store %arg12[%c64_131, %c256_132], %171 {strides = array<i32>} : memref<128x2304xbf16, #tpu.memory_space<vmem>>, vector<64x256xbf16>,
        %c1_133 = arith.constant 1 : index
        %c0_134 = arith.constant 0 : index
        %c2_135 = arith.constant 2 : index
        %c0_136 = arith.constant 0 : index
        %173 = vector.load %arg11[%c1_133, %c0_134, %c2_135, %c0_136] : memref<2x10x10x256xf32, #tpu.memory_space<vmem>>, vector<1x8x8x256xf32>
        %174 = vector.shape_cast %173 : vector<1x8x8x256xf32> to vector<8x8x256xf32>
        %175 = vector.shape_cast %174 : vector<8x8x256xf32> to vector<64x256xf32>
        %176 = arith.truncf %175 : vector<64x256xf32> to vector<64x256xbf16>
        %c64_137 = arith.constant 64 : index
        %c512_138 = arith.constant 512 : index
        %177 = vector.load %arg12[%c64_137, %c512_138] : memref<128x2304xbf16, #tpu.memory_space<vmem>>, vector<64x256xbf16>
        tpu.vector_store %arg12[%c64_137, %c512_138], %176 {strides = array<i32>} : memref<128x2304xbf16, #tpu.memory_space<vmem>>, vector<64x256xbf16>,
        %c1_139 = arith.constant 1 : index
        %c1_140 = arith.constant 1 : index
        %c0_141 = arith.constant 0 : index
        %c0_142 = arith.constant 0 : index
        %178 = vector.load %arg11[%c1_139, %c1_140, %c0_141, %c0_142] : memref<2x10x10x256xf32, #tpu.memory_space<vmem>>, vector<1x8x8x256xf32>
        %179 = vector.shape_cast %178 : vector<1x8x8x256xf32> to vector<8x8x256xf32>
        %180 = vector.shape_cast %179 : vector<8x8x256xf32> to vector<64x256xf32>
        %181 = arith.truncf %180 : vector<64x256xf32> to vector<64x256xbf16>
        %c64_143 = arith.constant 64 : index
        %c768_144 = arith.constant 768 : index
        %182 = vector.load %arg12[%c64_143, %c768_144] : memref<128x2304xbf16, #tpu.memory_space<vmem>>, vector<64x256xbf16>
        tpu.vector_store %arg12[%c64_143, %c768_144], %181 {strides = array<i32>} : memref<128x2304xbf16, #tpu.memory_space<vmem>>, vector<64x256xbf16>,
        %c1_145 = arith.constant 1 : index
        %c1_146 = arith.constant 1 : index
        %c1_147 = arith.constant 1 : index
        %c0_148 = arith.constant 0 : index
        %183 = vector.load %arg11[%c1_145, %c1_146, %c1_147, %c0_148] : memref<2x10x10x256xf32, #tpu.memory_space<vmem>>, vector<1x8x8x256xf32>
        %184 = vector.shape_cast %183 : vector<1x8x8x256xf32> to vector<8x8x256xf32>
        %185 = vector.shape_cast %184 : vector<8x8x256xf32> to vector<64x256xf32>
        %186 = arith.truncf %185 : vector<64x256xf32> to vector<64x256xbf16>
        %c64_149 = arith.constant 64 : index
        %c1024_150 = arith.constant 1024 : index
        %187 = vector.load %arg12[%c64_149, %c1024_150] : memref<128x2304xbf16, #tpu.memory_space<vmem>>, vector<64x256xbf16>
        tpu.vector_store %arg12[%c64_149, %c1024_150], %186 {strides = array<i32>} : memref<128x2304xbf16, #tpu.memory_space<vmem>>, vector<64x256xbf16>,
        %c1_151 = arith.constant 1 : index
        %c1_152 = arith.constant 1 : index
        %c2_153 = arith.constant 2 : index
        %c0_154 = arith.constant 0 : index
        %188 = vector.load %arg11[%c1_151, %c1_152, %c2_153, %c0_154] : memref<2x10x10x256xf32, #tpu.memory_space<vmem>>, vector<1x8x8x256xf32>
        %189 = vector.shape_cast %188 : vector<1x8x8x256xf32> to vector<8x8x256xf32>
        %190 = vector.shape_cast %189 : vector<8x8x256xf32> to vector<64x256xf32>
        %191 = arith.truncf %190 : vector<64x256xf32> to vector<64x256xbf16>
        %c64_155 = arith.constant 64 : index
        %c1280_156 = arith.constant 1280 : index
        %192 = vector.load %arg12[%c64_155, %c1280_156] : memref<128x2304xbf16, #tpu.memory_space<vmem>>, vector<64x256xbf16>
        tpu.vector_store %arg12[%c64_155, %c1280_156], %191 {strides = array<i32>} : memref<128x2304xbf16, #tpu.memory_space<vmem>>, vector<64x256xbf16>,
        %c1_157 = arith.constant 1 : index
        %c2_158 = arith.constant 2 : index
        %c0_159 = arith.constant 0 : index
        %c0_160 = arith.constant 0 : index
        %193 = vector.load %arg11[%c1_157, %c2_158, %c0_159, %c0_160] : memref<2x10x10x256xf32, #tpu.memory_space<vmem>>, vector<1x8x8x256xf32>
        %194 = vector.shape_cast %193 : vector<1x8x8x256xf32> to vector<8x8x256xf32>
        %195 = vector.shape_cast %194 : vector<8x8x256xf32> to vector<64x256xf32>
        %196 = arith.truncf %195 : vector<64x256xf32> to vector<64x256xbf16>
        %c64_161 = arith.constant 64 : index
        %c1536_162 = arith.constant 1536 : index
        %197 = vector.load %arg12[%c64_161, %c1536_162] : memref<128x2304xbf16, #tpu.memory_space<vmem>>, vector<64x256xbf16>
        tpu.vector_store %arg12[%c64_161, %c1536_162], %196 {strides = array<i32>} : memref<128x2304xbf16, #tpu.memory_space<vmem>>, vector<64x256xbf16>,
        %c1_163 = arith.constant 1 : index
        %c2_164 = arith.constant 2 : index
        %c1_165 = arith.constant 1 : index
        %c0_166 = arith.constant 0 : index
        %198 = vector.load %arg11[%c1_163, %c2_164, %c1_165, %c0_166] : memref<2x10x10x256xf32, #tpu.memory_space<vmem>>, vector<1x8x8x256xf32>
        %199 = vector.shape_cast %198 : vector<1x8x8x256xf32> to vector<8x8x256xf32>
        %200 = vector.shape_cast %199 : vector<8x8x256xf32> to vector<64x256xf32>
        %201 = arith.truncf %200 : vector<64x256xf32> to vector<64x256xbf16>
        %c64_167 = arith.constant 64 : index
        %c1792_168 = arith.constant 1792 : index
        %202 = vector.load %arg12[%c64_167, %c1792_168] : memref<128x2304xbf16, #tpu.memory_space<vmem>>, vector<64x256xbf16>
        tpu.vector_store %arg12[%c64_167, %c1792_168], %201 {strides = array<i32>} : memref<128x2304xbf16, #tpu.memory_space<vmem>>, vector<64x256xbf16>,
        %c1_169 = arith.constant 1 : index
        %c2_170 = arith.constant 2 : index
        %c2_171 = arith.constant 2 : index
        %c0_172 = arith.constant 0 : index
        %203 = vector.load %arg11[%c1_169, %c2_170, %c2_171, %c0_172] : memref<2x10x10x256xf32, #tpu.memory_space<vmem>>, vector<1x8x8x256xf32>
        %204 = vector.shape_cast %203 : vector<1x8x8x256xf32> to vector<8x8x256xf32>
        %205 = vector.shape_cast %204 : vector<8x8x256xf32> to vector<64x256xf32>
        %206 = arith.truncf %205 : vector<64x256xf32> to vector<64x256xbf16>
        %c64_173 = arith.constant 64 : index
        %c2048_174 = arith.constant 2048 : index
        %207 = vector.load %arg12[%c64_173, %c2048_174] : memref<128x2304xbf16, #tpu.memory_space<vmem>>, vector<64x256xbf16>
        tpu.vector_store %arg12[%c64_173, %c2048_174], %206 {strides = array<i32>} : memref<128x2304xbf16, #tpu.memory_space<vmem>>, vector<64x256xbf16>,
      } else {
      }
      %c1_i32_15 = arith.constant 1 : i32
      %22 = arith.cmpi eq, %arg0, %c1_i32_15 : i32
      %23 = arith.extui %22 : i1 to i32
      %c0_i32_16 = arith.constant 0 : i32
      %24 = arith.cmpi ne, %23, %c0_i32_16 : i32
      scf.if %24 {
        %c0_17 = arith.constant 0 : index
        %c0_18 = arith.constant 0 : index
        %c0_19 = arith.constant 0 : index
        %25 = vector.load %arg13[%c0_17, %c0_18, %c0_19] : memref<2x128x128xf32, #tpu.memory_space<vmem>>, vector<1x128x128xf32>
        %26 = vector.shape_cast %25 : vector<1x128x128xf32> to vector<128x128xf32>
        %c1 = arith.constant 1 : index
        %c0_20 = arith.constant 0 : index
        %c0_21 = arith.constant 0 : index
        %27 = vector.load %arg13[%c1, %c0_20, %c0_21] : memref<2x128x128xf32, #tpu.memory_space<vmem>>, vector<1x128x128xf32>
        %28 = vector.shape_cast %27 : vector<1x128x128xf32> to vector<128x128xf32>
        %29 = tpu.concatenate %26, %28 in 1 : vector<128x128xf32>, vector<128x128xf32> -> vector<128x256xf32>
        %30 = vector.extract_strided_slice %29 {offsets = [0, 0], sizes = [64, 256], strides = [1, 1]} : vector<128x256xf32> to vector<64x256xf32>
        %c0_22 = arith.constant 0 : index
        %c0_23 = arith.constant 0 : index
        %c0_24 = arith.constant 0 : index
        %31 = vector.load %arg5[%c0_22, %c0_23, %c0_24] : memref<1x1x256xf32, #tpu.memory_space<vmem>>, vector<1x1x256xf32>
        %32 = vector.shape_cast %31 : vector<1x1x256xf32> to vector<1x256xf32>
        %c0_25 = arith.constant 0 : index
        %c0_26 = arith.constant 0 : index
        %c0_27 = arith.constant 0 : index
        %33 = vector.load %arg6[%c0_25, %c0_26, %c0_27] : memref<1x1x256xf32, #tpu.memory_space<vmem>>, vector<1x1x256xf32>
        %34 = vector.shape_cast %33 : vector<1x1x256xf32> to vector<1x256xf32>
        %cst_28 = arith.constant dense<0.000000e+00> : vector<256xf32>
        %35 = vector.multi_reduction <add>, %30, %cst_28 [0] : vector<64x256xf32> to vector<256xf32>
        %36 = vector.shape_cast %35 : vector<256xf32> to vector<1x256xf32>
        %37 = arith.mulf %30, %30 : vector<64x256xf32>
        %cst_29 = arith.constant dense<0.000000e+00> : vector<256xf32>
        %38 = vector.multi_reduction <add>, %37, %cst_29 [0] : vector<64x256xf32> to vector<256xf32>
        %39 = vector.shape_cast %38 : vector<256xf32> to vector<1x256xf32>
        %cst_30 = arith.constant dense<0.000000e+00> : vector<1x32xf32>
        %40 = tpu.matmul %36, %0, %cst_30 {dimension_numbers = #tpu.dot_dimension_numbers<[1], [0], [0], [1], [0, 0, 1, 1], [], []>} : vector<1x256xf32>, vector<256x32xf32>, vector<1x32xf32> -> vector<1x32xf32>
        %cst_31 = arith.constant dense<0.000000e+00> : vector<1x32xf32>
        %41 = tpu.matmul %39, %0, %cst_31 {dimension_numbers = #tpu.dot_dimension_numbers<[1], [0], [0], [1], [0, 0, 1, 1], [], []>} : vector<1x256xf32>, vector<256x32xf32>, vector<1x32xf32> -> vector<1x32xf32>
        %cst_32 = arith.constant 0.001953125 : f32
        %42 = vector.broadcast %cst_32 : f32 to vector<1x32xf32>
        %43 = arith.mulf %40, %42 : vector<1x32xf32>
        %cst_33 = arith.constant 0.001953125 : f32
        %44 = vector.broadcast %cst_33 : f32 to vector<1x32xf32>
        %45 = arith.mulf %41, %44 : vector<1x32xf32>
        %46 = arith.mulf %43, %43 : vector<1x32xf32>
        %47 = arith.subf %45, %46 : vector<1x32xf32>
        %cst_34 = arith.constant 0.000000e+00 : f32
        %48 = vector.broadcast %cst_34 : f32 to vector<1x32xf32>
        %49 = arith.maximumf %47, %48 : vector<1x32xf32>
        %cst_35 = arith.constant dense<0.000000e+00> : vector<1x256xf32>
        %50 = tpu.matmul %43, %0, %cst_35 {dimension_numbers = #tpu.dot_dimension_numbers<[1], [1], [0], [0], [0, 0, 1, 0], [], []>} : vector<1x32xf32>, vector<256x32xf32>, vector<1x256xf32> -> vector<1x256xf32>
        %cst_36 = arith.constant dense<0.000000e+00> : vector<1x256xf32>
        %51 = tpu.matmul %49, %0, %cst_36 {dimension_numbers = #tpu.dot_dimension_numbers<[1], [1], [0], [0], [0, 0, 1, 0], [], []>} : vector<1x32xf32>, vector<256x32xf32>, vector<1x256xf32> -> vector<1x256xf32>
        %52 = vector.broadcast %50 : vector<1x256xf32> to vector<64x256xf32>
        %53 = arith.subf %30, %52 : vector<64x256xf32>
        %cst_37 = arith.constant 9.99999974E-6 : f32
        %54 = vector.broadcast %cst_37 : f32 to vector<1x256xf32>
        %55 = arith.addf %51, %54 : vector<1x256xf32>
        %56 = math.rsqrt %55 : vector<1x256xf32>
        %57 = vector.broadcast %56 : vector<1x256xf32> to vector<64x256xf32>
        %58 = arith.mulf %53, %57 : vector<64x256xf32>
        %59 = vector.broadcast %32 : vector<1x256xf32> to vector<64x256xf32>
        %60 = arith.mulf %58, %59 : vector<64x256xf32>
        %61 = vector.broadcast %34 : vector<1x256xf32> to vector<64x256xf32>
        %62 = arith.addf %60, %61 : vector<64x256xf32>
        %63 = arith.negf %62 : vector<64x256xf32>
        %64 = math.exp %63 : vector<64x256xf32>
        %cst_38 = arith.constant 1.000000e+00 : f32
        %65 = vector.broadcast %cst_38 : f32 to vector<64x256xf32>
        %66 = arith.addf %65, %64 : vector<64x256xf32>
        %67 = arith.divf %65, %66 : vector<64x256xf32>
        %68 = arith.mulf %62, %67 : vector<64x256xf32>
        %69 = vector.shape_cast %68 : vector<64x256xf32> to vector<8x8x256xf32>
        %c0_39 = arith.constant 0 : index
        %c1_40 = arith.constant 1 : index
        %c1_41 = arith.constant 1 : index
        %c0_42 = arith.constant 0 : index
        %70 = vector.load %arg11[%c0_39, %c1_40, %c1_41, %c0_42] : memref<2x10x10x256xf32, #tpu.memory_space<vmem>>, vector<1x8x8x256xf32>
        %71 = vector.shape_cast %70 : vector<1x8x8x256xf32> to vector<8x8x256xf32>
        %72 = vector.shape_cast %69 : vector<8x8x256xf32> to vector<1x8x8x256xf32>
        tpu.vector_store %arg11[%c0_39, %c1_40, %c1_41, %c0_42], %72 {strides = array<i32>} : memref<2x10x10x256xf32, #tpu.memory_space<vmem>>, vector<1x8x8x256xf32>,
        %73 = vector.extract_strided_slice %29 {offsets = [64, 0], sizes = [64, 256], strides = [1, 1]} : vector<128x256xf32> to vector<64x256xf32>
        %c0_43 = arith.constant 0 : index
        %c0_44 = arith.constant 0 : index
        %c0_45 = arith.constant 0 : index
        %74 = vector.load %arg5[%c0_43, %c0_44, %c0_45] : memref<1x1x256xf32, #tpu.memory_space<vmem>>, vector<1x1x256xf32>
        %75 = vector.shape_cast %74 : vector<1x1x256xf32> to vector<1x256xf32>
        %c0_46 = arith.constant 0 : index
        %c0_47 = arith.constant 0 : index
        %c0_48 = arith.constant 0 : index
        %76 = vector.load %arg6[%c0_46, %c0_47, %c0_48] : memref<1x1x256xf32, #tpu.memory_space<vmem>>, vector<1x1x256xf32>
        %77 = vector.shape_cast %76 : vector<1x1x256xf32> to vector<1x256xf32>
        %cst_49 = arith.constant dense<0.000000e+00> : vector<256xf32>
        %78 = vector.multi_reduction <add>, %73, %cst_49 [0] : vector<64x256xf32> to vector<256xf32>
        %79 = vector.shape_cast %78 : vector<256xf32> to vector<1x256xf32>
        %80 = arith.mulf %73, %73 : vector<64x256xf32>
        %cst_50 = arith.constant dense<0.000000e+00> : vector<256xf32>
        %81 = vector.multi_reduction <add>, %80, %cst_50 [0] : vector<64x256xf32> to vector<256xf32>
        %82 = vector.shape_cast %81 : vector<256xf32> to vector<1x256xf32>
        %cst_51 = arith.constant dense<0.000000e+00> : vector<1x32xf32>
        %83 = tpu.matmul %79, %0, %cst_51 {dimension_numbers = #tpu.dot_dimension_numbers<[1], [0], [0], [1], [0, 0, 1, 1], [], []>} : vector<1x256xf32>, vector<256x32xf32>, vector<1x32xf32> -> vector<1x32xf32>
        %cst_52 = arith.constant dense<0.000000e+00> : vector<1x32xf32>
        %84 = tpu.matmul %82, %0, %cst_52 {dimension_numbers = #tpu.dot_dimension_numbers<[1], [0], [0], [1], [0, 0, 1, 1], [], []>} : vector<1x256xf32>, vector<256x32xf32>, vector<1x32xf32> -> vector<1x32xf32>
        %cst_53 = arith.constant 0.001953125 : f32
        %85 = vector.broadcast %cst_53 : f32 to vector<1x32xf32>
        %86 = arith.mulf %83, %85 : vector<1x32xf32>
        %cst_54 = arith.constant 0.001953125 : f32
        %87 = vector.broadcast %cst_54 : f32 to vector<1x32xf32>
        %88 = arith.mulf %84, %87 : vector<1x32xf32>
        %89 = arith.mulf %86, %86 : vector<1x32xf32>
        %90 = arith.subf %88, %89 : vector<1x32xf32>
        %cst_55 = arith.constant 0.000000e+00 : f32
        %91 = vector.broadcast %cst_55 : f32 to vector<1x32xf32>
        %92 = arith.maximumf %90, %91 : vector<1x32xf32>
        %cst_56 = arith.constant dense<0.000000e+00> : vector<1x256xf32>
        %93 = tpu.matmul %86, %0, %cst_56 {dimension_numbers = #tpu.dot_dimension_numbers<[1], [1], [0], [0], [0, 0, 1, 0], [], []>} : vector<1x32xf32>, vector<256x32xf32>, vector<1x256xf32> -> vector<1x256xf32>
        %cst_57 = arith.constant dense<0.000000e+00> : vector<1x256xf32>
        %94 = tpu.matmul %92, %0, %cst_57 {dimension_numbers = #tpu.dot_dimension_numbers<[1], [1], [0], [0], [0, 0, 1, 0], [], []>} : vector<1x32xf32>, vector<256x32xf32>, vector<1x256xf32> -> vector<1x256xf32>
        %95 = vector.broadcast %93 : vector<1x256xf32> to vector<64x256xf32>
        %96 = arith.subf %73, %95 : vector<64x256xf32>
        %cst_58 = arith.constant 9.99999974E-6 : f32
        %97 = vector.broadcast %cst_58 : f32 to vector<1x256xf32>
        %98 = arith.addf %94, %97 : vector<1x256xf32>
        %99 = math.rsqrt %98 : vector<1x256xf32>
        %100 = vector.broadcast %99 : vector<1x256xf32> to vector<64x256xf32>
        %101 = arith.mulf %96, %100 : vector<64x256xf32>
        %102 = vector.broadcast %75 : vector<1x256xf32> to vector<64x256xf32>
        %103 = arith.mulf %101, %102 : vector<64x256xf32>
        %104 = vector.broadcast %77 : vector<1x256xf32> to vector<64x256xf32>
        %105 = arith.addf %103, %104 : vector<64x256xf32>
        %106 = arith.negf %105 : vector<64x256xf32>
        %107 = math.exp %106 : vector<64x256xf32>
        %cst_59 = arith.constant 1.000000e+00 : f32
        %108 = vector.broadcast %cst_59 : f32 to vector<64x256xf32>
        %109 = arith.addf %108, %107 : vector<64x256xf32>
        %110 = arith.divf %108, %109 : vector<64x256xf32>
        %111 = arith.mulf %105, %110 : vector<64x256xf32>
        %112 = vector.shape_cast %111 : vector<64x256xf32> to vector<8x8x256xf32>
        %c1_60 = arith.constant 1 : index
        %c1_61 = arith.constant 1 : index
        %c1_62 = arith.constant 1 : index
        %c0_63 = arith.constant 0 : index
        %113 = vector.load %arg11[%c1_60, %c1_61, %c1_62, %c0_63] : memref<2x10x10x256xf32, #tpu.memory_space<vmem>>, vector<1x8x8x256xf32>
        %114 = vector.shape_cast %113 : vector<1x8x8x256xf32> to vector<8x8x256xf32>
        %115 = vector.shape_cast %112 : vector<8x8x256xf32> to vector<1x8x8x256xf32>
        tpu.vector_store %arg11[%c1_60, %c1_61, %c1_62, %c0_63], %115 {strides = array<i32>} : memref<2x10x10x256xf32, #tpu.memory_space<vmem>>, vector<1x8x8x256xf32>,
        %c0_64 = arith.constant 0 : index
        %c0_65 = arith.constant 0 : index
        %c0_66 = arith.constant 0 : index
        %c0_67 = arith.constant 0 : index
        %116 = vector.load %arg11[%c0_64, %c0_65, %c0_66, %c0_67] : memref<2x10x10x256xf32, #tpu.memory_space<vmem>>, vector<1x8x8x256xf32>
        %117 = vector.shape_cast %116 : vector<1x8x8x256xf32> to vector<8x8x256xf32>
        %118 = vector.shape_cast %117 : vector<8x8x256xf32> to vector<64x256xf32>
        %119 = arith.truncf %118 : vector<64x256xf32> to vector<64x256xbf16>
        %c0_68 = arith.constant 0 : index
        %c0_69 = arith.constant 0 : index
        %120 = vector.load %arg12[%c0_68, %c0_69] : memref<128x2304xbf16, #tpu.memory_space<vmem>>, vector<64x256xbf16>
        tpu.vector_store %arg12[%c0_68, %c0_69], %119 {strides = array<i32>} : memref<128x2304xbf16, #tpu.memory_space<vmem>>, vector<64x256xbf16>,
        %c0_70 = arith.constant 0 : index
        %c0_71 = arith.constant 0 : index
        %c1_72 = arith.constant 1 : index
        %c0_73 = arith.constant 0 : index
        %121 = vector.load %arg11[%c0_70, %c0_71, %c1_72, %c0_73] : memref<2x10x10x256xf32, #tpu.memory_space<vmem>>, vector<1x8x8x256xf32>
        %122 = vector.shape_cast %121 : vector<1x8x8x256xf32> to vector<8x8x256xf32>
        %123 = vector.shape_cast %122 : vector<8x8x256xf32> to vector<64x256xf32>
        %124 = arith.truncf %123 : vector<64x256xf32> to vector<64x256xbf16>
        %c0_74 = arith.constant 0 : index
        %c256 = arith.constant 256 : index
        %125 = vector.load %arg12[%c0_74, %c256] : memref<128x2304xbf16, #tpu.memory_space<vmem>>, vector<64x256xbf16>
        tpu.vector_store %arg12[%c0_74, %c256], %124 {strides = array<i32>} : memref<128x2304xbf16, #tpu.memory_space<vmem>>, vector<64x256xbf16>,
        %c0_75 = arith.constant 0 : index
        %c0_76 = arith.constant 0 : index
        %c2 = arith.constant 2 : index
        %c0_77 = arith.constant 0 : index
        %126 = vector.load %arg11[%c0_75, %c0_76, %c2, %c0_77] : memref<2x10x10x256xf32, #tpu.memory_space<vmem>>, vector<1x8x8x256xf32>
        %127 = vector.shape_cast %126 : vector<1x8x8x256xf32> to vector<8x8x256xf32>
        %128 = vector.shape_cast %127 : vector<8x8x256xf32> to vector<64x256xf32>
        %129 = arith.truncf %128 : vector<64x256xf32> to vector<64x256xbf16>
        %c0_78 = arith.constant 0 : index
        %c512 = arith.constant 512 : index
        %130 = vector.load %arg12[%c0_78, %c512] : memref<128x2304xbf16, #tpu.memory_space<vmem>>, vector<64x256xbf16>
        tpu.vector_store %arg12[%c0_78, %c512], %129 {strides = array<i32>} : memref<128x2304xbf16, #tpu.memory_space<vmem>>, vector<64x256xbf16>,
        %c0_79 = arith.constant 0 : index
        %c1_80 = arith.constant 1 : index
        %c0_81 = arith.constant 0 : index
        %c0_82 = arith.constant 0 : index
        %131 = vector.load %arg11[%c0_79, %c1_80, %c0_81, %c0_82] : memref<2x10x10x256xf32, #tpu.memory_space<vmem>>, vector<1x8x8x256xf32>
        %132 = vector.shape_cast %131 : vector<1x8x8x256xf32> to vector<8x8x256xf32>
        %133 = vector.shape_cast %132 : vector<8x8x256xf32> to vector<64x256xf32>
        %134 = arith.truncf %133 : vector<64x256xf32> to vector<64x256xbf16>
        %c0_83 = arith.constant 0 : index
        %c768 = arith.constant 768 : index
        %135 = vector.load %arg12[%c0_83, %c768] : memref<128x2304xbf16, #tpu.memory_space<vmem>>, vector<64x256xbf16>
        tpu.vector_store %arg12[%c0_83, %c768], %134 {strides = array<i32>} : memref<128x2304xbf16, #tpu.memory_space<vmem>>, vector<64x256xbf16>,
        %c0_84 = arith.constant 0 : index
        %c1_85 = arith.constant 1 : index
        %c1_86 = arith.constant 1 : index
        %c0_87 = arith.constant 0 : index
        %136 = vector.load %arg11[%c0_84, %c1_85, %c1_86, %c0_87] : memref<2x10x10x256xf32, #tpu.memory_space<vmem>>, vector<1x8x8x256xf32>
        %137 = vector.shape_cast %136 : vector<1x8x8x256xf32> to vector<8x8x256xf32>
        %138 = vector.shape_cast %137 : vector<8x8x256xf32> to vector<64x256xf32>
        %139 = arith.truncf %138 : vector<64x256xf32> to vector<64x256xbf16>
        %c0_88 = arith.constant 0 : index
        %c1024 = arith.constant 1024 : index
        %140 = vector.load %arg12[%c0_88, %c1024] : memref<128x2304xbf16, #tpu.memory_space<vmem>>, vector<64x256xbf16>
        tpu.vector_store %arg12[%c0_88, %c1024], %139 {strides = array<i32>} : memref<128x2304xbf16, #tpu.memory_space<vmem>>, vector<64x256xbf16>,
        %c0_89 = arith.constant 0 : index
        %c1_90 = arith.constant 1 : index
        %c2_91 = arith.constant 2 : index
        %c0_92 = arith.constant 0 : index
        %141 = vector.load %arg11[%c0_89, %c1_90, %c2_91, %c0_92] : memref<2x10x10x256xf32, #tpu.memory_space<vmem>>, vector<1x8x8x256xf32>
        %142 = vector.shape_cast %141 : vector<1x8x8x256xf32> to vector<8x8x256xf32>
        %143 = vector.shape_cast %142 : vector<8x8x256xf32> to vector<64x256xf32>
        %144 = arith.truncf %143 : vector<64x256xf32> to vector<64x256xbf16>
        %c0_93 = arith.constant 0 : index
        %c1280 = arith.constant 1280 : index
        %145 = vector.load %arg12[%c0_93, %c1280] : memref<128x2304xbf16, #tpu.memory_space<vmem>>, vector<64x256xbf16>
        tpu.vector_store %arg12[%c0_93, %c1280], %144 {strides = array<i32>} : memref<128x2304xbf16, #tpu.memory_space<vmem>>, vector<64x256xbf16>,
        %c0_94 = arith.constant 0 : index
        %c2_95 = arith.constant 2 : index
        %c0_96 = arith.constant 0 : index
        %c0_97 = arith.constant 0 : index
        %146 = vector.load %arg11[%c0_94, %c2_95, %c0_96, %c0_97] : memref<2x10x10x256xf32, #tpu.memory_space<vmem>>, vector<1x8x8x256xf32>
        %147 = vector.shape_cast %146 : vector<1x8x8x256xf32> to vector<8x8x256xf32>
        %148 = vector.shape_cast %147 : vector<8x8x256xf32> to vector<64x256xf32>
        %149 = arith.truncf %148 : vector<64x256xf32> to vector<64x256xbf16>
        %c0_98 = arith.constant 0 : index
        %c1536 = arith.constant 1536 : index
        %150 = vector.load %arg12[%c0_98, %c1536] : memref<128x2304xbf16, #tpu.memory_space<vmem>>, vector<64x256xbf16>
        tpu.vector_store %arg12[%c0_98, %c1536], %149 {strides = array<i32>} : memref<128x2304xbf16, #tpu.memory_space<vmem>>, vector<64x256xbf16>,
        %c0_99 = arith.constant 0 : index
        %c2_100 = arith.constant 2 : index
        %c1_101 = arith.constant 1 : index
        %c0_102 = arith.constant 0 : index
        %151 = vector.load %arg11[%c0_99, %c2_100, %c1_101, %c0_102] : memref<2x10x10x256xf32, #tpu.memory_space<vmem>>, vector<1x8x8x256xf32>
        %152 = vector.shape_cast %151 : vector<1x8x8x256xf32> to vector<8x8x256xf32>
        %153 = vector.shape_cast %152 : vector<8x8x256xf32> to vector<64x256xf32>
        %154 = arith.truncf %153 : vector<64x256xf32> to vector<64x256xbf16>
        %c0_103 = arith.constant 0 : index
        %c1792 = arith.constant 1792 : index
        %155 = vector.load %arg12[%c0_103, %c1792] : memref<128x2304xbf16, #tpu.memory_space<vmem>>, vector<64x256xbf16>
        tpu.vector_store %arg12[%c0_103, %c1792], %154 {strides = array<i32>} : memref<128x2304xbf16, #tpu.memory_space<vmem>>, vector<64x256xbf16>,
        %c0_104 = arith.constant 0 : index
        %c2_105 = arith.constant 2 : index
        %c2_106 = arith.constant 2 : index
        %c0_107 = arith.constant 0 : index
        %156 = vector.load %arg11[%c0_104, %c2_105, %c2_106, %c0_107] : memref<2x10x10x256xf32, #tpu.memory_space<vmem>>, vector<1x8x8x256xf32>
        %157 = vector.shape_cast %156 : vector<1x8x8x256xf32> to vector<8x8x256xf32>
        %158 = vector.shape_cast %157 : vector<8x8x256xf32> to vector<64x256xf32>
        %159 = arith.truncf %158 : vector<64x256xf32> to vector<64x256xbf16>
        %c0_108 = arith.constant 0 : index
        %c2048 = arith.constant 2048 : index
        %160 = vector.load %arg12[%c0_108, %c2048] : memref<128x2304xbf16, #tpu.memory_space<vmem>>, vector<64x256xbf16>
        tpu.vector_store %arg12[%c0_108, %c2048], %159 {strides = array<i32>} : memref<128x2304xbf16, #tpu.memory_space<vmem>>, vector<64x256xbf16>,
        %c1_109 = arith.constant 1 : index
        %c0_110 = arith.constant 0 : index
        %c0_111 = arith.constant 0 : index
        %c0_112 = arith.constant 0 : index
        %161 = vector.load %arg11[%c1_109, %c0_110, %c0_111, %c0_112] : memref<2x10x10x256xf32, #tpu.memory_space<vmem>>, vector<1x8x8x256xf32>
        %162 = vector.shape_cast %161 : vector<1x8x8x256xf32> to vector<8x8x256xf32>
        %163 = vector.shape_cast %162 : vector<8x8x256xf32> to vector<64x256xf32>
        %164 = arith.truncf %163 : vector<64x256xf32> to vector<64x256xbf16>
        %c64 = arith.constant 64 : index
        %c0_113 = arith.constant 0 : index
        %165 = vector.load %arg12[%c64, %c0_113] : memref<128x2304xbf16, #tpu.memory_space<vmem>>, vector<64x256xbf16>
        tpu.vector_store %arg12[%c64, %c0_113], %164 {strides = array<i32>} : memref<128x2304xbf16, #tpu.memory_space<vmem>>, vector<64x256xbf16>,
        %c1_114 = arith.constant 1 : index
        %c0_115 = arith.constant 0 : index
        %c1_116 = arith.constant 1 : index
        %c0_117 = arith.constant 0 : index
        %166 = vector.load %arg11[%c1_114, %c0_115, %c1_116, %c0_117] : memref<2x10x10x256xf32, #tpu.memory_space<vmem>>, vector<1x8x8x256xf32>
        %167 = vector.shape_cast %166 : vector<1x8x8x256xf32> to vector<8x8x256xf32>
        %168 = vector.shape_cast %167 : vector<8x8x256xf32> to vector<64x256xf32>
        %169 = arith.truncf %168 : vector<64x256xf32> to vector<64x256xbf16>
        %c64_118 = arith.constant 64 : index
        %c256_119 = arith.constant 256 : index
        %170 = vector.load %arg12[%c64_118, %c256_119] : memref<128x2304xbf16, #tpu.memory_space<vmem>>, vector<64x256xbf16>
        tpu.vector_store %arg12[%c64_118, %c256_119], %169 {strides = array<i32>} : memref<128x2304xbf16, #tpu.memory_space<vmem>>, vector<64x256xbf16>,
        %c1_120 = arith.constant 1 : index
        %c0_121 = arith.constant 0 : index
        %c2_122 = arith.constant 2 : index
        %c0_123 = arith.constant 0 : index
        %171 = vector.load %arg11[%c1_120, %c0_121, %c2_122, %c0_123] : memref<2x10x10x256xf32, #tpu.memory_space<vmem>>, vector<1x8x8x256xf32>
        %172 = vector.shape_cast %171 : vector<1x8x8x256xf32> to vector<8x8x256xf32>
        %173 = vector.shape_cast %172 : vector<8x8x256xf32> to vector<64x256xf32>
        %174 = arith.truncf %173 : vector<64x256xf32> to vector<64x256xbf16>
        %c64_124 = arith.constant 64 : index
        %c512_125 = arith.constant 512 : index
        %175 = vector.load %arg12[%c64_124, %c512_125] : memref<128x2304xbf16, #tpu.memory_space<vmem>>, vector<64x256xbf16>
        tpu.vector_store %arg12[%c64_124, %c512_125], %174 {strides = array<i32>} : memref<128x2304xbf16, #tpu.memory_space<vmem>>, vector<64x256xbf16>,
        %c1_126 = arith.constant 1 : index
        %c1_127 = arith.constant 1 : index
        %c0_128 = arith.constant 0 : index
        %c0_129 = arith.constant 0 : index
        %176 = vector.load %arg11[%c1_126, %c1_127, %c0_128, %c0_129] : memref<2x10x10x256xf32, #tpu.memory_space<vmem>>, vector<1x8x8x256xf32>
        %177 = vector.shape_cast %176 : vector<1x8x8x256xf32> to vector<8x8x256xf32>
        %178 = vector.shape_cast %177 : vector<8x8x256xf32> to vector<64x256xf32>
        %179 = arith.truncf %178 : vector<64x256xf32> to vector<64x256xbf16>
        %c64_130 = arith.constant 64 : index
        %c768_131 = arith.constant 768 : index
        %180 = vector.load %arg12[%c64_130, %c768_131] : memref<128x2304xbf16, #tpu.memory_space<vmem>>, vector<64x256xbf16>
        tpu.vector_store %arg12[%c64_130, %c768_131], %179 {strides = array<i32>} : memref<128x2304xbf16, #tpu.memory_space<vmem>>, vector<64x256xbf16>,
        %c1_132 = arith.constant 1 : index
        %c1_133 = arith.constant 1 : index
        %c1_134 = arith.constant 1 : index
        %c0_135 = arith.constant 0 : index
        %181 = vector.load %arg11[%c1_132, %c1_133, %c1_134, %c0_135] : memref<2x10x10x256xf32, #tpu.memory_space<vmem>>, vector<1x8x8x256xf32>
        %182 = vector.shape_cast %181 : vector<1x8x8x256xf32> to vector<8x8x256xf32>
        %183 = vector.shape_cast %182 : vector<8x8x256xf32> to vector<64x256xf32>
        %184 = arith.truncf %183 : vector<64x256xf32> to vector<64x256xbf16>
        %c64_136 = arith.constant 64 : index
        %c1024_137 = arith.constant 1024 : index
        %185 = vector.load %arg12[%c64_136, %c1024_137] : memref<128x2304xbf16, #tpu.memory_space<vmem>>, vector<64x256xbf16>
        tpu.vector_store %arg12[%c64_136, %c1024_137], %184 {strides = array<i32>} : memref<128x2304xbf16, #tpu.memory_space<vmem>>, vector<64x256xbf16>,
        %c1_138 = arith.constant 1 : index
        %c1_139 = arith.constant 1 : index
        %c2_140 = arith.constant 2 : index
        %c0_141 = arith.constant 0 : index
        %186 = vector.load %arg11[%c1_138, %c1_139, %c2_140, %c0_141] : memref<2x10x10x256xf32, #tpu.memory_space<vmem>>, vector<1x8x8x256xf32>
        %187 = vector.shape_cast %186 : vector<1x8x8x256xf32> to vector<8x8x256xf32>
        %188 = vector.shape_cast %187 : vector<8x8x256xf32> to vector<64x256xf32>
        %189 = arith.truncf %188 : vector<64x256xf32> to vector<64x256xbf16>
        %c64_142 = arith.constant 64 : index
        %c1280_143 = arith.constant 1280 : index
        %190 = vector.load %arg12[%c64_142, %c1280_143] : memref<128x2304xbf16, #tpu.memory_space<vmem>>, vector<64x256xbf16>
        tpu.vector_store %arg12[%c64_142, %c1280_143], %189 {strides = array<i32>} : memref<128x2304xbf16, #tpu.memory_space<vmem>>, vector<64x256xbf16>,
        %c1_144 = arith.constant 1 : index
        %c2_145 = arith.constant 2 : index
        %c0_146 = arith.constant 0 : index
        %c0_147 = arith.constant 0 : index
        %191 = vector.load %arg11[%c1_144, %c2_145, %c0_146, %c0_147] : memref<2x10x10x256xf32, #tpu.memory_space<vmem>>, vector<1x8x8x256xf32>
        %192 = vector.shape_cast %191 : vector<1x8x8x256xf32> to vector<8x8x256xf32>
        %193 = vector.shape_cast %192 : vector<8x8x256xf32> to vector<64x256xf32>
        %194 = arith.truncf %193 : vector<64x256xf32> to vector<64x256xbf16>
        %c64_148 = arith.constant 64 : index
        %c1536_149 = arith.constant 1536 : index
        %195 = vector.load %arg12[%c64_148, %c1536_149] : memref<128x2304xbf16, #tpu.memory_space<vmem>>, vector<64x256xbf16>
        tpu.vector_store %arg12[%c64_148, %c1536_149], %194 {strides = array<i32>} : memref<128x2304xbf16, #tpu.memory_space<vmem>>, vector<64x256xbf16>,
        %c1_150 = arith.constant 1 : index
        %c2_151 = arith.constant 2 : index
        %c1_152 = arith.constant 1 : index
        %c0_153 = arith.constant 0 : index
        %196 = vector.load %arg11[%c1_150, %c2_151, %c1_152, %c0_153] : memref<2x10x10x256xf32, #tpu.memory_space<vmem>>, vector<1x8x8x256xf32>
        %197 = vector.shape_cast %196 : vector<1x8x8x256xf32> to vector<8x8x256xf32>
        %198 = vector.shape_cast %197 : vector<8x8x256xf32> to vector<64x256xf32>
        %199 = arith.truncf %198 : vector<64x256xf32> to vector<64x256xbf16>
        %c64_154 = arith.constant 64 : index
        %c1792_155 = arith.constant 1792 : index
        %200 = vector.load %arg12[%c64_154, %c1792_155] : memref<128x2304xbf16, #tpu.memory_space<vmem>>, vector<64x256xbf16>
        tpu.vector_store %arg12[%c64_154, %c1792_155], %199 {strides = array<i32>} : memref<128x2304xbf16, #tpu.memory_space<vmem>>, vector<64x256xbf16>,
        %c1_156 = arith.constant 1 : index
        %c2_157 = arith.constant 2 : index
        %c2_158 = arith.constant 2 : index
        %c0_159 = arith.constant 0 : index
        %201 = vector.load %arg11[%c1_156, %c2_157, %c2_158, %c0_159] : memref<2x10x10x256xf32, #tpu.memory_space<vmem>>, vector<1x8x8x256xf32>
        %202 = vector.shape_cast %201 : vector<1x8x8x256xf32> to vector<8x8x256xf32>
        %203 = vector.shape_cast %202 : vector<8x8x256xf32> to vector<64x256xf32>
        %204 = arith.truncf %203 : vector<64x256xf32> to vector<64x256xbf16>
        %c64_160 = arith.constant 64 : index
        %c2048_161 = arith.constant 2048 : index
        %205 = vector.load %arg12[%c64_160, %c2048_161] : memref<128x2304xbf16, #tpu.memory_space<vmem>>, vector<64x256xbf16>
        tpu.vector_store %arg12[%c64_160, %c2048_161], %204 {strides = array<i32>} : memref<128x2304xbf16, #tpu.memory_space<vmem>>, vector<64x256xbf16>,
      } else {
      }
    } else {
    }
    %c0_2 = arith.constant 0 : index
    %c0_3 = arith.constant 0 : index
    %c0_4 = arith.constant 0 : index
    %4 = vector.load %arg7[%c0_2, %c0_3, %c0_4] : memref<1x2304x128xbf16, #tpu.memory_space<vmem>>, vector<1x2304x128xbf16>
    %5 = vector.shape_cast %4 : vector<1x2304x128xbf16> to vector<2304x128xbf16>
    %c0_5 = arith.constant 0 : index
    %c0_6 = arith.constant 0 : index
    %6 = vector.load %arg12[%c0_5, %c0_6] : memref<128x2304xbf16, #tpu.memory_space<vmem>>, vector<128x2304xbf16>
    %cst = arith.constant dense<0.000000e+00> : vector<128x128xf32>
    %7 = tpu.matmul %6, %5, %cst {dimension_numbers = #tpu.dot_dimension_numbers<[1], [0], [0], [1], [0, 0, 1, 1], [], []>} : vector<128x2304xbf16>, vector<2304x128xbf16>, vector<128x128xf32> -> vector<128x128xf32>
    %c0_7 = arith.constant 0 : index
    %c0_8 = arith.constant 0 : index
    %c0_9 = arith.constant 0 : index
    %8 = vector.load %arg8[%c0_7, %c0_8, %c0_9] : memref<1x1x128xf32, #tpu.memory_space<vmem>>, vector<1x1x128xf32>
    %9 = vector.shape_cast %8 : vector<1x1x128xf32> to vector<128xf32>
    %10 = vector.shape_cast %9 : vector<128xf32> to vector<1x128xf32>
    %11 = vector.broadcast %10 : vector<1x128xf32> to vector<128x128xf32>
    %12 = arith.addf %7, %11 : vector<128x128xf32>
    %c0_i32_10 = arith.constant 0 : i32
    %13 = arith.cmpi eq, %arg0, %c0_i32_10 : i32
    %14 = arith.extui %13 : i1 to i32
    %c0_i32_11 = arith.constant 0 : i32
    %15 = arith.cmpi ne, %14, %c0_i32_11 : i32
    scf.if %15 {
      %c0_13 = arith.constant 0 : index
      %c0_14 = arith.constant 0 : index
      %19 = vector.load %arg4[%c0_13, %c0_14] : memref<2x128xf32, #tpu.memory_space<vmem>>, vector<2x128xf32>
      %20 = vector.extract_strided_slice %19 {offsets = [0, 0], sizes = [1, 128], strides = [1, 1]} : vector<2x128xf32> to vector<1x128xf32>
      %21 = vector.shape_cast %20 : vector<1x128xf32> to vector<1x128xf32>
      %22 = vector.broadcast %21 : vector<1x128xf32> to vector<64x128xf32>
      %23 = vector.extract_strided_slice %19 {offsets = [1, 0], sizes = [1, 128], strides = [1, 1]} : vector<2x128xf32> to vector<1x128xf32>
      %24 = vector.shape_cast %23 : vector<1x128xf32> to vector<1x128xf32>
      %25 = vector.broadcast %24 : vector<1x128xf32> to vector<64x128xf32>
      %26 = tpu.concatenate %22, %25 in 0 : vector<64x128xf32>, vector<64x128xf32> -> vector<128x128xf32>
      %27 = arith.addf %12, %26 : vector<128x128xf32>
      %28 = arith.index_cast %arg1 : i32 to index
      %c0_15 = arith.constant 0 : index
      %c0_16 = arith.constant 0 : index
      %29 = vector.load %arg13[%28, %c0_15, %c0_16] : memref<2x128x128xf32, #tpu.memory_space<vmem>>, vector<1x128x128xf32>
      %30 = vector.shape_cast %29 : vector<1x128x128xf32> to vector<128x128xf32>
      %31 = vector.shape_cast %27 : vector<128x128xf32> to vector<1x128x128xf32>
      tpu.vector_store %arg13[%28, %c0_15, %c0_16], %31 {strides = array<i32>} : memref<2x128x128xf32, #tpu.memory_space<vmem>>, vector<1x128x128xf32>,
      %c0_17 = arith.constant 0 : index
      %c0_18 = arith.constant 0 : index
      %32 = vector.load %arg10[%c0_17, %c0_18] : memref<128x128xf32, #tpu.memory_space<vmem>>, vector<128x128xf32>
      tpu.vector_store %arg10[%c0_17, %c0_18], %27 {strides = array<i32>} : memref<128x128xf32, #tpu.memory_space<vmem>>, vector<128x128xf32>,
    } else {
    }
    %c1_i32 = arith.constant 1 : i32
    %16 = arith.cmpi eq, %arg0, %c1_i32 : i32
    %17 = arith.extui %16 : i1 to i32
    %c0_i32_12 = arith.constant 0 : i32
    %18 = arith.cmpi ne, %17, %c0_i32_12 : i32
    scf.if %18 {
      %c0_13 = arith.constant 0 : index
      %c0_14 = arith.constant 0 : index
      %19 = vector.load %arg3[%c0_13, %c0_14] : memref<128x128xf32, #tpu.memory_space<vmem>>, vector<128x128xf32>
      %20 = arith.addf %19, %12 : vector<128x128xf32>
      %c0_15 = arith.constant 0 : index
      %c0_16 = arith.constant 0 : index
      %21 = vector.load %arg10[%c0_15, %c0_16] : memref<128x128xf32, #tpu.memory_space<vmem>>, vector<128x128xf32>
      tpu.vector_store %arg10[%c0_15, %c0_16], %20 {strides = array<i32>} : memref<128x128xf32, #tpu.memory_space<vmem>>, vector<128x128xf32>,
    } else {
    }
    return
  }
  func.func @transform_0(%arg0: i32, %arg1: i32) -> (i32, i32) {
    %c0_i32 = arith.constant 0 : i32
    %c0_i32_0 = arith.constant 0 : i32
    %c0_i32_1 = arith.constant 0 : i32
    return %c0_i32, %c0_i32_0 : i32, i32
  }
  func.func @transform_1(%arg0: i32, %arg1: i32) -> (i32, i32) {
    %c0_i32 = arith.constant 0 : i32
    %c0_i32_0 = arith.constant 0 : i32
    return %c0_i32, %arg1 : i32, i32
  }
  func.func @transform_2(%arg0: i32, %arg1: i32) -> (i32, i32) {
    %c0_i32 = arith.constant 0 : i32
    %c0_i32_0 = arith.constant 0 : i32
    return %c0_i32, %arg1 : i32, i32
  }
  func.func @transform_3(%arg0: i32, %arg1: i32) -> (i32, i32, i32) {
    %c0_i32 = arith.constant 0 : i32
    %c0_i32_0 = arith.constant 0 : i32
    %c0_i32_1 = arith.constant 0 : i32
    return %arg0, %c0_i32, %c0_i32_0 : i32, i32, i32
  }
  func.func @transform_4(%arg0: i32, %arg1: i32) -> (i32, i32, i32) {
    %c0_i32 = arith.constant 0 : i32
    %c0_i32_0 = arith.constant 0 : i32
    %c0_i32_1 = arith.constant 0 : i32
    return %arg0, %c0_i32, %c0_i32_0 : i32, i32, i32
  }
  func.func @transform_5(%arg0: i32, %arg1: i32) -> (i32, i32, i32) {
    %c0_i32 = arith.constant 0 : i32
    %c0_i32_0 = arith.constant 0 : i32
    return %arg0, %c0_i32, %arg1 : i32, i32, i32
  }
  func.func @transform_6(%arg0: i32, %arg1: i32) -> (i32, i32, i32) {
    %c0_i32 = arith.constant 0 : i32
    %c0_i32_0 = arith.constant 0 : i32
    return %arg0, %c0_i32, %arg1 : i32, i32, i32
  }
  func.func @transform_7(%arg0: i32, %arg1: i32) -> (i32, i32) {
    %c0_i32 = arith.constant 0 : i32
    %c0_i32_0 = arith.constant 0 : i32
    %c0_i32_1 = arith.constant 0 : i32
    return %c0_i32, %c0_i32_0 : i32, i32
  }
  func.func @transform_8(%arg0: i32, %arg1: i32) -> (i32, i32) {
    %c0_i32 = arith.constant 0 : i32
    %c0_i32_0 = arith.constant 0 : i32
    return %c0_i32, %arg1 : i32, i32
  }
}

</mosaic_0001>

<bundles_post_ra>
// kernel: tpu_custom_call.1
= control target key start
LH: loop header
LB: loop body
LE: loop exit
PB: predicated region body
PF: predicated region fallthrough
CT: control target
= control target key end

     0   :  { %s16875_s0 = inlined_call_operand.hbm [shape: f32[128,256], index: 0, kind: input, shape index: {}]   ;;  %s16876_s1 = inlined_call_operand.hbm [shape: f32[128,256], index: 1, kind: input, shape index: {}]   ;;  %s16877_s2 = inlined_call_operand.hbm [shape: f32[2,256], index: 2, kind: input, shape index: {}]   ;;  %s16878_s3 = inlined_call_operand.hbm [shape: f32[2,1,256], index: 3, kind: input, shape index: {}]   ;;  %s16879_s4 = inlined_call_operand.hbm [shape: f32[2,1,256], index: 4, kind: input, shape index: {}]   ;;  %s16880_s5 = inlined_call_operand.hbm [shape: bf16[2,2304,256], index: 5, kind: input, shape index: {}]   ;;  %s16881_s6 = inlined_call_operand.hbm [shape: f32[2,1,256], index: 6, kind: input, shape index: {}]   ;;  %s16882_s7 = inlined_call_operand.vmem [shape: f32[256,32], index: 7, kind: input, shape index: {}]   ;;  %s16883_s8 = inlined_call_operand.hbm [shape: f32[128,256], index: 8, kind: output, shape index: {}]  }
   0x1   :  { %16959 = sst [smem:[#allocation70_spill]] %s16876_s1 }
   0x2   :  { %16960 = sst [smem:[#allocation71_spill]] %s16878_s3 }
   0x3   :  { %16961 = sst [smem:[#allocation72_spill]] %s16880_s5 }
   0x4   :  { %16962 = sst [smem:[#allocation73_spill]] %s16882_s7 }
   0x5   :  { %16963 = sst [smem:[#allocation74_spill]] %s16883_s8 }
   0x6   :  { %13 = vsyncpa [#allocation6], 0 }
   0x7   :  { %14 = vsyncpa [#allocation9], 0 }
   0x8   :  { %16 = vsyncpa [#allocation9 + $0x1], 0 }
   0x9   :  { %17 = vsyncpa [#allocation12], 0 }
   0xa   :  { %19 = vsyncpa [#allocation12 + $0x1], 0 }
   0xb   :  { %20 = vsyncpa [#allocation15], 0 }
   0xc   :  { %22 = vsyncpa [#allocation15 + $0x1], 0 }
   0xd   :  { %23 = vsyncpa [#allocation7], 0 }
   0xe   :  { %25 = vsyncpa [#allocation7 + $0x1], 0  ;;  %s13326_s27 = smov 0   ;;  %s13328_s28 = smov 0  }
   0xf   :  { %s13330_s29 = smov 0   ;;  %s13332_s30 = smov 0  }
  0x10   :  { %s13334_s9 = smov 0   ;;  %s13336_s10 = smov 0  }
  0x11   :  { %s13338_s11 = smov 0   ;;  %s13340_s12 = smov 0  }
  0x12   :  { %s13342_s13 = smov 0   ;;  %s13344_s14 = smov 0  }
  0x13   :  { %s13346_s15 = smov 0   ;;  %s13348_s16 = smov 0  }
  0x14   :  { %s13350_s17 = smov 0   ;;  %s13352_s18 = smov 0  }
  0x15 LB: > { %16964 = sst [smem:[#allocation23_spill]] %s13213_s28  ;;  %s9979_s19 = sadd.s32 4294967294, %s13261_s18   ;;  %s13261_s18 = sphi %s13352_s18, %s31_s18   ;;  %s13257_s17 = sphi %s13350_s17, %s17131_s17   ;;  %s13253_s16 = sphi %s13348_s16, %s17130_s16   ;;  %s13249_s15 = sphi %s13346_s15, %s17129_s15   ;;  %s13245_s14 = sphi %s13344_s14, %s17128_s14   ;;  %s13241_s13 = sphi %s13342_s13, %s17121_s13   ;;  %s13237_s12 = sphi %s13340_s12, %s17127_s12   ;;  %s13233_s11 = sphi %s13338_s11, %s17126_s11   ;;  %s13229_s10 = sphi %s13336_s10, %s17119_s10   ;;  %s13225_s9 = sphi %s13334_s9, %s17118_s9   ;;  %s13221_s30 = sphi %s13332_s30, %s17117_s30   ;;  %s13217_s29 = sphi %s13330_s29, %s17125_s29   ;;  %s13213_s28 = sphi %s13328_s28, %s17124_s28   ;;  %s13209_s27 = sphi %s13326_s27, %s17115_s27  }
  0x16   : > { %16965 = sst [smem:[#allocation24_spill]] %s13225_s9  ;;  %p16888_p0 = scmp.ne.s32.totalorder %s13241_s13, %s13237_s12 }
  0x17   : > { %16966 = sst [smem:[#allocation25_spill]] %s13229_s10  ;;  %p16889_p1 = scmp.eq.s32.totalorder %s13261_s18, 0 }
  0x18   : > { %16967 = sst [smem:[#allocation26_spill]] %s13233_s11  ;;  %p16890_p2 = scmp.ne.s32.totalorder %s13237_s12, %s13233_s11 }
  0x19   : > { %16968 = sst [smem:[#allocation27_spill]] %s13241_s13  ;;  %p269_p3 = scmp.eq.s32.totalorder %s9979_s19, 3 }
  0x1a   : > { %16969 = sst [smem:[#allocation28_spill]] %s13245_s14  ;;  %p80_p4 = por %p16889_p1, %p16888_p0 }
  0x1b   : > { %16970 = sst [smem:[#allocation29_spill]] %s13249_s15  ;;  %p13411_p5 = por %p269_p3, %p16890_p2 }
  0x1c   : > { %p16887_p6 = scmp.lt.s32.totalorder %s13261_s18, 4  ;;  %s13417_s22 = sand.u32 1, %s13261_s18  }
  0x1d   : > { %s16971_s21 = scalar_select %p13411_p5, 1, 0 }
  0x1e   : > { %s16886_s23 = sand.u32 1, %s13241_s13   ;;  %s9984_s25 = sshll.u32 %s13253_s16, 7 }
  0x1f   : > { %16972 = sst [smem:[#allocation30_spill]] %s16971_s21  ;;  %s9983_s24 = sshll.u32 %s16886_s23, 7 }
  0x20   : > { %s16973_s1 = sld [smem:[#allocation70_spill]]  ;;  %s309_s8 = scalar_lea.vmem [#allocation8], %s9983_s24 }
  0x21   : > { %s315_s15 = sshll.u32 %s309_s8, 4  ;;  %p13430_p7 = pnand %p16887_p6, %p80_p4  ;;  %s13434_s15 = int_to_ptr.vmem [resolvable:$true] %s315_s15 }
  0x23   : > { %s16974_s21 = scalar_select %p13430_p7, 1, 0 }
  0x24   : > { %p16895_p9 = pneg %p13430_p7 }
  0x26   : > { %s13426_s19 = scalar_lea.hbm %s16973_s1, %s9984_s25  ;;  %s12900_s24 = scalar_lea.hbm %s16973_s1, 4096 }
  0x27   : > { %s12895_s14 = scalar_lea.hbm %s13426_s19, 2048  ;;  %p12901_p12 = scmp.lt.u32.totalorder %s13426_s19, %s16973_s1 }
  0x28   : > { %p12896_p8 = scmp.ne.s32.totalorder %s13426_s19, %s12895_s14  ;;  %p12902_p13 = scmp.lt.u32.totalorder %s12900_s24, %s12895_s14 }
  0x29   : > { %p12904_p4 = scmp.lt.u32.totalorder %s12895_s14, %s13426_s19 }
  0x2a   : > { %p12898_p10 = pnand %p16895_p9, %p12896_p8  ;;  %p12903_p3 = por %p12902_p13, %p12901_p12 }
  0x2c   : > { %p12899_p11 = pneg %p12898_p10  ;;  %p12905_p6 = por %p12904_p4, %p12903_p3 }
  0x2e   : > { %p12906_p0 = pnand %p12905_p6, %p12899_p11 }
  0x30   : > { %12909 = shalt.err (!%p12906_p0)
}
  0x31   : > { %s12910_s23 = scalar_lea.vmem %s13434_s15, 2048  ;;  %s13263_s20 = smov [#allocation8]  }
  0x32   : > { %p12911_p8 = scmp.ne.s32.totalorder %s13434_s15, %s12910_s23  ;;  %s12915_s8 = sshll.u32 %s13263_s20, 4  ;;  %s12916_s8 = int_to_ptr.vmem [resolvable:$false] %s12915_s8 }
  0x33   : > { %s12917_s25 = scalar_lea.vmem %s12916_s8, 4096  ;;  %p12918_p2 = scmp.lt.s32.totalorder %s13434_s15, %s12916_s8 }
  0x34   : > { %p12913_p10 = pnand %p12911_p8, %p16895_p9  ;;  %p12919_p12 = scmp.lt.s32.totalorder %s12917_s25, %s12910_s23 }
  0x36   : > { %p12914_p1 = pneg %p12913_p10  ;;  %p12920_p13 = por %p12919_p12, %p12918_p2 }
  0x38   : > { %p12921_p3 = pnand %p12920_p13, %p12914_p1 }
  0x3a   : > { %12924 = shalt.err (!%p12921_p3)
}
  0x3b   : > { %s16891_s14 = smov 256   ;;  %s16892_s24 = smov 128  }
  0x3c   : > { %s13266_s23 = smov 8   ;;  %s16975_s26 = scalar_lea.sflag [#allocation9], %s13417_s22 }
  0x3d   : > { %12300 = dma.hbm_to_vmem [thread:$0]  (!%p13430_p7), %s13426_s19, 2048, %s13434_s15, %s16975_s26, %s16891_s14, %s16892_s24, %s13266_s23  }
  0x3e   : > { %s13467_s20 = sadd.s32 4294967295, %s13261_s18   ;;  %s40_s8 = sadd.s32 1, %s13253_s16 }
  0x3f   : > { %p41_p0 = scmp.ge.s32.totalorder %s40_s8, 2  ;;  %s43_s25 = sadd.s32 1, %s13257_s17 }
  0x40   : > { %p16905_p1 = scmp.eq.s32.totalorder %s13467_s20, 0  ;;  %s123_s1 = sadd.s32 1, %s13229_s10 }
  0x41   : > { %s17133_s8 = smov (%p41_p0, %s40_s8), 0  ;;  %s17135_s25 = smov (!%p41_p0, %s43_s25), %s13257_s17 }
  0x42   : > { %16976 = sst [smem:[#allocation31_spill]] %s17133_s8  ;;  %s68_s15 = ssub.s32 %s13253_s16, %s17133_s8 }
  0x43   : > { %p16977_p2 = scmp.ne.s32.totalorder %s13237_s12, %s13233_s11  ;;  %p45_p11 = scmp.ge.s32.totalorder %s17135_s25, 2 }
  0x44   : > { %p69_p4 = scmp.eq.s32.totalorder %s68_s15, 0  ;;  %p130_p8 = scmp.ne.s32.totalorder %s13229_s10, %s13225_s9 }
  0x45   : > { %p13483_p6 = por %p16905_p1, %p16977_p2  ;;  %p136_p10 = scmp.ne.s32.totalorder %s13225_s9, %s13221_s30 }
  0x46   : > { %s17137_s25 = smov (%p45_p11, %s17135_s25), 0  ;;  %s16981_s23 = sadd.s32 1, %s13241_s13 }
  0x47   : > { %s16978_s19 = scalar_select %p13483_p6, 1, 0 }
  0x48   : > { %16980 = sst [smem:[#allocation33_spill]] %s17137_s25  ;;  %s120_s14 = ssub.s32 %s13257_s17, %s17137_s25 }
  0x49   : > { %16979 = sst [smem:[#allocation32_spill]] %s16978_s19  ;;  %p16983_p12 = scmp.eq.s32.totalorder %s13261_s18, 0 }
  0x4a   : > { %s13496_s26 = scalar_select %p69_p4, %s13241_s13, %s16981_s23  }
  0x4b   : > { %p132_p13 = por %p130_p8, %p16983_p12  ;;  %p121_p3 = scmp.eq.s32.totalorder %s120_s14, 0 }
  0x4c   : > { %16982 = sst [smem:[#allocation34_spill]] %s13496_s26  ;;  %p13504_p0 = por %p136_p10, %p16905_p1 }
  0x4d   : > { %s174_s8 = sor.u32 %s120_s14, %s68_s15  ;;  %p263_p2 = scmp.eq.s32.totalorder %s13467_s20, 3 }
  0x4e   : > { %s16984_s24 = scalar_select %p13504_p0, 1, 0 }
  0x4f   : > { %s13510_s30 = scalar_select %p121_p3, %s13229_s10, %s123_s1  }
  0x50   : > { %16985 = sst [smem:[#allocation35_spill]] %s16984_s24  ;;  %p13512_p11 = scmp.eq.s32.totalorder %s174_s8, 0 }
  0x51   : > { %16986 = sst [smem:[#allocation36_spill]] %s13510_s30  ;;  %p16988_p4 = scmp.ne.s32.totalorder %s13241_s13, %s13237_s12 }
  0x52   : > { %s345_s25 = sand.u32 1, %s13229_s10   ;;  %s16901_s26 = sshll.u32 %s13257_s17, 5 }
  0x53   : > { %p13519_p9 = por %p263_p2, %p16988_p4  ;;  %s13525_s7 = sshll.u32 %s345_s25, 1 }
  0x54   : > { %s16991_s3 = sld [smem:[#allocation71_spill]]  ;;  %p16992_p8 = scmp.lt.s32.totalorder %s13261_s18, 4 }
  0x55   : > { %s16989_s23 = scalar_select %p13519_p9, 1, 0 }
  0x56   : > { %p13536_p10 = pnand %p16992_p8, %p132_p13  ;;  %s347_s8 = scalar_lea.vmem [#allocation11], %s13525_s7 }
  0x57   : > { %16990 = sst [smem:[#allocation37_spill]] %s16989_s23  ;;  %s355_s25 = sshll.u32 %s347_s8, 4  ;;  %s13541_s25 = int_to_ptr.vmem [resolvable:$true] %s355_s25 }
  0x58   : > { %s16993_s14 = scalar_select %p13536_p10, 1, 0 }
  0x59   : > { %s16911_s15 = scalar_lea.sflag [#allocation12], %s13417_s22  ;;  %p16915_p3 = pneg %p13536_p10 }
  0x5a   : > { %s13532_s1 = scalar_lea.hbm %s16991_s3, %s16901_s26  ;;  %s12930_s30 = scalar_lea.hbm %s16991_s3, 64 }
  0x5b   : > { %s12925_s9 = scalar_lea.hbm %s13532_s1, 32  ;;  %p12931_p13 = scmp.lt.u32.totalorder %s13532_s1, %s16991_s3 }
  0x5c   : > { %p12926_p12 = scmp.ne.s32.totalorder %s13532_s1, %s12925_s9  ;;  %p12932_p8 = scmp.lt.u32.totalorder %s12930_s30, %s12925_s9 }
  0x5d   : > { %p12934_p5 = scmp.lt.u32.totalorder %s12925_s9, %s13532_s1 }
  0x5e   : > { %p12928_p2 = pnand %p16915_p3, %p12926_p12  ;;  %p12933_p1 = por %p12932_p8, %p12931_p13 }
  0x60   : > { %p12929_p4 = pneg %p12928_p2  ;;  %p12935_p9 = por %p12934_p5, %p12933_p1 }
  0x62   : > { %p12936_p0 = pnand %p12935_p9, %p12929_p4 }
  0x64   : > { %12939 = shalt.err (!%p12936_p0)
}
  0x65   : > { %s12940_s8 = scalar_lea.vmem %s13541_s25, 32  ;;  %s13267_s26 = smov [#allocation11]  }
  0x66   : > { %p12941_p12 = scmp.ne.s32.totalorder %s13541_s25, %s12940_s8  ;;  %s12945_s24 = sshll.u32 %s13267_s26, 4  ;;  %s12946_s24 = int_to_ptr.vmem [resolvable:$false] %s12945_s24 }
  0x67   : > { %s12947_s10 = scalar_lea.vmem %s12946_s24, 64  ;;  %p12948_p7 = scmp.lt.s32.totalorder %s13541_s25, %s12946_s24 }
  0x68   : > { %p12943_p2 = pnand %p12941_p12, %p16915_p3  ;;  %p12949_p13 = scmp.lt.s32.totalorder %s12947_s10, %s12940_s8 }
  0x6a   : > { %p12944_p6 = pneg %p12943_p2  ;;  %p12950_p8 = por %p12949_p13, %p12948_p7 }
  0x6c   : > { %p12951_p5 = pnand %p12950_p8, %p12944_p6 }
  0x6e   : > { %12954 = shalt.err (!%p12951_p5)
}
  0x6f   : > { %12306 = dma.hbm_to_vmem [thread:$0]  (!%p13536_p10), %s13532_s1, 32, %s13541_s25, %s16911_s15  }
  0x70   : > { %s16994_s30 = sshll.u32 %s13257_s17, 5  ;;  %s177_s26 = sadd.s32 1, %s13217_s29 }
  0x71   : > { %s13576_s8 = scalar_lea.hbm %s16879_s4, %s16994_s30  ;;  %p184_p7 = scmp.ne.s32.totalorder %s13217_s29, %s13213_s28 }
  0x72   : > { %s13582_s24 = scalar_select %p13512_p11, %s13217_s29, %s177_s26  }
  0x73   : > { %p190_p9 = scmp.ne.s32.totalorder %s13213_s28, %s13209_s27  ;;  %s16912_s10 = sand.u32 1, %s13217_s29  }
  0x74   : > { %16995 = sst [smem:[#allocation38_spill]] %s13582_s24  ;;  %p16996_p1 = scmp.eq.s32.totalorder %s13261_s18, 0 }
  0x75   : > { %p16997_p0 = scmp.eq.s32.totalorder %s13467_s20, 0  ;;  %s12272_s1 = smul.u32 1152, %s16912_s10 }
  0x76   : > { %p186_p6 = por %p184_p7, %p16996_p1  ;;  %s12273_s25 = smul.u32 576, %s13257_s17 }
  0x77   : > { %p13593_p4 = por %p190_p9, %p16997_p0  ;;  %p17000_p12 = scmp.lt.s32.totalorder %s13261_s18, 4 }
  0x78   : > { %s390_s11 = sadd.s32 %s13253_s16, %s12273_s25  ;;  %s385_s27 = scalar_lea.vmem [#allocation14], %s12272_s1 }
  0x79   : > { %s16998_s3 = scalar_select %p13593_p4, 1, 0 }
  0x7a   : > { %p13602_p2 = pnand %p17000_p12, %p186_p6  ;;  %s393_s23 = sshll.u32 %s385_s27, 4  ;;  %s13607_s23 = int_to_ptr.vmem [resolvable:$true] %s393_s23 }
  0x7b   : > { %16999 = sst [smem:[#allocation39_spill]] %s16998_s3  ;;  %s9993_s9 = sshll.u32 %s390_s11, 6 }
  0x7c   : > { %s17001_s30 = scalar_select %p13602_p2, 1, 0 }
  0x7d   : > { %s17002_s5 = sld [smem:[#allocation72_spill]]  ;;  %s16921_s10 = scalar_lea.sflag [#allocation15], %s13417_s22 }
  0x7e   : > { %p16923_p13 = pneg %p13602_p2 }
  0x83   : > { %s13612_s24 = scalar_lea.hbm %s17002_s5, %s9993_s9  ;;  %s12960_s11 = scalar_lea.hbm %s17002_s5, 73728 }
  0x84   : > { %s12955_s3 = scalar_lea.hbm %s13612_s24, 18432  ;;  %p12961_p7 = scmp.lt.u32.totalorder %s13612_s24, %s17002_s5 }
  0x85   : > { %p12956_p11 = scmp.ne.s32.totalorder %s13612_s24, %s12955_s3  ;;  %p12962_p9 = scmp.lt.u32.totalorder %s12960_s11, %s12955_s3 }
  0x86   : > { %p12964_p6 = scmp.lt.u32.totalorder %s12955_s3, %s13612_s24 }
  0x87   : > { %p12958_p8 = pnand %p16923_p13, %p12956_p11  ;;  %p12963_p1 = por %p12962_p9, %p12961_p7 }
  0x89   : > { %p12959_p5 = pneg %p12958_p8  ;;  %p12965_p0 = por %p12964_p6, %p12963_p1 }
  0x8b   : > { %p12966_p12 = pnand %p12965_p0, %p12959_p5 }
  0x8d   : > { %12969 = shalt.err (!%p12966_p12)
}
  0x8e   : > { %s12970_s9 = scalar_lea.vmem %s13607_s23, 18432  ;;  %s13268_s26 = smov [#allocation14]  }
  0x8f   : > { %p12971_p11 = scmp.ne.s32.totalorder %s13607_s23, %s12970_s9  ;;  %s12975_s1 = sshll.u32 %s13268_s26, 4  ;;  %s12976_s1 = int_to_ptr.vmem [resolvable:$false] %s12975_s1 }
  0x90   : > { %s12977_s25 = scalar_lea.vmem %s12976_s1, 36864  ;;  %p12978_p4 = scmp.lt.s32.totalorder %s13607_s23, %s12976_s1 }
  0x91   : > { %p12973_p8 = pnand %p12971_p11, %p16923_p13  ;;  %p12979_p7 = scmp.lt.s32.totalorder %s12977_s25, %s12970_s9 }
  0x93   : > { %p12974_p3 = pneg %p12973_p8  ;;  %p12980_p9 = por %p12979_p7, %p12978_p4 }
  0x95   : > { %p12981_p1 = pnand %p12980_p9, %p12974_p3 }
  0x97   : > { %12984 = shalt.err (!%p12981_p1)
}
  0x98   : > { %s13269_s3 = smov 64   ;;  %s13270_s11 = smov 4  }
  0x99   : > { %s17003_s15 = smov 128   ;;  %p9980_p5 = scmp.ge.s32.totalorder %s13261_s18, 1 }
  0x9a   : > { %12312 = dma.hbm_to_vmem [thread:$0]  (!%p13602_p2), %s13612_s24, 18432, %s13607_s23, %s16921_s10, %s17003_s15, %s13269_s3, %s13270_s11  }
  0x9b   : > { %p276_p4 = scmp.lt.s32.totalorder %s13261_s18, 5  ;;  %s13271_s9 = smov [#allocation5]  }
  0x9c   : > { %s288_s26 = sshll.u32 %s13271_s9, 4  ;;  %s17005_s1 = sand.u32 1, %s13241_s13   ;;  %s13649_s26 = int_to_ptr.vmem [resolvable:$true] %s288_s26 }
  0x9d   : > { %p13645_p3 = pnand %p9980_p5, %p276_p4  ;;  %s9985_s25 = sshll.u32 %s17005_s1, 1 }
  0x9e   : > { %s9986_s5 = sshll.u32 %s13253_s16, 5  ;;  %s329_s28 = scalar_lea.vmem [#allocation10], %s9985_s25 }
  0x9f   : > { %s17004_s27 = scalar_select %p13645_p3, 1, 0 }
  0xa0   : > { %p12293_p6 = pneg %p13645_p3  ;;  %s336_s19 = sshll.u32 %s329_s28, 4  ;;  %s13667_s19 = int_to_ptr.vmem [resolvable:$true] %s336_s19 }
  0xa1   : > { %p17006_p0 = scmp.eq.s32.totalorder %s13467_s20, 0  ;;  %s13665_s11 = scalar_lea.hbm %s16877_s2, %s9986_s5 }
  0xa2   : > { %s366_s15 = scalar_lea.vmem [#allocation13], %s13525_s7  ;;  %s12985_s28 = scalar_lea.hbm %s16875_s0, 4096 }
  0xa3   : > { %p13658_p12 = pnand %p12293_p6, %p17006_p0  ;;  %s374_s9 = sshll.u32 %s366_s15, 4  ;;  %s13670_s9 = int_to_ptr.vmem [resolvable:$true] %s374_s9 }
  0xa4   : > { %p12986_p11 = scmp.ne.s32.totalorder %s16875_s0, %s12985_s28  ;;  %p12992_p1 = scmp.lt.u32.totalorder %s12985_s28, %s16875_s0 }
  0xa5   : > { %p12987_p8 = pneg %p13658_p12 }
  0xa7   : > { %p12988_p7 = pnand %p12987_p8, %p12986_p11 }
  0xa9   : > { %p12989_p9 = pneg %p12988_p7 }
  0xab   : > { %p12994_p5 = pnand %p12992_p1, %p12989_p9 }
  0xad   : > { %12997 = shalt.err (!%p12994_p5)
}
  0xae   : > { %s12998_s7 = scalar_lea.vmem %s13649_s26, 4096  ;;  %p13006_p13 = scmp.lt.s32.totalorder %s13649_s26, %s13649_s26 }
  0xaf   : > { %p12999_p4 = scmp.ne.s32.totalorder %s13649_s26, %s12998_s7  ;;  %p13007_p3 = scmp.lt.s32.totalorder %s12998_s7, %s12998_s7 }
  0xb1   : > { %p13001_p6 = pnand %p12999_p4, %p12987_p8  ;;  %p13008_p2 = por %p13007_p3, %p13006_p13 }
  0xb3   : > { %p13002_p0 = pneg %p13001_p6 }
  0xb5   : > { %p13009_p10 = pnand %p13008_p2, %p13002_p0 }
  0xb7   : > { %13012 = shalt.err (!%p13009_p10)
}
  0xb8   : > { %s13272_s13 = smov 16   ;;  %s17008_s10 = smov 256  }
  0xb9   : > { %12296 = dma.hbm_to_vmem [thread:$0]  (!%p13658_p12), %s16875_s0, 4096, %s13649_s26, [#allocation6], %s17008_s10, %s17008_s10, %s13272_s13  }
  0xba   : > { %s13013_s1 = scalar_lea.hbm %s13665_s11, 32  ;;  %p17009_p13 = scmp.ne.s32.totalorder %s16974_s21, 0 }
  0xbb   : > { %p13014_p11 = scmp.ne.s32.totalorder %s13665_s11, %s13013_s1  ;;  %s13018_s28 = scalar_lea.hbm %s16877_s2, 64 }
  0xbc   : > { %p17010_p2 = pneg %p17009_p13  ;;  %p13019_p8 = scmp.lt.u32.totalorder %s13665_s11, %s16877_s2 }
  0xbd   : > { %p13020_p7 = scmp.lt.u32.totalorder %s13018_s28, %s13013_s1  ;;  %p13022_p1 = scmp.lt.u32.totalorder %s13013_s1, %s13665_s11 }
  0xbe   : > { %p13016_p10 = pnand %p13014_p11, %p17010_p2 }
  0xbf   : > { %p13021_p9 = por %p13020_p7, %p13019_p8 }
  0xc0   : > { %p13017_p3 = pneg %p13016_p10 }
  0xc1   : > { %p13023_p5 = por %p13022_p1, %p13021_p9 }
  0xc3   : > { %p13024_p4 = pnand %p13023_p5, %p13017_p3 }
  0xc5   : > { %13027 = shalt.err (!%p13024_p4)
}
  0xc6   : > { %s13028_s26 = scalar_lea.vmem %s13667_s19, 32  ;;  %p17011_p6 = pmov %p17010_p2 }
  0xc7   : > { %p13029_p12 = scmp.ne.s32.totalorder %s13667_s19, %s13028_s26  ;;  %s13273_s7 = smov [#allocation10]  }
  0xc8   : > { %s13033_s13 = sshll.u32 %s13273_s7, 4  ;;  %s13034_s13 = int_to_ptr.vmem [resolvable:$false] %s13033_s13 }
  0xc9   : > { %p13031_p0 = pnand %p13029_p12, %p17011_p6  ;;  %s13035_s10 = scalar_lea.vmem %s13034_s13, 64 }
  0xca   : > { %p13036_p2 = scmp.lt.s32.totalorder %s13667_s19, %s13034_s13  ;;  %p13037_p10 = scmp.lt.s32.totalorder %s13035_s10, %s13028_s26 }
  0xcb   : > { %p13032_p11 = pneg %p13031_p0 }
  0xcc   : > { %p13038_p8 = por %p13037_p10, %p13036_p2 }
  0xce   : > { %p13039_p7 = pnand %p13038_p8, %p13032_p11 }
  0xd0   : > { %13042 = shalt.err (!%p13039_p7)
}
  0xd1   : > { %s17012_s3 = scalar_lea.sflag [#allocation9], %s13417_s22  ;;  %s13043_s15 = scalar_lea.hbm %s13576_s8, 32 }
  0xd2   : > { %12303 = dma.hbm_to_vmem [thread:$0]  (!%p17009_p13), %s13665_s11, 32, %s13667_s19, %s17012_s3  }
  0xd3   : > { %p13044_p3 = scmp.ne.s32.totalorder %s13576_s8, %s13043_s15  ;;  %p17013_p9 = scmp.ne.s32.totalorder %s16993_s14, 0 }
  0xd4   : > { %s13048_s21 = scalar_lea.hbm %s16879_s4, 64  ;;  %p13049_p12 = scmp.lt.u32.totalorder %s13576_s8, %s16879_s4 }
  0xd5   : > { %p17014_p1 = pneg %p17013_p9  ;;  %p13050_p6 = scmp.lt.u32.totalorder %s13048_s21, %s13043_s15 }
  0xd6   : > { %p13052_p11 = scmp.lt.u32.totalorder %s13043_s15, %s13576_s8 }
  0xd7   : > { %p13046_p5 = pnand %p13044_p3, %p17014_p1  ;;  %p13051_p0 = por %p13050_p6, %p13049_p12 }
  0xd9   : > { %p13047_p4 = pneg %p13046_p5  ;;  %p13053_p2 = por %p13052_p11, %p13051_p0 }
  0xdb   : > { %p13054_p10 = pnand %p13053_p2, %p13047_p4 }
  0xdd   : > { %13057 = shalt.err (!%p13054_p10)
}
  0xde   : > { %s13058_s19 = scalar_lea.vmem %s13670_s9, 32  ;;  %p17015_p8 = pmov %p17014_p1 }
  0xdf   : > { %p13059_p13 = scmp.ne.s32.totalorder %s13670_s9, %s13058_s19  ;;  %s13274_s11 = smov [#allocation13]  }
  0xe0   : > { %s13063_s5 = sshll.u32 %s13274_s11, 4  ;;  %s13064_s5 = int_to_ptr.vmem [resolvable:$false] %s13063_s5 }
  0xe1   : > { %p13061_p7 = pnand %p13059_p13, %p17015_p8  ;;  %s13065_s23 = scalar_lea.vmem %s13064_s5, 64 }
  0xe2   : > { %p13066_p1 = scmp.lt.s32.totalorder %s13670_s9, %s13064_s5  ;;  %p13067_p5 = scmp.lt.s32.totalorder %s13065_s23, %s13058_s19 }
  0xe3   : > { %p13062_p3 = pneg %p13061_p7 }
  0xe4   : > { %p13068_p12 = por %p13067_p5, %p13066_p1 }
  0xe6   : > { %p13069_p6 = pnand %p13068_p12, %p13062_p3 }
  0xe8   : > { %13072 = shalt.err (!%p13069_p6)
}
  0xe9   : > { %s17016_s26 = scalar_lea.sflag [#allocation12], %s13417_s22  ;;  %s9994_s7 = sshll.u32 %s13257_s17, 1 }
  0xea   : > { %12309 = dma.hbm_to_vmem [thread:$0]  (!%p17013_p9), %s13576_s8, 32, %s13670_s9, %s17016_s26  }
  0xeb   : > { %s411_s13 = sadd.s32 %s13253_s16, %s9994_s7  ;;  %s17017_s10 = sand.u32 1, %s13217_s29  }
  0xec   : > { %s406_s3 = scalar_lea.vmem [#allocation16], %s17017_s10  ;;  %s9995_s1 = sshll.u32 %s411_s13, 4 }
  0xed   : > { %s415_s15 = sshll.u32 %s406_s3, 4  ;;  %s413_s14 = scalar_lea.hbm %s16881_s6, %s9995_s1  ;;  %s416_s15 = int_to_ptr.vmem [resolvable:$true] %s415_s15 }
  0xee   : > { %s13073_s24 = scalar_lea.hbm %s413_s14, 16  ;;  %p17018_p0 = scmp.ne.s32.totalorder %s17001_s30, 0 }
  0xef   : > { %p13074_p4 = scmp.ne.s32.totalorder %s413_s14, %s13073_s24  ;;  %s13078_s8 = scalar_lea.hbm %s16881_s6, 64 }
  0xf0   : > { %p17019_p11 = pneg %p17018_p0  ;;  %p13079_p9 = scmp.lt.u32.totalorder %s413_s14, %s16881_s6 }
  0xf1   : > { %p13080_p13 = scmp.lt.u32.totalorder %s13078_s8, %s13073_s24  ;;  %p13082_p7 = scmp.lt.u32.totalorder %s13073_s24, %s413_s14 }
  0xf2   : > { %p13076_p2 = pnand %p13074_p4, %p17019_p11 }
  0xf3   : > { %p13081_p8 = por %p13080_p13, %p13079_p9 }
  0xf4   : > { %p13077_p10 = pneg %p13076_p2 }
  0xf5   : > { %p13083_p3 = por %p13082_p7, %p13081_p8 }
  0xf7   : > { %p13084_p1 = pnand %p13083_p3, %p13077_p10 }
  0xf9   : > { %13087 = shalt.err (!%p13084_p1)
}
  0xfa   : > { %s13088_s5 = scalar_lea.vmem %s416_s15, 16  ;;  %p17020_p12 = pmov %p17019_p11 }
  0xfb   : > { %p13089_p5 = scmp.ne.s32.totalorder %s416_s15, %s13088_s5  ;;  %s13275_s23 = smov [#allocation16]  }
  0xfc   : > { %s13093_s26 = sshll.u32 %s13275_s23, 4  ;;  %s13094_s26 = int_to_ptr.vmem [resolvable:$false] %s13093_s26 }
  0xfd   : > { %p13091_p6 = pnand %p13089_p5, %p17020_p12  ;;  %s13095_s7 = scalar_lea.vmem %s13094_s26, 32 }
  0xfe   : > { %p13096_p11 = scmp.lt.s32.totalorder %s416_s15, %s13094_s26  ;;  %p13097_p2 = scmp.lt.s32.totalorder %s13095_s7, %s13088_s5 }
  0xff   : > { %p13092_p4 = pneg %p13091_p6 }
 0x100   : > { %p13098_p9 = por %p13097_p2, %p13096_p11 }
 0x102   : > { %p13099_p13 = pnand %p13098_p9, %p13092_p4 }
 0x104   : > { %13102 = shalt.err (!%p13099_p13)
}
 0x105   : > { %s17021_s13 = scalar_lea.sflag [#allocation15], %s13417_s22  ;;  %p17022_p10 = scmp.ne.s32.totalorder %s17004_s27, 0 }
 0x106   : > { %12315 = dma.hbm_to_vmem [thread:$0]  (!%p17018_p0), %s413_s14, 16, %s416_s15, %s17021_s13  }
 0x107   : > { %424 = sbr.rel (%p17022_p10) target bundleno = 2736 (0xab0), region = 52 }
 0x10e   : > { %p17023_p8 = scmp.eq.s32.totalorder %s13467_s20, 0 }
 0x110   : > { %13188 = dma.done.wait (%p17023_p8), [#allocation6], 4096   ;;  %p17024_p7 = pmov %p17023_p8 }
 0x111   : > { %s17025_s10 = sld [smem:[#allocation32_spill]]  ;;  %s430_s3 = sand.u32 1, %s13467_s20  }
 0x112   : > { %13190 = vsyncadd (%p17024_p7), [#allocation6], 4294963200  ;;  %s13776_s1 = sand.u32 1, %s13237_s12   ;;  %s431_s22 = scalar_lea.sflag [#allocation9], %s430_s3 }
 0x113   : > { %s9998_s30 = sshll.u32 %s13776_s1, 7 }
 0x114   : > { %s13781_s15 = scalar_lea.vmem [#allocation8], %s9998_s30 }
 0x117   : > { %p17026_p0 = scmp.ne.s32.totalorder %s17025_s10, 0 }
 0x119   : > { %13192 = dma.done.wait (%p17026_p0), %s431_s22, 2080  }
 0x11a   : > { %13194 = vsyncadd (%p17026_p0), %s431_s22, 4294965216  ;;  %s17027_s27 = sld [smem:[#allocation24_spill]]  ;;  %s17028_s25 = sld [smem:[#allocation35_spill]] }
 0x11b   : > { %s9999_s21 = sshll.u32 %s13776_s1, 1  ;;  %s449_s28 = scalar_lea.sflag [#allocation12], %s430_s3 }
 0x11c   : > { %s13789_s24 = scalar_lea.vmem [#allocation10], %s9999_s21 }
 0x120   : > { %s450_s14 = sand.u32 1, %s17027_s27   ;;  %p17029_p3 = scmp.ne.s32.totalorder %s17028_s25, 0 }
 0x121   : > { %s10000_s20 = sshll.u32 %s450_s14, 1 }
 0x122   : > { %s13791_s19 = scalar_lea.vmem [#allocation11], %s10000_s20 }
 0x123   : > { %13196 = dma.done.wait (%p17029_p3), %s449_s28, 64  }
 0x124   : > { %13198 = vsyncadd (%p17029_p3), %s449_s28, 4294967232  ;;  %s17030_s8 = sld [smem:[#allocation23_spill]]  ;;  %s13800_s23 = scalar_lea.vmem [#allocation13], %s10000_s20 }
 0x125   : > { %s17031_s9 = sld [smem:[#allocation39_spill]]  ;;  %s467_s26 = scalar_lea.sflag [#allocation15], %s430_s3 }
 0x12a   : > { %s468_s11 = sand.u32 1, %s17030_s8  }
 0x12b   : > { %s12274_s5 = smul.u32 1152, %s468_s11  ;;  %p17032_p1 = scmp.ne.s32.totalorder %s17031_s9, 0 }
 0x12d   : > { %s13802_s7 = scalar_lea.vmem [#allocation14], %s12274_s5 }
 0x12e   : > { %13200 = dma.done.wait (%p17032_p1), %s467_s26, 18448  }
 0x12f   : > { %13202 = vsyncadd (%p17032_p1), %s467_s26, 4294948848  ;;  %s17033_s22 = sld [smem:[#allocation73_spill]]  ;;  %s13970_s21 = scalar_lea.vmem [#allocation16], %s468_s11 }
 0x130   : > { %s13974_s14 = scalar_lea.vmem [#allocation17], %s9998_s30  ;;  %s17064_s3 = sld [smem:[#allocation28_spill]] }
 0x135   : > { %v13811_v0 = vld [vmem:[%s17033_s22] sm:$0xff]  ;;  %v13816_v1 = vld [vmem:[%s17033_s22 + $0x8] sm:$0xff]  ;;  %v13821_v2 = vld [vmem:[%s17033_s22 + $0x10] sm:$0xff] }
 0x136   : > { %17034 = vst [vmem:[#allocation40_spill] sm:$0xff] %v13811_v0  ;;  %17035 = vst [vmem:[#allocation41_spill] sm:$0xff] %v13816_v1  ;;  %v13826_v3 = vld [vmem:[%s17033_s22 + $0x18] sm:$0xff]  ;;  %v13831_v4 = vld [vmem:[%s17033_s22 + $0x20] sm:$0xff]  ;;  %p10003_p5 = scmp.ne.s32.totalorder %s17064_s3, 0 }
 0x137   : > { %17036 = vst [vmem:[#allocation42_spill] sm:$0xff] %v13821_v2  ;;  %17037 = vst [vmem:[#allocation43_spill] sm:$0xff] %v13826_v3  ;;  %v13836_v5 = vld [vmem:[%s17033_s22 + $0x28] sm:$0xff]  ;;  %v13841_v6 = vld [vmem:[%s17033_s22 + $0x30] sm:$0xff]  ;;  %s17065_s20 = sld [smem:[#allocation29_spill]] (!%p10003_p5) }
 0x138   : > { %17038 = vst [vmem:[#allocation44_spill] sm:$0xff] %v13831_v4  ;;  %17039 = vst [vmem:[#allocation45_spill] sm:$0xff] %v13836_v5  ;;  %v13846_v7 = vld [vmem:[%s17033_s22 + $0x38] sm:$0xff]  ;;  %v13851_v8 = vld [vmem:[%s17033_s22 + $0x40] sm:$0xff] }
 0x139   : > { %17040 = vst [vmem:[#allocation46_spill] sm:$0xff] %v13841_v6  ;;  %17041 = vst [vmem:[#allocation47_spill] sm:$0xff] %v13846_v7  ;;  %v13856_v9 = vld [vmem:[%s17033_s22 + $0x48] sm:$0xff]  ;;  %v13861_v10 = vld [vmem:[%s17033_s22 + $0x50] sm:$0xff] }
 0x13a   : > { %17042 = vst [vmem:[#allocation48_spill] sm:$0xff] %v13851_v8  ;;  %17043 = vst [vmem:[#allocation49_spill] sm:$0xff] %v13856_v9  ;;  %v13866_v11 = vld [vmem:[%s17033_s22 + $0x58] sm:$0xff]  ;;  %v13871_v12 = vld [vmem:[%s17033_s22 + $0x60] sm:$0xff] }
 0x13b   : > { %17044 = vst [vmem:[#allocation50_spill] sm:$0xff] %v13861_v10  ;;  %17045 = vst [vmem:[#allocation51_spill] sm:$0xff] %v13866_v11  ;;  %v13876_v13 = vld [vmem:[%s17033_s22 + $0x68] sm:$0xff]  ;;  %v13881_v14 = vld [vmem:[%s17033_s22 + $0x70] sm:$0xff] }
 0x13c   : > { %17046 = vst [vmem:[#allocation52_spill] sm:$0xff] %v13871_v12  ;;  %17047 = vst [vmem:[#allocation53_spill] sm:$0xff] %v13876_v13  ;;  %v13886_v15 = vld [vmem:[%s17033_s22 + $0x78] sm:$0xff]  ;;  %v13891_v16 = vld [vmem:[%s17033_s22 + $0x80] sm:$0xff] }
 0x13d   : > { %17048 = vst [vmem:[#allocation54_spill] sm:$0xff] %v13881_v14  ;;  %17049 = vst [vmem:[#allocation55_spill] sm:$0xff] %v13886_v15  ;;  %v13896_v17 = vld [vmem:[%s17033_s22 + $0x88] sm:$0xff]  ;;  %v13901_v18 = vld [vmem:[%s17033_s22 + $0x90] sm:$0xff]  ;;  %p10004_p12 = scmp.ne.s32.totalorder (!%p10003_p5), %s17065_s20, 0 }
 0x13e   : > { %17050 = vst [vmem:[#allocation56_spill] sm:$0xff] %v13901_v18  ;;  %v13906_v19 = vld [vmem:[%s17033_s22 + $0x98] sm:$0xff]  ;;  %v13911_v20 = vld [vmem:[%s17033_s22 + $0xa0] sm:$0xff]  ;;  %v13916_v21 = vld [vmem:[%s17033_s22 + $0xa8] sm:$0xff] }
 0x13f   : > { %17051 = vst [vmem:[#allocation57_spill] sm:$0xff] %v13906_v19  ;;  %17052 = vst [vmem:[#allocation58_spill] sm:$0xff] %v13911_v20  ;;  %v13921_v22 = vld [vmem:[%s17033_s22 + $0xb0] sm:$0xff]  ;;  %v13926_v23 = vld [vmem:[%s17033_s22 + $0xb8] sm:$0xff]  ;;  %571 = sbr.rel (%p10003_p5) target bundleno = 2147 (0x863), region = 84 }
 0x140   : > { %17053 = vst [vmem:[#allocation59_spill] sm:$0xff] %v13916_v21  ;;  %17054 = vst [vmem:[#allocation60_spill] sm:$0xff] %v13921_v22  ;;  %v13931_v24 = vld [vmem:[%s17033_s22 + $0xc0] sm:$0xff]  ;;  %v13936_v25 = vld [vmem:[%s17033_s22 + $0xc8] sm:$0xff] }
 0x141   : > { %17055 = vst [vmem:[#allocation61_spill] sm:$0xff] %v13926_v23  ;;  %17056 = vst [vmem:[#allocation62_spill] sm:$0xff] %v13931_v24  ;;  %v13941_v26 = vld [vmem:[%s17033_s22 + $0xd0] sm:$0xff]  ;;  %v13946_v27 = vld [vmem:[%s17033_s22 + $0xd8] sm:$0xff] }
 0x142   : > { %17057 = vst [vmem:[#allocation63_spill] sm:$0xff] %v13936_v25  ;;  %17058 = vst [vmem:[#allocation64_spill] sm:$0xff] %v13941_v26  ;;  %v13951_v28 = vld [vmem:[%s17033_s22 + $0xe0] sm:$0xff]  ;;  %v13956_v29 = vld [vmem:[%s17033_s22 + $0xe8] sm:$0xff] }
 0x143   : > { %17059 = vst [vmem:[#allocation65_spill] sm:$0xff] %v13946_v27  ;;  %17060 = vst [vmem:[#allocation66_spill] sm:$0xff] %v13951_v28  ;;  %v13961_v30 = vld [vmem:[%s17033_s22 + $0xf0] sm:$0xff]  ;;  %v13966_v31 = vld [vmem:[%s17033_s22 + $0xf8] sm:$0xff] }
 0x144   : > { %17061 = vst [vmem:[#allocation67_spill] sm:$0xff] %v13956_v29  ;;  %17062 = vst [vmem:[#allocation68_spill] sm:$0xff] %v13961_v30 }
 0x145   : > { %17063 = vst [vmem:[#allocation69_spill] sm:$0xff] %v13966_v31 }
 0x146   : > { %575 = sbr.rel (%p10004_p12) target bundleno = 1233 (0x4d1), region = 88  ;;  %v13980_v32 = vpack.c.bf16 (!%p10004_p12), %v13896_v17, %v13891_v16  ;;  %v13984_v33 = vpack.c.bf16 (!%p10004_p12), %v13816_v1, %v13811_v0  ;;  %v13988_v34 = vpack.c.bf16 (!%p10004_p12), %v13906_v19, %v13901_v18  ;;  %v13990_v35 = vld [vmem:[#allocation5 + $0x8] sm:$0xff] (!%p10004_p12)  ;;  %v13992_v36 = vld [vmem:[#allocation5 + $0x18] sm:$0xff] (!%p10004_p12)  ;;  %v13996_v37 = vld [vmem:[#allocation5] sm:$0xff] (!%p10004_p12)  ;;  %v14002_v38 = vpack.c.bf16 (!%p10004_p12), %v13826_v3, %v13821_v2 }
 0x147   : > { %v14004_v39 = vld [vmem:[#allocation5 + $0x28] sm:$0xff] (!%p10004_p12)  ;;  %v14006_v40 = vld [vmem:[#allocation5 + $0x10] sm:$0xff] (!%p10004_p12)  ;;  %v14012_v41 = vpack.c.bf16 (!%p10004_p12), %v13916_v21, %v13911_v20  ;;  %v14014_v42 = vld [vmem:[#allocation5 + $0x38] sm:$0xff] (!%p10004_p12)  ;;  %v763_v43 = vadd.f32 (!%p10004_p12), %v13992_v36, %v13990_v35  ;;  %v777_v46 = vmul.f32 (!%p10004_p12), %v13990_v35, %v13990_v35  ;;  %v779_v47 = vmul.f32 (!%p10004_p12), %v13992_v36, %v13992_v36 }
 0x148   : > { %11617 = vmatprep.subr.bf16.mxu0 (!%p10004_p12), %v13980_v32  ;;  %11649 = vmatprep.subr.bf16.mxu1 (!%p10004_p12), %v13980_v32  ;;  %v14018_v44 = vld [vmem:[#allocation5 + $0x20] sm:$0xff] (!%p10004_p12)  ;;  %v750_v45 = vadd.f32 (!%p10004_p12), %v14006_v40, %v13996_v37  ;;  %v14028_v48 = vpack.c.bf16 (!%p10004_p12), %v13836_v5, %v13831_v4  ;;  %v14031_v50 = vld [vmem:[#allocation5 + $0x30] sm:$0xff] (!%p10004_p12)  ;;  %v781_v51 = vmul.f32 (!%p10004_p12), %v14004_v39, %v14004_v39  ;;  %v14041_v53 = vld [vmem:[#allocation5 + $0x48] sm:$0xff] (!%p10004_p12)  ;;  %vm963_vm0 = vcmask (!%p10004_p12), 261120  }
 0x149   : > { %11619 = vmatpush3.bf16.msra.mxu0 (!%p10004_p12), %v13984_v33  ;;  %11651 = vmatpush3.bf16.msra.mxu1 (!%p10004_p12), %v13984_v33  ;;  %v764_v49 = vadd.f32 (!%p10004_p12), %v763_v43, %v14004_v39  ;;  %v14039_v52 = vpack.c.bf16 (!%p10004_p12), %v13926_v23, %v13921_v22  ;;  %v783_v55 = vmul.f32 (!%p10004_p12), %v14014_v42, %v14014_v42  ;;  %v14048_v56 = vld [vmem:[#allocation5 + $0x58] sm:$0xff] (!%p10004_p12)  ;;  %v14051_v58 = vld [vmem:[#allocation5 + $0x40] sm:$0xff] (!%p10004_p12)  ;;  %vm14154_vm1 = vmpackc.low (!%p10004_p12), %vm963_vm0, %vm963_vm0  ;;  %vm2261_vm3 = vcmask (!%p10004_p12), 1046528  }
 0x14a   : > { %11621 = vmatprep.subr.bf16.mxu0 (!%p10004_p12), %v13988_v34  ;;  %11653 = vmatprep.subr.bf16.mxu1 (!%p10004_p12), %v13988_v34  ;;  %v751_v54 = vadd.f32 (!%p10004_p12), %v750_v45, %v14018_v44  ;;  %v805_v59 = vadd.f32 (!%p10004_p12), %v779_v47, %v777_v46  ;;  %v776_v60 = vmul.f32 (!%p10004_p12), %v13996_v37, %v13996_v37  ;;  %v14066_v45 = vld [vmem:[#allocation5 + $0x68] sm:$0xff] (!%p10004_p12)  ;;  %v14069_v47 = vld [vmem:[#allocation5 + $0x50] sm:$0xff] (!%p10004_p12)  ;;  %vm2406_vm4 = vcmask (!%p10004_p12), 1045504  }
 0x14b   : > { %v765_v57 = vadd.f32 (!%p10004_p12), %v764_v49, %v14014_v42  ;;  %v14057_v61 = vpack.c.bf16 (!%p10004_p12), %v13846_v7, %v13841_v6  ;;  %v14061_v62 = vpack.c.bf16 (!%p10004_p12), %v13936_v25, %v13931_v24  ;;  %v778_v43 = vmul.f32 (!%p10004_p12), %v14006_v40, %v14006_v40  ;;  %v14087_v24 = vld [vmem:[#allocation5 + $0x60] sm:$0xff] (!%p10004_p12)  ;;  %v734_v19 = vld [vmem:[#allocation5 + $0x90] sm:$0xff] (!%p10004_p12) }
 0x14c   : > { %v752_v63 = vadd.f32 (!%p10004_p12), %v751_v54, %v14031_v50  ;;  %v785_v49 = vmul.f32 (!%p10004_p12), %v14041_v53, %v14041_v53  ;;  %v806_v7 = vadd.f32 (!%p10004_p12), %v805_v59, %v781_v51  ;;  %v780_v6 = vmul.f32 (!%p10004_p12), %v14018_v44, %v14018_v44  ;;  %v14084_v51 = vld [vmem:[#allocation5 + $0x78] sm:$0xff] (!%p10004_p12) }
 0x14d   : > { %11623 = vmatpush3.bf16.msra.mxu0 %v14002_v38  ;;  %11655 = vmatpush3.bf16.msra.mxu1 %v14002_v38  ;;  %v766_v46 = vadd.f32 %v765_v57, %v14041_v53  ;;  %v787_v25 = vmul.f32 %v14048_v56, %v14048_v56  ;;  %v782_v57 = vmul.f32 %v14031_v50, %v14031_v50 }
 0x14e   : > { %11625 = vmatprep.subr.bf16.mxu0 %v14012_v41  ;;  %11657 = vmatprep.subr.bf16.mxu1 %v14012_v41  ;;  %v753_v54 = vadd.f32 %v752_v63, %v14051_v58  ;;  %v807_v23 = vadd.f32 %v806_v7, %v783_v55  ;;  %v792_v22 = vadd.f32 %v778_v43, %v776_v60 }
 0x14f   : > { %v767_v59 = vadd.f32 %v766_v46, %v14048_v56  ;;  %v14091_v63 = vpack.c.bf16 %v13856_v9, %v13851_v8  ;;  %v14095_v5 = vpack.c.bf16 %v13946_v27, %v13941_v26  ;;  %v789_v21 = vmul.f32 %v14066_v45, %v14066_v45  ;;  %v14101_v46 = vld [vmem:[#allocation5 + $0x70] sm:$0xff] }
 0x150   : > { %v754_v4 = vadd.f32 %v753_v54, %v14069_v47  ;;  %v808_v3 = vadd.f32 %v807_v23, %v785_v49  ;;  %v784_v7 = vmul.f32 %v14051_v58, %v14051_v58  ;;  %v793_v55 = vadd.f32 %v792_v22, %v780_v6 }
 0x151   : > { %11627 = vmatpush3.bf16.msra.mxu0 %v14028_v48  ;;  %11659 = vmatpush3.bf16.msra.mxu1 %v14028_v48  ;;  %v768_v20 = vadd.f32 %v767_v59, %v14066_v45  ;;  %v791_v43 = vmul.f32 %v14084_v51, %v14084_v51  ;;  %v786_v54 = vmul.f32 %v14069_v47, %v14069_v47 }
 0x152   : > { %11629 = vmatprep.subr.bf16.mxu0 %v14039_v52  ;;  %11661 = vmatprep.subr.bf16.mxu1 %v14039_v52  ;;  %v755_v60 = vadd.f32 %v754_v4, %v14087_v24  ;;  %v809_v49 = vadd.f32 %v808_v3, %v787_v25  ;;  %v794_v6 = vadd.f32 %v793_v55, %v782_v57 }
 0x153   : > { %v769_v23 = vadd.f32 %v768_v20, %v14084_v51  ;;  %v788_v4 = vmul.f32 %v14087_v24, %v14087_v24  ;;  %v14122_v9 = vpack.c.bf16 %v13866_v11, %v13861_v10  ;;  %v14126_v3 = vpack.c.bf16 %v13956_v29, %v13951_v28 }
 0x154   : > { %v756_v22 = vadd.f32 %v755_v60, %v14101_v46  ;;  %v810_v27 = vadd.f32 %v809_v49, %v789_v21  ;;  %v795_v26 = vadd.f32 %v794_v6, %v784_v7  ;;  %v790_v21 = vmul.f32 %v14101_v46, %v14101_v46 }
 0x155   : > { %11631 = vmatpush3.bf16.msra.mxu0 %v14057_v61  ;;  %11663 = vmatpush3.bf16.msra.mxu1 %v14057_v61  ;;  %v770_v59 = vrot.slane %v769_v23, 4  ;;  %v14136_v29 = vpack.c.bf16 %v13876_v13, %v13871_v12  ;;  %v14140_v28 = vpack.c.bf16 %v13966_v31, %v13961_v30  ;;  %v747_v12 = vld [vmem:[#allocation5 + $0xf8] sm:$0xff] }
 0x156   : > { %11633 = vmatprep.subr.bf16.mxu0 %v14061_v62  ;;  %11665 = vmatprep.subr.bf16.mxu1 %v14061_v62  ;;  %v757_v20 = vrot.slane %v756_v22, 4  ;;  %v811_v57 = vadd.f32 %v810_v27, %v791_v43  ;;  %v796_v7 = vadd.f32 %v795_v26, %v786_v54 }
 0x157   : > { %v771_v25 = vadd.f32 %v770_v59, %v769_v23 }
 0x158   : > { %v758_v55 = vadd.f32 %v757_v20, %v756_v22  ;;  %v812_v49 = vrot.slane %v811_v57, 4  ;;  %v797_v6 = vadd.f32 %v796_v7, %v788_v4  ;;  %v14148_v4 = vpack.c.bf16 %v13886_v15, %v13881_v14  ;;  %v745_v14 = vld [vmem:[#allocation5 + $0xe8] sm:$0xff] }
 0x159   : > { %11635 = vmatpush3.bf16.msra.mxu0 %v14091_v63  ;;  %11667 = vmatpush3.bf16.msra.mxu1 %v14091_v63  ;;  %v772_v60 = vrot.slane %v771_v25, 2  ;;  %v1546_v2 = vmul.f32 %v745_v14, %v745_v14 }
 0x15a   : > { %11637 = vmatprep.subr.bf16.mxu0 %v14095_v5  ;;  %11669 = vmatprep.subr.bf16.mxu1 %v14095_v5  ;;  %v759_v11 = vrot.slane %v758_v55, 2  ;;  %v813_v27 = vadd.f32 %v812_v49, %v811_v57  ;;  %v798_v43 = vadd.f32 %v797_v6, %v790_v21 }
 0x15b   : > { %v773_v26 = vadd.f32 %v772_v60, %v771_v25 }
 0x15c   : > { %v760_v54 = vadd.f32 %v759_v11, %v758_v55  ;;  %v814_v22 = vrot.slane %v813_v27, 2  ;;  %v799_v59 = vrot.slane %v798_v43, 4 }
 0x15d   : > { %11639 = vmatpush3.bf16.msra.mxu0 %v14122_v9  ;;  %11671 = vmatpush3.bf16.msra.mxu1 %v14122_v9  ;;  %v774_v23 = vrot.slane %v773_v26, 1 }
 0x15e   : > { %11641 = vmatprep.subr.bf16.mxu0 %v14126_v3  ;;  %11673 = vmatprep.subr.bf16.mxu1 %v14126_v3  ;;  %v761_v20 = vrot.slane %v760_v54, 1  ;;  %v815_v21 = vadd.f32 %v814_v22, %v813_v27  ;;  %v800_v11 = vadd.f32 %v799_v59, %v798_v43  ;;  %v733_v43 = vld [vmem:[#allocation5 + $0x88] sm:$0xff] }
 0x15f   : > { %v775_v25 = vadd.f32 %v774_v23, %v773_v26  ;;  %v737_v22 = vld [vmem:[#allocation5 + $0xa8] sm:$0xff] }
 0x160   : > { %v762_v7 = vadd.f32 %v761_v20, %v760_v54  ;;  %v816_v55 = vrot.slane %v815_v21, 1  ;;  %v801_v60 = vrot.slane %v800_v11, 2  ;;  %v735_v54 = vld [vmem:[#allocation5 + $0x98] sm:$0xff] }
 0x161   : > { %11643 = vmatpush3.bf16.msra.mxu0 %v14136_v29  ;;  %11675 = vmatpush3.bf16.msra.mxu1 %v14136_v29  ;;  %v1520_v23 = vadd.f32 %v735_v54, %v733_v43  ;;  %v739_v20 = vld [vmem:[#allocation5 + $0xb8] sm:$0xff] }
 0x162   : > { %11645 = vmatprep.subr.bf16.mxu0 %v14140_v28  ;;  %11677 = vmatprep.subr.bf16.mxu1 %v14140_v28  ;;  %v817_v49 = vadd.f32 %v816_v55, %v815_v21  ;;  %v802_v6 = vadd.f32 %v801_v60, %v800_v11  ;;  %v1536_v21 = vmul.f32 %v735_v54, %v735_v54 }
 0x163   : > { %882 = vmatprep.mubr.f32.mxu0 %v775_v25  ;;  %v1521_v59 = vadd.f32 %v1520_v23, %v737_v22  ;;  %v1534_v25 = vmul.f32 %v733_v43, %v733_v43  ;;  %v1538_v55 = vmul.f32 %v737_v22, %v737_v22  ;;  %v1548_v22 = vmul.f32 %v747_v12, %v747_v12 }
 0x164   : > { %952 = vmatprep.mubr.f32.mxu1 %v817_v49  ;;  %v803_v26 = vrot.slane %v802_v6, 1 }
 0x165   : > { %11647 = vmatpush3.bf16.msra.mxu0 %v14148_v4  ;;  %11679 = vmatpush3.bf16.msra.mxu1 %v14148_v4  ;;  %v1522_v11 = vadd.f32 %v1521_v59, %v739_v20  ;;  %v1562_v60 = vadd.f32 %v1536_v21, %v1534_v25  ;;  %v732_v59 = vld [vmem:[#allocation5 + $0x80] sm:$0xff] }
 0x166   : > { %11682 = vmatprep.subr.msk.bf16.mxu0 %vm14154_vm1, %v13980_v32  ;;  %11730 = vmatprep.subr.msk.bf16.mxu1 %vm14154_vm1, %v13980_v32  ;;  %v804_v27 = vadd.f32 %v803_v26, %v802_v6  ;;  %v743_v6 = vld [vmem:[#allocation5 + $0xd8] sm:$0xff]  ;;  %v1540_v26 = vmul.f32 %v739_v20, %v739_v20  ;;  %v1507_v21 = vadd.f32 %v734_v19, %v732_v59  ;;  %v736_v20 = vld [vmem:[#allocation5 + $0xa0] sm:$0xff] }
 0x167   : > { %v1544_v10 = vmul.f32 %v743_v6, %v743_v6 }
 0x168   : > { %883 = vmatmul.mubr.f32.vlgmr.msra.gmra.mrb[0].mxu0 %v762_v7  ;;  %953 = vmatmul.mubr.f32.vlgmr.msra.gmra.mrb[0].mxu1 %v804_v27  ;;  %v741_v7 = vld [vmem:[#allocation5 + $0xc8] sm:$0xff]  ;;  %v1563_v27 = vadd.f32 %v1562_v60, %v1538_v55  ;;  %v1508_v60 = vadd.f32 %v1507_v21, %v736_v20 }
 0x169   : > { %v1523_v49 = vadd.f32 %v1522_v11, %v741_v7  ;;  %v1542_v31 = vmul.f32 %v741_v7, %v741_v7  ;;  %v1535_v7 = vmul.f32 %v734_v19, %v734_v19 }
 0x16a   : > { %v1564_v30 = vadd.f32 %v1563_v27, %v1540_v26 }
 0x16b   : > { %v1524_v15 = vadd.f32 %v1523_v49, %v743_v6  ;;  %v1533_v49 = vmul.f32 %v732_v59, %v732_v59 }
 0x16c   : > { %v1565_v8 = vadd.f32 %v1564_v30, %v1542_v31  ;;  %v1537_v30 = vmul.f32 %v736_v20, %v736_v20  ;;  %v744_v20 = vld [vmem:[#allocation5 + $0xe0] sm:$0xff] }
 0x16d   : > { %v1525_v13 = vadd.f32 %v1524_v15, %v745_v14  ;;  %v738_v15 = vld [vmem:[#allocation5 + $0xb0] sm:$0xff] }
 0x16e   : > { %11685 = vmatpush3.bf16.xpose.msk.msra.mxu0 %vm14154_vm1, %v13984_v33  ;;  %11733 = vmatpush3.bf16.xpose.msk.msra.mxu1 %vm14154_vm1, %v13984_v33  ;;  %v1566_v43 = vadd.f32 %v1565_v8, %v1544_v10  ;;  %v1509_v6 = vadd.f32 %v1508_v60, %v738_v15  ;;  %v740_v8 = vld [vmem:[#allocation5 + $0xc0] sm:$0xff]  ;;  %v1539_v18 = vmul.f32 %v738_v15, %v738_v15 }
 0x16f   : > { %11688 = vmatprep.subr.msk.bf16.mxu0 %vm14154_vm1, %v13988_v34  ;;  %11736 = vmatprep.subr.msk.bf16.mxu1 %vm14154_vm1, %v13988_v34  ;;  %v1526_v23 = vadd.f32 %v1525_v13, %v747_v12  ;;  %v1549_v13 = vadd.f32 %v1535_v7, %v1533_v49  ;;  %v1541_v19 = vmul.f32 %v740_v8, %v740_v8 }
 0x170   : > { %v1567_v25 = vadd.f32 %v1566_v43, %v1546_v2  ;;  %v1510_v31 = vadd.f32 %v1509_v6, %v740_v8 }
 0x171   : > { %v1527_v54 = vrot.slane %v1526_v23, 4  ;;  %v1550_v12 = vadd.f32 %v1549_v13, %v1537_v30 }
 0x172   : > { %v1568_v55 = vadd.f32 %v1567_v25, %v1548_v22 }
 0x173   : > { %v1528_v11 = vadd.f32 %v1527_v54, %v1526_v23  ;;  %v742_v23 = vld [vmem:[#allocation5 + $0xd0] sm:$0xff]  ;;  %v1551_v21 = vadd.f32 %v1550_v12, %v1539_v18 }
 0x174   : > { %v1569_v27 = vrot.slane %v1568_v55, 4  ;;  %v1511_v59 = vadd.f32 %v1510_v31, %v742_v23  ;;  %v1543_v15 = vmul.f32 %v742_v23, %v742_v23  ;;  %v746_v18 = vld [vmem:[#allocation5 + $0xf0] sm:$0xff] }
 0x175   : > { %v1529_v26 = vrot.slane %v1528_v11, 2  ;;  %v1547_v12 = vmul.f32 %v746_v18, %v746_v18 }
 0x176   : > { %11691 = vmatpush3.bf16.xpose.msk.msra.mxu0 %vm14154_vm1, %v14002_v38  ;;  %11739 = vmatpush3.bf16.xpose.msk.msra.mxu1 %vm14154_vm1, %v14002_v38  ;;  %v1570_v10 = vadd.f32 %v1569_v27, %v1568_v55  ;;  %v1552_v27 = vadd.f32 %v1551_v21, %v1541_v19 }
 0x177   : > { %11694 = vmatprep.subr.msk.bf16.mxu0 %vm14154_vm1, %v14012_v41  ;;  %11742 = vmatprep.subr.msk.bf16.mxu1 %vm14154_vm1, %v14012_v41  ;;  %v1530_v14 = vadd.f32 %v1529_v26, %v1528_v11  ;;  %v1512_v26 = vadd.f32 %v1511_v59, %v744_v20 }
 0x178   : > { %v1571_v25 = vrot.slane %v1570_v10, 2  ;;  %v1553_v8 = vadd.f32 %v1552_v27, %v1543_v15 }
 0x179   : > { %v1531_v43 = vrot.slane %v1530_v14, 1 }
 0x17a   : > { %v1572_v55 = vadd.f32 %v1571_v25, %v1570_v10 }
 0x17b   : > { %v1532_v60 = vadd.f32 %v1531_v43, %v1530_v14  ;;  %v1513_v14 = vadd.f32 %v1512_v26, %v746_v18 }
 0x17c   : > { %v1573_v13 = vrot.slane %v1572_v55, 1 }
 0x17d   : > { %v1514_v10 = vrot.slane %v1513_v14, 4 }
 0x17e   : > { %11697 = vmatpush3.bf16.xpose.msk.msra.mxu0 %vm14154_vm1, %v14028_v48  ;;  %11745 = vmatpush3.bf16.xpose.msk.msra.mxu1 %vm14154_vm1, %v14028_v48 }
 0x17f   : > { %11700 = vmatprep.subr.msk.bf16.mxu0 %vm14154_vm1, %v14039_v52  ;;  %11748 = vmatprep.subr.msk.bf16.mxu1 %vm14154_vm1, %v14039_v52  ;;  %v1515_v43 = vadd.f32 %v1514_v10, %v1513_v14 }
 0x186   : > { %11703 = vmatpush3.bf16.xpose.msk.msra.mxu0 %vm14154_vm1, %v14057_v61  ;;  %11751 = vmatpush3.bf16.xpose.msk.msra.mxu1 %vm14154_vm1, %v14057_v61 }
 0x187   : > { %11706 = vmatprep.subr.msk.bf16.mxu0 %vm14154_vm1, %v14061_v62  ;;  %11754 = vmatprep.subr.msk.bf16.mxu1 %vm14154_vm1, %v14061_v62 }
 0x18e   : > { %11709 = vmatpush3.bf16.xpose.msk.msra.mxu0 %vm14154_vm1, %v14091_v63  ;;  %11757 = vmatpush3.bf16.xpose.msk.msra.mxu1 %vm14154_vm1, %v14091_v63 }
 0x18f   : > { %11712 = vmatprep.subr.msk.bf16.mxu0 %vm14154_vm1, %v14095_v5  ;;  %11760 = vmatprep.subr.msk.bf16.mxu1 %vm14154_vm1, %v14095_v5 }
 0x196   : > { %11715 = vmatpush3.bf16.xpose.msk.msra.mxu0 %vm14154_vm1, %v14122_v9  ;;  %11763 = vmatpush3.bf16.xpose.msk.msra.mxu1 %vm14154_vm1, %v14122_v9 }
 0x197   : > { %11718 = vmatprep.subr.msk.bf16.mxu0 %vm14154_vm1, %v14126_v3  ;;  %11766 = vmatprep.subr.msk.bf16.mxu1 %vm14154_vm1, %v14126_v3 }
 0x19e   : > { %11721 = vmatpush3.bf16.xpose.msk.msra.mxu0 %vm14154_vm1, %v14136_v29  ;;  %11769 = vmatpush3.bf16.xpose.msk.msra.mxu1 %vm14154_vm1, %v14136_v29 }
 0x19f   : > { %11724 = vmatprep.subr.msk.bf16.mxu0 %vm14154_vm1, %v14140_v28  ;;  %11772 = vmatprep.subr.msk.bf16.mxu1 %vm14154_vm1, %v14140_v28 }
 0x1a6   : > { %11727 = vmatpush3.bf16.xpose.msk.msra.mxu0 %vm14154_vm1, %v14148_v4  ;;  %11775 = vmatpush3.bf16.xpose.msk.msra.mxu1 %vm14154_vm1, %v14148_v4 }
 0x1a7   : > { %11777 = vmatprep.subr.bf16.mxu0 %v13980_v32  ;;  %11809 = vmatprep.subr.bf16.mxu1 %v13980_v32 }
 0x23b   : > { %v10520_v2 = vpop.f32.mrb[0].mxu0  ;;  %v10555_v0 = vpop.f32.mrb[0].mxu1 }
 0x23c   : > { %v10521_v54 = vpop.f32.mrb[1].mxu0  ;;  %v10556_v49 = vpop.f32.mrb[1].mxu1 }
 0x23d   : > { %v10522_v22 = vadd.f32 %v10521_v54, %v10520_v2  ;;  %v10557_v11 = vadd.f32 %v10556_v49, %v10555_v0  ;;  %v1545_v0 = vmul.f32 %v744_v20, %v744_v20  ;;  %v1516_v54 = vrot.slane %v1515_v43, 2 }
 0x23f   : > { %v958_v1 = vmul.f32 0.001953125, %v10522_v22  ;;  %v959_v6 = vmul.f32 0.001953125, %v10557_v11  ;;  %v1554_v2 = vadd.f32 %v1553_v8, %v1545_v0  ;;  %v1517_v25 = vadd.f32 %v1516_v54, %v1515_v43 }
 0x241   : > { %v960_v7 = vmul.f32 %v958_v1, %v958_v1  ;;  %10590 = vmatprep.mubr.msk.f32.mxu0 %vm963_vm0, %v958_v1  ;;  %v1555_v23 = vadd.f32 %v1554_v2, %v1547_v12  ;;  %v1518_v19 = vrot.slane %v1517_v25, 1 }
 0x242   : > { %10591 = vmatmul.mubr.msk.f32.vlgmr.msra.gmra.mrb[2].mxu0 %vm963_vm0, %v958_v1  ;;  %v1574_v1 = vadd.f32 %v1573_v13, %v1572_v55 }
 0x243   : > { %11779 = vmatpush3.bf16.msra.mxu0 %v13984_v33  ;;  %1639 = vmatprep.mubr.f32.mxu0 %v1532_v60  ;;  %v961_v30 = vsub.f32 %v959_v6, %v960_v7  ;;  %v1556_v22 = vrot.slane %v1555_v23, 4  ;;  %v1519_v60 = vadd.f32 %v1518_v19, %v1517_v25 }
 0x244   : > { %11781 = vmatprep.subr.bf16.mxu0 %v13988_v34 }
 0x245   : > { %v962_v31 = vmax.f32 %v961_v30, 0.0  ;;  %v1557_v59 = vadd.f32 %v1556_v22, %v1555_v23 }
 0x247   : > { %11783 = vmatpush3.bf16.msra.mxu0 %v14002_v38  ;;  %10624 = vmatprep.mubr.msk.f32.mxu1 %vm963_vm0, %v962_v31  ;;  %v1558_v21 = vrot.slane %v1557_v59, 2 }
 0x248   : > { %11785 = vmatprep.subr.bf16.mxu0 %v14012_v41  ;;  %10625 = vmatmul.mubr.msk.f32.vlgmr.msra.gmra.mrb[2].mxu1 %vm963_vm0, %v962_v31 }
 0x249   : > { %11811 = vmatpush3.bf16.msra.mxu1 %v13984_v33  ;;  %1709 = vmatprep.mubr.f32.mxu1 %v1574_v1  ;;  %v1559_v20 = vadd.f32 %v1558_v21, %v1557_v59 }
 0x24a   : > { %11813 = vmatprep.subr.bf16.mxu1 %v13988_v34 }
 0x24b   : > { %11787 = vmatpush3.bf16.msra.mxu0 %v14028_v48  ;;  %v1560_v49 = vrot.slane %v1559_v20, 1 }
 0x24c   : > { %11789 = vmatprep.subr.bf16.mxu0 %v14039_v52 }
 0x24d   : > { %11815 = vmatpush3.bf16.msra.mxu1 %v14002_v38  ;;  %v1561_v11 = vadd.f32 %v1560_v49, %v1559_v20 }
 0x24e   : > { %11817 = vmatprep.subr.bf16.mxu1 %v14012_v41 }
 0x24f   : > { %11791 = vmatpush3.bf16.msra.mxu0 %v14057_v61 }
 0x250   : > { %11793 = vmatprep.subr.bf16.mxu0 %v14061_v62 }
 0x251   : > { %11819 = vmatpush3.bf16.msra.mxu1 %v14028_v48 }
 0x252   : > { %11821 = vmatprep.subr.bf16.mxu1 %v14039_v52 }
 0x253   : > { %11795 = vmatpush3.bf16.msra.mxu0 %v14091_v63 }
 0x254   : > { %11797 = vmatprep.subr.bf16.mxu0 %v14095_v5 }
 0x255   : > { %11823 = vmatpush3.bf16.msra.mxu1 %v14057_v61 }
 0x256   : > { %11825 = vmatprep.subr.bf16.mxu1 %v14061_v62 }
 0x257   : > { %11799 = vmatpush3.bf16.msra.mxu0 %v14122_v9 }
 0x258   : > { %11801 = vmatprep.subr.bf16.mxu0 %v14126_v3 }
 0x259   : > { %11827 = vmatpush3.bf16.msra.mxu1 %v14091_v63 }
 0x25a   : > { %11829 = vmatprep.subr.bf16.mxu1 %v14095_v5 }
 0x25b   : > { %11803 = vmatpush3.bf16.msra.mxu0 %v14136_v29 }
 0x25c   : > { %11805 = vmatprep.subr.bf16.mxu0 %v14140_v28 }
 0x25d   : > { %11831 = vmatpush3.bf16.msra.mxu1 %v14122_v9 }
 0x25e   : > { %11833 = vmatprep.subr.bf16.mxu1 %v14126_v3 }
 0x25f   : > { %11807 = vmatpush3.bf16.msra.mxu0 %v14148_v4 }
 0x260   : > { %11842 = vmatprep.subr.msk.bf16.mxu0 %vm14154_vm1, %v13980_v32 }
 0x261   : > { %11835 = vmatpush3.bf16.msra.mxu1 %v14136_v29 }
 0x262   : > { %1640 = vmatmul.mubr.f32.vlgmr.msra.gmra.mrb[4].mxu0 %v1519_v60  ;;  %11837 = vmatprep.subr.bf16.mxu1 %v14140_v28 }
 0x265   : > { %11839 = vmatpush3.bf16.msra.mxu1 %v14148_v4 }
 0x266   : > { %11890 = vmatprep.subr.msk.bf16.mxu1 %vm14154_vm1, %v13980_v32  ;;  %v593_v32 = vlaneseq }
 0x268   : > { %11845 = vmatpush3.bf16.xpose.msk.msra.mxu0 %vm14154_vm1, %v13984_v33  ;;  %1710 = vmatmul.mubr.f32.vlgmr.msra.gmra.mrb[4].mxu1 %v1561_v11  ;;  %vm14371_vm2 = vcmp.lt.s32.totalorder %v593_v32, 256 }
 0x269   : > { %11848 = vmatprep.subr.msk.bf16.mxu0 %vm14154_vm1, %v13988_v34 }
 0x26e   : > { %11893 = vmatpush3.bf16.xpose.msk.msra.mxu1 %vm14154_vm1, %v13984_v33 }
 0x26f   : > { %11896 = vmatprep.subr.msk.bf16.mxu1 %vm14154_vm1, %v13988_v34 }
 0x270   : > { %11851 = vmatpush3.bf16.xpose.msk.msra.mxu0 %vm14154_vm1, %v14002_v38 }
 0x271   : > { %11854 = vmatprep.subr.msk.bf16.mxu0 %vm14154_vm1, %v14012_v41 }
 0x276   : > { %11899 = vmatpush3.bf16.xpose.msk.msra.mxu1 %vm14154_vm1, %v14002_v38  ;;  %v1135_v38 = vshrl.u32 %v593_v32, 7 }
 0x277   : > { %11902 = vmatprep.subr.msk.bf16.mxu1 %vm14154_vm1, %v14012_v41 }
 0x278   : > { %11857 = vmatpush3.bf16.xpose.msk.msra.mxu0 %vm14154_vm1, %v14028_v48 }
 0x279   : > { %11860 = vmatprep.subr.msk.bf16.mxu0 %vm14154_vm1, %v14039_v52 }
 0x27e   : > { %11905 = vmatpush3.bf16.xpose.msk.msra.mxu1 %vm14154_vm1, %v14028_v48 }
 0x27f   : > { %11908 = vmatprep.subr.msk.bf16.mxu1 %vm14154_vm1, %v14039_v52 }
 0x280   : > { %11863 = vmatpush3.bf16.xpose.msk.msra.mxu0 %vm14154_vm1, %v14057_v61 }
 0x281   : > { %11866 = vmatprep.subr.msk.bf16.mxu0 %vm14154_vm1, %v14061_v62 }
 0x286   : > { %11911 = vmatpush3.bf16.xpose.msk.msra.mxu1 %vm14154_vm1, %v14057_v61 }
 0x287   : > { %11914 = vmatprep.subr.msk.bf16.mxu1 %vm14154_vm1, %v14061_v62  ;;  %v14474_v62 = vsub.s32 0, %v1135_v38 }
 0x288   : > { %11869 = vmatpush3.bf16.xpose.msk.msra.mxu0 %vm14154_vm1, %v14091_v63 }
 0x289   : > { %11872 = vmatprep.subr.msk.bf16.mxu0 %vm14154_vm1, %v14095_v5 }
 0x28e   : > { %11917 = vmatpush3.bf16.xpose.msk.msra.mxu1 %vm14154_vm1, %v14091_v63  ;;  %v14477_v63 = vsub.s32 1, %v1135_v38 }
 0x28f   : > { %11920 = vmatprep.subr.msk.bf16.mxu1 %vm14154_vm1, %v14095_v5  ;;  %v13276_v5 = vmov 0.0  }
 0x290   : > { %11875 = vmatpush3.bf16.xpose.msk.msra.mxu0 %vm14154_vm1, %v14122_v9  ;;  %576 = vst [vmem:[#allocation2] sm:$0xff] %v13276_v5  ;;  %577 = vst [vmem:[#allocation2 + $0x8] sm:$0xff] %v13276_v5 }
 0x291   : > { %11878 = vmatprep.subr.msk.bf16.mxu0 %vm14154_vm1, %v14126_v3  ;;  %578 = vst [vmem:[#allocation2 + $0x10] sm:$0x3] %v13276_v5  ;;  %579 = vst [vmem:[#allocation2 + $0x18] sm:$0x3] %v13276_v5 }
 0x292   : > { %585 = vst [vmem:[#allocation2 + $0x120] sm:$0xff] %v13276_v5  ;;  %586 = vst [vmem:[#allocation2 + $0x128] sm:$0xff] %v13276_v5 }
 0x293   : > { %587 = vst [vmem:[#allocation2 + $0x130] sm:$0x3] %v13276_v5  ;;  %588 = vst [vmem:[#allocation2 + $0x138] sm:$0x3] %v13276_v5 }
 0x294   : > { %600 = vst.msk [vmem:[#allocation2 + $0x20] ss:$8 sm:$0x3] %vm14371_vm2, %v13276_v5  ;;  %603 = vst.msk [vmem:[#allocation2 + $0x40] ss:$8 sm:$0x3] %vm14371_vm2, %v13276_v5 }
 0x295   : > { %606 = vst.msk [vmem:[#allocation2 + $0x60] ss:$8 sm:$0x3] %vm14371_vm2, %v13276_v5  ;;  %609 = vst.msk [vmem:[#allocation2 + $0x80] ss:$8 sm:$0x3] %vm14371_vm2, %v13276_v5 }
 0x296   : > { %11923 = vmatpush3.bf16.xpose.msk.msra.mxu1 %vm14154_vm1, %v14122_v9  ;;  %612 = vst.msk [vmem:[#allocation2 + $0xa0] ss:$8 sm:$0x3] %vm14371_vm2, %v13276_v5  ;;  %615 = vst.msk [vmem:[#allocation2 + $0xc0] ss:$8 sm:$0x3] %vm14371_vm2, %v13276_v5 }
 0x297   : > { %11926 = vmatprep.subr.msk.bf16.mxu1 %vm14154_vm1, %v14126_v3  ;;  %618 = vst.msk [vmem:[#allocation2 + $0xe0] ss:$8 sm:$0x3] %vm14371_vm2, %v13276_v5  ;;  %621 = vst.msk [vmem:[#allocation2 + $0x100] ss:$8 sm:$0x3] %vm14371_vm2, %v13276_v5 }
 0x298   : > { %11881 = vmatpush3.bf16.xpose.msk.msra.mxu0 %vm14154_vm1, %v14136_v29  ;;  %660 = vst.msk [vmem:[#allocation2 + $0x31] ss:$8 sm:$0x3] %vm14371_vm2, %v13276_v5  ;;  %663 = vst.msk [vmem:[#allocation2 + $0x51] ss:$8 sm:$0x3] %vm14371_vm2, %v13276_v5 }
 0x299   : > { %11884 = vmatprep.subr.msk.bf16.mxu0 %vm14154_vm1, %v14140_v28  ;;  %666 = vst.msk [vmem:[#allocation2 + $0x71] ss:$8 sm:$0x3] %vm14371_vm2, %v13276_v5  ;;  %669 = vst.msk [vmem:[#allocation2 + $0x91] ss:$8 sm:$0x3] %vm14371_vm2, %v13276_v5 }
 0x29a   : > { %672 = vst.msk [vmem:[#allocation2 + $0xb1] ss:$8 sm:$0x3] %vm14371_vm2, %v13276_v5  ;;  %675 = vst.msk [vmem:[#allocation2 + $0xd1] ss:$8 sm:$0x3] %vm14371_vm2, %v13276_v5 }
 0x29b   : > { %678 = vst.msk [vmem:[#allocation2 + $0xf1] ss:$8 sm:$0x3] %vm14371_vm2, %v13276_v5  ;;  %681 = vst.msk [vmem:[#allocation2 + $0x111] ss:$8 sm:$0x3] %vm14371_vm2, %v13276_v5 }
 0x29c   : > { %580 = vst [vmem:[#allocation2 + $0x140] sm:$0xff] %v13276_v5  ;;  %581 = vst [vmem:[#allocation2 + $0x148] sm:$0xff] %v13276_v5  ;;  %v749_v3 = vld [vmem:[%s13800_s23] sm:$0x3] }
 0x29d   : > { %582 = vst [vmem:[#allocation2 + $0x150] sm:$0x3] %v13276_v5  ;;  %583 = vst [vmem:[#allocation2 + $0x158] sm:$0x3] %v13276_v5  ;;  %v1289_v55 = vrot.slane %v749_v3, %v14474_v62  ;;  %v14491_v15 = vrot.slane %v749_v3, %v14477_v63 }
 0x29e   : > { %589 = vst [vmem:[#allocation2 + $0x260] sm:$0xff] %v13276_v5  ;;  %590 = vst [vmem:[#allocation2 + $0x268] sm:$0xff] %v13276_v5  ;;  %11929 = vmatpush3.bf16.xpose.msk.msra.mxu1 %vm14154_vm1, %v14136_v29 }
 0x29f   : > { %591 = vst [vmem:[#allocation2 + $0x270] sm:$0x3] %v13276_v5  ;;  %592 = vst [vmem:[#allocation2 + $0x278] sm:$0x3] %v13276_v5  ;;  %11932 = vmatprep.subr.msk.bf16.mxu1 %vm14154_vm1, %v14140_v28  ;;  %v748_v28 = vld [vmem:[%s13791_s19] sm:$0x3] }
 0x2a0   : > { %630 = vst.msk [vmem:[#allocation2 + $0x160] ss:$8 sm:$0x3] %vm14371_vm2, %v13276_v5  ;;  %633 = vst.msk [vmem:[#allocation2 + $0x180] ss:$8 sm:$0x3] %vm14371_vm2, %v13276_v5  ;;  %11887 = vmatpush3.bf16.xpose.msk.msra.mxu0 %vm14154_vm1, %v14148_v4  ;;  %v1262_v57 = vrot.slane %v748_v28, %v14474_v62  ;;  %v14488_v26 = vrot.slane %v748_v28, %v14477_v63 }
 0x2a1   : > { %636 = vst.msk [vmem:[#allocation2 + $0x1a0] ss:$8 sm:$0x3] %vm14371_vm2, %v13276_v5  ;;  %639 = vst.msk [vmem:[#allocation2 + $0x1c0] ss:$8 sm:$0x3] %vm14371_vm2, %v13276_v5 }
 0x2a2   : > { %642 = vst.msk [vmem:[#allocation2 + $0x1e0] ss:$8 sm:$0x3] %vm14371_vm2, %v13276_v5  ;;  %645 = vst.msk [vmem:[#allocation2 + $0x200] ss:$8 sm:$0x3] %vm14371_vm2, %v13276_v5 }
 0x2a3   : > { %648 = vst.msk [vmem:[#allocation2 + $0x220] ss:$8 sm:$0x3] %vm14371_vm2, %v13276_v5  ;;  %651 = vst.msk [vmem:[#allocation2 + $0x240] ss:$8 sm:$0x3] %vm14371_vm2, %v13276_v5 }
 0x2a4   : > { %690 = vst.msk [vmem:[#allocation2 + $0x171] ss:$8 sm:$0x3] %vm14371_vm2, %v13276_v5  ;;  %693 = vst.msk [vmem:[#allocation2 + $0x191] ss:$8 sm:$0x3] %vm14371_vm2, %v13276_v5 }
 0x2a5   : > { %696 = vst.msk [vmem:[#allocation2 + $0x1b1] ss:$8 sm:$0x3] %vm14371_vm2, %v13276_v5  ;;  %699 = vst.msk [vmem:[#allocation2 + $0x1d1] ss:$8 sm:$0x3] %vm14371_vm2, %v13276_v5 }
 0x2a6   : > { %702 = vst.msk [vmem:[#allocation2 + $0x1f1] ss:$8 sm:$0x3] %vm14371_vm2, %v13276_v5  ;;  %705 = vst.msk [vmem:[#allocation2 + $0x211] ss:$8 sm:$0x3] %vm14371_vm2, %v13276_v5  ;;  %11935 = vmatpush3.bf16.xpose.msk.msra.mxu1 %vm14154_vm1, %v14148_v4 }
 0x2a7   : > { %708 = vst.msk [vmem:[#allocation2 + $0x231] ss:$8 sm:$0x3] %vm14371_vm2, %v13276_v5  ;;  %711 = vst.msk [vmem:[#allocation2 + $0x251] ss:$8 sm:$0x3] %vm14371_vm2, %v13276_v5 }
 0x2a8   : > { %597 = vst.msk [vmem:[#allocation2] ss:$8 sm:$0x3] %vm14371_vm2, %v13276_v5  ;;  %624 = vst.msk [vmem:[#allocation2 + $0x120] ss:$8 sm:$0x3] %vm14371_vm2, %v13276_v5 }
 0x2a9   : > { %657 = vst.msk [vmem:[#allocation2 + $0x11] ss:$8 sm:$0x3] %vm14371_vm2, %v13276_v5  ;;  %684 = vst.msk [vmem:[#allocation2 + $0x131] ss:$8 sm:$0x3] %vm14371_vm2, %v13276_v5 }
 0x2aa   : > { %627 = vst.msk [vmem:[#allocation2 + $0x140] ss:$8 sm:$0x3] %vm14371_vm2, %v13276_v5  ;;  %654 = vst.msk [vmem:[#allocation2 + $0x260] ss:$8 sm:$0x3] %vm14371_vm2, %v13276_v5 }
 0x2ab   : > { %687 = vst.msk [vmem:[#allocation2 + $0x151] ss:$8 sm:$0x3] %vm14371_vm2, %v13276_v5  ;;  %714 = vst.msk [vmem:[#allocation2 + $0x271] ss:$8 sm:$0x3] %vm14371_vm2, %v13276_v5 }
 0x315   : > { %v1129_v9 = vpop.f32.mrb[2].mxu0 }
 0x316   : > { %v1131_v34 = vpop.f32.mrb[3].mxu0  ;;  %v1137_v29 = vrot.slane %v1129_v9, %v14474_v62 }
 0x317   : > { %v14482_v4 = vrot.slane %v1131_v34, %v14474_v62 }
 0x318   : > { %v1142_v7 = vsub.f32 %v13996_v37, %v1137_v29  ;;  %v1144_v27 = vsub.f32 %v14006_v40, %v1137_v29  ;;  %v1146_v6 = vsub.f32 %v14018_v44, %v1137_v29  ;;  %v1148_v18 = vsub.f32 %v14031_v50, %v1137_v29 }
 0x319   : > { %v1150_v30 = vsub.f32 %v14051_v58, %v1137_v29  ;;  %v1152_v14 = vsub.f32 %v14069_v47, %v1137_v29  ;;  %v1154_v37 = vsub.f32 %v14087_v24, %v1137_v29  ;;  %v1156_v0 = vsub.f32 %v14101_v46, %v1137_v29 }
 0x31a   : > { %v1143_v8 = vsub.f32 %v13990_v35, %v14482_v4  ;;  %v1145_v40 = vsub.f32 %v13992_v36, %v14482_v4  ;;  %v1147_v44 = vsub.f32 %v14004_v39, %v14482_v4  ;;  %v1149_v50 = vsub.f32 %v14014_v42, %v14482_v4 }
 0x31b   : > { %v1227_v41 = vpop.f32.mrb[2].mxu1  ;;  %v1151_v24 = vsub.f32 %v14041_v53, %v14482_v4  ;;  %v1153_v47 = vsub.f32 %v14048_v56, %v14482_v4  ;;  %v1155_v35 = vsub.f32 %v14066_v45, %v14482_v4  ;;  %v1157_v49 = vsub.f32 %v14084_v51, %v14482_v4 }
 0x31c   : > { %v1228_v48 = vadd.f32 1e-05, %v1227_v41  ;;  %v1229_v52 = vpop.f32.mrb[3].mxu1 }
 0x31d   : > { %v1230_v61 = vadd.f32 1e-05, %v1229_v52 }
 0x31e   : > { %12447 = vrsqrt.f32 %v1228_v48 }
 0x31f   : > { %12449 = vrsqrt.f32 %v1230_v61 }
 0x328   : > { %v12448_v13 = vpop.eup %12447 }
 0x329   : > { %v12450_v31 = vpop.eup %12449  ;;  %v1237_v58 = vrot.slane %v12448_v13, %v14474_v62 }
 0x32a   : > { %v1241_v46 = vrot.slane %v12450_v31, %v14474_v62 }
 0x32b   : > { %v1242_v36 = vmul.f32 %v1237_v58, %v1142_v7  ;;  %v1244_v1 = vmul.f32 %v1237_v58, %v1144_v27  ;;  %v1246_v10 = vmul.f32 %v1237_v58, %v1146_v6  ;;  %v1248_v39 = vmul.f32 %v1237_v58, %v1148_v18 }
 0x32c   : > { %v1250_v12 = vmul.f32 %v1237_v58, %v1150_v30  ;;  %v1252_v2 = vmul.f32 %v1237_v58, %v1152_v14  ;;  %v1254_v42 = vmul.f32 %v1237_v58, %v1154_v37  ;;  %v1256_v43 = vmul.f32 %v1237_v58, %v1156_v0 }
 0x32d   : > { %v1269_v23 = vmul.f32 %v1262_v57, %v1242_v36  ;;  %v1271_v54 = vmul.f32 %v1262_v57, %v1244_v1  ;;  %v1273_v22 = vmul.f32 %v1262_v57, %v1246_v10  ;;  %v1275_v53 = vmul.f32 %v1262_v57, %v1248_v39 }
 0x32e   : > { %v1277_v25 = vmul.f32 %v1262_v57, %v1250_v12  ;;  %v1279_v59 = vmul.f32 %v1262_v57, %v1252_v2  ;;  %v1281_v56 = vmul.f32 %v1262_v57, %v1254_v42  ;;  %v1283_v19 = vmul.f32 %v1262_v57, %v1256_v43 }
 0x32f   : > { %v14516_v21 = vadd.f32 %v1289_v55, %v1269_v23  ;;  %v14518_v45 = vadd.f32 %v1289_v55, %v1271_v54  ;;  %v14520_v60 = vadd.f32 %v1289_v55, %v1273_v22  ;;  %v14522_v20 = vadd.f32 %v1289_v55, %v1275_v53 }
 0x330   : > { %v14526_v11 = vadd.f32 %v1289_v55, %v1277_v25  ;;  %v14528_v32 = vadd.f32 %v1289_v55, %v1279_v59  ;;  %v14530_v33 = vadd.f32 %v1289_v55, %v1281_v56  ;;  %v1243_v38 = vmul.f32 %v1241_v46, %v1143_v8 }
 0x331   : > { %v10071_v5 = vmul.f32 -1.442695, %v14516_v21  ;;  %v10073_v9 = vmul.f32 -1.442695, %v14518_v45  ;;  %v10075_v34 = vmul.f32 -1.442695, %v14520_v60  ;;  %v14535_v41 = vadd.f32 %v1289_v55, %v1283_v19 }
 0x332   : > { %v10077_v48 = vmul.f32 -1.442695, %v14522_v20  ;;  %v10079_v52 = vmul.f32 -1.442695, %v14526_v11  ;;  %v1245_v51 = vmul.f32 %v1241_v46, %v1145_v40  ;;  %v10081_v61 = vmul.f32 -1.442695, %v14528_v32 }
 0x333   : > { %12451 = vpow2.f32 %v10071_v5  ;;  %v10083_v29 = vmul.f32 -1.442695, %v14530_v33  ;;  %v1247_v28 = vmul.f32 %v1241_v46, %v1147_v44  ;;  %v1249_v4 = vmul.f32 %v1241_v46, %v1149_v50 }
 0x334   : > { %12453 = vpow2.f32 %v10073_v9  ;;  %v1251_v57 = vmul.f32 %v1241_v46, %v1151_v24  ;;  %v1253_v7 = vmul.f32 %v1241_v46, %v1153_v47  ;;  %v1255_v55 = vmul.f32 %v1241_v46, %v1155_v35 }
 0x335   : > { %v10658_v3 = vpop.f32.mrb[4].mxu0  ;;  %12455 = vpow2.f32 %v10075_v34  ;;  %v14541_v6 = vmul.f32 %v1241_v46, %v1157_v49  ;;  %v1270_v18 = vmul.f32 %v14488_v26, %v1243_v38  ;;  %v10085_v30 = vmul.f32 -1.442695, %v14535_v41 }
 0x336   : > { %v10659_v27 = vpop.f32.mrb[5].mxu0  ;;  %12457 = vpow2.f32 %v10077_v48  ;;  %v1272_v13 = vmul.f32 %v14488_v26, %v1245_v51  ;;  %v1274_v14 = vmul.f32 %v14488_v26, %v1247_v28  ;;  %v1276_v58 = vmul.f32 %v14488_v26, %v1249_v4 }
 0x337   : > { %12459 = vpow2.f32 %v10079_v52  ;;  %v14548_v37 = vadd.f32 %v14491_v15, %v1270_v18  ;;  %v10660_v50 = vadd.f32 %v10659_v27, %v10658_v3  ;;  %v1278_v47 = vmul.f32 %v14488_v26, %v1251_v57 }
 0x338   : > { %12461 = vpow2.f32 %v10081_v61  ;;  %v14551_v0 = vadd.f32 %v14491_v15, %v1272_v13  ;;  %v14554_v8 = vadd.f32 %v14491_v15, %v1274_v14  ;;  %v1280_v1 = vmul.f32 %v14488_v26, %v1253_v7 }
 0x339   : > { %12463 = vpow2.f32 %v10083_v29  ;;  %v10072_v31 = vmul.f32 -1.442695, %v14548_v37  ;;  %v1282_v12 = vmul.f32 %v14488_v26, %v1255_v55  ;;  %v1715_v2 = vmul.f32 0.001953125, %v10660_v50 }
 0x33a   : > { %12465 = vpow2.f32 %v10085_v30  ;;  %v10074_v40 = vmul.f32 -1.442695, %v14551_v0  ;;  %v10076_v44 = vmul.f32 -1.442695, %v14554_v8  ;;  %v14564_v54 = vadd.f32 %v14491_v15, %v1276_v58 }
 0x33b   : > { %12467 = vpow2.f32 %v10072_v31  ;;  %v10693_v35 = vpop.f32.mrb[4].mxu1  ;;  %v14567_v59 = vadd.f32 %v14491_v15, %v1278_v47  ;;  %v1717_v56 = vmul.f32 %v1715_v2, %v1715_v2  ;;  %10728 = vmatprep.mubr.msk.f32.mxu0 %vm963_vm0, %v1715_v2  ;;  %v14571_v5 = vadd.f32 %v14491_v15, %v1280_v1 }
 0x33c   : > { %12469 = vpow2.f32 %v10074_v40  ;;  %v10694_v42 = vpop.f32.mrb[5].mxu1  ;;  %10729 = vmatmul.mubr.msk.f32.vlgmr.msra.gmra.mrb[6].mxu0 %vm963_vm0, %v1715_v2  ;;  %v14575_v38 = vadd.f32 %v14491_v15, %v1282_v12  ;;  %v10078_v61 = vmul.f32 -1.442695, %v14564_v54  ;;  %v1284_v50 = vmul.f32 %v14488_v26, %v14541_v6  ;;  %v14607_v6 = vld [vmem:[#allocation2 + $0x130] sm:$0x1] }
 0x33d   : > { %v12452_v24 = vpop.eup %12451  ;;  %12471 = vpow2.f32 %v10076_v44  ;;  %v10695_v22 = vadd.f32 %v10694_v42, %v10693_v35  ;;  %v10080_v28 = vmul.f32 -1.442695, %v14567_v59  ;;  %v10082_v4 = vmul.f32 -1.442695, %v14571_v5  ;;  %v14591_v44 = vld [vmem:[#allocation2] sm:$0xfe] }
 0x33e   : > { %v12454_v46 = vpop.eup %12453  ;;  %v1360_v36 = vadd.f32 1.0, %v12452_v24  ;;  %v10084_v7 = vmul.f32 -1.442695, %v14575_v38  ;;  %v14596_v35 = vld [vmem:[#allocation2 + $0x10] sm:$0x1]  ;;  %v2262_v26 = vrot.slane %v14591_v44, 1 }
 0x33f   : > { %v12456_v10 = vpop.eup %12455  ;;  %v1362_v39 = vadd.f32 1.0, %v12454_v46  ;;  %v1716_v48 = vmul.f32 0.001953125, %v10695_v22  ;;  %v14616_v22 = vadd.f32 %v14491_v15, %v1284_v50 }
 0x340   : > { %v12458_v43 = vpop.eup %12457  ;;  %v1364_v23 = vadd.f32 1.0, %v12456_v10  ;;  %12473 = vrcp.f32 %v1360_v36  ;;  %v14601_v10 = vld [vmem:[#allocation2 + $0x10] sm:$0x3] }
 0x341   : > { %v12460_v53 = vpop.eup %12459  ;;  %v1366_v25 = vadd.f32 1.0, %v12458_v43  ;;  %12475 = vrcp.f32 %v1362_v39  ;;  %v1718_v3 = vsub.f32 %v1716_v48, %v1717_v56  ;;  %v2263_v43 = vrot.slane %v14596_v35, 1 }
 0x342   : > { %v12462_v19 = vpop.eup %12461  ;;  %v1368_v49 = vadd.f32 1.0, %v12460_v53  ;;  %12477 = vrcp.f32 %v1364_v23  ;;  %v14611_v23 = vld [vmem:[#allocation2 + $0x120] sm:$0xfc] }
 0x343   : > { %v12464_v9 = vpop.eup %12463  ;;  %v1370_v34 = vadd.f32 1.0, %v12462_v19  ;;  %12479 = vrcp.f32 %v1366_v25  ;;  %v1719_v27 = vmax.f32 %v1718_v3, 0.0  ;;  %v10086_v3 = vmul.f32 -1.442695, %v14616_v22 }
 0x344   : > { %v12466_v52 = vpop.eup %12465  ;;  %v1372_v51 = vadd.f32 1.0, %v12464_v9  ;;  %12481 = vrcp.f32 %v1368_v49 }
 0x345   : > { %v1374_v29 = vadd.f32 1.0, %v12466_v52  ;;  %12483 = vrcp.f32 %v1370_v34  ;;  %v14580_v57 = vpop.eup %12467  ;;  %10762 = vmatprep.mubr.msk.f32.mxu1 %vm963_vm0, %v1719_v27  ;;  %v2408_v34 = vrot.slane %v14601_v10, 2 }
 0x346   : > { %12485 = vrcp.f32 %v1372_v51  ;;  %v14583_v55 = vpop.eup %12469  ;;  %10763 = vmatmul.mubr.msk.f32.vlgmr.msra.gmra.mrb[6].mxu1 %vm963_vm0, %v1719_v27  ;;  %v3090_v51 = vrot.slane %v14611_v23, 2 }
 0x347   : > { %12487 = vrcp.f32 %v1374_v29  ;;  %v14585_v18 = vpop.eup %12471 }
 0x348   : > { %12489 = vpow2.f32 %v10078_v61 }
 0x349   : > { %12491 = vpow2.f32 %v10080_v28 }
 0x34a   : > { %v12474_v30 = vpop.eup %12473  ;;  %12493 = vpow2.f32 %v10082_v4  ;;  %v14628_v4 = vadd.f32 1.0, %v14580_v57 }
 0x34b   : > { %v12476_v13 = vpop.eup %12475  ;;  %v1408_v14 = vmul.f32 %v12474_v30, %v14516_v21  ;;  %12495 = vpow2.f32 %v10084_v7  ;;  %v14599_v21 = vld [vmem:[#allocation2] sm:$0xfc]  ;;  %v14631_v7 = vadd.f32 1.0, %v14583_v55  ;;  %v14634_v30 = vadd.f32 1.0, %v14585_v18 }
 0x34c   : > { %v12478_v31 = vpop.eup %12477  ;;  %v1410_v40 = vmul.f32 %v12476_v13, %v14518_v45  ;;  %12497 = vpow2.f32 %v10086_v3 }
 0x34d   : > { %v12480_v58 = vpop.eup %12479  ;;  %v1412_v24 = vmul.f32 %v12478_v31, %v14520_v60  ;;  %v1440_v47 = vrot.slane %v1408_v14, 7  ;;  %v14605_v60 = vld [vmem:[#allocation2 + $0x120] sm:$0xfe]  ;;  %12499 = vrcp.f32 %v14628_v4 }
 0x34e   : > { %v12482_v46 = vpop.eup %12481  ;;  %v1414_v36 = vmul.f32 %v12480_v58, %v14522_v20  ;;  %v1442_v1 = vrot.slane %v1410_v40, 7  ;;  %v2946_v15 = vrot.slane %v14605_v60, 1  ;;  %12501 = vrcp.f32 %v14631_v7 }
 0x34f   : > { %v12484_v45 = vpop.eup %12483  ;;  %v1416_v39 = vmul.f32 %v12482_v46, %v14526_v11  ;;  %v1444_v12 = vrot.slane %v1412_v24, 7  ;;  %1473 = vst [vmem:[#allocation2 + $0x20] sm:$0xfe] %v1440_v47  ;;  %1475 = vst [vmem:[#allocation2 + $0x30] sm:$0x1] %v1440_v47  ;;  %12503 = vrcp.f32 %v14634_v30 }
 0x350   : > { %v12486_v2 = vpop.eup %12485  ;;  %v1418_v20 = vmul.f32 %v12484_v45, %v14528_v32  ;;  %v1446_v42 = vrot.slane %v1414_v36, 7  ;;  %1477 = vst [vmem:[#allocation2 + $0x40] sm:$0xfe] %v1442_v1  ;;  %1479 = vst [vmem:[#allocation2 + $0x50] sm:$0x1] %v1442_v1  ;;  %v2407_v32 = vrot.slane %v14599_v21, 2  ;;  %v2264_v45 = vsel %vm2261_vm3, %v2262_v26, %v2263_v43 }
 0x351   : > { %v14613_v11 = vld [vmem:[#allocation2 + $0x130] sm:$0x3]  ;;  %v12488_v53 = vpop.eup %12487  ;;  %v1420_v25 = vmul.f32 %v12486_v2, %v14530_v33  ;;  %v1448_v56 = vrot.slane %v1416_v39, 7  ;;  %1481 = vst [vmem:[#allocation2 + $0x60] sm:$0xfe] %v1444_v12  ;;  %v2947_v33 = vrot.slane %v14607_v6, 1 }
 0x352   : > { %1483 = vst [vmem:[#allocation2 + $0x70] sm:$0x1] %v1444_v12  ;;  %v12490_v19 = vpop.eup %12489  ;;  %v1422_v49 = vmul.f32 %v12488_v53, %v14535_v41  ;;  %v1450_v9 = vrot.slane %v1418_v20, 7  ;;  %1485 = vst [vmem:[#allocation2 + $0x80] sm:$0xfe] %v1446_v42  ;;  %v3091_v61 = vrot.slane %v14613_v11, 2 }
 0x353   : > { %1487 = vst [vmem:[#allocation2 + $0x90] sm:$0x1] %v1446_v42  ;;  %v12492_v48 = vpop.eup %12491  ;;  %v1452_v52 = vrot.slane %v1420_v25, 7  ;;  %1489 = vst [vmem:[#allocation2 + $0xa0] sm:$0xfe] %v1448_v56  ;;  %v2165_v41 = vld [vmem:[#allocation2] sm:$0xff] }
 0x354   : > { %1491 = vst [vmem:[#allocation2 + $0xb0] sm:$0x1] %v1448_v56  ;;  %v12494_v29 = vpop.eup %12493  ;;  %v1454_v28 = vrot.slane %v1422_v49, 7  ;;  %1493 = vst [vmem:[#allocation2 + $0xc0] sm:$0xfe] %v1450_v9  ;;  %v14636_v13 = vadd.f32 1.0, %v12490_v19 }
 0x355   : > { %1495 = vst [vmem:[#allocation2 + $0xd0] sm:$0x1] %v1450_v9  ;;  %v12496_v27 = vpop.eup %12495  ;;  %1497 = vst [vmem:[#allocation2 + $0xe0] sm:$0xfe] %v1452_v52  ;;  %v14638_v14 = vadd.f32 1.0, %v12492_v48  ;;  %v14640_v31 = vadd.f32 1.0, %v12494_v29 }
 0x356   : > { %1499 = vst [vmem:[#allocation2 + $0xf0] sm:$0x1] %v1452_v52  ;;  %1501 = vst [vmem:[#allocation2 + $0x100] sm:$0xfe] %v1454_v28  ;;  %v2167_v40 = vld [vmem:[#allocation2 + $0x20] sm:$0xff]  ;;  %v14642_v58 = vadd.f32 1.0, %v12496_v27  ;;  %12505 = vrcp.f32 %v14636_v13 }
 0x357   : > { %1503 = vst [vmem:[#allocation2 + $0x110] sm:$0x1] %v1454_v28  ;;  %v2201_v57 = vld [vmem:[#allocation2 + $0x20] sm:$0xfe]  ;;  %v2203_v50 = vld [vmem:[#allocation2 + $0x30] sm:$0x1]  ;;  %v2181_v24 = vpack.c.bf16 %v2167_v40, %v2165_v41  ;;  %12507 = vrcp.f32 %v14638_v14 }
 0x358   : > { %v2169_v55 = vld [vmem:[#allocation2 + $0x40] sm:$0xff]  ;;  %v2207_v35 = vld [vmem:[#allocation2 + $0x50] sm:$0x1]  ;;  %v2268_v46 = vrot.slane %v2201_v57, 1  ;;  %v2269_v39 = vrot.slane %v2203_v50, 1  ;;  %12509 = vrcp.f32 %v14640_v31  ;;  %v14698_v31 = vsel %vm2406_vm4, %v3090_v51, %v3091_v61 }
 0x359   : > { %v2205_v47 = vld [vmem:[#allocation2 + $0x40] sm:$0xfe]  ;;  %v2211_v1 = vld [vmem:[#allocation2 + $0x70] sm:$0x1]  ;;  %v2503_v12 = vpack.c.bf16 %v2169_v55, %v2167_v40  ;;  %2189 = vst [vmem:[#allocation3] sm:$0xff] %v2181_v24  ;;  %v2275_v48 = vrot.slane %v2207_v35, 1  ;;  %12511 = vrcp.f32 %v14642_v58 }
 0x35a   : > { %v2171_v18 = vld [vmem:[#allocation2 + $0x60] sm:$0xff]  ;;  %v2215_v53 = vld [vmem:[#allocation2 + $0x90] sm:$0x1]  ;;  %v2274_v25 = vrot.slane %v2205_v47, 1  ;;  %v2270_v9 = vsel %vm2261_vm3, %v2268_v46, %v2269_v39 }
 0x35b   : > { %v2209_v36 = vld [vmem:[#allocation2 + $0x60] sm:$0xfe]  ;;  %v2183_v20 = vpack.c.bf16 %v2171_v18, %v2169_v55  ;;  %v2219_v49 = vld [vmem:[#allocation2 + $0xb0] sm:$0x1]  ;;  %2511 = vst [vmem:[#allocation3 + $0x30] sm:$0xff] %v2503_v12  ;;  %v2326_v41 = vpack.c.bf16 %v2270_v9, %v2264_v45  ;;  %v2281_v55 = vrot.slane %v2211_v1, 1 }
 0x35c   : > { %v2173_v2 = vld [vmem:[#allocation2 + $0x80] sm:$0xff]  ;;  %v2223_v43 = vld [vmem:[#allocation2 + $0xd0] sm:$0x1]  ;;  %v2280_v28 = vrot.slane %v2209_v36, 1  ;;  %v2276_v50 = vsel %vm2261_vm3, %v2274_v25, %v2275_v48  ;;  %v2287_v46 = vrot.slane %v2215_v53, 1  ;;  %v2293_v45 = vrot.slane %v2219_v49, 1 }
 0x35d   : > { %v2213_v42 = vld [vmem:[#allocation2 + $0x80] sm:$0xfe]  ;;  %v2505_v52 = vpack.c.bf16 %v2173_v2, %v2171_v18  ;;  %2191 = vst [vmem:[#allocation3 + $0x90] sm:$0xff] %v2183_v20  ;;  %2832 = vst [vmem:[#allocation3 + $0x60] sm:$0xff] %v2183_v20  ;;  %v2227_v57 = vld [vmem:[#allocation2 + $0xf0] sm:$0x1] }
 0x35e   : > { %v2175_v56 = vld [vmem:[#allocation2 + $0xa0] sm:$0xff]  ;;  %v2286_v35 = vrot.slane %v2213_v42, 1  ;;  %2334 = vst [vmem:[#allocation3 + $0x10] sm:$0xff] %v2326_v41  ;;  %v2282_v36 = vsel %vm2261_vm3, %v2280_v28, %v2281_v55  ;;  %v2299_v20 = vrot.slane %v2223_v43, 1  ;;  %v2305_v25 = vrot.slane %v2227_v57, 1 }
 0x35f   : > { %v2217_v19 = vld [vmem:[#allocation2 + $0xa0] sm:$0xfe]  ;;  %v2185_v44 = vpack.c.bf16 %v2175_v56, %v2173_v2  ;;  %2513 = vst [vmem:[#allocation3 + $0xc0] sm:$0xff] %v2505_v52  ;;  %v2348_v42 = vld [vmem:[#allocation2 + $0x30] sm:$0x3] }
 0x360   : > { %v2177_v29 = vld [vmem:[#allocation2 + $0xc0] sm:$0xff]  ;;  %v2292_v18 = vrot.slane %v2217_v19, 1  ;;  %v2288_v1 = vsel %vm2261_vm3, %v2286_v35, %v2287_v46  ;;  %v2352_v52 = vld [vmem:[#allocation2 + $0x50] sm:$0x3] }
 0x361   : > { %v2221_v26 = vld [vmem:[#allocation2 + $0xc0] sm:$0xfe]  ;;  %v2507_v24 = vpack.c.bf16 %v2177_v29, %v2175_v56  ;;  %2193 = vst [vmem:[#allocation3 + $0x120] sm:$0xff] %v2185_v44  ;;  %2834 = vst [vmem:[#allocation3 + $0xf0] sm:$0xff] %v2185_v44  ;;  %v2328_v56 = vpack.c.bf16 %v2282_v36, %v2276_v50  ;;  %v2356_v49 = vld [vmem:[#allocation2 + $0x70] sm:$0x3] }
 0x362   : > { %v2179_v27 = vld [vmem:[#allocation2 + $0xe0] sm:$0xff]  ;;  %v2298_v2 = vrot.slane %v2221_v26, 1  ;;  %v2294_v19 = vsel %vm2261_vm3, %v2292_v18, %v2293_v45  ;;  %v2364_v55 = vld [vmem:[#allocation2 + $0xb0] sm:$0x3]  ;;  %v2414_v18 = vrot.slane %v2348_v42, 2  ;;  %v2420_v4 = vrot.slane %v2352_v52, 2 }
 0x363   : > { %v2225_v40 = vld [vmem:[#allocation2 + $0xe0] sm:$0xfe]  ;;  %v2187_v47 = vpack.c.bf16 %v2179_v27, %v2177_v29  ;;  %2515 = vst [vmem:[#allocation3 + $0x150] sm:$0xff] %v2507_v24  ;;  %v2330_v28 = vpack.c.bf16 %v2294_v19, %v2288_v1  ;;  %2336 = vst [vmem:[#allocation3 + $0xa0] sm:$0xff] %v2328_v56  ;;  %v2426_v45 = vrot.slane %v2356_v49, 2  ;;  %v14663_v1 = vpop.eup %12497 }
 0x364   : > { %v2501_v39 = vld [vmem:[#allocation2 + $0x100] sm:$0xff]  ;;  %v2304_v3 = vrot.slane %v2225_v40, 1  ;;  %v2300_v48 = vsel %vm2261_vm3, %v2298_v2, %v2299_v20  ;;  %v2360_v40 = vld [vmem:[#allocation2 + $0x90] sm:$0x3]  ;;  %v2438_v20 = vrot.slane %v2364_v55, 2 }
 0x365   : > { %v2822_v12 = vld [vmem:[#allocation2 + $0x120] sm:$0xff]  ;;  %2195 = vst [vmem:[#allocation3 + $0x1b0] sm:$0xff] %v2187_v47  ;;  %2836 = vst [vmem:[#allocation3 + $0x180] sm:$0xff] %v2187_v47  ;;  %v2509_v44 = vpack.c.bf16 %v2501_v39, %v2179_v27  ;;  %v2368_v47 = vld [vmem:[#allocation2 + $0xd0] sm:$0x3]  ;;  %v2409_v27 = vsel %vm2406_vm4, %v2407_v32, %v2408_v34  ;;  %v2432_v10 = vrot.slane %v2360_v40, 2 }
 0x366   : > { %v2346_v9 = vld [vmem:[#allocation2 + $0x20] sm:$0xfc]  ;;  %v2830_v26 = vpack.c.bf16 %v2822_v12, %v2501_v39  ;;  %v2306_v43 = vsel %vm2261_vm3, %v2304_v3, %v2305_v25  ;;  %2338 = vst [vmem:[#allocation3 + $0x130] sm:$0xff] %v2330_v28  ;;  %v2372_v12 = vld [vmem:[#allocation2 + $0xf0] sm:$0x3]  ;;  %v2444_v25 = vrot.slane %v2368_v47, 2 }
 0x367   : > { %v2350_v53 = vld [vmem:[#allocation2 + $0x40] sm:$0xfc]  ;;  %v2332_v50 = vpack.c.bf16 %v2306_v43, %v2300_v48  ;;  %2517 = vst [vmem:[#allocation3 + $0x1e0] sm:$0xff] %v2509_v44  ;;  %v2413_v46 = vrot.slane %v2346_v9, 2  ;;  %v2521_v42 = vld [vmem:[#allocation2 + $0x30] sm:$0x1] }
 0x368   : > { %v2354_v29 = vld [vmem:[#allocation2 + $0x60] sm:$0xfc]  ;;  %2838 = vst [vmem:[#allocation3 + $0x210] sm:$0xff] %v2830_v26  ;;  %v2419_v39 = vrot.slane %v2350_v53, 2  ;;  %v2450_v48 = vrot.slane %v2372_v12, 2 }
 0x369   : > { %v2358_v41 = vld [vmem:[#allocation2 + $0x80] sm:$0xfc]  ;;  %2340 = vst [vmem:[#allocation3 + $0x1c0] sm:$0xff] %v2332_v50  ;;  %v2425_v36 = vrot.slane %v2354_v29, 2  ;;  %v2415_v21 = vsel %vm2406_vm4, %v2413_v46, %v2414_v18  ;;  %v2525_v49 = vld [vmem:[#allocation2 + $0x50] sm:$0x1]  ;;  %v14673_v18 = vpop.eup %12499 }
 0x36a   : > { %v2362_v57 = vld [vmem:[#allocation2 + $0xa0] sm:$0xfc]  ;;  %v2431_v2 = vrot.slane %v2358_v41, 2  ;;  %v2421_v32 = vsel %vm2406_vm4, %v2419_v39, %v2420_v4  ;;  %v2471_v52 = vpack.c.bf16 %v2415_v21, %v2409_v27  ;;  %v2529_v41 = vld [vmem:[#allocation2 + $0x70] sm:$0x1]  ;;  %v2584_v4 = vrot.slane %v2521_v42, 1 }
 0x36b   : > { %v2366_v24 = vld [vmem:[#allocation2 + $0xc0] sm:$0xfc]  ;;  %v2437_v34 = vrot.slane %v2362_v57, 2  ;;  %v2427_v7 = vsel %vm2406_vm4, %v2425_v36, %v2426_v45  ;;  %v2533_v50 = vld [vmem:[#allocation2 + $0x90] sm:$0x1]  ;;  %v2590_v36 = vrot.slane %v2525_v49, 1  ;;  %v14675_v45 = vpop.eup %12501 }
 0x36c   : > { %v2370_v35 = vld [vmem:[#allocation2 + $0xe0] sm:$0xfc]  ;;  %v2433_v9 = vsel %vm2406_vm4, %v2431_v2, %v2432_v10  ;;  %v2443_v3 = vrot.slane %v2366_v24, 2  ;;  %v2473_v26 = vpack.c.bf16 %v2427_v7, %v2421_v32  ;;  %2479 = vst [vmem:[#allocation3 + $0x20] sm:$0xff] %v2471_v52  ;;  %v2537_v24 = vld [vmem:[#allocation2 + $0xb0] sm:$0x1] }
 0x36d   : > { %v2519_v56 = vld [vmem:[#allocation2 + $0x20] sm:$0xfe]  ;;  %v2439_v53 = vsel %vm2406_vm4, %v2437_v34, %v2438_v20  ;;  %v2449_v19 = vrot.slane %v2370_v35, 2  ;;  %v2541_v35 = vld [vmem:[#allocation2 + $0xd0] sm:$0x1]  ;;  %v2596_v10 = vrot.slane %v2529_v41, 1 }
 0x36e   : > { %v2523_v29 = vld [vmem:[#allocation2 + $0x40] sm:$0xfe]  ;;  %v2445_v44 = vsel %vm2406_vm4, %v2443_v3, %v2444_v25  ;;  %v2475_v43 = vpack.c.bf16 %v2439_v53, %v2433_v9  ;;  %2481 = vst [vmem:[#allocation3 + $0xb0] sm:$0xff] %v2473_v26  ;;  %v2545_v39 = vld [vmem:[#allocation2 + $0xf0] sm:$0x1]  ;;  %v2583_v30 = vrot.slane %v2519_v56, 1 }
 0x36f   : > { %v2527_v28 = vld [vmem:[#allocation2 + $0x60] sm:$0xfe]  ;;  %v2451_v57 = vsel %vm2406_vm4, %v2449_v19, %v2450_v48  ;;  %v2589_v12 = vrot.slane %v2523_v29, 1  ;;  %v2602_v32 = vrot.slane %v2533_v50, 1  ;;  %v2549_v34 = vld [vmem:[#allocation2 + $0x110] sm:$0x1] }
 0x370   : > { %v2531_v40 = vld [vmem:[#allocation2 + $0x80] sm:$0xfe]  ;;  %v2477_v47 = vpack.c.bf16 %v2451_v57, %v2445_v44  ;;  %2483 = vst [vmem:[#allocation3 + $0x140] sm:$0xff] %v2475_v43  ;;  %v2595_v13 = vrot.slane %v2527_v28, 1  ;;  %v2585_v20 = vsel %vm2261_vm3, %v2583_v30, %v2584_v4  ;;  %v2608_v9 = vrot.slane %v2537_v24, 1 }
 0x371   : > { %v2535_v55 = vld [vmem:[#allocation2 + $0xa0] sm:$0xfe]  ;;  %v2601_v21 = vrot.slane %v2531_v40, 1  ;;  %v2591_v14 = vsel %vm2261_vm3, %v2589_v12, %v2590_v36  ;;  %v2614_v42 = vrot.slane %v2541_v35, 1  ;;  %v2665_v19 = vld [vmem:[#allocation2 + $0x30] sm:$0x3] }
 0x372   : > { %v2539_v27 = vld [vmem:[#allocation2 + $0xc0] sm:$0xfe]  ;;  %2485 = vst [vmem:[#allocation3 + $0x1d0] sm:$0xff] %v2477_v47  ;;  %v2607_v7 = vrot.slane %v2535_v55, 1  ;;  %v2597_v3 = vsel %vm2261_vm3, %v2595_v13, %v2596_v10  ;;  %v2620_v49 = vrot.slane %v2545_v39, 1  ;;  %v2626_v41 = vrot.slane %v2549_v34, 1 }
 0x373   : > { %v2543_v46 = vld [vmem:[#allocation2 + $0xe0] sm:$0xfe]  ;;  %v2603_v25 = vsel %vm2261_vm3, %v2601_v21, %v2602_v32  ;;  %v2613_v56 = vrot.slane %v2539_v27, 1  ;;  %v2669_v26 = vld [vmem:[#allocation2 + $0x50] sm:$0x3]  ;;  %v2647_v40 = vpack.c.bf16 %v2591_v14, %v2585_v20  ;;  %v2728_v6 = vrot.slane %v2665_v19, 2 }
 0x374   : > { %v2547_v2 = vld [vmem:[#allocation2 + $0x100] sm:$0xfe]  ;;  %v2609_v52 = vsel %vm2261_vm3, %v2607_v7, %v2608_v9  ;;  %v2619_v29 = vrot.slane %v2543_v46, 1  ;;  %v2649_v57 = vpack.c.bf16 %v2603_v25, %v2597_v3  ;;  %v2673_v50 = vld [vmem:[#allocation2 + $0x70] sm:$0x3]  ;;  %v12504_v46 = vpop.eup %12503 }
 0x375   : > { %v2663_v53 = vld [vmem:[#allocation2 + $0x20] sm:$0xfc]  ;;  %v2625_v44 = vrot.slane %v2547_v2, 1  ;;  %v2615_v28 = vsel %vm2261_vm3, %v2613_v56, %v2614_v42  ;;  %v2677_v27 = vld [vmem:[#allocation2 + $0x90] sm:$0x3]  ;;  %2655 = vst [vmem:[#allocation3 + $0x40] sm:$0xff] %v2647_v40  ;;  %v14691_v2 = vsel %vm2261_vm3, %v2946_v15, %v2947_v33  ;;  %v12506_v13 = vpop.eup %12505 }
 0x376   : > { %v2667_v48 = vld [vmem:[#allocation2 + $0x40] sm:$0xfc]  ;;  %v2621_v24 = vsel %vm2261_vm3, %v2619_v29, %v2620_v49  ;;  %v2651_v47 = vpack.c.bf16 %v2615_v28, %v2609_v52  ;;  %v2681_v30 = vld [vmem:[#allocation2 + $0xb0] sm:$0x3]  ;;  %2657 = vst [vmem:[#allocation3 + $0xd0] sm:$0xff] %v2649_v57  ;;  %v2727_v32 = vrot.slane %v2663_v53, 2  ;;  %v14701_v60 = vpop.eup %12507 }
 0x377   : > { %v2671_v43 = vld [vmem:[#allocation2 + $0x60] sm:$0xfc]  ;;  %v2627_v39 = vsel %vm2261_vm3, %v2625_v44, %v2626_v41  ;;  %v2685_v12 = vld [vmem:[#allocation2 + $0xd0] sm:$0x3]  ;;  %v2733_v34 = vrot.slane %v2667_v48, 2  ;;  %v2734_v33 = vrot.slane %v2669_v26, 2 }
 0x378   : > { %v2675_v55 = vld [vmem:[#allocation2 + $0x80] sm:$0xfc]  ;;  %v2653_v10 = vpack.c.bf16 %v2627_v39, %v2621_v24  ;;  %2659 = vst [vmem:[#allocation3 + $0x160] sm:$0xff] %v2651_v47  ;;  %v2689_v21 = vld [vmem:[#allocation2 + $0xf0] sm:$0x3]  ;;  %v2739_v20 = vrot.slane %v2671_v43, 2  ;;  %v2729_v51 = vsel %vm2406_vm4, %v2727_v32, %v2728_v6  ;;  %v14723_v32 = vmul.f32 %v12506_v13, %v14564_v54  ;;  %v12510_v6 = vpop.eup %12509 }
 0x379   : > { %v2679_v35 = vld [vmem:[#allocation2 + $0xa0] sm:$0xfc]  ;;  %v2740_v11 = vrot.slane %v2673_v50, 2  ;;  %v2745_v14 = vrot.slane %v2675_v55, 2  ;;  %v2693_v23 = vld [vmem:[#allocation2 + $0x110] sm:$0x3]  ;;  %v2735_v9 = vsel %vm2406_vm4, %v2733_v34, %v2734_v33 }
 0x37a   : > { %v2683_v4 = vld [vmem:[#allocation2 + $0xc0] sm:$0xfc]  ;;  %2661 = vst [vmem:[#allocation3 + $0x1f0] sm:$0xff] %v2653_v10  ;;  %v2746_v61 = vrot.slane %v2677_v27, 2  ;;  %v2751_v58 = vrot.slane %v2679_v35, 2  ;;  %v2752_v7 = vrot.slane %v2681_v30, 2  ;;  %v2791_v41 = vpack.c.bf16 %v2735_v9, %v2729_v51 }
 0x37b   : > { %v2687_v36 = vld [vmem:[#allocation2 + $0xe0] sm:$0xfc]  ;;  %v2741_v3 = vsel %vm2406_vm4, %v2739_v20, %v2740_v11  ;;  %v2757_v25 = vrot.slane %v2683_v4, 2  ;;  %v2758_v56 = vrot.slane %v2685_v12, 2  ;;  %v2842_v53 = vld [vmem:[#allocation2 + $0x50] sm:$0x1]  ;;  %v14712_v30 = vmul.f32 %v14673_v18, %v14548_v37  ;;  %v12512_v20 = vpop.eup %12511 }
 0x37c   : > { %v2691_v15 = vld [vmem:[#allocation2 + $0x100] sm:$0xfc]  ;;  %v2747_v19 = vsel %vm2406_vm4, %v2745_v14, %v2746_v61  ;;  %v2753_v48 = vsel %vm2406_vm4, %v2751_v58, %v2752_v7  ;;  %v2763_v52 = vrot.slane %v2687_v36, 2  ;;  %v2764_v29 = vrot.slane %v2689_v21, 2  ;;  %v2846_v44 = vld [vmem:[#allocation2 + $0x70] sm:$0x1] }
 0x37d   : > { %v2840_v42 = vld [vmem:[#allocation2 + $0x40] sm:$0xfe]  ;;  %v2759_v26 = vsel %vm2406_vm4, %v2757_v25, %v2758_v56  ;;  %v2769_v43 = vrot.slane %v2691_v15, 2  ;;  %v2770_v28 = vrot.slane %v2693_v23, 2  ;;  %v2850_v57 = vld [vmem:[#allocation2 + $0x90] sm:$0x1]  ;;  %v2793_v55 = vpack.c.bf16 %v2747_v19, %v2741_v3 }
 0x37e   : > { %v2844_v49 = vld [vmem:[#allocation2 + $0x60] sm:$0xfe]  ;;  %v2765_v50 = vsel %vm2406_vm4, %v2763_v52, %v2764_v29  ;;  %v2795_v24 = vpack.c.bf16 %v2759_v26, %v2753_v48  ;;  %v2854_v27 = vld [vmem:[#allocation2 + $0xb0] sm:$0x1]  ;;  %2799 = vst [vmem:[#allocation3 + $0x50] sm:$0xff] %v2791_v41  ;;  %v14717_v10 = vmul.f32 %v14675_v45, %v14551_v0  ;;  %v14720_v21 = vmul.f32 %v12504_v46, %v14554_v8 }
 0x37f   : > { %v2848_v40 = vld [vmem:[#allocation2 + $0x80] sm:$0xfe]  ;;  %v2771_v39 = vsel %vm2406_vm4, %v2769_v43, %v2770_v28  ;;  %v2858_v4 = vld [vmem:[#allocation2 + $0xd0] sm:$0x1]  ;;  %2801 = vst [vmem:[#allocation3 + $0xe0] sm:$0xff] %v2793_v55  ;;  %v2904_v18 = vrot.slane %v2840_v42, 1 }
 0x380   : > { %v2852_v47 = vld [vmem:[#allocation2 + $0xa0] sm:$0xfe]  ;;  %v2862_v36 = vld [vmem:[#allocation2 + $0xf0] sm:$0x1]  ;;  %v2797_v34 = vpack.c.bf16 %v2771_v39, %v2765_v50  ;;  %2803 = vst [vmem:[#allocation3 + $0x170] sm:$0xff] %v2795_v24  ;;  %v2905_v15 = vrot.slane %v2842_v53, 1 }
 0x381   : > { %v2856_v35 = vld [vmem:[#allocation2 + $0xc0] sm:$0xfe]  ;;  %v2910_v33 = vrot.slane %v2844_v49, 1  ;;  %v2866_v11 = vld [vmem:[#allocation2 + $0x110] sm:$0x1]  ;;  %v2911_v14 = vrot.slane %v2846_v44, 1 }
 0x382   : > { %v2860_v12 = vld [vmem:[#allocation2 + $0xe0] sm:$0xfe]  ;;  %v2916_v23 = vrot.slane %v2848_v40, 1  ;;  %v2917_v0 = vrot.slane %v2850_v57, 1  ;;  %v2922_v45 = vrot.slane %v2852_v47, 1  ;;  %2805 = vst [vmem:[#allocation3 + $0x200] sm:$0xff] %v2797_v34  ;;  %v2906_v8 = vsel %vm2261_vm3, %v2904_v18, %v2905_v15 }
 0x383   : > { %v2864_v37 = vld [vmem:[#allocation2 + $0x100] sm:$0xfe]  ;;  %v2923_v46 = vrot.slane %v2854_v27, 1  ;;  %v2928_v54 = vrot.slane %v2856_v35, 1  ;;  %v2929_v13 = vrot.slane %v2858_v4, 1  ;;  %v2912_v58 = vsel %vm2261_vm3, %v2910_v33, %v2911_v14 }
 0x384   : > { %v2984_v51 = vld [vmem:[#allocation2 + $0x40] sm:$0xfc]  ;;  %v2986_v61 = vld [vmem:[#allocation2 + $0x50] sm:$0x3]  ;;  %v2918_v7 = vsel %vm2261_vm3, %v2916_v23, %v2917_v0  ;;  %v2934_v9 = vrot.slane %v2860_v12, 1  ;;  %v2935_v3 = vrot.slane %v2862_v36, 1  ;;  %v2968_v44 = vpack.c.bf16 %v2912_v58, %v2906_v8 }
 0x385   : > { %v2988_v25 = vld [vmem:[#allocation2 + $0x60] sm:$0xfc]  ;;  %v2990_v56 = vld [vmem:[#allocation2 + $0x70] sm:$0x3]  ;;  %v2924_v42 = vsel %vm2261_vm3, %v2922_v45, %v2923_v46  ;;  %v2930_v53 = vsel %vm2261_vm3, %v2928_v54, %v2929_v13  ;;  %v2940_v19 = vrot.slane %v2864_v37, 1  ;;  %v2941_v48 = vrot.slane %v2866_v11, 1 }
 0x386   : > { %v2992_v52 = vld [vmem:[#allocation2 + $0x80] sm:$0xfc]  ;;  %v2994_v29 = vld [vmem:[#allocation2 + $0x90] sm:$0x3]  ;;  %v2936_v49 = vsel %vm2261_vm3, %v2934_v9, %v2935_v3  ;;  %v2970_v26 = vpack.c.bf16 %v2924_v42, %v2918_v7  ;;  %v14733_v40 = vmul.f32 %v14701_v60, %v14567_v59  ;;  %v1419_v27 = vmul.f32 %v12510_v6, %v14571_v5  ;;  %2976 = vst [vmem:[#allocation3 + $0x70] sm:$0xff] %v2968_v44 }
 0x387   : > { %v2996_v43 = vld [vmem:[#allocation2 + $0xa0] sm:$0xfc]  ;;  %v2998_v28 = vld [vmem:[#allocation2 + $0xb0] sm:$0x3]  ;;  %v2942_v57 = vsel %vm2261_vm3, %v2940_v19, %v2941_v48  ;;  %v2972_v50 = vpack.c.bf16 %v2936_v49, %v2930_v53  ;;  %v1421_v35 = vmul.f32 %v12512_v20, %v14575_v38  ;;  %v3048_v12 = vrot.slane %v2984_v51, 2 }
 0x388   : > { %v3000_v41 = vld [vmem:[#allocation2 + $0xc0] sm:$0xfc]  ;;  %v3002_v55 = vld [vmem:[#allocation2 + $0xd0] sm:$0x3]  ;;  %v2974_v39 = vpack.c.bf16 %v14691_v2, %v2942_v57  ;;  %2978 = vst [vmem:[#allocation3 + $0x100] sm:$0xff] %v2970_v26  ;;  %v3049_v36 = vrot.slane %v2986_v61, 2 }
 0x389   : > { %v3004_v24 = vld [vmem:[#allocation2 + $0xe0] sm:$0xfc]  ;;  %v3006_v47 = vld [vmem:[#allocation2 + $0xf0] sm:$0x3]  ;;  %v3054_v34 = vrot.slane %v2988_v25, 2  ;;  %2980 = vst [vmem:[#allocation3 + $0x190] sm:$0xff] %v2972_v50 }
 0x38a   : > { %v3008_v4 = vld [vmem:[#allocation2 + $0x100] sm:$0xfc]  ;;  %v3010_v59 = vld [vmem:[#allocation2 + $0x110] sm:$0x3]  ;;  %v3055_v60 = vrot.slane %v2990_v56, 2  ;;  %v3060_v37 = vrot.slane %v2992_v52, 2  ;;  %v3050_v33 = vsel %vm2406_vm4, %v3048_v12, %v3049_v36 }
 0x38b   : > { %v3061_v18 = vrot.slane %v2994_v29, 2  ;;  %v3066_v15 = vrot.slane %v2996_v43, 2  ;;  %2982 = vst [vmem:[#allocation3 + $0x220] sm:$0xff] %v2974_v39  ;;  %v3067_v5 = vrot.slane %v2998_v28, 2  ;;  %v3072_v6 = vrot.slane %v3000_v41, 2  ;;  %v2166_v29 = vld [vmem:[#allocation2 + $0x8] sm:$0xff] }
 0x38c   : > { %v3073_v38 = vrot.slane %v3002_v55, 2  ;;  %v3056_v2 = vsel %vm2406_vm4, %v3054_v34, %v3055_v60  ;;  %v3078_v11 = vrot.slane %v3004_v24, 2  ;;  %v3079_v14 = vrot.slane %v3006_v47, 2  ;;  %v2198_v42 = vld [vmem:[#allocation2 + $0x8] sm:$0xfe] }
 0x38d   : > { %v3062_v20 = vsel %vm2406_vm4, %v3060_v37, %v3061_v18  ;;  %v3068_v23 = vsel %vm2406_vm4, %v3066_v15, %v3067_v5  ;;  %v3084_v45 = vrot.slane %v3008_v4, 2  ;;  %v3085_v8 = vrot.slane %v3010_v59, 2  ;;  %v14757_v48 = vld [vmem:[#allocation2 + $0x128] sm:$0xfe]  ;;  %v14759_v52 = vld [vmem:[#allocation2 + $0x138] sm:$0x1] }
 0x38e   : > { %v3074_v0 = vsel %vm2406_vm4, %v3072_v6, %v3073_v38  ;;  %v3080_v46 = vsel %vm2406_vm4, %v3078_v11, %v3079_v14  ;;  %v3112_v54 = vpack.c.bf16 %v3056_v2, %v3050_v33  ;;  %v3114_v13 = vpack.c.bf16 %v3068_v23, %v3062_v20  ;;  %v14761_v49 = vld [vmem:[#allocation2 + $0x128] sm:$0xfc]  ;;  %v14765_v43 = vld [vmem:[#allocation2 + $0x138] sm:$0x3] }
 0x38f   : > { %v1375_v51 = vadd.f32 1.0, %v14663_v1  ;;  %v3086_v61 = vsel %vm2406_vm4, %v3084_v45, %v3085_v8  ;;  %v3116_v58 = vpack.c.bf16 %v3080_v46, %v3074_v0  ;;  %v1441_v7 = vrot.slane %v14712_v30, 7  ;;  %v2200_v30 = vld [vmem:[#allocation2 + $0x18] sm:$0x1] }
 0x390   : > { %v1443_v9 = vrot.slane %v14717_v10, 7  ;;  %v3118_v3 = vpack.c.bf16 %v14698_v31, %v3086_v61  ;;  %3120 = vst [vmem:[#allocation3 + $0x80] sm:$0xff] %v3112_v54  ;;  %3122 = vst [vmem:[#allocation3 + $0x110] sm:$0xff] %v3114_v13  ;;  %v1445_v25 = vrot.slane %v14720_v21, 7  ;;  %v1447_v56 = vrot.slane %v14723_v32, 7 }
 0x391   : > { %12513 = vrcp.f32 %v1375_v51  ;;  %3124 = vst [vmem:[#allocation3 + $0x1a0] sm:$0xff] %v3116_v58  ;;  %v1449_v1 = vrot.slane %v14733_v40, 7  ;;  %v1451_v53 = vrot.slane %v1419_v27, 7  ;;  %v1453_v19 = vrot.slane %v1421_v35, 7  ;;  %1474 = vst [vmem:[#allocation2 + $0x28] sm:$0xfe] %v1441_v7 }
 0x392   : > { %1476 = vst [vmem:[#allocation2 + $0x38] sm:$0x1] %v1441_v7  ;;  %1478 = vst [vmem:[#allocation2 + $0x48] sm:$0xfe] %v1443_v9  ;;  %v2265_v31 = vrot.slane %v2198_v42, 1  ;;  %v2266_v10 = vrot.slane %v2200_v30, 1 }
 0x393   : > { %1480 = vst [vmem:[#allocation2 + $0x58] sm:$0x1] %v1443_v9  ;;  %3126 = vst [vmem:[#allocation3 + $0x230] sm:$0xff] %v3118_v3  ;;  %v14753_v21 = vld [vmem:[#allocation2 + $0x8] sm:$0xfc]  ;;  %v2949_v50 = vrot.slane %v14757_v48, 1 }
 0x394   : > { %1482 = vst [vmem:[#allocation2 + $0x68] sm:$0xfe] %v1445_v25  ;;  %1484 = vst [vmem:[#allocation2 + $0x78] sm:$0x1] %v1445_v25  ;;  %v14755_v32 = vld [vmem:[#allocation2 + $0x18] sm:$0x3]  ;;  %v2267_v57 = vsel %vm2261_vm3, %v2265_v31, %v2266_v10 }
 0x395   : > { %1486 = vst [vmem:[#allocation2 + $0x88] sm:$0xfe] %v1447_v56  ;;  %1488 = vst [vmem:[#allocation2 + $0x98] sm:$0x1] %v1447_v56  ;;  %v2410_v44 = vrot.slane %v14753_v21, 2  ;;  %v2411_v26 = vrot.slane %v14755_v32, 2 }
 0x396   : > { %1490 = vst [vmem:[#allocation2 + $0xa8] sm:$0xfe] %v1449_v1  ;;  %1492 = vst [vmem:[#allocation2 + $0xb8] sm:$0x1] %v1449_v1  ;;  %v2950_v55 = vrot.slane %v14759_v52, 1  ;;  %v3093_v12 = vrot.slane %v14761_v49, 2 }
 0x397   : > { %1494 = vst [vmem:[#allocation2 + $0xc8] sm:$0xfe] %v1451_v53  ;;  %1496 = vst [vmem:[#allocation2 + $0xd8] sm:$0x1] %v1451_v53  ;;  %v3094_v33 = vrot.slane %v14765_v43, 2 }
 0x398   : > { %1498 = vst [vmem:[#allocation2 + $0xe8] sm:$0xfe] %v1453_v19  ;;  %1500 = vst [vmem:[#allocation2 + $0xf8] sm:$0x1] %v1453_v19  ;;  %v2168_v28 = vld [vmem:[#allocation2 + $0x28] sm:$0xff] }
 0x399   : > { %v2170_v41 = vld [vmem:[#allocation2 + $0x48] sm:$0xff]  ;;  %v2182_v27 = vpack.c.bf16 %v2168_v28, %v2166_v29  ;;  %v2204_v35 = vld [vmem:[#allocation2 + $0x38] sm:$0x1] }
 0x39a   : > { %v2202_v40 = vld [vmem:[#allocation2 + $0x28] sm:$0xfe]  ;;  %v2504_v4 = vpack.c.bf16 %v2170_v41, %v2168_v28  ;;  %v2272_v18 = vrot.slane %v2204_v35, 1  ;;  %v2208_v20 = vld [vmem:[#allocation2 + $0x58] sm:$0x1] }
 0x39b   : > { %v2172_v24 = vld [vmem:[#allocation2 + $0x68] sm:$0xff]  ;;  %v2271_v39 = vrot.slane %v2202_v40, 1  ;;  %v12514_v36 = vpop.eup %12513  ;;  %2190 = vst [vmem:[#allocation3 + $0x8] sm:$0xff] %v2182_v27  ;;  %v2212_v23 = vld [vmem:[#allocation2 + $0x78] sm:$0x1]  ;;  %v2278_v3 = vrot.slane %v2208_v20, 1 }
 0x39c   : > { %v2174_v47 = vld [vmem:[#allocation2 + $0x88] sm:$0xff]  ;;  %v2184_v37 = vpack.c.bf16 %v2172_v24, %v2170_v41  ;;  %v1423_v5 = vmul.f32 %v12514_v36, %v14616_v22  ;;  %2512 = vst [vmem:[#allocation3 + $0x38] sm:$0xff] %v2504_v4  ;;  %v2216_v45 = vld [vmem:[#allocation2 + $0x98] sm:$0x1]  ;;  %v2284_v56 = vrot.slane %v2212_v23, 1 }
 0x39d   : > { %v2176_v34 = vld [vmem:[#allocation2 + $0xa8] sm:$0xff]  ;;  %v2506_v15 = vpack.c.bf16 %v2174_v47, %v2172_v24  ;;  %v2273_v8 = vsel %vm2261_vm3, %v2271_v39, %v2272_v18  ;;  %v2220_v54 = vld [vmem:[#allocation2 + $0xb8] sm:$0x1]  ;;  %v2290_v1 = vrot.slane %v2216_v45, 1 }
 0x39e   : > { %v2178_v59 = vld [vmem:[#allocation2 + $0xc8] sm:$0xff]  ;;  %v2186_v6 = vpack.c.bf16 %v2176_v34, %v2174_v47  ;;  %2192 = vst [vmem:[#allocation3 + $0x98] sm:$0xff] %v2184_v37  ;;  %2833 = vst [vmem:[#allocation3 + $0x68] sm:$0xff] %v2184_v37  ;;  %v1455_v46 = vrot.slane %v1423_v5, 7  ;;  %v2327_v51 = vpack.c.bf16 %v2273_v8, %v2267_v57  ;;  %v2224_v58 = vld [vmem:[#allocation2 + $0xd8] sm:$0x1] }
 0x39f   : > { %v14771_v60 = vld [vmem:[#allocation2 + $0xe8] sm:$0xff]  ;;  %v2508_v14 = vpack.c.bf16 %v2178_v59, %v2176_v34  ;;  %2514 = vst [vmem:[#allocation3 + $0xc8] sm:$0xff] %v2506_v15  ;;  %v2228_v9 = vld [vmem:[#allocation2 + $0xf8] sm:$0x1]  ;;  %v2296_v19 = vrot.slane %v2220_v54, 1  ;;  %v2302_v29 = vrot.slane %v2224_v58, 1 }
 0x3a0   : > { %v2188_v38 = vpack.c.bf16 %v14771_v60, %v2178_v59  ;;  %v2206_v2 = vld [vmem:[#allocation2 + $0x48] sm:$0xfe]  ;;  %2194 = vst [vmem:[#allocation3 + $0x128] sm:$0xff] %v2186_v6  ;;  %2835 = vst [vmem:[#allocation3 + $0xf8] sm:$0xff] %v2186_v6  ;;  %v2308_v24 = vrot.slane %v2228_v9, 1 }
 0x3a1   : > { %v2210_v11 = vld [vmem:[#allocation2 + $0x68] sm:$0xfe]  ;;  %v2277_v13 = vrot.slane %v2206_v2, 1  ;;  %2516 = vst [vmem:[#allocation3 + $0x158] sm:$0xff] %v2508_v14  ;;  %1502 = vst [vmem:[#allocation2 + $0x108] sm:$0xfe] %v1455_v46 }
 0x3a2   : > { %v2214_v0 = vld [vmem:[#allocation2 + $0x88] sm:$0xfe]  ;;  %2196 = vst [vmem:[#allocation3 + $0x1b8] sm:$0xff] %v2188_v38  ;;  %2837 = vst [vmem:[#allocation3 + $0x188] sm:$0xff] %v2188_v38  ;;  %v2283_v25 = vrot.slane %v2210_v11, 1  ;;  %v2412_v11 = vsel %vm2406_vm4, %v2410_v44, %v2411_v26 }
 0x3a3   : > { %v2218_v22 = vld [vmem:[#allocation2 + $0xa8] sm:$0xfe]  ;;  %1504 = vst [vmem:[#allocation2 + $0x118] sm:$0x1] %v1455_v46  ;;  %v2289_v42 = vrot.slane %v2214_v0, 1  ;;  %2335 = vst [vmem:[#allocation3 + $0x18] sm:$0xff] %v2327_v51  ;;  %v2279_v31 = vsel %vm2261_vm3, %v2277_v13, %v2278_v3 }
 0x3a4   : > { %v2222_v61 = vld [vmem:[#allocation2 + $0xc8] sm:$0xfe]  ;;  %v2295_v53 = vrot.slane %v2218_v22, 1  ;;  %v2285_v10 = vsel %vm2261_vm3, %v2283_v25, %v2284_v56  ;;  %v2349_v27 = vld [vmem:[#allocation2 + $0x38] sm:$0x3] }
 0x3a5   : > { %v2226_v7 = vld [vmem:[#allocation2 + $0xe8] sm:$0xfe]  ;;  %v2301_v30 = vrot.slane %v2222_v61, 1  ;;  %v2291_v40 = vsel %vm2261_vm3, %v2289_v42, %v2290_v1  ;;  %v2329_v47 = vpack.c.bf16 %v2285_v10, %v2279_v31  ;;  %v2353_v36 = vld [vmem:[#allocation2 + $0x58] sm:$0x3]  ;;  %v2417_v0 = vrot.slane %v2349_v27, 2 }
 0x3a6   : > { %v2307_v28 = vrot.slane %v2226_v7, 1  ;;  %v2347_v41 = vld [vmem:[#allocation2 + $0x28] sm:$0xfc]  ;;  %v2297_v57 = vsel %vm2261_vm3, %v2295_v53, %v2296_v19  ;;  %v2357_v59 = vld [vmem:[#allocation2 + $0x78] sm:$0x3]  ;;  %v2423_v8 = vrot.slane %v2353_v36, 2 }
 0x3a7   : > { %v2351_v35 = vld [vmem:[#allocation2 + $0x48] sm:$0xfc]  ;;  %v2303_v39 = vsel %vm2261_vm3, %v2301_v30, %v2302_v29  ;;  %v2331_v4 = vpack.c.bf16 %v2297_v57, %v2291_v40  ;;  %2337 = vst [vmem:[#allocation3 + $0xa8] sm:$0xff] %v2329_v47  ;;  %v2361_v15 = vld [vmem:[#allocation2 + $0x98] sm:$0x3]  ;;  %v2416_v23 = vrot.slane %v2347_v41, 2 }
 0x3a8   : > { %v2355_v34 = vld [vmem:[#allocation2 + $0x68] sm:$0xfc]  ;;  %v2309_v37 = vsel %vm2261_vm3, %v2307_v28, %v2308_v24  ;;  %v2365_v38 = vld [vmem:[#allocation2 + $0xb8] sm:$0x3]  ;;  %v2422_v45 = vrot.slane %v2351_v35, 2  ;;  %v2429_v54 = vrot.slane %v2357_v59, 2 }
 0x3a9   : > { %v2359_v18 = vld [vmem:[#allocation2 + $0x88] sm:$0xfc]  ;;  %v2333_v6 = vpack.c.bf16 %v2309_v37, %v2303_v39  ;;  %2339 = vst [vmem:[#allocation3 + $0x138] sm:$0xff] %v2331_v4  ;;  %v2369_v20 = vld [vmem:[#allocation2 + $0xd8] sm:$0x3]  ;;  %v2428_v22 = vrot.slane %v2355_v34, 2  ;;  %v2418_v61 = vsel %vm2406_vm4, %v2416_v23, %v2417_v0 }
 0x3aa   : > { %v2363_v5 = vld [vmem:[#allocation2 + $0xa8] sm:$0xfc]  ;;  %v2373_v46 = vld [vmem:[#allocation2 + $0xf8] sm:$0x3]  ;;  %v2434_v13 = vrot.slane %v2359_v18, 2  ;;  %v2435_v51 = vrot.slane %v2361_v15, 2  ;;  %v2424_v58 = vsel %vm2406_vm4, %v2422_v45, %v2423_v8  ;;  %v2472_v30 = vpack.c.bf16 %v2418_v61, %v2412_v11 }
 0x3ab   : > { %v2367_v2 = vld [vmem:[#allocation2 + $0xc8] sm:$0xfc]  ;;  %2341 = vst [vmem:[#allocation3 + $0x1c8] sm:$0xff] %v2333_v6  ;;  %v2440_v32 = vrot.slane %v2363_v5, 2  ;;  %v2441_v7 = vrot.slane %v2365_v38, 2  ;;  %v2430_v44 = vsel %vm2406_vm4, %v2428_v22, %v2429_v54  ;;  %v2447_v25 = vrot.slane %v2369_v20, 2 }
 0x3ac   : > { %v2371_v14 = vld [vmem:[#allocation2 + $0xe8] sm:$0xfc]  ;;  %v2436_v26 = vsel %vm2406_vm4, %v2434_v13, %v2435_v51  ;;  %v2446_v3 = vrot.slane %v2367_v2, 2  ;;  %v2522_v42 = vld [vmem:[#allocation2 + $0x38] sm:$0x1]  ;;  %v2453_v19 = vrot.slane %v2373_v46, 2  ;;  %v2474_v28 = vpack.c.bf16 %v2430_v44, %v2424_v58 }
 0x3ad   : > { %v2502_v21 = vld [vmem:[#allocation2 + $0x108] sm:$0xff]  ;;  %v2442_v1 = vsel %vm2406_vm4, %v2440_v32, %v2441_v7  ;;  %v2452_v53 = vrot.slane %v2371_v14, 2  ;;  %v2526_v10 = vld [vmem:[#allocation2 + $0x58] sm:$0x1]  ;;  %2480 = vst [vmem:[#allocation3 + $0x28] sm:$0xff] %v2472_v30 }
 0x3ae   : > { %v2823_v9 = vld [vmem:[#allocation2 + $0x128] sm:$0xff]  ;;  %v2448_v29 = vsel %vm2406_vm4, %v2446_v3, %v2447_v25  ;;  %v2476_v41 = vpack.c.bf16 %v2442_v1, %v2436_v26  ;;  %v2510_v40 = vpack.c.bf16 %v2502_v21, %v14771_v60  ;;  %v2530_v24 = vld [vmem:[#allocation2 + $0x78] sm:$0x1]  ;;  %2482 = vst [vmem:[#allocation3 + $0xb8] sm:$0xff] %v2474_v28  ;;  %v2587_v60 = vrot.slane %v2522_v42, 1 }
 0x3af   : > { %v2520_v56 = vld [vmem:[#allocation2 + $0x28] sm:$0xfe]  ;;  %v2454_v27 = vsel %vm2406_vm4, %v2452_v53, %v2453_v19  ;;  %v2534_v35 = vld [vmem:[#allocation2 + $0x98] sm:$0x1]  ;;  %v2831_v36 = vpack.c.bf16 %v2823_v9, %v2502_v21  ;;  %v2593_v38 = vrot.slane %v2526_v10, 1  ;;  %v2599_v11 = vrot.slane %v2530_v24, 1 }
 0x3b0   : > { %v2524_v31 = vld [vmem:[#allocation2 + $0x48] sm:$0xfe]  ;;  %v2538_v4 = vld [vmem:[#allocation2 + $0xb8] sm:$0x1]  ;;  %v2478_v34 = vpack.c.bf16 %v2454_v27, %v2448_v29  ;;  %2484 = vst [vmem:[#allocation3 + $0x148] sm:$0xff] %v2476_v41  ;;  %2518 = vst [vmem:[#allocation3 + $0x1e8] sm:$0xff] %v2510_v40 }
 0x3b1   : > { %v2528_v57 = vld [vmem:[#allocation2 + $0x68] sm:$0xfe]  ;;  %v2542_v37 = vld [vmem:[#allocation2 + $0xd8] sm:$0x1]  ;;  %v2586_v5 = vrot.slane %v2520_v56, 1  ;;  %v2592_v6 = vrot.slane %v2524_v31, 1 }
 0x3b2   : > { %v2532_v47 = vld [vmem:[#allocation2 + $0x88] sm:$0xfe]  ;;  %v2546_v15 = vld [vmem:[#allocation2 + $0xf8] sm:$0x1]  ;;  %2839 = vst [vmem:[#allocation3 + $0x218] sm:$0xff] %v2831_v36  ;;  %2486 = vst [vmem:[#allocation3 + $0x1d8] sm:$0xff] %v2478_v34 }
 0x3b3   : > { %v2536_v39 = vld [vmem:[#allocation2 + $0xa8] sm:$0xfe]  ;;  %v2598_v20 = vrot.slane %v2528_v57, 1  ;;  %v2604_v14 = vrot.slane %v2532_v47, 1  ;;  %v2605_v23 = vrot.slane %v2534_v35, 1  ;;  %v2588_v45 = vsel %vm2261_vm3, %v2586_v5, %v2587_v60 }
 0x3b4   : > { %v2540_v59 = vld [vmem:[#allocation2 + $0xc8] sm:$0xfe]  ;;  %v2550_v0 = vld [vmem:[#allocation2 + $0x118] sm:$0x1]  ;;  %v2594_v8 = vsel %vm2261_vm3, %v2592_v6, %v2593_v38  ;;  %v2610_v46 = vrot.slane %v2536_v39, 1  ;;  %v2611_v22 = vrot.slane %v2538_v4, 1 }
 0x3b5   : > { %v2544_v18 = vld [vmem:[#allocation2 + $0xe8] sm:$0xfe]  ;;  %v2600_v54 = vsel %vm2261_vm3, %v2598_v20, %v2599_v11  ;;  %v2606_v13 = vsel %vm2261_vm3, %v2604_v14, %v2605_v23  ;;  %v2616_v51 = vrot.slane %v2540_v59, 1  ;;  %v2617_v61 = vrot.slane %v2542_v37, 1  ;;  %v2666_v32 = vld [vmem:[#allocation2 + $0x38] sm:$0x3] }
 0x3b6   : > { %v2548_v2 = vld [vmem:[#allocation2 + $0x108] sm:$0xfe]  ;;  %v2612_v21 = vsel %vm2261_vm3, %v2610_v46, %v2611_v22  ;;  %v2622_v9 = vrot.slane %v2544_v18, 1  ;;  %v2623_v44 = vrot.slane %v2546_v15, 1  ;;  %v2670_v3 = vld [vmem:[#allocation2 + $0x58] sm:$0x3]  ;;  %v2648_v1 = vpack.c.bf16 %v2594_v8, %v2588_v45 }
 0x3b7   : > { %v2664_v58 = vld [vmem:[#allocation2 + $0x28] sm:$0xfc]  ;;  %v2628_v26 = vrot.slane %v2548_v2, 1  ;;  %v2618_v56 = vsel %vm2261_vm3, %v2616_v51, %v2617_v61  ;;  %v2629_v42 = vrot.slane %v2550_v0, 1  ;;  %v2650_v53 = vpack.c.bf16 %v2606_v13, %v2600_v54  ;;  %v2674_v19 = vld [vmem:[#allocation2 + $0x78] sm:$0x3] }
 0x3b8   : > { %v2668_v7 = vld [vmem:[#allocation2 + $0x48] sm:$0xfc]  ;;  %v2624_v31 = vsel %vm2261_vm3, %v2622_v9, %v2623_v44  ;;  %v2652_v10 = vpack.c.bf16 %v2618_v56, %v2612_v21  ;;  %v2678_v29 = vld [vmem:[#allocation2 + $0x98] sm:$0x3]  ;;  %2656 = vst [vmem:[#allocation3 + $0x48] sm:$0xff] %v2648_v1  ;;  %v2730_v39 = vrot.slane %v2664_v58, 2 }
 0x3b9   : > { %v2672_v25 = vld [vmem:[#allocation2 + $0x68] sm:$0xfc]  ;;  %v2682_v41 = vld [vmem:[#allocation2 + $0xb8] sm:$0x3]  ;;  %v2630_v40 = vsel %vm2261_vm3, %v2628_v26, %v2629_v42  ;;  %2658 = vst [vmem:[#allocation3 + $0xd8] sm:$0xff] %v2650_v53  ;;  %v2731_v4 = vrot.slane %v2666_v32, 2 }
 0x3ba   : > { %v2676_v30 = vld [vmem:[#allocation2 + $0x88] sm:$0xfc]  ;;  %v2686_v24 = vld [vmem:[#allocation2 + $0xd8] sm:$0x3]  ;;  %v2654_v27 = vpack.c.bf16 %v2630_v40, %v2624_v31  ;;  %2660 = vst [vmem:[#allocation3 + $0x168] sm:$0xff] %v2652_v10  ;;  %v2736_v36 = vrot.slane %v2668_v7, 2  ;;  %v2951_v31 = vsel %vm2261_vm3, %v2949_v50, %v2950_v55 }
 0x3bb   : > { %v2680_v28 = vld [vmem:[#allocation2 + $0xa8] sm:$0xfc]  ;;  %v2690_v35 = vld [vmem:[#allocation2 + $0xf8] sm:$0x3]  ;;  %v2737_v59 = vrot.slane %v2670_v3, 2  ;;  %v2742_v37 = vrot.slane %v2672_v25, 2  ;;  %v2732_v60 = vsel %vm2406_vm4, %v2730_v39, %v2731_v4 }
 0x3bc   : > { %v2684_v57 = vld [vmem:[#allocation2 + $0xc8] sm:$0xfc]  ;;  %v2743_v18 = vrot.slane %v2674_v19, 2  ;;  %v2748_v15 = vrot.slane %v2676_v30, 2  ;;  %2662 = vst [vmem:[#allocation3 + $0x1f8] sm:$0xff] %v2654_v27  ;;  %v2749_v6 = vrot.slane %v2678_v29, 2 }
 0x3bd   : > { %v2688_v47 = vld [vmem:[#allocation2 + $0xe8] sm:$0xfc]  ;;  %v2694_v5 = vld [vmem:[#allocation2 + $0x118] sm:$0x3]  ;;  %v2754_v38 = vrot.slane %v2680_v28, 2  ;;  %v2755_v2 = vrot.slane %v2682_v41, 2  ;;  %v2738_v20 = vsel %vm2406_vm4, %v2736_v36, %v2737_v59 }
 0x3be   : > { %v2692_v34 = vld [vmem:[#allocation2 + $0x108] sm:$0xfc]  ;;  %v2744_v11 = vsel %vm2406_vm4, %v2742_v37, %v2743_v18  ;;  %v2760_v14 = vrot.slane %v2684_v57, 2  ;;  %v2761_v23 = vrot.slane %v2686_v24, 2  ;;  %v2843_v45 = vld [vmem:[#allocation2 + $0x58] sm:$0x1]  ;;  %v2750_v8 = vsel %vm2406_vm4, %v2748_v15, %v2749_v6 }
 0x3bf   : > { %v2841_v0 = vld [vmem:[#allocation2 + $0x48] sm:$0xfe]  ;;  %v2756_v46 = vsel %vm2406_vm4, %v2754_v38, %v2755_v2  ;;  %v2766_v22 = vrot.slane %v2688_v47, 2  ;;  %v2767_v54 = vrot.slane %v2690_v35, 2  ;;  %v2847_v51 = vld [vmem:[#allocation2 + $0x78] sm:$0x1]  ;;  %v2792_v7 = vpack.c.bf16 %v2738_v20, %v2732_v60 }
 0x3c0   : > { %v2845_v13 = vld [vmem:[#allocation2 + $0x68] sm:$0xfe]  ;;  %v2762_v61 = vsel %vm2406_vm4, %v2760_v14, %v2761_v23  ;;  %v2772_v58 = vrot.slane %v2692_v34, 2  ;;  %v2773_v32 = vrot.slane %v2694_v5, 2  ;;  %v2851_v9 = vld [vmem:[#allocation2 + $0x98] sm:$0x1]  ;;  %v2794_v26 = vpack.c.bf16 %v2750_v8, %v2744_v11 }
 0x3c1   : > { %v2849_v21 = vld [vmem:[#allocation2 + $0x88] sm:$0xfe]  ;;  %v2768_v44 = vsel %vm2406_vm4, %v2766_v22, %v2767_v54  ;;  %v2796_v3 = vpack.c.bf16 %v2762_v61, %v2756_v46  ;;  %v2855_v56 = vld [vmem:[#allocation2 + $0xb8] sm:$0x1]  ;;  %2800 = vst [vmem:[#allocation3 + $0x58] sm:$0xff] %v2792_v7  ;;  %v2907_v28 = vrot.slane %v2841_v0, 1  ;;  %v3095_v61 = vsel %vm2406_vm4, %v3093_v12, %v3094_v33 }
 0x3c2   : > { %v2853_v25 = vld [vmem:[#allocation2 + $0xa8] sm:$0xfe]  ;;  %v2774_v1 = vsel %vm2406_vm4, %v2772_v58, %v2773_v32  ;;  %v2859_v53 = vld [vmem:[#allocation2 + $0xd8] sm:$0x1]  ;;  %2802 = vst [vmem:[#allocation3 + $0xe8] sm:$0xff] %v2794_v26  ;;  %v2908_v41 = vrot.slane %v2843_v45, 1 }
 0x3c3   : > { %v2857_v42 = vld [vmem:[#allocation2 + $0xc8] sm:$0xfe]  ;;  %v2863_v30 = vld [vmem:[#allocation2 + $0xf8] sm:$0x1]  ;;  %v2798_v10 = vpack.c.bf16 %v2774_v1, %v2768_v44  ;;  %2804 = vst [vmem:[#allocation3 + $0x178] sm:$0xff] %v2796_v3  ;;  %v2913_v40 = vrot.slane %v2845_v13, 1 }
 0x3c4   : > { %v2861_v19 = vld [vmem:[#allocation2 + $0xe8] sm:$0xfe]  ;;  %v2867_v57 = vld [vmem:[#allocation2 + $0x118] sm:$0x1]  ;;  %v2914_v24 = vrot.slane %v2847_v51, 1  ;;  %v2919_v47 = vrot.slane %v2849_v21, 1  ;;  %v2909_v39 = vsel %vm2261_vm3, %v2907_v28, %v2908_v41 }
 0x3c5   : > { %v2865_v29 = vld [vmem:[#allocation2 + $0x108] sm:$0xfe]  ;;  %v2920_v27 = vrot.slane %v2851_v9, 1  ;;  %v2925_v35 = vrot.slane %v2853_v25, 1  ;;  %2806 = vst [vmem:[#allocation3 + $0x208] sm:$0xff] %v2798_v10  ;;  %v2926_v52 = vrot.slane %v2855_v56, 1 }
 0x3c6   : > { %v2931_v4 = vrot.slane %v2857_v42, 1  ;;  %v2932_v48 = vrot.slane %v2859_v53, 1  ;;  %v2985_v36 = vld [vmem:[#allocation2 + $0x48] sm:$0xfc]  ;;  %v2987_v50 = vld [vmem:[#allocation2 + $0x58] sm:$0x3]  ;;  %v2915_v55 = vsel %vm2261_vm3, %v2913_v40, %v2914_v24 }
 0x3c7   : > { %v2921_v34 = vsel %vm2261_vm3, %v2919_v47, %v2920_v27  ;;  %v2937_v59 = vrot.slane %v2861_v19, 1  ;;  %v2938_v37 = vrot.slane %v2863_v30, 1  ;;  %v2989_v18 = vld [vmem:[#allocation2 + $0x68] sm:$0xfc]  ;;  %v2991_v15 = vld [vmem:[#allocation2 + $0x78] sm:$0x3]  ;;  %v2927_v5 = vsel %vm2261_vm3, %v2925_v35, %v2926_v52 }
 0x3c8   : > { %v2933_v60 = vsel %vm2261_vm3, %v2931_v4, %v2932_v48  ;;  %v2943_v6 = vrot.slane %v2865_v29, 1  ;;  %v2944_v38 = vrot.slane %v2867_v57, 1  ;;  %v2993_v2 = vld [vmem:[#allocation2 + $0x88] sm:$0xfc]  ;;  %v2995_v20 = vld [vmem:[#allocation2 + $0x98] sm:$0x3]  ;;  %v2969_v14 = vpack.c.bf16 %v2915_v55, %v2909_v39 }
 0x3c9   : > { %v2939_v11 = vsel %vm2261_vm3, %v2937_v59, %v2938_v37  ;;  %v2971_v23 = vpack.c.bf16 %v2927_v5, %v2921_v34  ;;  %v2997_v0 = vld [vmem:[#allocation2 + $0xa8] sm:$0xfc]  ;;  %v2999_v45 = vld [vmem:[#allocation2 + $0xb8] sm:$0x3]  ;;  %v3051_v7 = vrot.slane %v2985_v36, 2  ;;  %v3052_v21 = vrot.slane %v2987_v50, 2 }
 0x3ca   : > { %v3001_v8 = vld [vmem:[#allocation2 + $0xc8] sm:$0xfc]  ;;  %v2945_v46 = vsel %vm2261_vm3, %v2943_v6, %v2944_v38  ;;  %v2973_v22 = vpack.c.bf16 %v2939_v11, %v2933_v60  ;;  %v3003_v54 = vld [vmem:[#allocation2 + $0xd8] sm:$0x3]  ;;  %2977 = vst [vmem:[#allocation3 + $0x78] sm:$0xff] %v2969_v14  ;;  %v3057_v9 = vrot.slane %v2989_v18, 2 }
 0x3cb   : > { %v3005_v13 = vld [vmem:[#allocation2 + $0xe8] sm:$0xfc]  ;;  %v3007_v51 = vld [vmem:[#allocation2 + $0xf8] sm:$0x3]  ;;  %v2975_v58 = vpack.c.bf16 %v2951_v31, %v2945_v46  ;;  %2979 = vst [vmem:[#allocation3 + $0x108] sm:$0xff] %v2971_v23  ;;  %v3058_v26 = vrot.slane %v2991_v15, 2  ;;  %v3053_v43 = vsel %vm2406_vm4, %v3051_v7, %v3052_v21 }
 0x3cc   : > { %v3009_v32 = vld [vmem:[#allocation2 + $0x108] sm:$0xfc]  ;;  %2981 = vst [vmem:[#allocation3 + $0x198] sm:$0xff] %v2973_v22  ;;  %v3011_v44 = vld [vmem:[#allocation2 + $0x118] sm:$0x3]  ;;  %v3063_v3 = vrot.slane %v2993_v2, 2 }
 0x3cd   : > { %v3064_v25 = vrot.slane %v2995_v20, 2  ;;  %v3069_v56 = vrot.slane %v2997_v0, 2  ;;  %2983 = vst [vmem:[#allocation3 + $0x228] sm:$0xff] %v2975_v58  ;;  %v3070_v42 = vrot.slane %v2999_v45, 2  ;;  %v3075_v49 = vrot.slane %v3001_v8, 2  ;;  %v12583_v37 = vld [vmem:[#allocation5 + $0x80] sm:$0xff] }
 0x3ce   : > { %v3076_v1 = vrot.slane %v3003_v54, 2  ;;  %v3059_v12 = vsel %vm2406_vm4, %v3057_v9, %v3058_v26  ;;  %v3081_v53 = vrot.slane %v3005_v13, 2  ;;  %v3082_v19 = vrot.slane %v3007_v51, 2  ;;  %v1505_v50 = vld [vmem:[%s13791_s19] sm:$0x3]  ;;  %v12584_v6 = vld [vmem:[#allocation5 + $0x90] sm:$0xff] }
 0x3cf   : > { %v3065_v33 = vsel %vm2406_vm4, %v3063_v3, %v3064_v25  ;;  %v3071_v30 = vsel %vm2406_vm4, %v3069_v56, %v3070_v42  ;;  %v3087_v10 = vrot.slane %v3009_v32, 2  ;;  %v3088_v29 = vrot.slane %v3011_v44, 2  ;;  %v1506_v55 = vld [vmem:[%s13800_s23] sm:$0x3]  ;;  %v12585_v2 = vld [vmem:[#allocation5 + $0xa0] sm:$0xff]  ;;  %v12586_v11 = vld [vmem:[#allocation5 + $0xb0] sm:$0xff] }
 0x3d0   : > { %v3077_v31 = vsel %vm2406_vm4, %v3075_v49, %v3076_v1  ;;  %v3083_v28 = vsel %vm2406_vm4, %v3081_v53, %v3082_v19  ;;  %v3113_v41 = vpack.c.bf16 %v3059_v12, %v3053_v43  ;;  %v3115_v40 = vpack.c.bf16 %v3071_v30, %v3065_v33  ;;  %v12587_v23 = vld [vmem:[#allocation5 + $0xc0] sm:$0xff]  ;;  %v12588_v8 = vld [vmem:[#allocation5 + $0xd0] sm:$0xff]  ;;  %v12592_v32 = vld [vmem:[#allocation5 + $0x98] sm:$0xff] }
 0x3d1   : > { %v3089_v57 = vsel %vm2406_vm4, %v3087_v10, %v3088_v29  ;;  %v3117_v24 = vpack.c.bf16 %v3083_v28, %v3077_v31  ;;  %v1922_v59 = vrot.slane %v1505_v50, %v14474_v62  ;;  %v14844_v15 = vrot.slane %v1506_v55, %v14474_v62  ;;  %v12589_v22 = vld [vmem:[#allocation5 + $0xe0] sm:$0xff]  ;;  %v12590_v13 = vld [vmem:[#allocation5 + $0xf0] sm:$0xff]  ;;  %v12593_v21 = vld [vmem:[#allocation5 + $0xa8] sm:$0xff] }
 0x3d2   : > { %v3119_v47 = vpack.c.bf16 %v3095_v61, %v3089_v57  ;;  %3121 = vst [vmem:[#allocation3 + $0x88] sm:$0xff] %v3113_v41  ;;  %3123 = vst [vmem:[#allocation3 + $0x118] sm:$0xff] %v3115_v40  ;;  %v14847_v5 = vrot.slane %v1505_v50, %v14477_v63  ;;  %v14850_v60 = vrot.slane %v1506_v55, %v14477_v63  ;;  %v12591_v61 = vld [vmem:[#allocation5 + $0x88] sm:$0xff]  ;;  %v12594_v44 = vld [vmem:[#allocation5 + $0xb8] sm:$0xff] }
 0x3d3   : > { %3125 = vst [vmem:[#allocation3 + $0x1a8] sm:$0xff] %v3117_v24  ;;  %v12595_v25 = vld [vmem:[#allocation5 + $0xc8] sm:$0xff]  ;;  %v12596_v43 = vld [vmem:[#allocation5 + $0xd8] sm:$0xff] }
 0x3d4   : > { %3127 = vst [vmem:[#allocation3 + $0x238] sm:$0xff] %v3119_v47  ;;  %v12597_v49 = vld [vmem:[#allocation5 + $0xe8] sm:$0xff] }
 0x40f   : > { %v1789_v27 = vpop.f32.mrb[6].mxu0 }
 0x410   : > { %v1791_v35 = vpop.f32.mrb[7].mxu0  ;;  %v1797_v36 = vrot.slane %v1789_v27, %v14474_v62 }
 0x411   : > { %v14840_v34 = vrot.slane %v1791_v35, %v14474_v62 }
 0x412   : > { %v1802_v18 = vsub.f32 %v12583_v37, %v1797_v36  ;;  %v1804_v38 = vsub.f32 %v12584_v6, %v1797_v36  ;;  %v1806_v20 = vsub.f32 %v12585_v2, %v1797_v36  ;;  %v1808_v14 = vsub.f32 %v12586_v11, %v1797_v36 }
 0x413   : > { %v1810_v0 = vsub.f32 %v12587_v23, %v1797_v36  ;;  %v1812_v46 = vsub.f32 %v12588_v8, %v1797_v36  ;;  %v1814_v54 = vsub.f32 %v12589_v22, %v1797_v36  ;;  %v1816_v51 = vsub.f32 %v12590_v13, %v1797_v36  ;;  %v12598_v36 = vld [vmem:[#allocation5 + $0xf8] sm:$0xff] }
 0x414   : > { %v1803_v58 = vsub.f32 %v12591_v61, %v14840_v34  ;;  %v1805_v7 = vsub.f32 %v12592_v32, %v14840_v34  ;;  %v1807_v9 = vsub.f32 %v12593_v21, %v14840_v34  ;;  %v1809_v26 = vsub.f32 %v12594_v44, %v14840_v34 }
 0x415   : > { %v1811_v56 = vsub.f32 %v12595_v25, %v14840_v34  ;;  %v1813_v42 = vsub.f32 %v12596_v43, %v14840_v34  ;;  %v1815_v1 = vsub.f32 %v12597_v49, %v14840_v34  ;;  %v1817_v50 = vsub.f32 %v12598_v36, %v14840_v34 }
 0x419   : > { %v1887_v39 = vpop.f32.mrb[6].mxu1 }
 0x41a   : > { %v1888_v52 = vadd.f32 1e-05, %v1887_v39  ;;  %v1889_v4 = vpop.f32.mrb[7].mxu1 }
 0x41b   : > { %v1890_v48 = vadd.f32 1e-05, %v1889_v4 }
 0x41c   : > { %12515 = vrsqrt.f32 %v1888_v52 }
 0x41d   : > { %12517 = vrsqrt.f32 %v1890_v48 }
 0x426   : > { %v12516_v45 = vpop.eup %12515 }
 0x427   : > { %v12518_v63 = vpop.eup %12517  ;;  %v1897_v3 = vrot.slane %v12516_v45, %v14474_v62 }
 0x428   : > { %v1901_v12 = vrot.slane %v12518_v63, %v14474_v62 }
 0x429   : > { %v1902_v33 = vmul.f32 %v1897_v3, %v1802_v18  ;;  %v1904_v53 = vmul.f32 %v1897_v3, %v1804_v38  ;;  %v1906_v19 = vmul.f32 %v1897_v3, %v1806_v20  ;;  %v1908_v30 = vmul.f32 %v1897_v3, %v1808_v14 }
 0x42a   : > { %v1910_v31 = vmul.f32 %v1897_v3, %v1810_v0  ;;  %v1912_v10 = vmul.f32 %v1897_v3, %v1812_v46  ;;  %v1914_v29 = vmul.f32 %v1897_v3, %v1814_v54  ;;  %v1916_v28 = vmul.f32 %v1897_v3, %v1816_v51 }
 0x42b   : > { %v1929_v41 = vmul.f32 %v1922_v59, %v1902_v33  ;;  %v1931_v40 = vmul.f32 %v1922_v59, %v1904_v53  ;;  %v1933_v57 = vmul.f32 %v1922_v59, %v1906_v19  ;;  %v1935_v24 = vmul.f32 %v1922_v59, %v1908_v30 }
 0x42c   : > { %v1937_v47 = vmul.f32 %v1922_v59, %v1910_v31  ;;  %v1939_v27 = vmul.f32 %v1922_v59, %v1912_v10  ;;  %v1941_v35 = vmul.f32 %v1922_v59, %v1914_v29  ;;  %v1943_v39 = vmul.f32 %v1922_v59, %v1916_v28 }
 0x42d   : > { %v14862_v52 = vadd.f32 %v14844_v15, %v1929_v41  ;;  %v14865_v62 = vadd.f32 %v14844_v15, %v1931_v40  ;;  %v14868_v4 = vadd.f32 %v14844_v15, %v1933_v57  ;;  %v14871_v48 = vadd.f32 %v14844_v15, %v1935_v24 }
 0x42e   : > { %v14875_v55 = vadd.f32 %v14844_v15, %v1937_v47  ;;  %v14878_v59 = vadd.f32 %v14844_v15, %v1939_v27  ;;  %v14881_v37 = vadd.f32 %v14844_v15, %v1941_v35  ;;  %v1903_v2 = vmul.f32 %v1901_v12, %v1803_v58 }
 0x42f   : > { %v10153_v18 = vmul.f32 -1.442695, %v14862_v52  ;;  %v10155_v6 = vmul.f32 -1.442695, %v14865_v62  ;;  %v10157_v38 = vmul.f32 -1.442695, %v14868_v4  ;;  %v14887_v20 = vadd.f32 %v14844_v15, %v1943_v39 }
 0x430   : > { %v10159_v34 = vmul.f32 -1.442695, %v14871_v48  ;;  %v10161_v11 = vmul.f32 -1.442695, %v14875_v55  ;;  %v1905_v14 = vmul.f32 %v1901_v12, %v1805_v7  ;;  %v10163_v23 = vmul.f32 -1.442695, %v14878_v59 }
 0x431   : > { %12519 = vpow2.f32 %v10153_v18  ;;  %v10165_v0 = vmul.f32 -1.442695, %v14881_v37  ;;  %v1907_v45 = vmul.f32 %v1901_v12, %v1807_v9  ;;  %v1909_v8 = vmul.f32 %v1901_v12, %v1809_v26 }
 0x432   : > { %12521 = vpow2.f32 %v10155_v6  ;;  %v1911_v46 = vmul.f32 %v1901_v12, %v1811_v56  ;;  %v1913_v22 = vmul.f32 %v1901_v12, %v1813_v42  ;;  %v1915_v54 = vmul.f32 %v1901_v12, %v1815_v1 }
 0x433   : > { %12523 = vpow2.f32 %v10157_v38  ;;  %v14893_v13 = vmul.f32 %v1901_v12, %v1817_v50  ;;  %v1930_v15 = vmul.f32 %v14847_v5, %v1903_v2  ;;  %v10167_v51 = vmul.f32 -1.442695, %v14887_v20 }
 0x434   : > { %12525 = vpow2.f32 %v10159_v34  ;;  %v1932_v61 = vmul.f32 %v14847_v5, %v1905_v14  ;;  %v1934_v58 = vmul.f32 %v14847_v5, %v1907_v45  ;;  %v1936_v26 = vmul.f32 %v14847_v5, %v1909_v8 }
 0x435   : > { %12527 = vpow2.f32 %v10161_v11  ;;  %v14900_v63 = vadd.f32 %v14850_v60, %v1930_v15  ;;  %v1938_v25 = vmul.f32 %v14847_v5, %v1911_v46  ;;  %v1940_v42 = vmul.f32 %v14847_v5, %v1913_v22  ;;  %v14944_v15 = vld [vmem:[#allocation2 + $0x150] sm:$0x1] }
 0x436   : > { %12529 = vpow2.f32 %v10163_v23  ;;  %v14903_v32 = vadd.f32 %v14850_v60, %v1932_v61  ;;  %v14906_v7 = vadd.f32 %v14850_v60, %v1934_v58  ;;  %v1942_v12 = vmul.f32 %v14847_v5, %v1915_v54  ;;  %v14942_v54 = vld [vmem:[#allocation2 + $0x140] sm:$0xfe] }
 0x437   : > { %12531 = vpow2.f32 %v10165_v0  ;;  %v10154_v21 = vmul.f32 -1.442695, %v14900_v63  ;;  %v14916_v19 = vadd.f32 %v14850_v60, %v1936_v26  ;;  %v14919_v10 = vadd.f32 %v14850_v60, %v1938_v25  ;;  %v14958_v25 = vld [vmem:[#allocation2 + $0x260] sm:$0xfc] }
 0x438   : > { %12533 = vpow2.f32 %v10167_v51  ;;  %v10156_v9 = vmul.f32 -1.442695, %v14903_v32  ;;  %v10158_v44 = vmul.f32 -1.442695, %v14906_v7  ;;  %v14922_v41 = vadd.f32 %v14850_v60, %v1940_v42 }
 0x439   : > { %12535 = vpow2.f32 %v10154_v21  ;;  %v14925_v24 = vadd.f32 %v14850_v60, %v1942_v12  ;;  %v10160_v35 = vmul.f32 -1.442695, %v14916_v19  ;;  %v10162_v36 = vmul.f32 -1.442695, %v14919_v10  ;;  %v14949_v21 = vld [vmem:[#allocation2 + $0x150] sm:$0x3] }
 0x43a   : > { %12537 = vpow2.f32 %v10156_v9  ;;  %v10164_v50 = vmul.f32 -1.442695, %v14922_v41  ;;  %v1944_v45 = vmul.f32 %v14847_v5, %v14893_v13  ;;  %v14954_v13 = vld [vmem:[#allocation2 + $0x270] sm:$0x1] }
 0x43b   : > { %v12520_v3 = vpop.eup %12519  ;;  %12539 = vpow2.f32 %v10158_v44  ;;  %v10166_v6 = vmul.f32 -1.442695, %v14925_v24 }
 0x43c   : > { %v12522_v56 = vpop.eup %12521  ;;  %v2020_v43 = vadd.f32 1.0, %v12520_v3 }
 0x43d   : > { %v12524_v49 = vpop.eup %12523  ;;  %v2022_v1 = vadd.f32 1.0, %v12522_v56  ;;  %v14960_v56 = vld [vmem:[#allocation2 + $0x270] sm:$0x3] }
 0x43e   : > { %v12526_v33 = vpop.eup %12525  ;;  %v2024_v53 = vadd.f32 1.0, %v12524_v49  ;;  %12541 = vrcp.f32 %v2020_v43 }
 0x43f   : > { %v12528_v30 = vpop.eup %12527  ;;  %v2026_v31 = vadd.f32 1.0, %v12526_v33  ;;  %12543 = vrcp.f32 %v2022_v1 }
 0x440   : > { %v12530_v29 = vpop.eup %12529  ;;  %v2028_v28 = vadd.f32 1.0, %v12528_v30  ;;  %12545 = vrcp.f32 %v2024_v53  ;;  %v3370_v30 = vrot.slane %v14949_v21, 2 }
 0x441   : > { %v12532_v40 = vpop.eup %12531  ;;  %v2030_v57 = vadd.f32 1.0, %v12530_v29  ;;  %12547 = vrcp.f32 %v2026_v31 }
 0x442   : > { %v12534_v47 = vpop.eup %12533  ;;  %v2032_v27 = vadd.f32 1.0, %v12532_v40  ;;  %12549 = vrcp.f32 %v2028_v28  ;;  %v4052_v28 = vrot.slane %v14958_v25, 2  ;;  %v4053_v40 = vrot.slane %v14960_v56, 2 }
 0x443   : > { %v2034_v39 = vadd.f32 1.0, %v12534_v47  ;;  %12551 = vrcp.f32 %v2030_v57  ;;  %v14930_v18 = vpop.eup %12535 }
 0x444   : > { %12553 = vrcp.f32 %v2032_v27  ;;  %v14933_v38 = vpop.eup %12537 }
 0x445   : > { %12555 = vrcp.f32 %v2034_v39  ;;  %v14935_v2 = vpop.eup %12539  ;;  %v14979_v39 = vadd.f32 1.0, %v14933_v38 }
 0x446   : > { %12557 = vpow2.f32 %v10160_v35  ;;  %v14976_v35 = vadd.f32 1.0, %v14930_v18 }
 0x447   : > { %12559 = vpow2.f32 %v10162_v36 }
 0x448   : > { %v12542_v34 = vpop.eup %12541  ;;  %12561 = vpow2.f32 %v10164_v50  ;;  %v14982_v50 = vadd.f32 1.0, %v14935_v2 }
 0x449   : > { %v12544_v11 = vpop.eup %12543  ;;  %v2068_v14 = vmul.f32 %v12542_v34, %v14862_v52  ;;  %12563 = vpow2.f32 %v10166_v6  ;;  %v14947_v52 = vld [vmem:[#allocation2 + $0x140] sm:$0xfc] }
 0x44a   : > { %v12546_v23 = vpop.eup %12545  ;;  %v2070_v0 = vmul.f32 %v12544_v11, %v14865_v62  ;;  %v3369_v1 = vrot.slane %v14947_v52, 2 }
 0x44b   : > { %v12548_v8 = vpop.eup %12547  ;;  %v2072_v46 = vmul.f32 %v12546_v23, %v14868_v4  ;;  %v2100_v22 = vrot.slane %v2068_v14, 7  ;;  %v14952_v4 = vld [vmem:[#allocation2 + $0x260] sm:$0xfe] }
 0x44c   : > { %v12550_v51 = vpop.eup %12549  ;;  %v2074_v61 = vmul.f32 %v12548_v8, %v14871_v48  ;;  %v2102_v58 = vrot.slane %v2070_v0, 7  ;;  %v3225_v48 = vrot.slane %v14942_v54, 1 }
 0x44d   : > { %v12552_v62 = vpop.eup %12551  ;;  %v2076_v9 = vmul.f32 %v12550_v51, %v14875_v55  ;;  %v2104_v5 = vrot.slane %v2072_v46, 7  ;;  %2133 = vst [vmem:[#allocation2 + $0x160] sm:$0xfe] %v2100_v22  ;;  %2135 = vst [vmem:[#allocation2 + $0x170] sm:$0x1] %v2100_v22  ;;  %v14963_v55 = vadd.f32 %v14850_v60, %v1944_v45  ;;  %v3908_v60 = vrot.slane %v14952_v4, 1 }
 0x44e   : > { %v12554_v44 = vpop.eup %12553  ;;  %v2078_v26 = vmul.f32 %v12552_v62, %v14878_v59  ;;  %v2106_v3 = vrot.slane %v2074_v61, 7  ;;  %2137 = vst [vmem:[#allocation2 + $0x180] sm:$0xfe] %v2102_v58  ;;  %2139 = vst [vmem:[#allocation2 + $0x190] sm:$0x1] %v2102_v58  ;;  %v3226_v59 = vrot.slane %v14944_v15, 1 }
 0x44f   : > { %v12556_v43 = vpop.eup %12555  ;;  %v2080_v42 = vmul.f32 %v12554_v44, %v14881_v37  ;;  %v2108_v49 = vrot.slane %v2076_v9, 7  ;;  %2141 = vst [vmem:[#allocation2 + $0x1a0] sm:$0xfe] %v2104_v5  ;;  %2143 = vst [vmem:[#allocation2 + $0x1b0] sm:$0x1] %v2104_v5  ;;  %v3909_v37 = vrot.slane %v14954_v13, 1 }
 0x450   : > { %v12558_v12 = vpop.eup %12557  ;;  %v2082_v33 = vmul.f32 %v12556_v43, %v14887_v20  ;;  %v2110_v53 = vrot.slane %v2078_v26, 7  ;;  %2145 = vst [vmem:[#allocation2 + $0x1c0] sm:$0xfe] %v2106_v3  ;;  %2147 = vst [vmem:[#allocation2 + $0x1d0] sm:$0x1] %v2106_v3  ;;  %v3129_v20 = vld [vmem:[#allocation2 + $0x140] sm:$0xff]  ;;  %v3227_v51 = vsel %vm2261_vm3, %v3225_v48, %v3226_v59 }
 0x451   : > { %v12560_v31 = vpop.eup %12559  ;;  %v2112_v29 = vrot.slane %v2080_v42, 7  ;;  %2149 = vst [vmem:[#allocation2 + $0x1e0] sm:$0xfe] %v2108_v49  ;;  %2151 = vst [vmem:[#allocation2 + $0x1f0] sm:$0x1] %v2108_v49  ;;  %v14984_v6 = vadd.f32 1.0, %v12558_v12 }
 0x452   : > { %v12562_v57 = vpop.eup %12561  ;;  %v2114_v47 = vrot.slane %v2082_v33, 7  ;;  %2153 = vst [vmem:[#allocation2 + $0x200] sm:$0xfe] %v2110_v53  ;;  %2155 = vst [vmem:[#allocation2 + $0x210] sm:$0x1] %v2110_v53  ;;  %v14986_v34 = vadd.f32 1.0, %v12560_v31 }
 0x453   : > { %v10168_v27 = vmul.f32 -1.442695, %v14963_v55  ;;  %v12564_v36 = vpop.eup %12563  ;;  %2157 = vst [vmem:[#allocation2 + $0x220] sm:$0xfe] %v2112_v29  ;;  %2159 = vst [vmem:[#allocation2 + $0x230] sm:$0x1] %v2112_v29 }
 0x454   : > { %v14988_v11 = vadd.f32 1.0, %v12562_v57  ;;  %2161 = vst [vmem:[#allocation2 + $0x240] sm:$0xfe] %v2114_v47  ;;  %2163 = vst [vmem:[#allocation2 + $0x250] sm:$0x1] %v2114_v47  ;;  %v3131_v14 = vld [vmem:[#allocation2 + $0x160] sm:$0xff] }
 0x455   : > { %v3165_v18 = vld [vmem:[#allocation2 + $0x160] sm:$0xfe]  ;;  %v3167_v23 = vld [vmem:[#allocation2 + $0x170] sm:$0x1]  ;;  %v14990_v0 = vadd.f32 1.0, %v12564_v36  ;;  %v3145_v45 = vpack.c.bf16 %v3131_v14, %v3129_v20  ;;  %12565 = vpow2.f32 %v10168_v27 }
 0x456   : > { %v3133_v38 = vld [vmem:[#allocation2 + $0x180] sm:$0xff]  ;;  %v3171_v46 = vld [vmem:[#allocation2 + $0x190] sm:$0x1]  ;;  %v3231_v22 = vrot.slane %v3165_v18, 1  ;;  %v3232_v61 = vrot.slane %v3167_v23, 1  ;;  %12567 = vrcp.f32 %v14976_v35 }
 0x457   : > { %v3169_v8 = vld [vmem:[#allocation2 + $0x180] sm:$0xfe]  ;;  %v3175_v15 = vld [vmem:[#allocation2 + $0x1b0] sm:$0x1]  ;;  %v3465_v58 = vpack.c.bf16 %v3133_v38, %v3131_v14  ;;  %3153 = vst [vmem:[#allocation3 + $0x240] sm:$0xff] %v3145_v45  ;;  %v3238_v12 = vrot.slane %v3171_v46, 1  ;;  %12569 = vrcp.f32 %v14979_v39 }
 0x458   : > { %v3135_v2 = vld [vmem:[#allocation2 + $0x1a0] sm:$0xff]  ;;  %v3179_v44 = vld [vmem:[#allocation2 + $0x1d0] sm:$0x1]  ;;  %v3237_v26 = vrot.slane %v3169_v8, 1  ;;  %v3233_v49 = vsel %vm2261_vm3, %v3231_v22, %v3232_v61  ;;  %v3244_v18 = vrot.slane %v3175_v15, 1  ;;  %12571 = vrcp.f32 %v14982_v50 }
 0x459   : > { %v3173_v54 = vld [vmem:[#allocation2 + $0x1a0] sm:$0xfe]  ;;  %v3147_v9 = vpack.c.bf16 %v3135_v2, %v3133_v38  ;;  %v3183_v42 = vld [vmem:[#allocation2 + $0x1f0] sm:$0x1]  ;;  %3473 = vst [vmem:[#allocation3 + $0x270] sm:$0xff] %v3465_v58  ;;  %v3289_v57 = vpack.c.bf16 %v3233_v49, %v3227_v51  ;;  %v3250_v8 = vrot.slane %v3179_v44, 1  ;;  %12573 = vrcp.f32 %v14984_v6 }
 0x45a   : > { %v3137_v62 = vld [vmem:[#allocation2 + $0x1c0] sm:$0xff]  ;;  %v3187_v59 = vld [vmem:[#allocation2 + $0x210] sm:$0x1]  ;;  %v3243_v29 = vrot.slane %v3173_v54, 1  ;;  %v3239_v14 = vsel %vm2261_vm3, %v3237_v26, %v3238_v12  ;;  %v3256_v51 = vrot.slane %v3183_v42, 1  ;;  %12575 = vrcp.f32 %v14986_v34 }
 0x45b   : > { %v3177_v5 = vld [vmem:[#allocation2 + $0x1c0] sm:$0xfe]  ;;  %v3467_v33 = vpack.c.bf16 %v3137_v62, %v3135_v2  ;;  %3155 = vst [vmem:[#allocation3 + $0x2d0] sm:$0xff] %v3147_v9  ;;  %3794 = vst [vmem:[#allocation3 + $0x2a0] sm:$0xff] %v3147_v9  ;;  %v3191_v36 = vld [vmem:[#allocation2 + $0x230] sm:$0x1]  ;;  %12577 = vrcp.f32 %v14988_v11  ;;  %v15044_v11 = vsel %vm2406_vm4, %v4052_v28, %v4053_v40 }
 0x45c   : > { %v3139_v3 = vld [vmem:[#allocation2 + $0x1e0] sm:$0xff]  ;;  %v3249_v45 = vrot.slane %v3177_v5, 1  ;;  %3297 = vst [vmem:[#allocation3 + $0x250] sm:$0xff] %v3289_v57  ;;  %v3245_v54 = vsel %vm2261_vm3, %v3243_v29, %v3244_v18  ;;  %v3262_v58 = vrot.slane %v3187_v59, 1  ;;  %v3268_v9 = vrot.slane %v3191_v36, 1 }
 0x45d   : > { %v3181_v43 = vld [vmem:[#allocation2 + $0x1e0] sm:$0xfe]  ;;  %v3149_v31 = vpack.c.bf16 %v3139_v3, %v3137_v62  ;;  %3475 = vst [vmem:[#allocation3 + $0x300] sm:$0xff] %v3467_v33  ;;  %v3291_v26 = vpack.c.bf16 %v3245_v54, %v3239_v14  ;;  %v3311_v5 = vld [vmem:[#allocation2 + $0x170] sm:$0x3]  ;;  %12579 = vrcp.f32 %v14990_v0 }
 0x45e   : > { %v3141_v53 = vld [vmem:[#allocation2 + $0x200] sm:$0xff]  ;;  %v3255_v46 = vrot.slane %v3181_v43, 1  ;;  %v3251_v15 = vsel %vm2261_vm3, %v3249_v45, %v3250_v8  ;;  %v3315_v49 = vld [vmem:[#allocation2 + $0x190] sm:$0x3]  ;;  %v3376_v45 = vrot.slane %v3311_v5, 2 }
 0x45f   : > { %v3185_v48 = vld [vmem:[#allocation2 + $0x200] sm:$0xfe]  ;;  %v3469_v23 = vpack.c.bf16 %v3141_v53, %v3139_v3  ;;  %3157 = vst [vmem:[#allocation3 + $0x360] sm:$0xff] %v3149_v31  ;;  %3796 = vst [vmem:[#allocation3 + $0x330] sm:$0xff] %v3149_v31  ;;  %v3319_v42 = vld [vmem:[#allocation2 + $0x1b0] sm:$0x3] }
 0x460   : > { %v3143_v47 = vld [vmem:[#allocation2 + $0x220] sm:$0xff]  ;;  %v3261_v61 = vrot.slane %v3185_v48, 1  ;;  %v3257_v3 = vsel %vm2261_vm3, %v3255_v46, %v3256_v51  ;;  %3299 = vst [vmem:[#allocation3 + $0x2e0] sm:$0xff] %v3291_v26  ;;  %v3323_v29 = vld [vmem:[#allocation2 + $0x1d0] sm:$0x3]  ;;  %v3382_v35 = vrot.slane %v3315_v49, 2 }
 0x461   : > { %v3189_v20 = vld [vmem:[#allocation2 + $0x220] sm:$0xfe]  ;;  %v3151_v38 = vpack.c.bf16 %v3143_v47, %v3141_v53  ;;  %3477 = vst [vmem:[#allocation3 + $0x390] sm:$0xff] %v3469_v23  ;;  %v3293_v48 = vpack.c.bf16 %v3257_v3, %v3251_v15  ;;  %v3327_v36 = vld [vmem:[#allocation2 + $0x1f0] sm:$0x3]  ;;  %v3394_v21 = vrot.slane %v3323_v29, 2 }
 0x462   : > { %v3463_v22 = vld [vmem:[#allocation2 + $0x240] sm:$0xff]  ;;  %v3267_v27 = vrot.slane %v3189_v20, 1  ;;  %v3263_v43 = vsel %vm2261_vm3, %v3261_v61, %v3262_v58  ;;  %v3331_v18 = vld [vmem:[#allocation2 + $0x210] sm:$0x3]  ;;  %v3400_v51 = vrot.slane %v3327_v36, 2  ;;  %v15009_v61 = vpop.eup %12565 }
 0x463   : > { %v3784_v2 = vld [vmem:[#allocation2 + $0x260] sm:$0xff]  ;;  %3159 = vst [vmem:[#allocation3 + $0x3f0] sm:$0xff] %v3151_v38  ;;  %3798 = vst [vmem:[#allocation3 + $0x3c0] sm:$0xff] %v3151_v38  ;;  %v3471_v33 = vpack.c.bf16 %v3463_v22, %v3143_v47  ;;  %v3371_v47 = vsel %vm2406_vm4, %v3369_v1, %v3370_v30  ;;  %v3335_v46 = vld [vmem:[#allocation2 + $0x230] sm:$0x3]  ;;  %v3406_v15 = vrot.slane %v3331_v18, 2 }
 0x464   : > { %v3309_v62 = vld [vmem:[#allocation2 + $0x160] sm:$0xfc]  ;;  %v3792_v53 = vpack.c.bf16 %v3784_v2, %v3463_v22  ;;  %v3269_v31 = vsel %vm2261_vm3, %v3267_v27, %v3268_v9  ;;  %3301 = vst [vmem:[#allocation3 + $0x370] sm:$0xff] %v3293_v48  ;;  %v3388_v2 = vrot.slane %v3319_v42, 2  ;;  %v3483_v9 = vld [vmem:[#allocation2 + $0x170] sm:$0x1] }
 0x465   : > { %v3313_v44 = vld [vmem:[#allocation2 + $0x180] sm:$0xfc]  ;;  %v3295_v20 = vpack.c.bf16 %v3269_v31, %v3263_v43  ;;  %3479 = vst [vmem:[#allocation3 + $0x420] sm:$0xff] %v3471_v33  ;;  %v3375_v38 = vrot.slane %v3309_v62, 2  ;;  %v3487_v49 = vld [vmem:[#allocation2 + $0x190] sm:$0x1] }
 0x466   : > { %v3317_v12 = vld [vmem:[#allocation2 + $0x1a0] sm:$0xfc]  ;;  %3800 = vst [vmem:[#allocation3 + $0x450] sm:$0xff] %v3792_v53  ;;  %v3381_v8 = vrot.slane %v3313_v44, 2  ;;  %v3412_v44 = vrot.slane %v3335_v46, 2 }
 0x467   : > { %v3321_v59 = vld [vmem:[#allocation2 + $0x1c0] sm:$0xfc]  ;;  %3303 = vst [vmem:[#allocation3 + $0x400] sm:$0xff] %v3295_v20  ;;  %v3387_v22 = vrot.slane %v3317_v12, 2  ;;  %v3377_v52 = vsel %vm2406_vm4, %v3375_v38, %v3376_v45  ;;  %v3491_v31 = vld [vmem:[#allocation2 + $0x1b0] sm:$0x1] }
 0x468   : > { %v3325_v57 = vld [vmem:[#allocation2 + $0x1e0] sm:$0xfc]  ;;  %v3393_v54 = vrot.slane %v3321_v59, 2  ;;  %v3383_v1 = vsel %vm2406_vm4, %v3381_v8, %v3382_v35  ;;  %v3433_v3 = vpack.c.bf16 %v3377_v52, %v3371_v47  ;;  %v3495_v29 = vld [vmem:[#allocation2 + $0x1d0] sm:$0x1]  ;;  %v3546_v45 = vrot.slane %v3483_v9, 1 }
 0x469   : > { %v3329_v14 = vld [vmem:[#allocation2 + $0x200] sm:$0xfc]  ;;  %v3399_v30 = vrot.slane %v3325_v57, 2  ;;  %v3389_v39 = vsel %vm2406_vm4, %v3387_v22, %v3388_v2  ;;  %v3499_v20 = vld [vmem:[#allocation2 + $0x1f0] sm:$0x1]  ;;  %v3552_v35 = vrot.slane %v3487_v49, 1 }
 0x46a   : > { %v3333_v23 = vld [vmem:[#allocation2 + $0x220] sm:$0xfc]  ;;  %v3395_v58 = vsel %vm2406_vm4, %v3393_v54, %v3394_v21  ;;  %v3405_v62 = vrot.slane %v3329_v14, 2  ;;  %v3435_v42 = vpack.c.bf16 %v3389_v39, %v3383_v1  ;;  %3441 = vst [vmem:[#allocation3 + $0x260] sm:$0xff] %v3433_v3  ;;  %v3503_v18 = vld [vmem:[#allocation2 + $0x210] sm:$0x1] }
 0x46b   : > { %v3481_v27 = vld [vmem:[#allocation2 + $0x160] sm:$0xfe]  ;;  %v3401_v26 = vsel %vm2406_vm4, %v3399_v30, %v3400_v51  ;;  %v3411_v5 = vrot.slane %v3333_v23, 2  ;;  %v15019_v23 = vpop.eup %12567  ;;  %v3507_v38 = vld [vmem:[#allocation2 + $0x230] sm:$0x1]  ;;  %v3558_v2 = vrot.slane %v3491_v31, 1 }
 0x46c   : > { %v3485_v43 = vld [vmem:[#allocation2 + $0x180] sm:$0xfe]  ;;  %v3407_v12 = vsel %vm2406_vm4, %v3405_v62, %v3406_v15  ;;  %v3437_v33 = vpack.c.bf16 %v3401_v26, %v3395_v58  ;;  %3443 = vst [vmem:[#allocation3 + $0x2f0] sm:$0xff] %v3435_v42  ;;  %v3545_v50 = vrot.slane %v3481_v27, 1  ;;  %v15021_v46 = vpop.eup %12569  ;;  %v3564_v21 = vrot.slane %v3495_v29, 1 }
 0x46d   : > { %v3489_v53 = vld [vmem:[#allocation2 + $0x1a0] sm:$0xfe]  ;;  %v3413_v59 = vsel %vm2406_vm4, %v3411_v5, %v3412_v44  ;;  %v3551_v8 = vrot.slane %v3485_v43, 1  ;;  %v3511_v52 = vld [vmem:[#allocation2 + $0x250] sm:$0x1]  ;;  %v3570_v51 = vrot.slane %v3499_v20, 1 }
 0x46e   : > { %v3493_v48 = vld [vmem:[#allocation2 + $0x1c0] sm:$0xfe]  ;;  %v3439_v36 = vpack.c.bf16 %v3413_v59, %v3407_v12  ;;  %3445 = vst [vmem:[#allocation3 + $0x380] sm:$0xff] %v3437_v33  ;;  %v3557_v6 = vrot.slane %v3489_v53, 1  ;;  %v3547_v1 = vsel %vm2261_vm3, %v3545_v50, %v3546_v45  ;;  %v3576_v15 = vrot.slane %v3503_v18, 1  ;;  %v12572_v18 = vpop.eup %12571 }
 0x46f   : > { %v3497_v57 = vld [vmem:[#allocation2 + $0x1e0] sm:$0xfe]  ;;  %v3563_v54 = vrot.slane %v3493_v48, 1  ;;  %v3553_v34 = vsel %vm2261_vm3, %v3551_v8, %v3552_v35  ;;  %v3627_v9 = vld [vmem:[#allocation2 + $0x170] sm:$0x3]  ;;  %v3582_v3 = vrot.slane %v3507_v38, 1  ;;  %v15037_v8 = vsel %vm2261_vm3, %v3908_v60, %v3909_v37  ;;  %v12574_v35 = vpop.eup %12573 }
 0x470   : > { %v3501_v14 = vld [vmem:[#allocation2 + $0x200] sm:$0xfe]  ;;  %3447 = vst [vmem:[#allocation3 + $0x410] sm:$0xff] %v3439_v36  ;;  %v3569_v30 = vrot.slane %v3497_v57, 1  ;;  %v3559_v39 = vsel %vm2261_vm3, %v3557_v6, %v3558_v2  ;;  %v3631_v49 = vld [vmem:[#allocation2 + $0x190] sm:$0x3]  ;;  %v3609_v53 = vpack.c.bf16 %v3553_v34, %v3547_v1  ;;  %v15047_v4 = vpop.eup %12575 }
 0x471   : > { %v3505_v47 = vld [vmem:[#allocation2 + $0x220] sm:$0xfe]  ;;  %v3565_v58 = vsel %vm2261_vm3, %v3563_v54, %v3564_v21  ;;  %v3575_v62 = vrot.slane %v3501_v14, 1  ;;  %v3588_v33 = vrot.slane %v3511_v52, 1  ;;  %v3635_v48 = vld [vmem:[#allocation2 + $0x1b0] sm:$0x3] }
 0x472   : > { %v3509_v22 = vld [vmem:[#allocation2 + $0x240] sm:$0xfe]  ;;  %v3571_v5 = vsel %vm2261_vm3, %v3569_v30, %v3570_v51  ;;  %v3581_v44 = vrot.slane %v3505_v47, 1  ;;  %v3611_v31 = vpack.c.bf16 %v3565_v58, %v3559_v39  ;;  %v3639_v20 = vld [vmem:[#allocation2 + $0x1d0] sm:$0x3]  ;;  %3617 = vst [vmem:[#allocation3 + $0x280] sm:$0xff] %v3609_v53 }
 0x473   : > { %v3625_v27 = vld [vmem:[#allocation2 + $0x160] sm:$0xfc]  ;;  %v3587_v43 = vrot.slane %v3509_v22, 1  ;;  %v3577_v42 = vsel %vm2261_vm3, %v3575_v62, %v3576_v15  ;;  %v3643_v14 = vld [vmem:[#allocation2 + $0x1f0] sm:$0x3]  ;;  %v3690_v13 = vrot.slane %v3627_v9, 2 }
 0x474   : > { %v3629_v26 = vld [vmem:[#allocation2 + $0x180] sm:$0xfc]  ;;  %v3583_v29 = vsel %vm2261_vm3, %v3581_v44, %v3582_v3  ;;  %v3613_v57 = vpack.c.bf16 %v3577_v42, %v3571_v5  ;;  %3619 = vst [vmem:[#allocation3 + $0x310] sm:$0xff] %v3611_v31  ;;  %v3647_v50 = vld [vmem:[#allocation2 + $0x210] sm:$0x3]  ;;  %v3689_v2 = vrot.slane %v3625_v27, 2 }
 0x475   : > { %v3633_v12 = vld [vmem:[#allocation2 + $0x1a0] sm:$0xfc]  ;;  %v3589_v47 = vsel %vm2261_vm3, %v3587_v43, %v3588_v33  ;;  %v3651_v6 = vld [vmem:[#allocation2 + $0x230] sm:$0x3]  ;;  %v3695_v54 = vrot.slane %v3629_v26, 2  ;;  %v3696_v37 = vrot.slane %v3631_v49, 2 }
 0x476   : > { %v3637_v59 = vld [vmem:[#allocation2 + $0x1c0] sm:$0xfc]  ;;  %v3615_v22 = vpack.c.bf16 %v3589_v47, %v3583_v29  ;;  %3621 = vst [vmem:[#allocation3 + $0x3a0] sm:$0xff] %v3613_v57  ;;  %v3701_v21 = vrot.slane %v3633_v12, 2  ;;  %v3702_v56 = vrot.slane %v3635_v48, 2  ;;  %v3691_v28 = vsel %vm2406_vm4, %v3689_v2, %v3690_v13 }
 0x477   : > { %v3641_v36 = vld [vmem:[#allocation2 + $0x1e0] sm:$0xfc]  ;;  %v3707_v52 = vrot.slane %v3637_v59, 2  ;;  %v3655_v25 = vld [vmem:[#allocation2 + $0x250] sm:$0x3]  ;;  %v3708_v40 = vrot.slane %v3639_v20, 2  ;;  %v3697_v34 = vsel %vm2406_vm4, %v3695_v54, %v3696_v37  ;;  %v15058_v20 = vmul.f32 %v15019_v23, %v14900_v63 }
 0x478   : > { %v3645_v38 = vld [vmem:[#allocation2 + $0x200] sm:$0xfc]  ;;  %3623 = vst [vmem:[#allocation3 + $0x430] sm:$0xff] %v3615_v22  ;;  %v3713_v0 = vrot.slane %v3641_v36, 2  ;;  %v3714_v1 = vrot.slane %v3643_v14, 2  ;;  %v3703_v30 = vsel %vm2406_vm4, %v3701_v21, %v3702_v56  ;;  %v3720_v39 = vrot.slane %v3647_v50, 2 }
 0x479   : > { %v3649_v45 = vld [vmem:[#allocation2 + $0x220] sm:$0xfc]  ;;  %v3719_v51 = vrot.slane %v3645_v38, 2  ;;  %v3804_v62 = vld [vmem:[#allocation2 + $0x190] sm:$0x1]  ;;  %v3709_v15 = vsel %vm2406_vm4, %v3707_v52, %v3708_v40  ;;  %v3726_v26 = vrot.slane %v3651_v6, 2  ;;  %v3753_v12 = vpack.c.bf16 %v3697_v34, %v3691_v28  ;;  %v12578_v6 = vpop.eup %12577 }
 0x47a   : > { %v3653_v60 = vld [vmem:[#allocation2 + $0x240] sm:$0xfc]  ;;  %v3715_v27 = vsel %vm2406_vm4, %v3713_v0, %v3714_v1  ;;  %v3725_v9 = vrot.slane %v3649_v45, 2  ;;  %v3808_v44 = vld [vmem:[#allocation2 + $0x1b0] sm:$0x1]  ;;  %v3732_v49 = vrot.slane %v3655_v25, 2  ;;  %v3755_v31 = vpack.c.bf16 %v3709_v15, %v3703_v30 }
 0x47b   : > { %v3802_v58 = vld [vmem:[#allocation2 + $0x180] sm:$0xfe]  ;;  %v3721_v3 = vsel %vm2406_vm4, %v3719_v51, %v3720_v39  ;;  %v3731_v43 = vrot.slane %v3653_v60, 2  ;;  %v3812_v33 = vld [vmem:[#allocation2 + $0x1d0] sm:$0x1]  ;;  %3761 = vst [vmem:[#allocation3 + $0x290] sm:$0xff] %v3753_v12  ;;  %v15063_v50 = vmul.f32 %v15021_v46, %v14903_v32  ;;  %v15066_v45 = vmul.f32 %v12572_v18, %v14906_v7  ;;  %v12580_v60 = vpop.eup %12579 }
 0x47c   : > { %v3806_v5 = vld [vmem:[#allocation2 + $0x1a0] sm:$0xfe]  ;;  %v3727_v53 = vsel %vm2406_vm4, %v3725_v9, %v3726_v26  ;;  %v3757_v48 = vpack.c.bf16 %v3721_v3, %v3715_v27  ;;  %v3816_v29 = vld [vmem:[#allocation2 + $0x1f0] sm:$0x1]  ;;  %v15069_v22 = vmul.f32 %v12574_v35, %v14916_v19  ;;  %3763 = vst [vmem:[#allocation3 + $0x320] sm:$0xff] %v3755_v31  ;;  %v3866_v23 = vrot.slane %v3802_v58, 1 }
 0x47d   : > { %v3810_v42 = vld [vmem:[#allocation2 + $0x1c0] sm:$0xfe]  ;;  %v3733_v36 = vsel %vm2406_vm4, %v3731_v43, %v3732_v49  ;;  %v3820_v14 = vld [vmem:[#allocation2 + $0x210] sm:$0x1]  ;;  %v3867_v13 = vrot.slane %v3804_v62, 1  ;;  %v3872_v54 = vrot.slane %v3806_v5, 1  ;;  %v15079_v49 = vmul.f32 %v15047_v4, %v14919_v10 }
 0x47e   : > { %v3814_v59 = vld [vmem:[#allocation2 + $0x1e0] sm:$0xfe]  ;;  %v3824_v38 = vld [vmem:[#allocation2 + $0x230] sm:$0x1]  ;;  %v3759_v2 = vpack.c.bf16 %v3733_v36, %v3727_v53  ;;  %3765 = vst [vmem:[#allocation3 + $0x3b0] sm:$0xff] %v3757_v48  ;;  %v3873_v21 = vrot.slane %v3808_v44, 1  ;;  %v2079_v48 = vmul.f32 %v12578_v6, %v14922_v41 }
 0x47f   : > { %v3818_v57 = vld [vmem:[#allocation2 + $0x200] sm:$0xfe]  ;;  %v3828_v37 = vld [vmem:[#allocation2 + $0x250] sm:$0x1]  ;;  %v3878_v56 = vrot.slane %v3810_v42, 1  ;;  %v3879_v32 = vrot.slane %v3812_v33, 1  ;;  %v3868_v7 = vsel %vm2261_vm3, %v3866_v23, %v3867_v13 }
 0x480   : > { %v3822_v47 = vld [vmem:[#allocation2 + $0x220] sm:$0xfe]  ;;  %v3884_v46 = vrot.slane %v3814_v59, 1  ;;  %3767 = vst [vmem:[#allocation3 + $0x440] sm:$0xff] %v3759_v2  ;;  %v3885_v18 = vrot.slane %v3816_v29, 1  ;;  %v3890_v19 = vrot.slane %v3818_v57, 1  ;;  %v3874_v28 = vsel %vm2261_vm3, %v3872_v54, %v3873_v21 }
 0x481   : > { %v3826_v63 = vld [vmem:[#allocation2 + $0x240] sm:$0xfe]  ;;  %v3891_v35 = vrot.slane %v3820_v14, 1  ;;  %v3948_v25 = vld [vmem:[#allocation2 + $0x190] sm:$0x3]  ;;  %v3880_v40 = vsel %vm2261_vm3, %v3878_v56, %v3879_v32  ;;  %v3896_v0 = vrot.slane %v3822_v47, 1  ;;  %v3930_v26 = vpack.c.bf16 %v3874_v28, %v3868_v7 }
 0x482   : > { %v3946_v52 = vld [vmem:[#allocation2 + $0x180] sm:$0xfc]  ;;  %v3897_v1 = vrot.slane %v3824_v38, 1  ;;  %v3952_v30 = vld [vmem:[#allocation2 + $0x1b0] sm:$0x3]  ;;  %v3886_v51 = vsel %vm2261_vm3, %v3884_v46, %v3885_v18  ;;  %v3902_v58 = vrot.slane %v3826_v63, 1  ;;  %v2081_v59 = vmul.f32 %v12580_v60, %v14925_v24 }
 0x483   : > { %v3950_v34 = vld [vmem:[#allocation2 + $0x1a0] sm:$0xfc]  ;;  %v3892_v39 = vsel %vm2261_vm3, %v3890_v19, %v3891_v35  ;;  %v3903_v62 = vrot.slane %v3828_v37, 1  ;;  %v3956_v27 = vld [vmem:[#allocation2 + $0x1d0] sm:$0x3]  ;;  %v3932_v5 = vpack.c.bf16 %v3886_v51, %v3880_v40  ;;  %3938 = vst [vmem:[#allocation3 + $0x2b0] sm:$0xff] %v3930_v26 }
 0x484   : > { %v3954_v15 = vld [vmem:[#allocation2 + $0x1c0] sm:$0xfc]  ;;  %v3898_v9 = vsel %vm2261_vm3, %v3896_v0, %v3897_v1  ;;  %v3960_v3 = vld [vmem:[#allocation2 + $0x1f0] sm:$0x3]  ;;  %v4010_v36 = vrot.slane %v3946_v52, 2  ;;  %v4011_v14 = vrot.slane %v3948_v25, 2 }
 0x485   : > { %v3958_v44 = vld [vmem:[#allocation2 + $0x1e0] sm:$0xfc]  ;;  %v3904_v12 = vsel %vm2261_vm3, %v3902_v58, %v3903_v62  ;;  %v3934_v42 = vpack.c.bf16 %v3898_v9, %v3892_v39  ;;  %v3964_v33 = vld [vmem:[#allocation2 + $0x210] sm:$0x3]  ;;  %3940 = vst [vmem:[#allocation3 + $0x340] sm:$0xff] %v3932_v5  ;;  %v4016_v47 = vrot.slane %v3950_v34, 2 }
 0x486   : > { %v3962_v43 = vld [vmem:[#allocation2 + $0x200] sm:$0xfc]  ;;  %v3968_v31 = vld [vmem:[#allocation2 + $0x230] sm:$0x3]  ;;  %v3936_v29 = vpack.c.bf16 %v15037_v8, %v3904_v12  ;;  %v4017_v4 = vrot.slane %v3952_v30, 2  ;;  %v4022_v38 = vrot.slane %v3954_v15, 2  ;;  %v4012_v23 = vsel %vm2406_vm4, %v4010_v36, %v4011_v14 }
 0x487   : > { %v3966_v53 = vld [vmem:[#allocation2 + $0x220] sm:$0xfc]  ;;  %3942 = vst [vmem:[#allocation3 + $0x3d0] sm:$0xff] %v3934_v42  ;;  %v3972_v10 = vld [vmem:[#allocation2 + $0x250] sm:$0x3]  ;;  %v4023_v2 = vrot.slane %v3956_v27, 2 }
 0x488   : > { %v3970_v57 = vld [vmem:[#allocation2 + $0x240] sm:$0xfc]  ;;  %v4028_v63 = vrot.slane %v3958_v44, 2  ;;  %3944 = vst [vmem:[#allocation3 + $0x460] sm:$0xff] %v3936_v29  ;;  %v4029_v41 = vrot.slane %v3960_v3, 2  ;;  %v4034_v6 = vrot.slane %v3962_v43, 2  ;;  %v4018_v8 = vsel %vm2406_vm4, %v4016_v47, %v4017_v4 }
 0x489   : > { %v4035_v24 = vrot.slane %v3964_v33, 2  ;;  %v4024_v13 = vsel %vm2406_vm4, %v4022_v38, %v4023_v2  ;;  %v4040_v54 = vrot.slane %v3966_v53, 2  ;;  %v4041_v60 = vrot.slane %v3968_v31, 2  ;;  %v3162_v34 = vld [vmem:[#allocation2 + $0x148] sm:$0xfe] }
 0x48a   : > { %v4030_v37 = vsel %vm2406_vm4, %v4028_v63, %v4029_v41  ;;  %v4046_v56 = vrot.slane %v3970_v57, 2  ;;  %v4047_v32 = vrot.slane %v3972_v10, 2  ;;  %v4074_v7 = vpack.c.bf16 %v4018_v8, %v4012_v23  ;;  %v15103_v39 = vld [vmem:[#allocation2 + $0x268] sm:$0xfe]  ;;  %v15105_v58 = vld [vmem:[#allocation2 + $0x278] sm:$0x1] }
 0x48b   : > { %v4036_v21 = vsel %vm2406_vm4, %v4034_v6, %v4035_v24  ;;  %v4042_v46 = vsel %vm2406_vm4, %v4040_v54, %v4041_v60  ;;  %v4076_v18 = vpack.c.bf16 %v4030_v37, %v4024_v13  ;;  %v2035_v19 = vadd.f32 1.0, %v15009_v61  ;;  %v3130_v62 = vld [vmem:[#allocation2 + $0x148] sm:$0xff]  ;;  %v15111_v26 = vld [vmem:[#allocation2 + $0x278] sm:$0x3] }
 0x48c   : > { %v4048_v35 = vsel %vm2406_vm4, %v4046_v56, %v4047_v32  ;;  %v4078_v52 = vpack.c.bf16 %v4042_v46, %v4036_v21  ;;  %v2101_v25 = vrot.slane %v15058_v20, 7  ;;  %v2103_v28 = vrot.slane %v15063_v50, 7  ;;  %4082 = vst [vmem:[#allocation3 + $0x2c0] sm:$0xff] %v4074_v7  ;;  %v3164_v20 = vld [vmem:[#allocation2 + $0x158] sm:$0x1] }
 0x48d   : > { %v4080_v40 = vpack.c.bf16 %v15044_v11, %v4048_v35  ;;  %4084 = vst [vmem:[#allocation3 + $0x350] sm:$0xff] %v4076_v18  ;;  %12581 = vrcp.f32 %v2035_v19  ;;  %v2105_v0 = vrot.slane %v15066_v45, 7  ;;  %v2107_v1 = vrot.slane %v15069_v22, 7  ;;  %v15099_v45 = vld [vmem:[#allocation2 + $0x148] sm:$0xfc] }
 0x48e   : > { %4086 = vst [vmem:[#allocation3 + $0x3e0] sm:$0xff] %v4078_v52  ;;  %v2109_v61 = vrot.slane %v15079_v49, 7  ;;  %v2111_v30 = vrot.slane %v2079_v48, 7  ;;  %v2113_v51 = vrot.slane %v2081_v59, 7  ;;  %2134 = vst [vmem:[#allocation2 + $0x168] sm:$0xfe] %v2101_v25 }
 0x48f   : > { %2136 = vst [vmem:[#allocation2 + $0x178] sm:$0x1] %v2101_v25  ;;  %2138 = vst [vmem:[#allocation2 + $0x188] sm:$0xfe] %v2103_v28  ;;  %v3228_v11 = vrot.slane %v3162_v34, 1  ;;  %v3229_v50 = vrot.slane %v3164_v20, 1 }
 0x490   : > { %2140 = vst [vmem:[#allocation2 + $0x198] sm:$0x1] %v2103_v28  ;;  %4088 = vst [vmem:[#allocation3 + $0x470] sm:$0xff] %v4080_v40  ;;  %v15101_v22 = vld [vmem:[#allocation2 + $0x158] sm:$0x3]  ;;  %v3372_v27 = vrot.slane %v15099_v45, 2 }
 0x491   : > { %2142 = vst [vmem:[#allocation2 + $0x1a8] sm:$0xfe] %v2105_v0  ;;  %2144 = vst [vmem:[#allocation2 + $0x1b8] sm:$0x1] %v2105_v0  ;;  %v15107_v15 = vld [vmem:[#allocation2 + $0x268] sm:$0xfc]  ;;  %v3230_v43 = vsel %vm2261_vm3, %v3228_v11, %v3229_v50 }
 0x492   : > { %2146 = vst [vmem:[#allocation2 + $0x1c8] sm:$0xfe] %v2107_v1  ;;  %2148 = vst [vmem:[#allocation2 + $0x1d8] sm:$0x1] %v2107_v1  ;;  %v3373_v9 = vrot.slane %v15101_v22, 2  ;;  %v3911_v49 = vrot.slane %v15103_v39, 1 }
 0x493   : > { %2150 = vst [vmem:[#allocation2 + $0x1e8] sm:$0xfe] %v2109_v61  ;;  %2152 = vst [vmem:[#allocation2 + $0x1f8] sm:$0x1] %v2109_v61  ;;  %v3912_v12 = vrot.slane %v15105_v58, 1  ;;  %v4055_v29 = vrot.slane %v15107_v15, 2 }
 0x494   : > { %2154 = vst [vmem:[#allocation2 + $0x208] sm:$0xfe] %v2111_v30  ;;  %2156 = vst [vmem:[#allocation2 + $0x218] sm:$0x1] %v2111_v30  ;;  %v4056_v2 = vrot.slane %v15111_v26, 2 }
 0x495   : > { %2158 = vst [vmem:[#allocation2 + $0x228] sm:$0xfe] %v2113_v51  ;;  %2160 = vst [vmem:[#allocation2 + $0x238] sm:$0x1] %v2113_v51  ;;  %v3132_v5 = vld [vmem:[#allocation2 + $0x168] sm:$0xff] }
 0x496   : > { %v3134_v44 = vld [vmem:[#allocation2 + $0x188] sm:$0xff]  ;;  %v3146_v53 = vpack.c.bf16 %v3132_v5, %v3130_v62  ;;  %v3168_v31 = vld [vmem:[#allocation2 + $0x178] sm:$0x1] }
 0x497   : > { %v3166_v3 = vld [vmem:[#allocation2 + $0x168] sm:$0xfe]  ;;  %v3466_v59 = vpack.c.bf16 %v3134_v44, %v3132_v5  ;;  %v12582_v57 = vpop.eup %12581  ;;  %v3235_v4 = vrot.slane %v3168_v31, 1  ;;  %v3172_v24 = vld [vmem:[#allocation2 + $0x198] sm:$0x1] }
 0x498   : > { %v3136_v42 = vld [vmem:[#allocation2 + $0x1a8] sm:$0xff]  ;;  %v3234_v48 = vrot.slane %v3166_v3, 1  ;;  %v2083_v63 = vmul.f32 %v12582_v57, %v14963_v55  ;;  %3154 = vst [vmem:[#allocation3 + $0x248] sm:$0xff] %v3146_v53  ;;  %v3176_v54 = vld [vmem:[#allocation2 + $0x1b8] sm:$0x1]  ;;  %v3241_v25 = vrot.slane %v3172_v24, 1 }
 0x499   : > { %v3138_v33 = vld [vmem:[#allocation2 + $0x1c8] sm:$0xff]  ;;  %v3148_v10 = vpack.c.bf16 %v3136_v42, %v3134_v44  ;;  %3474 = vst [vmem:[#allocation3 + $0x278] sm:$0xff] %v3466_v59  ;;  %v3180_v37 = vld [vmem:[#allocation2 + $0x1d8] sm:$0x1]  ;;  %v3247_v40 = vrot.slane %v3176_v54, 1 }
 0x49a   : > { %v3140_v36 = vld [vmem:[#allocation2 + $0x1e8] sm:$0xff]  ;;  %v3468_v38 = vpack.c.bf16 %v3138_v33, %v3136_v42  ;;  %v3236_v21 = vsel %vm2261_vm3, %v3234_v48, %v3235_v4  ;;  %v2115_v56 = vrot.slane %v2083_v63, 7  ;;  %v3184_v32 = vld [vmem:[#allocation2 + $0x1f8] sm:$0x1]  ;;  %v3253_v1 = vrot.slane %v3180_v37, 1 }
 0x49b   : > { %v3142_v14 = vld [vmem:[#allocation2 + $0x208] sm:$0xff]  ;;  %v3150_v23 = vpack.c.bf16 %v3140_v36, %v3138_v33  ;;  %3156 = vst [vmem:[#allocation3 + $0x2d8] sm:$0xff] %v3148_v10  ;;  %3795 = vst [vmem:[#allocation3 + $0x2a8] sm:$0xff] %v3148_v10  ;;  %v3290_v7 = vpack.c.bf16 %v3236_v21, %v3230_v43  ;;  %v3188_v19 = vld [vmem:[#allocation2 + $0x218] sm:$0x1]  ;;  %v3259_v61 = vrot.slane %v3184_v32, 1 }
 0x49c   : > { %v15117_v47 = vld [vmem:[#allocation2 + $0x228] sm:$0xff]  ;;  %v3470_v13 = vpack.c.bf16 %v3142_v14, %v3140_v36  ;;  %3476 = vst [vmem:[#allocation3 + $0x308] sm:$0xff] %v3468_v38  ;;  %2162 = vst [vmem:[#allocation2 + $0x248] sm:$0xfe] %v2115_v56  ;;  %v3192_v52 = vld [vmem:[#allocation2 + $0x238] sm:$0x1] }
 0x49d   : > { %v3152_v41 = vpack.c.bf16 %v15117_v47, %v3142_v14  ;;  %v3170_v6 = vld [vmem:[#allocation2 + $0x188] sm:$0xfe]  ;;  %3158 = vst [vmem:[#allocation3 + $0x368] sm:$0xff] %v3150_v23  ;;  %3797 = vst [vmem:[#allocation3 + $0x338] sm:$0xff] %v3150_v23  ;;  %v3265_v11 = vrot.slane %v3188_v19, 1  ;;  %v3271_v3 = vrot.slane %v3192_v52, 1 }
 0x49e   : > { %v3174_v8 = vld [vmem:[#allocation2 + $0x1a8] sm:$0xfe]  ;;  %v3240_v46 = vrot.slane %v3170_v6, 1  ;;  %3478 = vst [vmem:[#allocation3 + $0x398] sm:$0xff] %v3470_v13  ;;  %2164 = vst [vmem:[#allocation2 + $0x258] sm:$0x1] %v2115_v56  ;;  %v3374_v6 = vsel %vm2406_vm4, %v3372_v27, %v3373_v9 }
 0x49f   : > { %v3178_v60 = vld [vmem:[#allocation2 + $0x1c8] sm:$0xfe]  ;;  %3160 = vst [vmem:[#allocation3 + $0x3f8] sm:$0xff] %v3152_v41  ;;  %3799 = vst [vmem:[#allocation3 + $0x3c8] sm:$0xff] %v3152_v41  ;;  %v3246_v28 = vrot.slane %v3174_v8, 1 }
 0x4a0   : > { %v3182_v55 = vld [vmem:[#allocation2 + $0x1e8] sm:$0xfe]  ;;  %v3252_v0 = vrot.slane %v3178_v60, 1  ;;  %3298 = vst [vmem:[#allocation3 + $0x258] sm:$0xff] %v3290_v7  ;;  %v3242_v51 = vsel %vm2261_vm3, %v3240_v46, %v3241_v25  ;;  %v3312_v42 = vld [vmem:[#allocation2 + $0x178] sm:$0x3] }
 0x4a1   : > { %v3186_v18 = vld [vmem:[#allocation2 + $0x208] sm:$0xfe]  ;;  %v3258_v34 = vrot.slane %v3182_v55, 1  ;;  %v3248_v20 = vsel %vm2261_vm3, %v3246_v28, %v3247_v40  ;;  %v3316_v48 = vld [vmem:[#allocation2 + $0x198] sm:$0x3]  ;;  %v3379_v13 = vrot.slane %v3312_v42, 2 }
 0x4a2   : > { %v3190_v35 = vld [vmem:[#allocation2 + $0x228] sm:$0xfe]  ;;  %v3264_v30 = vrot.slane %v3186_v18, 1  ;;  %v3254_v5 = vsel %vm2261_vm3, %v3252_v0, %v3253_v1  ;;  %v3292_v43 = vpack.c.bf16 %v3248_v20, %v3242_v51  ;;  %v3320_v57 = vld [vmem:[#allocation2 + $0x1b8] sm:$0x3]  ;;  %v3385_v60 = vrot.slane %v3316_v48, 2 }
 0x4a3   : > { %v3270_v50 = vrot.slane %v3190_v35, 1  ;;  %v3310_v62 = vld [vmem:[#allocation2 + $0x168] sm:$0xfc]  ;;  %v3260_v44 = vsel %vm2261_vm3, %v3258_v34, %v3259_v61  ;;  %v3324_v10 = vld [vmem:[#allocation2 + $0x1d8] sm:$0x3]  ;;  %v3391_v56 = vrot.slane %v3320_v57, 2 }
 0x4a4   : > { %v3314_v33 = vld [vmem:[#allocation2 + $0x188] sm:$0xfc]  ;;  %v3266_v53 = vsel %vm2261_vm3, %v3264_v30, %v3265_v11  ;;  %v3294_v31 = vpack.c.bf16 %v3260_v44, %v3254_v5  ;;  %3300 = vst [vmem:[#allocation3 + $0x2e8] sm:$0xff] %v3292_v43  ;;  %v3328_v63 = vld [vmem:[#allocation2 + $0x1f8] sm:$0x3]  ;;  %v3378_v8 = vrot.slane %v3310_v62, 2 }
 0x4a5   : > { %v3318_v59 = vld [vmem:[#allocation2 + $0x1a8] sm:$0xfc]  ;;  %v3272_v36 = vsel %vm2261_vm3, %v3270_v50, %v3271_v3  ;;  %v3332_v41 = vld [vmem:[#allocation2 + $0x218] sm:$0x3]  ;;  %v3384_v54 = vrot.slane %v3314_v33, 2  ;;  %v3397_v32 = vrot.slane %v3324_v10, 2 }
 0x4a6   : > { %v3322_v14 = vld [vmem:[#allocation2 + $0x1c8] sm:$0xfc]  ;;  %v3296_v38 = vpack.c.bf16 %v3272_v36, %v3266_v53  ;;  %3302 = vst [vmem:[#allocation3 + $0x378] sm:$0xff] %v3294_v31  ;;  %v3336_v37 = vld [vmem:[#allocation2 + $0x238] sm:$0x3]  ;;  %v3390_v21 = vrot.slane %v3318_v59, 2  ;;  %v3380_v46 = vsel %vm2406_vm4, %v3378_v8, %v3379_v13 }
 0x4a7   : > { %v3326_v4 = vld [vmem:[#allocation2 + $0x1e8] sm:$0xfc]  ;;  %v3396_v55 = vrot.slane %v3322_v14, 2  ;;  %v3386_v7 = vsel %vm2406_vm4, %v3384_v54, %v3385_v60  ;;  %v3403_v18 = vrot.slane %v3328_v63, 2  ;;  %v3409_v52 = vrot.slane %v3332_v41, 2 }
 0x4a8   : > { %v3330_v23 = vld [vmem:[#allocation2 + $0x208] sm:$0xfc]  ;;  %3304 = vst [vmem:[#allocation3 + $0x408] sm:$0xff] %v3296_v38  ;;  %v3402_v22 = vrot.slane %v3326_v4, 2  ;;  %v3392_v27 = vsel %vm2406_vm4, %v3390_v21, %v3391_v56  ;;  %v3484_v28 = vld [vmem:[#allocation2 + $0x178] sm:$0x1]  ;;  %v3434_v34 = vpack.c.bf16 %v3380_v46, %v3374_v6 }
 0x4a9   : > { %v3334_v24 = vld [vmem:[#allocation2 + $0x228] sm:$0xfc]  ;;  %v3398_v9 = vsel %vm2406_vm4, %v3396_v55, %v3397_v32  ;;  %v3408_v35 = vrot.slane %v3330_v23, 2  ;;  %v3415_v1 = vrot.slane %v3336_v37, 2  ;;  %v3488_v30 = vld [vmem:[#allocation2 + $0x198] sm:$0x1]  ;;  %v3436_v20 = vpack.c.bf16 %v3392_v27, %v3386_v7 }
 0x4aa   : > { %v3464_v45 = vld [vmem:[#allocation2 + $0x248] sm:$0xff]  ;;  %v3404_v40 = vsel %vm2406_vm4, %v3402_v22, %v3403_v18  ;;  %v3414_v0 = vrot.slane %v3334_v24, 2  ;;  %v3492_v5 = vld [vmem:[#allocation2 + $0x1b8] sm:$0x1]  ;;  %3442 = vst [vmem:[#allocation3 + $0x268] sm:$0xff] %v3434_v34  ;;  %v3555_v4 = vrot.slane %v3488_v30, 1 }
 0x4ab   : > { %v3785_v19 = vld [vmem:[#allocation2 + $0x268] sm:$0xff]  ;;  %v3410_v51 = vsel %vm2406_vm4, %v3408_v35, %v3409_v52  ;;  %v3438_v11 = vpack.c.bf16 %v3404_v40, %v3398_v9  ;;  %v3472_v50 = vpack.c.bf16 %v3464_v45, %v15117_v47  ;;  %v3496_v43 = vld [vmem:[#allocation2 + $0x1d8] sm:$0x1]  ;;  %3444 = vst [vmem:[#allocation3 + $0x2f8] sm:$0xff] %v3436_v20  ;;  %v3549_v47 = vrot.slane %v3484_v28, 1 }
 0x4ac   : > { %v3482_v25 = vld [vmem:[#allocation2 + $0x168] sm:$0xfe]  ;;  %v3416_v3 = vsel %vm2406_vm4, %v3414_v0, %v3415_v1  ;;  %v3500_v33 = vld [vmem:[#allocation2 + $0x1f8] sm:$0x1]  ;;  %v3793_v53 = vpack.c.bf16 %v3785_v19, %v3464_v45  ;;  %v3561_v23 = vrot.slane %v3492_v5, 1  ;;  %v3567_v6 = vrot.slane %v3496_v43, 1 }
 0x4ad   : > { %v3486_v61 = vld [vmem:[#allocation2 + $0x188] sm:$0xfe]  ;;  %v3440_v31 = vpack.c.bf16 %v3416_v3, %v3410_v51  ;;  %3446 = vst [vmem:[#allocation3 + $0x388] sm:$0xff] %v3438_v11  ;;  %3480 = vst [vmem:[#allocation3 + $0x428] sm:$0xff] %v3472_v50  ;;  %v3504_v59 = vld [vmem:[#allocation2 + $0x218] sm:$0x1] }
 0x4ae   : > { %v3490_v62 = vld [vmem:[#allocation2 + $0x1a8] sm:$0xfe]  ;;  %v3508_v36 = vld [vmem:[#allocation2 + $0x238] sm:$0x1]  ;;  %v3548_v14 = vrot.slane %v3482_v25, 1  ;;  %v3554_v10 = vrot.slane %v3486_v61, 1 }
 0x4af   : > { %v3494_v44 = vld [vmem:[#allocation2 + $0x1c8] sm:$0xfe]  ;;  %3801 = vst [vmem:[#allocation3 + $0x458] sm:$0xff] %v3793_v53  ;;  %3448 = vst [vmem:[#allocation3 + $0x418] sm:$0xff] %v3440_v31  ;;  %v3560_v63 = vrot.slane %v3490_v62, 1  ;;  %v3573_v60 = vrot.slane %v3500_v33, 1 }
 0x4b0   : > { %v3498_v42 = vld [vmem:[#allocation2 + $0x1e8] sm:$0xfe]  ;;  %v3566_v41 = vrot.slane %v3494_v44, 1  ;;  %v3512_v24 = vld [vmem:[#allocation2 + $0x258] sm:$0x1]  ;;  %v3550_v8 = vsel %vm2261_vm3, %v3548_v14, %v3549_v47  ;;  %v3556_v13 = vsel %vm2261_vm3, %v3554_v10, %v3555_v4  ;;  %v3579_v55 = vrot.slane %v3504_v59, 1 }
 0x4b1   : > { %v3502_v48 = vld [vmem:[#allocation2 + $0x208] sm:$0xfe]  ;;  %v3572_v54 = vrot.slane %v3498_v42, 1  ;;  %v3562_v37 = vsel %vm2261_vm3, %v3560_v63, %v3561_v23  ;;  %v3628_v46 = vld [vmem:[#allocation2 + $0x178] sm:$0x3]  ;;  %v3585_v45 = vrot.slane %v3508_v36, 1  ;;  %v3610_v25 = vpack.c.bf16 %v3556_v13, %v3550_v8 }
 0x4b2   : > { %v3506_v57 = vld [vmem:[#allocation2 + $0x228] sm:$0xfe]  ;;  %v3568_v21 = vsel %vm2261_vm3, %v3566_v41, %v3567_v6  ;;  %v3578_v56 = vrot.slane %v3502_v48, 1  ;;  %v3632_v27 = vld [vmem:[#allocation2 + $0x198] sm:$0x3]  ;;  %v3591_v52 = vrot.slane %v3512_v24, 1 }
 0x4b3   : > { %v3510_v38 = vld [vmem:[#allocation2 + $0x248] sm:$0xfe]  ;;  %v3574_v22 = vsel %vm2261_vm3, %v3572_v54, %v3573_v60  ;;  %v3584_v18 = vrot.slane %v3506_v57, 1  ;;  %v3612_v28 = vpack.c.bf16 %v3568_v21, %v3562_v37  ;;  %v3636_v40 = vld [vmem:[#allocation2 + $0x1b8] sm:$0x3]  ;;  %3618 = vst [vmem:[#allocation3 + $0x288] sm:$0xff] %v3610_v25 }
 0x4b4   : > { %v3626_v32 = vld [vmem:[#allocation2 + $0x168] sm:$0xfc]  ;;  %v3590_v19 = vrot.slane %v3510_v38, 1  ;;  %v3580_v35 = vsel %vm2261_vm3, %v3578_v56, %v3579_v55  ;;  %v3640_v61 = vld [vmem:[#allocation2 + $0x1d8] sm:$0x3]  ;;  %v3693_v43 = vrot.slane %v3628_v46, 2 }
 0x4b5   : > { %v3630_v7 = vld [vmem:[#allocation2 + $0x188] sm:$0xfc]  ;;  %v3586_v1 = vsel %vm2261_vm3, %v3584_v18, %v3585_v45  ;;  %v3614_v34 = vpack.c.bf16 %v3580_v35, %v3574_v22  ;;  %v3644_v51 = vld [vmem:[#allocation2 + $0x1f8] sm:$0x3]  ;;  %3620 = vst [vmem:[#allocation3 + $0x318] sm:$0xff] %v3612_v28  ;;  %v3692_v3 = vrot.slane %v3626_v32, 2 }
 0x4b6   : > { %v3634_v9 = vld [vmem:[#allocation2 + $0x1a8] sm:$0xfc]  ;;  %v3592_v20 = vsel %vm2261_vm3, %v3590_v19, %v3591_v52  ;;  %v3648_v50 = vld [vmem:[#allocation2 + $0x218] sm:$0x3]  ;;  %v3698_v42 = vrot.slane %v3630_v7, 2  ;;  %v3699_v53 = vrot.slane %v3632_v27, 2 }
 0x4b7   : > { %v3638_v0 = vld [vmem:[#allocation2 + $0x1c8] sm:$0xfc]  ;;  %v3616_v5 = vpack.c.bf16 %v3592_v20, %v3586_v1  ;;  %3622 = vst [vmem:[#allocation3 + $0x3a8] sm:$0xff] %v3614_v34  ;;  %v3652_v44 = vld [vmem:[#allocation2 + $0x238] sm:$0x3]  ;;  %v3704_v31 = vrot.slane %v3634_v9, 2  ;;  %v3694_v36 = vsel %vm2406_vm4, %v3692_v3, %v3693_v43 }
 0x4b8   : > { %v3642_v30 = vld [vmem:[#allocation2 + $0x1e8] sm:$0xfc]  ;;  %v3705_v48 = vrot.slane %v3636_v40, 2  ;;  %v3710_v59 = vrot.slane %v3638_v0, 2  ;;  %v3656_v57 = vld [vmem:[#allocation2 + $0x258] sm:$0x3]  ;;  %v3700_v4 = vsel %vm2406_vm4, %v3698_v42, %v3699_v53  ;;  %v3913_v40 = vsel %vm2261_vm3, %v3911_v49, %v3912_v12 }
 0x4b9   : > { %v3646_v11 = vld [vmem:[#allocation2 + $0x208] sm:$0xfc]  ;;  %3624 = vst [vmem:[#allocation3 + $0x438] sm:$0xff] %v3616_v5  ;;  %v3711_v14 = vrot.slane %v3640_v61, 2  ;;  %v3716_v47 = vrot.slane %v3642_v30, 2  ;;  %v3717_v10 = vrot.slane %v3644_v51, 2  ;;  %v3754_v32 = vpack.c.bf16 %v3700_v4, %v3694_v36 }
 0x4ba   : > { %v3650_v62 = vld [vmem:[#allocation2 + $0x228] sm:$0xfc]  ;;  %v3706_v38 = vsel %vm2406_vm4, %v3704_v31, %v3705_v48  ;;  %v3722_v63 = vrot.slane %v3646_v11, 2  ;;  %v3723_v23 = vrot.slane %v3648_v50, 2  ;;  %v3805_v6 = vld [vmem:[#allocation2 + $0x198] sm:$0x1] }
 0x4bb   : > { %v3654_v33 = vld [vmem:[#allocation2 + $0x248] sm:$0xfc]  ;;  %v3712_v24 = vsel %vm2406_vm4, %v3710_v59, %v3711_v14  ;;  %v3718_v8 = vsel %vm2406_vm4, %v3716_v47, %v3717_v10  ;;  %v3728_v13 = vrot.slane %v3650_v62, 2  ;;  %v3729_v54 = vrot.slane %v3652_v44, 2  ;;  %v3809_v37 = vld [vmem:[#allocation2 + $0x1b8] sm:$0x1] }
 0x4bc   : > { %v3803_v41 = vld [vmem:[#allocation2 + $0x188] sm:$0xfe]  ;;  %v3724_v21 = vsel %vm2406_vm4, %v3722_v63, %v3723_v23  ;;  %v3734_v56 = vrot.slane %v3654_v33, 2  ;;  %v3735_v55 = vrot.slane %v3656_v57, 2  ;;  %v3813_v7 = vld [vmem:[#allocation2 + $0x1d8] sm:$0x1]  ;;  %v3756_v18 = vpack.c.bf16 %v3712_v24, %v3706_v38 }
 0x4bd   : > { %v3807_v60 = vld [vmem:[#allocation2 + $0x1a8] sm:$0xfe]  ;;  %v3730_v22 = vsel %vm2406_vm4, %v3728_v13, %v3729_v54  ;;  %v3758_v45 = vpack.c.bf16 %v3724_v21, %v3718_v8  ;;  %v3817_v27 = vld [vmem:[#allocation2 + $0x1f8] sm:$0x1]  ;;  %3762 = vst [vmem:[#allocation3 + $0x298] sm:$0xff] %v3754_v32  ;;  %v3869_v34 = vrot.slane %v3803_v41, 1 }
 0x4be   : > { %v3811_v46 = vld [vmem:[#allocation2 + $0x1c8] sm:$0xfe]  ;;  %v3736_v35 = vsel %vm2406_vm4, %v3734_v56, %v3735_v55  ;;  %v3821_v52 = vld [vmem:[#allocation2 + $0x218] sm:$0x1]  ;;  %3764 = vst [vmem:[#allocation3 + $0x328] sm:$0xff] %v3756_v18  ;;  %v3870_v61 = vrot.slane %v3805_v6, 1 }
 0x4bf   : > { %v3815_v19 = vld [vmem:[#allocation2 + $0x1e8] sm:$0xfe]  ;;  %v3825_v28 = vld [vmem:[#allocation2 + $0x238] sm:$0x1]  ;;  %v3760_v0 = vpack.c.bf16 %v3736_v35, %v3730_v22  ;;  %3766 = vst [vmem:[#allocation3 + $0x3b8] sm:$0xff] %v3758_v45  ;;  %v3875_v30 = vrot.slane %v3807_v60, 1  ;;  %v4057_v60 = vsel %vm2406_vm4, %v4055_v29, %v4056_v2 }
 0x4c0   : > { %v3819_v9 = vld [vmem:[#allocation2 + $0x208] sm:$0xfe]  ;;  %v3829_v51 = vld [vmem:[#allocation2 + $0x258] sm:$0x1]  ;;  %v3876_v20 = vrot.slane %v3809_v37, 1  ;;  %v3881_v11 = vrot.slane %v3811_v46, 1  ;;  %v3871_v5 = vsel %vm2261_vm3, %v3869_v34, %v3870_v61 }
 0x4c1   : > { %v3823_v25 = vld [vmem:[#allocation2 + $0x228] sm:$0xfe]  ;;  %v3882_v50 = vrot.slane %v3813_v7, 1  ;;  %v3887_v62 = vrot.slane %v3815_v19, 1  ;;  %3768 = vst [vmem:[#allocation3 + $0x448] sm:$0xff] %v3760_v0  ;;  %v3888_v58 = vrot.slane %v3817_v27, 1 }
 0x4c2   : > { %v3827_v1 = vld [vmem:[#allocation2 + $0x248] sm:$0xfe]  ;;  %v3893_v44 = vrot.slane %v3819_v9, 1  ;;  %v3894_v39 = vrot.slane %v3821_v52, 1  ;;  %v3949_v49 = vld [vmem:[#allocation2 + $0x198] sm:$0x3]  ;;  %v3877_v12 = vsel %vm2261_vm3, %v3875_v30, %v3876_v20 }
 0x4c3   : > { %v3947_v3 = vld [vmem:[#allocation2 + $0x188] sm:$0xfc]  ;;  %v3883_v43 = vsel %vm2261_vm3, %v3881_v11, %v3882_v50  ;;  %v3899_v42 = vrot.slane %v3823_v25, 1  ;;  %v3900_v33 = vrot.slane %v3825_v28, 1  ;;  %v3953_v31 = vld [vmem:[#allocation2 + $0x1b8] sm:$0x3]  ;;  %v3889_v48 = vsel %vm2261_vm3, %v3887_v62, %v3888_v58 }
 0x4c4   : > { %v3951_v53 = vld [vmem:[#allocation2 + $0x1a8] sm:$0xfc]  ;;  %v3895_v59 = vsel %vm2261_vm3, %v3893_v44, %v3894_v39  ;;  %v3905_v57 = vrot.slane %v3827_v1, 1  ;;  %v3906_v36 = vrot.slane %v3829_v51, 1  ;;  %v3957_v47 = vld [vmem:[#allocation2 + $0x1d8] sm:$0x3]  ;;  %v3931_v4 = vpack.c.bf16 %v3877_v12, %v3871_v5 }
 0x4c5   : > { %v3955_v14 = vld [vmem:[#allocation2 + $0x1c8] sm:$0xfc]  ;;  %v3901_v10 = vsel %vm2261_vm3, %v3899_v42, %v3900_v33  ;;  %v3933_v38 = vpack.c.bf16 %v3889_v48, %v3883_v43  ;;  %v3961_v23 = vld [vmem:[#allocation2 + $0x1f8] sm:$0x3]  ;;  %v4013_v56 = vrot.slane %v3947_v3, 2  ;;  %v4014_v55 = vrot.slane %v3949_v49, 2 }
 0x4c6   : > { %v3959_v63 = vld [vmem:[#allocation2 + $0x1e8] sm:$0xfc]  ;;  %v3907_v6 = vsel %vm2261_vm3, %v3905_v57, %v3906_v36  ;;  %v3935_v24 = vpack.c.bf16 %v3901_v10, %v3895_v59  ;;  %v3965_v8 = vld [vmem:[#allocation2 + $0x218] sm:$0x3]  ;;  %3939 = vst [vmem:[#allocation3 + $0x2b8] sm:$0xff] %v3931_v4  ;;  %v4019_v32 = vrot.slane %v3951_v53, 2 }
 0x4c7   : > { %v3963_v41 = vld [vmem:[#allocation2 + $0x208] sm:$0xfc]  ;;  %v3969_v54 = vld [vmem:[#allocation2 + $0x238] sm:$0x3]  ;;  %v3937_v37 = vpack.c.bf16 %v3913_v40, %v3907_v6  ;;  %3941 = vst [vmem:[#allocation3 + $0x348] sm:$0xff] %v3933_v38  ;;  %v4020_v7 = vrot.slane %v3953_v31, 2  ;;  %v4015_v26 = vsel %vm2406_vm4, %v4013_v56, %v4014_v55 }
 0x4c8   : > { %v3967_v13 = vld [vmem:[#allocation2 + $0x228] sm:$0xfc]  ;;  %3943 = vst [vmem:[#allocation3 + $0x3d8] sm:$0xff] %v3935_v24  ;;  %v3973_v46 = vld [vmem:[#allocation2 + $0x258] sm:$0x3]  ;;  %v4025_v22 = vrot.slane %v3955_v14, 2 }
 0x4c9   : > { %v3971_v21 = vld [vmem:[#allocation2 + $0x248] sm:$0xfc]  ;;  %v4026_v18 = vrot.slane %v3957_v47, 2  ;;  %v4031_v45 = vrot.slane %v3959_v63, 2  ;;  %3945 = vst [vmem:[#allocation3 + $0x468] sm:$0xff] %v3937_v37  ;;  %v4032_v19 = vrot.slane %v3961_v23, 2  ;;  %v4021_v29 = vsel %vm2406_vm4, %v4019_v32, %v4020_v7 }
 0x4ca   : > { %v4037_v15 = vrot.slane %v3963_v41, 2  ;;  %v4038_v27 = vrot.slane %v3965_v8, 2  ;;  %v4043_v9 = vrot.slane %v3967_v13, 2  ;;  %v4044_v35 = vrot.slane %v3969_v54, 2 }
 0x4cb   : > { %v4027_v2 = vsel %vm2406_vm4, %v4025_v22, %v4026_v18  ;;  %v4033_v52 = vsel %vm2406_vm4, %v4031_v45, %v4032_v19  ;;  %v4049_v28 = vrot.slane %v3971_v21, 2  ;;  %v4050_v40 = vrot.slane %v3973_v46, 2 }
 0x4cc   : > { %v4039_v25 = vsel %vm2406_vm4, %v4037_v15, %v4038_v27  ;;  %v4045_v0 = vsel %vm2406_vm4, %v4043_v9, %v4044_v35  ;;  %v4075_v1 = vpack.c.bf16 %v4021_v29, %v4015_v26  ;;  %v4077_v34 = vpack.c.bf16 %v4033_v52, %v4027_v2 }
 0x4cd   : > { %v4051_v61 = vsel %vm2406_vm4, %v4049_v28, %v4050_v40  ;;  %v4079_v30 = vpack.c.bf16 %v4045_v0, %v4039_v25 }
 0x4ce   : > { %v4081_v51 = vpack.c.bf16 %v4057_v60, %v4051_v61  ;;  %4083 = vst [vmem:[#allocation3 + $0x2c8] sm:$0xff] %v4075_v1  ;;  %4085 = vst [vmem:[#allocation3 + $0x358] sm:$0xff] %v4077_v34 }
 0x4cf   : > { %4087 = vst [vmem:[#allocation3 + $0x3e8] sm:$0xff] %v4079_v30 }
 0x4d0   : > { %4089 = vst [vmem:[#allocation3 + $0x478] sm:$0xff] %v4081_v51 }
 0x4d1 PF: > { %s17070_s30 = sld [smem:[#allocation29_spill]] }
 0x4d7   : > { %p10169_p6 = scmp.ne.s32.totalorder %s17070_s30, 1 }
 0x4d8   : > { %v15185_v20 = vpack.c.bf16 (!%p10169_p6), %v13896_v17, %v13891_v16  ;;  %v17071_v11 = vld [vmem:[#allocation40_spill] sm:$0xff] (!%p10169_p6)  ;;  %v17072_v50 = vld [vmem:[#allocation41_spill] sm:$0xff] (!%p10169_p6)  ;;  %v15195_v39 = vld [vmem:[#allocation4 + $0x80] sm:$0xff] (!%p10169_p6)  ;;  %vm4342_vm5 = vcmask (!%p10169_p6), 261120   ;;  %vm5640_vm7 = vcmask (!%p10169_p6), 1046528   ;;  %vm5785_vm8 = vcmask (!%p10169_p6), 1045504  }
 0x4d9   : > { %4093 = sbr.rel (%p10169_p6) target bundleno = 2147 (0x863), region = 92  ;;  %v15189_v62 = vpack.c.bf16 (!%p10169_p6), %v17072_v50, %v17071_v11  ;;  %v17073_v5 = vld [vmem:[#allocation56_spill] sm:$0xff] (!%p10169_p6)  ;;  %v17074_v58 = vld [vmem:[#allocation57_spill] sm:$0xff] (!%p10169_p6)  ;;  %v15201_v49 = vld [vmem:[#allocation4] sm:$0xff] (!%p10169_p6)  ;;  %v4156_v14 = vmul.f32 (!%p10169_p6), %v15195_v39, %v15195_v39 }
 0x4da   : > { %v15193_v44 = vpack.c.bf16 (!%p10169_p6), %v17074_v58, %v17073_v5  ;;  %v15197_v3 = vld [vmem:[#allocation4 + $0x88] sm:$0xff] (!%p10169_p6)  ;;  %11937 = vmatprep.subr.bf16.mxu0 (!%p10169_p6), %v15185_v20  ;;  %11969 = vmatprep.subr.bf16.mxu1 (!%p10169_p6), %v15185_v20  ;;  %v17075_v16 = vld [vmem:[#allocation42_spill] sm:$0xff] (!%p10169_p6)  ;;  %v15209_v43 = vld [vmem:[#allocation4 + $0x90] sm:$0xff] (!%p10169_p6)  ;;  %v4155_v32 = vmul.f32 (!%p10169_p6), %v15201_v49, %v15201_v49 }
 0x4db   : > { %11939 = vmatpush3.bf16.msra.mxu0 (!%p10169_p6), %v15189_v62  ;;  %11971 = vmatpush3.bf16.msra.mxu1 (!%p10169_p6), %v15189_v62  ;;  %v17076_v17 = vld [vmem:[#allocation43_spill] sm:$0xff] (!%p10169_p6)  ;;  %v17077_v33 = vld [vmem:[#allocation58_spill] sm:$0xff] (!%p10169_p6)  ;;  %v4142_v59 = vadd.f32 (!%p10169_p6), %v15197_v3, %v15195_v39  ;;  %v15223_v57 = vld [vmem:[#allocation4 + $0x10] sm:$0xff] (!%p10169_p6)  ;;  %v4158_v47 = vmul.f32 (!%p10169_p6), %v15197_v3, %v15197_v3  ;;  %v4160_v41 = vmul.f32 (!%p10169_p6), %v15209_v43, %v15209_v43 }
 0x4dc   : > { %v15207_v12 = vpack.c.bf16 (!%p10169_p6), %v17076_v17, %v17075_v16  ;;  %v15211_v42 = vld [vmem:[#allocation4 + $0x8] sm:$0xff] (!%p10169_p6)  ;;  %11941 = vmatprep.subr.bf16.mxu0 (!%p10169_p6), %v15193_v44  ;;  %11973 = vmatprep.subr.bf16.mxu1 (!%p10169_p6), %v15193_v44  ;;  %v15219_v48 = vld [vmem:[#allocation4 + $0x98] sm:$0xff] (!%p10169_p6)  ;;  %v15246_v13 = vld [vmem:[#allocation4 + $0xa0] sm:$0xff] (!%p10169_p6)  ;;  %v4159_v52 = vmul.f32 (!%p10169_p6), %v15223_v57, %v15223_v57 }
 0x4dd   : > { %v17078_v53 = vld [vmem:[#allocation59_spill] sm:$0xff] (!%p10169_p6)  ;;  %v4129_v36 = vadd.f32 (!%p10169_p6), %v15211_v42, %v15201_v49  ;;  %v17079_v10 = vld [vmem:[#allocation44_spill] sm:$0xff] (!%p10169_p6)  ;;  %v17080_v4 = vld [vmem:[#allocation45_spill] sm:$0xff] (!%p10169_p6)  ;;  %v4143_v63 = vadd.f32 (!%p10169_p6), %v4142_v59, %v15209_v43  ;;  %v4162_v60 = vmul.f32 (!%p10169_p6), %v15219_v48, %v15219_v48  ;;  %v4184_v55 = vadd.f32 (!%p10169_p6), %v4158_v47, %v4156_v14 }
 0x4de   : > { %v15217_v31 = vpack.c.bf16 (!%p10169_p6), %v17078_v53, %v17077_v33  ;;  %v15233_v38 = vpack.c.bf16 (!%p10169_p6), %v17080_v4, %v17079_v10  ;;  %v15236_v23 = vld [vmem:[#allocation4 + $0x18] sm:$0xff] (!%p10169_p6)  ;;  %v17081_v6 = vld [vmem:[#allocation60_spill] sm:$0xff] (!%p10169_p6)  ;;  %v15256_v56 = vld [vmem:[#allocation4 + $0x20] sm:$0xff] (!%p10169_p6)  ;;  %v4157_v15 = vmul.f32 (!%p10169_p6), %v15211_v42, %v15211_v42  ;;  %v4164_v9 = vmul.f32 (!%p10169_p6), %v15246_v13, %v15246_v13 }
 0x4df   : > { %11943 = vmatpush3.bf16.msra.mxu0 (!%p10169_p6), %v15207_v12  ;;  %11975 = vmatpush3.bf16.msra.mxu1 (!%p10169_p6), %v15207_v12  ;;  %v17082_v24 = vld [vmem:[#allocation61_spill] sm:$0xff] (!%p10169_p6)  ;;  %v4130_v54 = vadd.f32 (!%p10169_p6), %v4129_v36, %v15223_v57  ;;  %v15253_v37 = vld [vmem:[#allocation4 + $0xa8] sm:$0xff] (!%p10169_p6)  ;;  %v4144_v21 = vadd.f32 (!%p10169_p6), %v4143_v63, %v15219_v48  ;;  %v17083_v46 = vld [vmem:[#allocation46_spill] sm:$0xff] (!%p10169_p6)  ;;  %v4185_v35 = vadd.f32 (!%p10169_p6), %v4184_v55, %v4160_v41 }
 0x4e0   : > { %v15244_v8 = vpack.c.bf16 %v17082_v24, %v17081_v6  ;;  %11945 = vmatprep.subr.bf16.mxu0 %v15217_v31  ;;  %11977 = vmatprep.subr.bf16.mxu1 %v15217_v31  ;;  %v17084_v7 = vld [vmem:[#allocation47_spill] sm:$0xff]  ;;  %v17085_v18 = vld [vmem:[#allocation62_spill] sm:$0xff]  ;;  %v15271_v27 = vld [vmem:[#allocation4 + $0xb0] sm:$0xff]  ;;  %v4166_v28 = vmul.f32 %v15253_v37, %v15253_v37  ;;  %v4161_v40 = vmul.f32 %v15236_v23, %v15236_v23 }
 0x4e1   : > { %v15262_v22 = vpack.c.bf16 %v17084_v7, %v17083_v46  ;;  %v17086_v45 = vld [vmem:[#allocation63_spill] sm:$0xff]  ;;  %v4131_v19 = vadd.f32 %v4130_v54, %v15236_v23  ;;  %v4145_v29 = vadd.f32 %v4144_v21, %v15246_v13  ;;  %v15289_v0 = vld [vmem:[#allocation4 + $0xb8] sm:$0xff]  ;;  %v15292_v34 = vld [vmem:[#allocation4 + $0x30] sm:$0xff]  ;;  %v4186_v61 = vadd.f32 %v4185_v35, %v4162_v60 }
 0x4e2   : > { %v15266_v26 = vpack.c.bf16 %v17086_v45, %v17085_v18  ;;  %v15274_v2 = vld [vmem:[#allocation4 + $0x28] sm:$0xff]  ;;  %v4171_v30 = vadd.f32 %v4157_v15, %v4155_v32  ;;  %v17088_v11 = vld [vmem:[#allocation49_spill] sm:$0xff]  ;;  %v4168_v33 = vmul.f32 %v15271_v27, %v15271_v27  ;;  %v4163_v14 = vmul.f32 %v15256_v56, %v15256_v56  ;;  %v17091_v46 = vld [vmem:[#allocation50_spill] sm:$0xff] }
 0x4e3   : > { %11947 = vmatpush3.bf16.msra.mxu0 %v15233_v38  ;;  %11979 = vmatpush3.bf16.msra.mxu1 %v15233_v38  ;;  %v4132_v25 = vadd.f32 %v4131_v19, %v15256_v56  ;;  %v4146_v1 = vadd.f32 %v4145_v29, %v15253_v37  ;;  %v17087_v51 = vld [vmem:[#allocation48_spill] sm:$0xff]  ;;  %v17090_v58 = vld [vmem:[#allocation65_spill] sm:$0xff]  ;;  %v4187_v36 = vadd.f32 %v4186_v61, %v4164_v9  ;;  %v17092_v7 = vld [vmem:[#allocation51_spill] sm:$0xff] }
 0x4e4   : > { %11949 = vmatprep.subr.bf16.mxu0 %v15244_v8  ;;  %11981 = vmatprep.subr.bf16.mxu1 %v15244_v8  ;;  %v15296_v50 = vpack.c.bf16 %v17088_v11, %v17087_v51  ;;  %v17089_v5 = vld [vmem:[#allocation64_spill] sm:$0xff]  ;;  %v15306_v59 = vld [vmem:[#allocation4 + $0x38] sm:$0xff]  ;;  %v4172_v47 = vadd.f32 %v4171_v30, %v4159_v52  ;;  %v4170_v4 = vmul.f32 %v15289_v0, %v15289_v0  ;;  %v17094_v19 = vld [vmem:[#allocation67_spill] sm:$0xff] }
 0x4e5   : > { %v15300_v16 = vpack.c.bf16 %v17090_v58, %v17089_v5  ;;  %v4133_v17 = vadd.f32 %v4132_v25, %v15274_v2  ;;  %v4147_v53 = vadd.f32 %v4146_v1, %v15271_v27  ;;  %v4165_v63 = vmul.f32 %v15274_v2, %v15274_v2  ;;  %v17093_v45 = vld [vmem:[#allocation66_spill] sm:$0xff]  ;;  %v17095_v30 = vld [vmem:[#allocation52_spill] sm:$0xff]  ;;  %v17096_v51 = vld [vmem:[#allocation53_spill] sm:$0xff] }
 0x4e6   : > { %v4188_v6 = vadd.f32 %v4187_v36, %v4166_v28  ;;  %v4173_v24 = vadd.f32 %v4172_v47, %v4161_v40  ;;  %v4167_v55 = vmul.f32 %v15292_v34, %v15292_v34  ;;  %v15327_v18 = vpack.c.bf16 %v17092_v7, %v17091_v46  ;;  %v17097_v5 = vld [vmem:[#allocation68_spill] sm:$0xff]  ;;  %v17098_v58 = vld [vmem:[#allocation69_spill] sm:$0xff]  ;;  %vm15359_vm6 = vmpackc.low %vm4342_vm5, %vm4342_vm5 }
 0x4e7   : > { %11951 = vmatpush3.bf16.msra.mxu0 %v15262_v22  ;;  %11983 = vmatpush3.bf16.msra.mxu1 %v15262_v22  ;;  %v4134_v10 = vadd.f32 %v4133_v17, %v15292_v34  ;;  %v4148_v41 = vadd.f32 %v4147_v53, %v15289_v0  ;;  %v15331_v15 = vpack.c.bf16 %v17094_v19, %v17093_v45 }
 0x4e8   : > { %11953 = vmatprep.subr.bf16.mxu0 %v15266_v26  ;;  %11985 = vmatprep.subr.bf16.mxu1 %v15266_v26  ;;  %v4189_v21 = vadd.f32 %v4188_v6, %v4168_v33  ;;  %v4174_v32 = vadd.f32 %v4173_v24, %v4163_v14  ;;  %v4169_v9 = vmul.f32 %v15306_v59, %v15306_v59  ;;  %v17100_v6 = vld [vmem:[#allocation55_spill] sm:$0xff] }
 0x4e9   : > { %v4135_v54 = vadd.f32 %v4134_v10, %v15306_v59  ;;  %v4149_v60 = vrot.slane %v4148_v41, 4  ;;  %v15341_v11 = vpack.c.bf16 %v17096_v51, %v17095_v30  ;;  %v15345_v17 = vpack.c.bf16 %v17098_v58, %v17097_v5  ;;  %v4123_v58 = vld [vmem:[#allocation4 + $0xe0] sm:$0xff] }
 0x4ea   : > { %v4190_v52 = vadd.f32 %v4189_v21, %v4170_v4  ;;  %v4175_v25 = vadd.f32 %v4174_v32, %v4165_v63 }
 0x4eb   : > { %11955 = vmatpush3.bf16.msra.mxu0 %v15296_v50  ;;  %11987 = vmatpush3.bf16.msra.mxu1 %v15296_v50  ;;  %v4136_v29 = vrot.slane %v4135_v54, 4  ;;  %v4150_v35 = vadd.f32 %v4149_v60, %v4148_v41  ;;  %v17099_v41 = vld [vmem:[#allocation54_spill] sm:$0xff] }
 0x4ec   : > { %11957 = vmatprep.subr.bf16.mxu0 %v15300_v16  ;;  %11989 = vmatprep.subr.bf16.mxu1 %v15300_v16  ;;  %v4191_v1 = vrot.slane %v4190_v52, 4  ;;  %v4176_v61 = vadd.f32 %v4175_v25, %v4167_v55  ;;  %v15353_v24 = vpack.c.bf16 %v17100_v6, %v17099_v41  ;;  %v4120_v25 = vld [vmem:[#allocation4 + $0xc8] sm:$0xff]  ;;  %v4921_v41 = vmul.f32 %v4123_v58, %v4123_v58 }
 0x4ed   : > { %v4137_v28 = vadd.f32 %v4136_v29, %v4135_v54  ;;  %v4151_v40 = vrot.slane %v4150_v35, 2  ;;  %v4915_v51 = vmul.f32 %v4120_v25, %v4120_v25 }
 0x4ee   : > { %v4192_v36 = vadd.f32 %v4191_v1, %v4190_v52  ;;  %v4177_v14 = vadd.f32 %v4176_v61, %v4169_v9  ;;  %v4119_v52 = vld [vmem:[#allocation4 + $0xc0] sm:$0xff]  ;;  %v4122_v61 = vld [vmem:[#allocation4 + $0xd8] sm:$0xff] }
 0x4ef   : > { %11959 = vmatpush3.bf16.msra.mxu0 %v15327_v18  ;;  %11991 = vmatpush3.bf16.msra.mxu1 %v15327_v18  ;;  %v4138_v33 = vrot.slane %v4137_v28, 2  ;;  %v4152_v53 = vadd.f32 %v4151_v40, %v4150_v35  ;;  %v4121_v40 = vld [vmem:[#allocation4 + $0xd0] sm:$0xff]  ;;  %v4913_v30 = vmul.f32 %v4119_v52, %v4119_v52 }
 0x4f0   : > { %11961 = vmatprep.subr.bf16.mxu0 %v15331_v15  ;;  %11993 = vmatprep.subr.bf16.mxu1 %v15331_v15  ;;  %v4193_v4 = vrot.slane %v4192_v36, 2  ;;  %v4178_v63 = vrot.slane %v4177_v14, 4 }
 0x4f1   : > { %v4139_v47 = vadd.f32 %v4138_v33, %v4137_v28  ;;  %v4153_v10 = vrot.slane %v4152_v53, 1  ;;  %v4899_v28 = vadd.f32 %v4120_v25, %v4119_v52  ;;  %v4917_v33 = vmul.f32 %v4121_v40, %v4121_v40 }
 0x4f2   : > { %v4194_v21 = vadd.f32 %v4193_v4, %v4192_v36  ;;  %v4179_v55 = vadd.f32 %v4178_v63, %v4177_v14  ;;  %v4124_v14 = vld [vmem:[#allocation4 + $0xe8] sm:$0xff]  ;;  %v4125_v63 = vld [vmem:[#allocation4 + $0xf0] sm:$0xff] }
 0x4f3   : > { %11963 = vmatpush3.bf16.msra.mxu0 %v15341_v11  ;;  %11995 = vmatpush3.bf16.msra.mxu1 %v15341_v11  ;;  %v4140_v54 = vrot.slane %v4139_v47, 1  ;;  %v4154_v60 = vadd.f32 %v4153_v10, %v4152_v53  ;;  %v4900_v1 = vadd.f32 %v4899_v28, %v4121_v40  ;;  %v4941_v53 = vadd.f32 %v4915_v51, %v4913_v30  ;;  %v4104_v40 = vld [vmem:[#allocation4 + $0x50] sm:$0xff] }
 0x4f4   : > { %11965 = vmatprep.subr.bf16.mxu0 %v15345_v17  ;;  %11997 = vmatprep.subr.bf16.mxu1 %v15345_v17  ;;  %v4195_v7 = vrot.slane %v4194_v21, 1  ;;  %v4180_v45 = vrot.slane %v4179_v55, 2 }
 0x4f5   : > { %4261 = vmatprep.mubr.f32.mxu0 %v4154_v60  ;;  %v4141_v46 = vadd.f32 %v4140_v54, %v4139_v47  ;;  %v4901_v5 = vadd.f32 %v4900_v1, %v4122_v61  ;;  %v4919_v47 = vmul.f32 %v4122_v61, %v4122_v61  ;;  %v4942_v10 = vadd.f32 %v4941_v53, %v4917_v33  ;;  %v4126_v60 = vld [vmem:[#allocation4 + $0xf8] sm:$0xff] }
 0x4f6   : > { %v4196_v19 = vadd.f32 %v4195_v7, %v4194_v21  ;;  %v4181_v29 = vadd.f32 %v4180_v45, %v4179_v55  ;;  %v4923_v21 = vmul.f32 %v4124_v14, %v4124_v14  ;;  %v4925_v7 = vmul.f32 %v4125_v63, %v4125_v63 }
 0x4f7   : > { %11967 = vmatpush3.bf16.msra.mxu0 %v15353_v24  ;;  %11999 = vmatpush3.bf16.msra.mxu1 %v15353_v24  ;;  %v4902_v36 = vadd.f32 %v4901_v5, %v4123_v58  ;;  %v4943_v6 = vadd.f32 %v4942_v10, %v4919_v47  ;;  %v4105_v58 = vld [vmem:[#allocation4 + $0x58] sm:$0xff]  ;;  %v4106_v10 = vld [vmem:[#allocation4 + $0x60] sm:$0xff] }
 0x4f8   : > { %12002 = vmatprep.subr.msk.bf16.mxu0 %vm15359_vm6, %v15185_v20  ;;  %12050 = vmatprep.subr.msk.bf16.mxu1 %vm15359_vm6, %v15185_v20  ;;  %v4182_v9 = vrot.slane %v4181_v29, 1 }
 0x4f9   : > { %4331 = vmatprep.mubr.f32.mxu1 %v4196_v19  ;;  %v4903_v4 = vadd.f32 %v4902_v36, %v4124_v14  ;;  %v4944_v55 = vadd.f32 %v4943_v6, %v4921_v41  ;;  %v4916_v36 = vmul.f32 %v4104_v40, %v4104_v40  ;;  %v4918_v41 = vmul.f32 %v4105_v58, %v4105_v58 }
 0x4fa   : > { %4262 = vmatmul.mubr.f32.vlgmr.msra.gmra.mrb[0].mxu0 %v4141_v46  ;;  %v4183_v35 = vadd.f32 %v4182_v9, %v4181_v29  ;;  %v4102_v29 = vld [vmem:[#allocation4 + $0x40] sm:$0xff]  ;;  %v4103_v9 = vld [vmem:[#allocation4 + $0x48] sm:$0xff] }
 0x4fb   : > { %v4904_v54 = vadd.f32 %v4903_v4, %v4125_v63  ;;  %v4945_v45 = vadd.f32 %v4944_v55, %v4923_v21  ;;  %v4886_v25 = vadd.f32 %v4103_v9, %v4102_v29  ;;  %v4912_v30 = vmul.f32 %v4102_v29, %v4102_v29  ;;  %v4107_v21 = vld [vmem:[#allocation4 + $0x68] sm:$0xff] }
 0x4fc   : > { %4332 = vmatmul.mubr.f32.vlgmr.msra.gmra.mrb[0].mxu1 %v4183_v35  ;;  %v4927_v35 = vmul.f32 %v4126_v60, %v4126_v60  ;;  %v4914_v51 = vmul.f32 %v4103_v9, %v4103_v9 }
 0x4fd   : > { %v4905_v46 = vadd.f32 %v4904_v54, %v4126_v60  ;;  %v4946_v52 = vadd.f32 %v4945_v45, %v4925_v7  ;;  %v4887_v61 = vadd.f32 %v4886_v25, %v4104_v40  ;;  %v4108_v25 = vld [vmem:[#allocation4 + $0x70] sm:$0xff] }
 0x4fe   : > { %v4928_v14 = vadd.f32 %v4914_v51, %v4912_v30  ;;  %v4922_v51 = vmul.f32 %v4107_v21, %v4107_v21 }
 0x4ff   : > { %v4906_v19 = vrot.slane %v4905_v46, 4  ;;  %v4947_v1 = vadd.f32 %v4946_v52, %v4927_v35  ;;  %v4888_v53 = vadd.f32 %v4887_v61, %v4105_v58 }
 0x500   : > { %12005 = vmatpush3.bf16.xpose.msk.msra.mxu0 %vm15359_vm6, %v15189_v62  ;;  %12053 = vmatpush3.bf16.xpose.msk.msra.mxu1 %vm15359_vm6, %v15189_v62  ;;  %v4929_v6 = vadd.f32 %v4928_v14, %v4916_v36 }
 0x501   : > { %12008 = vmatprep.subr.msk.bf16.mxu0 %vm15359_vm6, %v15193_v44  ;;  %12056 = vmatprep.subr.msk.bf16.mxu1 %vm15359_vm6, %v15193_v44  ;;  %v4907_v28 = vadd.f32 %v4906_v19, %v4905_v46  ;;  %v4948_v33 = vrot.slane %v4947_v1, 4  ;;  %v4889_v63 = vadd.f32 %v4888_v53, %v4106_v10  ;;  %v4920_v19 = vmul.f32 %v4106_v10, %v4106_v10 }
 0x502   : > { %v4930_v29 = vadd.f32 %v4929_v6, %v4918_v41 }
 0x503   : > { %v4908_v5 = vrot.slane %v4907_v28, 2  ;;  %v4949_v4 = vadd.f32 %v4948_v33, %v4947_v1  ;;  %v4890_v45 = vadd.f32 %v4889_v63, %v4107_v21  ;;  %v4109_v33 = vld [vmem:[#allocation4 + $0x78] sm:$0xff] }
 0x504   : > { %v4926_v6 = vmul.f32 %v4109_v33, %v4109_v33 }
 0x505   : > { %v4909_v47 = vadd.f32 %v4908_v5, %v4907_v28  ;;  %v4950_v7 = vrot.slane %v4949_v4, 2  ;;  %v4891_v30 = vadd.f32 %v4890_v45, %v4108_v25  ;;  %v4931_v5 = vadd.f32 %v4930_v29, %v4920_v19 }
 0x507   : > { %v4910_v60 = vrot.slane %v4909_v47, 1  ;;  %v4951_v1 = vadd.f32 %v4950_v7, %v4949_v4  ;;  %v4892_v14 = vadd.f32 %v4891_v30, %v4109_v33  ;;  %v4932_v10 = vadd.f32 %v4931_v5, %v4922_v51 }
 0x508   : > { %12011 = vmatpush3.bf16.xpose.msk.msra.mxu0 %vm15359_vm6, %v15207_v12  ;;  %12059 = vmatpush3.bf16.xpose.msk.msra.mxu1 %vm15359_vm6, %v15207_v12 }
 0x509   : > { %12014 = vmatprep.subr.msk.bf16.mxu0 %vm15359_vm6, %v15217_v31  ;;  %12062 = vmatprep.subr.msk.bf16.mxu1 %vm15359_vm6, %v15217_v31  ;;  %v4911_v52 = vadd.f32 %v4910_v60, %v4909_v47  ;;  %v4952_v36 = vrot.slane %v4951_v1, 1  ;;  %v4924_v47 = vmul.f32 %v4108_v25, %v4108_v25  ;;  %v4893_v41 = vrot.slane %v4892_v14, 4 }
 0x50b   : > { %v4953_v4 = vadd.f32 %v4952_v36, %v4951_v1  ;;  %v4894_v60 = vadd.f32 %v4893_v41, %v4892_v14 }
 0x510   : > { %12017 = vmatpush3.bf16.xpose.msk.msra.mxu0 %vm15359_vm6, %v15233_v38  ;;  %12065 = vmatpush3.bf16.xpose.msk.msra.mxu1 %vm15359_vm6, %v15233_v38 }
 0x511   : > { %12020 = vmatprep.subr.msk.bf16.mxu0 %vm15359_vm6, %v15244_v8  ;;  %12068 = vmatprep.subr.msk.bf16.mxu1 %vm15359_vm6, %v15244_v8 }
 0x518   : > { %12023 = vmatpush3.bf16.xpose.msk.msra.mxu0 %vm15359_vm6, %v15262_v22  ;;  %12071 = vmatpush3.bf16.xpose.msk.msra.mxu1 %vm15359_vm6, %v15262_v22 }
 0x519   : > { %12026 = vmatprep.subr.msk.bf16.mxu0 %vm15359_vm6, %v15266_v26  ;;  %12074 = vmatprep.subr.msk.bf16.mxu1 %vm15359_vm6, %v15266_v26 }
 0x520   : > { %12029 = vmatpush3.bf16.xpose.msk.msra.mxu0 %vm15359_vm6, %v15296_v50  ;;  %12077 = vmatpush3.bf16.xpose.msk.msra.mxu1 %vm15359_vm6, %v15296_v50 }
 0x521   : > { %12032 = vmatprep.subr.msk.bf16.mxu0 %vm15359_vm6, %v15300_v16  ;;  %12080 = vmatprep.subr.msk.bf16.mxu1 %vm15359_vm6, %v15300_v16 }
 0x528   : > { %12035 = vmatpush3.bf16.xpose.msk.msra.mxu0 %vm15359_vm6, %v15327_v18  ;;  %12083 = vmatpush3.bf16.xpose.msk.msra.mxu1 %vm15359_vm6, %v15327_v18 }
 0x529   : > { %12038 = vmatprep.subr.msk.bf16.mxu0 %vm15359_vm6, %v15331_v15  ;;  %12086 = vmatprep.subr.msk.bf16.mxu1 %vm15359_vm6, %v15331_v15 }
 0x530   : > { %12041 = vmatpush3.bf16.xpose.msk.msra.mxu0 %vm15359_vm6, %v15341_v11  ;;  %12089 = vmatpush3.bf16.xpose.msk.msra.mxu1 %vm15359_vm6, %v15341_v11 }
 0x531   : > { %12044 = vmatprep.subr.msk.bf16.mxu0 %vm15359_vm6, %v15345_v17  ;;  %12092 = vmatprep.subr.msk.bf16.mxu1 %vm15359_vm6, %v15345_v17 }
 0x538   : > { %12047 = vmatpush3.bf16.xpose.msk.msra.mxu0 %vm15359_vm6, %v15353_v24  ;;  %12095 = vmatpush3.bf16.xpose.msk.msra.mxu1 %vm15359_vm6, %v15353_v24 }
 0x539   : > { %12097 = vmatprep.subr.bf16.mxu0 %v15185_v20  ;;  %12129 = vmatprep.subr.bf16.mxu1 %v15185_v20 }
 0x5cd   : > { %v10796_v54 = vpop.f32.mrb[0].mxu0 }
 0x5ce   : > { %v10797_v55 = vpop.f32.mrb[1].mxu0 }
 0x5cf   : > { %v10798_v46 = vadd.f32 %v10797_v55, %v10796_v54  ;;  %v10831_v35 = vpop.f32.mrb[0].mxu1  ;;  %v4933_v54 = vadd.f32 %v4932_v10, %v4924_v47  ;;  %v4895_v55 = vrot.slane %v4894_v60, 2 }
 0x5d0   : > { %v10832_v40 = vpop.f32.mrb[1].mxu1 }
 0x5d1   : > { %v4337_v9 = vmul.f32 0.001953125, %v10798_v46  ;;  %v10833_v28 = vadd.f32 %v10832_v40, %v10831_v35  ;;  %v4934_v21 = vadd.f32 %v4933_v54, %v4926_v6  ;;  %v4896_v7 = vadd.f32 %v4895_v55, %v4894_v60 }
 0x5d3   : > { %v4339_v61 = vmul.f32 %v4337_v9, %v4337_v9  ;;  %10866 = vmatprep.mubr.msk.f32.mxu0 %vm4342_vm5, %v4337_v9  ;;  %v4338_v58 = vmul.f32 0.001953125, %v10833_v28  ;;  %v4935_v46 = vrot.slane %v4934_v21, 4  ;;  %v4897_v19 = vrot.slane %v4896_v7, 1 }
 0x5d4   : > { %10867 = vmatmul.mubr.msk.f32.vlgmr.msra.gmra.mrb[2].mxu0 %vm4342_vm5, %v4337_v9 }
 0x5d5   : > { %12099 = vmatpush3.bf16.msra.mxu0 %v15189_v62  ;;  %5018 = vmatprep.mubr.f32.mxu0 %v4911_v52  ;;  %v4340_v53 = vsub.f32 %v4338_v58, %v4339_v61  ;;  %v4936_v45 = vadd.f32 %v4935_v46, %v4934_v21  ;;  %v4898_v9 = vadd.f32 %v4897_v19, %v4896_v7 }
 0x5d6   : > { %12101 = vmatprep.subr.bf16.mxu0 %v15193_v44 }
 0x5d7   : > { %v4341_v63 = vmax.f32 %v4340_v53, 0.0  ;;  %v4937_v29 = vrot.slane %v4936_v45, 2 }
 0x5d9   : > { %12103 = vmatpush3.bf16.msra.mxu0 %v15207_v12  ;;  %10900 = vmatprep.mubr.msk.f32.mxu1 %vm4342_vm5, %v4341_v63  ;;  %v4938_v35 = vadd.f32 %v4937_v29, %v4936_v45 }
 0x5da   : > { %12105 = vmatprep.subr.bf16.mxu0 %v15217_v31  ;;  %10901 = vmatmul.mubr.msk.f32.vlgmr.msra.gmra.mrb[2].mxu1 %vm4342_vm5, %v4341_v63 }
 0x5db   : > { %12131 = vmatpush3.bf16.msra.mxu1 %v15189_v62  ;;  %5088 = vmatprep.mubr.f32.mxu1 %v4953_v4  ;;  %v4939_v52 = vrot.slane %v4938_v35, 1 }
 0x5dc   : > { %12133 = vmatprep.subr.bf16.mxu1 %v15193_v44 }
 0x5dd   : > { %12107 = vmatpush3.bf16.msra.mxu0 %v15233_v38  ;;  %v4940_v25 = vadd.f32 %v4939_v52, %v4938_v35 }
 0x5de   : > { %12109 = vmatprep.subr.bf16.mxu0 %v15244_v8 }
 0x5df   : > { %12135 = vmatpush3.bf16.msra.mxu1 %v15207_v12 }
 0x5e0   : > { %12137 = vmatprep.subr.bf16.mxu1 %v15217_v31 }
 0x5e1   : > { %12111 = vmatpush3.bf16.msra.mxu0 %v15262_v22 }
 0x5e2   : > { %12113 = vmatprep.subr.bf16.mxu0 %v15266_v26 }
 0x5e3   : > { %12139 = vmatpush3.bf16.msra.mxu1 %v15233_v38 }
 0x5e4   : > { %12141 = vmatprep.subr.bf16.mxu1 %v15244_v8 }
 0x5e5   : > { %12115 = vmatpush3.bf16.msra.mxu0 %v15296_v50 }
 0x5e6   : > { %12117 = vmatprep.subr.bf16.mxu0 %v15300_v16 }
 0x5e7   : > { %12143 = vmatpush3.bf16.msra.mxu1 %v15262_v22 }
 0x5e8   : > { %12145 = vmatprep.subr.bf16.mxu1 %v15266_v26 }
 0x5e9   : > { %12119 = vmatpush3.bf16.msra.mxu0 %v15327_v18 }
 0x5ea   : > { %12121 = vmatprep.subr.bf16.mxu0 %v15331_v15 }
 0x5eb   : > { %12147 = vmatpush3.bf16.msra.mxu1 %v15296_v50 }
 0x5ec   : > { %12149 = vmatprep.subr.bf16.mxu1 %v15300_v16 }
 0x5ed   : > { %12123 = vmatpush3.bf16.msra.mxu0 %v15341_v11 }
 0x5ee   : > { %12125 = vmatprep.subr.bf16.mxu0 %v15345_v17 }
 0x5ef   : > { %12151 = vmatpush3.bf16.msra.mxu1 %v15327_v18 }
 0x5f0   : > { %12153 = vmatprep.subr.bf16.mxu1 %v15331_v15 }
 0x5f1   : > { %12127 = vmatpush3.bf16.msra.mxu0 %v15353_v24 }
 0x5f2   : > { %12162 = vmatprep.subr.msk.bf16.mxu0 %vm15359_vm6, %v15185_v20 }
 0x5f3   : > { %12155 = vmatpush3.bf16.msra.mxu1 %v15341_v11 }
 0x5f4   : > { %5019 = vmatmul.mubr.f32.vlgmr.msra.gmra.mrb[4].mxu0 %v4898_v9  ;;  %12157 = vmatprep.subr.bf16.mxu1 %v15345_v17 }
 0x5f7   : > { %12159 = vmatpush3.bf16.msra.mxu1 %v15353_v24 }
 0x5f8   : > { %12210 = vmatprep.subr.msk.bf16.mxu1 %vm15359_vm6, %v15185_v20 }
 0x5fa   : > { %12165 = vmatpush3.bf16.xpose.msk.msra.mxu0 %vm15359_vm6, %v15189_v62  ;;  %5089 = vmatmul.mubr.f32.vlgmr.msra.gmra.mrb[4].mxu1 %v4940_v25 }
 0x5fb   : > { %12168 = vmatprep.subr.msk.bf16.mxu0 %vm15359_vm6, %v15193_v44 }
 0x600   : > { %12213 = vmatpush3.bf16.xpose.msk.msra.mxu1 %vm15359_vm6, %v15189_v62 }
 0x601   : > { %12216 = vmatprep.subr.msk.bf16.mxu1 %vm15359_vm6, %v15193_v44  ;;  %v4513_v44 = vlaneseq }
 0x602   : > { %12171 = vmatpush3.bf16.xpose.msk.msra.mxu0 %vm15359_vm6, %v15207_v12 }
 0x603   : > { %12174 = vmatprep.subr.msk.bf16.mxu0 %vm15359_vm6, %v15217_v31 }
 0x608   : > { %12219 = vmatpush3.bf16.xpose.msk.msra.mxu1 %vm15359_vm6, %v15207_v12  ;;  %v4514_v12 = vshrl.u32 %v4513_v44, 7 }
 0x609   : > { %12222 = vmatprep.subr.msk.bf16.mxu1 %vm15359_vm6, %v15217_v31 }
 0x60a   : > { %12177 = vmatpush3.bf16.xpose.msk.msra.mxu0 %vm15359_vm6, %v15233_v38 }
 0x60b   : > { %12180 = vmatprep.subr.msk.bf16.mxu0 %vm15359_vm6, %v15244_v8 }
 0x610   : > { %12225 = vmatpush3.bf16.xpose.msk.msra.mxu1 %vm15359_vm6, %v15233_v38 }
 0x611   : > { %12228 = vmatprep.subr.msk.bf16.mxu1 %vm15359_vm6, %v15244_v8 }
 0x612   : > { %12183 = vmatpush3.bf16.xpose.msk.msra.mxu0 %vm15359_vm6, %v15262_v22 }
 0x613   : > { %12186 = vmatprep.subr.msk.bf16.mxu0 %vm15359_vm6, %v15266_v26 }
 0x618   : > { %12231 = vmatpush3.bf16.xpose.msk.msra.mxu1 %vm15359_vm6, %v15262_v22 }
 0x619   : > { %12234 = vmatprep.subr.msk.bf16.mxu1 %vm15359_vm6, %v15266_v26  ;;  %v15593_v26 = vsub.s32 0, %v4514_v12 }
 0x61a   : > { %12189 = vmatpush3.bf16.xpose.msk.msra.mxu0 %vm15359_vm6, %v15296_v50 }
 0x61b   : > { %12192 = vmatprep.subr.msk.bf16.mxu0 %vm15359_vm6, %v15300_v16 }
 0x620   : > { %12237 = vmatpush3.bf16.xpose.msk.msra.mxu1 %vm15359_vm6, %v15296_v50 }
 0x621   : > { %12240 = vmatprep.subr.msk.bf16.mxu1 %vm15359_vm6, %v15300_v16  ;;  %v15596_v16 = vsub.s32 1, %v4514_v12 }
 0x622   : > { %12195 = vmatpush3.bf16.xpose.msk.msra.mxu0 %vm15359_vm6, %v15327_v18 }
 0x623   : > { %12198 = vmatprep.subr.msk.bf16.mxu0 %vm15359_vm6, %v15331_v15 }
 0x628   : > { %12243 = vmatpush3.bf16.xpose.msk.msra.mxu1 %vm15359_vm6, %v15327_v18  ;;  %v4127_v18 = vld [vmem:[%s13791_s19] sm:$0x3] }
 0x629   : > { %12246 = vmatprep.subr.msk.bf16.mxu1 %vm15359_vm6, %v15331_v15  ;;  %v4128_v15 = vld [vmem:[%s13800_s23] sm:$0x3]  ;;  %v15607_v40 = vrot.slane %v4127_v18, %v15596_v16 }
 0x62a   : > { %12201 = vmatpush3.bf16.xpose.msk.msra.mxu0 %vm15359_vm6, %v15341_v11  ;;  %v4668_v32 = vrot.slane %v4128_v15, %v15593_v26  ;;  %v15610_v28 = vrot.slane %v4128_v15, %v15596_v16 }
 0x62b   : > { %12204 = vmatprep.subr.msk.bf16.mxu0 %vm15359_vm6, %v15345_v17 }
 0x630   : > { %12249 = vmatpush3.bf16.xpose.msk.msra.mxu1 %vm15359_vm6, %v15341_v11 }
 0x631   : > { %12252 = vmatprep.subr.msk.bf16.mxu1 %vm15359_vm6, %v15345_v17  ;;  %v4641_v17 = vrot.slane %v4127_v18, %v15593_v26 }
 0x632   : > { %12207 = vmatpush3.bf16.xpose.msk.msra.mxu0 %vm15359_vm6, %v15353_v24 }
 0x638   : > { %12255 = vmatpush3.bf16.xpose.msk.msra.mxu1 %vm15359_vm6, %v15353_v24 }
 0x6a7   : > { %v4508_v20 = vpop.f32.mrb[2].mxu0 }
 0x6a8   : > { %v4510_v62 = vpop.f32.mrb[3].mxu0  ;;  %v4516_v50 = vrot.slane %v4508_v20, %v15593_v26 }
 0x6a9   : > { %v15601_v11 = vrot.slane %v4510_v62, %v15593_v26 }
 0x6aa   : > { %v4521_v24 = vsub.f32 %v15201_v49, %v4516_v50  ;;  %v4523_v61 = vsub.f32 %v15211_v42, %v4516_v50  ;;  %v4525_v1 = vsub.f32 %v15223_v57, %v4516_v50  ;;  %v4527_v30 = vsub.f32 %v15236_v23, %v4516_v50 }
 0x6ab   : > { %v4529_v51 = vsub.f32 %v15256_v56, %v4516_v50  ;;  %v4531_v58 = vsub.f32 %v15274_v2, %v4516_v50  ;;  %v4533_v49 = vsub.f32 %v15292_v34, %v4516_v50  ;;  %v4535_v33 = vsub.f32 %v15306_v59, %v4516_v50 }
 0x6ac   : > { %v4522_v53 = vsub.f32 %v15195_v39, %v15601_v11  ;;  %v4524_v42 = vsub.f32 %v15197_v3, %v15601_v11  ;;  %v4526_v57 = vsub.f32 %v15209_v43, %v15601_v11  ;;  %v4528_v23 = vsub.f32 %v15219_v48, %v15601_v11 }
 0x6ad   : > { %v4606_v31 = vpop.f32.mrb[2].mxu1  ;;  %v4530_v2 = vsub.f32 %v15246_v13, %v15601_v11  ;;  %v4532_v34 = vsub.f32 %v15253_v37, %v15601_v11  ;;  %v4534_v39 = vsub.f32 %v15271_v27, %v15601_v11  ;;  %v4536_v19 = vsub.f32 %v15289_v0, %v15601_v11 }
 0x6ae   : > { %v4607_v38 = vadd.f32 1e-05, %v4606_v31  ;;  %v4608_v8 = vpop.f32.mrb[3].mxu1 }
 0x6af   : > { %v4609_v22 = vadd.f32 1e-05, %v4608_v8 }
 0x6b0   : > { %12599 = vrsqrt.f32 %v4607_v38 }
 0x6b1   : > { %12601 = vrsqrt.f32 %v4609_v22 }
 0x6ba   : > { %v12600_v5 = vpop.eup %12599 }
 0x6bb   : > { %v12602_v36 = vpop.eup %12601  ;;  %v4616_v56 = vrot.slane %v12600_v5, %v15593_v26 }
 0x6bc   : > { %v4620_v59 = vrot.slane %v12602_v36, %v15593_v26 }
 0x6bd   : > { %v4621_v3 = vmul.f32 %v4616_v56, %v4521_v24  ;;  %v4623_v14 = vmul.f32 %v4616_v56, %v4523_v61  ;;  %v4625_v47 = vmul.f32 %v4616_v56, %v4525_v1  ;;  %v4627_v43 = vmul.f32 %v4616_v56, %v4527_v30 }
 0x6be   : > { %v4629_v10 = vmul.f32 %v4616_v56, %v4529_v51  ;;  %v4631_v63 = vmul.f32 %v4616_v56, %v4531_v58  ;;  %v4633_v48 = vmul.f32 %v4616_v56, %v4533_v49  ;;  %v4635_v4 = vmul.f32 %v4616_v56, %v4535_v33 }
 0x6bf   : > { %v4648_v41 = vmul.f32 %v4641_v17, %v4621_v3  ;;  %v4650_v6 = vmul.f32 %v4641_v17, %v4623_v14  ;;  %v4652_v54 = vmul.f32 %v4641_v17, %v4625_v47  ;;  %v4654_v13 = vmul.f32 %v4641_v17, %v4627_v43 }
 0x6c0   : > { %v4656_v60 = vmul.f32 %v4641_v17, %v4629_v10  ;;  %v4658_v21 = vmul.f32 %v4641_v17, %v4631_v63  ;;  %v4660_v37 = vmul.f32 %v4641_v17, %v4633_v48  ;;  %v4662_v55 = vmul.f32 %v4641_v17, %v4635_v4 }
 0x6c1   : > { %v15635_v46 = vadd.f32 %v4668_v32, %v4648_v41  ;;  %v15637_v27 = vadd.f32 %v4668_v32, %v4650_v6  ;;  %v15639_v7 = vadd.f32 %v4668_v32, %v4652_v54  ;;  %v15641_v45 = vadd.f32 %v4668_v32, %v4654_v13 }
 0x6c2   : > { %v15645_v29 = vadd.f32 %v4668_v32, %v4656_v60  ;;  %v15647_v9 = vadd.f32 %v4668_v32, %v4658_v21  ;;  %v15649_v35 = vadd.f32 %v4668_v32, %v4660_v37  ;;  %v4622_v62 = vmul.f32 %v4620_v59, %v4522_v53 }
 0x6c3   : > { %v10236_v52 = vmul.f32 -1.442695, %v15635_v46  ;;  %v10238_v25 = vmul.f32 -1.442695, %v15637_v27  ;;  %v10240_v20 = vmul.f32 -1.442695, %v15639_v7  ;;  %v15654_v44 = vadd.f32 %v4668_v32, %v4662_v55 }
 0x6c4   : > { %v10242_v12 = vmul.f32 -1.442695, %v15641_v45  ;;  %v10244_v31 = vmul.f32 -1.442695, %v15645_v29  ;;  %v4624_v0 = vmul.f32 %v4620_v59, %v4524_v42  ;;  %v10246_v38 = vmul.f32 -1.442695, %v15647_v9 }
 0x6c5   : > { %12603 = vpow2.f32 %v10236_v52  ;;  %v10248_v8 = vmul.f32 -1.442695, %v15649_v35  ;;  %v4626_v22 = vmul.f32 %v4620_v59, %v4526_v57  ;;  %v4628_v18 = vmul.f32 %v4620_v59, %v4528_v23 }
 0x6c6   : > { %12605 = vpow2.f32 %v10238_v25  ;;  %v4630_v15 = vmul.f32 %v4620_v59, %v4530_v2  ;;  %v4632_v11 = vmul.f32 %v4620_v59, %v4532_v34  ;;  %v4634_v24 = vmul.f32 %v4620_v59, %v4534_v39 }
 0x6c7   : > { %v10934_v50 = vpop.f32.mrb[4].mxu0  ;;  %12607 = vpow2.f32 %v10240_v20  ;;  %v15660_v32 = vmul.f32 %v4620_v59, %v4536_v19  ;;  %v4649_v61 = vmul.f32 %v15607_v40, %v4622_v62  ;;  %v10250_v1 = vmul.f32 -1.442695, %v15654_v44 }
 0x6c8   : > { %v10935_v17 = vpop.f32.mrb[5].mxu0  ;;  %12609 = vpow2.f32 %v10242_v12  ;;  %v4651_v30 = vmul.f32 %v15607_v40, %v4624_v0  ;;  %v4653_v51 = vmul.f32 %v15607_v40, %v4626_v22  ;;  %v4655_v57 = vmul.f32 %v15607_v40, %v4628_v18 }
 0x6c9   : > { %12611 = vpow2.f32 %v10244_v31  ;;  %v15667_v5 = vadd.f32 %v15610_v28, %v4649_v61  ;;  %v10936_v42 = vadd.f32 %v10935_v17, %v10934_v50  ;;  %v4657_v56 = vmul.f32 %v15607_v40, %v4630_v15 }
 0x6ca   : > { %12613 = vpow2.f32 %v10246_v38  ;;  %v15670_v58 = vadd.f32 %v15610_v28, %v4651_v30  ;;  %v15673_v49 = vadd.f32 %v15610_v28, %v4653_v51  ;;  %v4659_v59 = vmul.f32 %v15607_v40, %v4632_v11 }
 0x6cb   : > { %12615 = vpow2.f32 %v10248_v8  ;;  %v10237_v33 = vmul.f32 -1.442695, %v15667_v5  ;;  %v4661_v47 = vmul.f32 %v15607_v40, %v4634_v24  ;;  %v5094_v43 = vmul.f32 0.001953125, %v10936_v42 }
 0x6cc   : > { %12617 = vpow2.f32 %v10250_v1  ;;  %v10239_v53 = vmul.f32 -1.442695, %v15670_v58  ;;  %v10241_v36 = vmul.f32 -1.442695, %v15673_v49  ;;  %v15683_v4 = vadd.f32 %v15610_v28, %v4655_v57 }
 0x6cd   : > { %12619 = vpow2.f32 %v10237_v33  ;;  %v10969_v2 = vpop.f32.mrb[4].mxu1  ;;  %v15686_v13 = vadd.f32 %v15610_v28, %v4657_v56  ;;  %v5096_v60 = vmul.f32 %v5094_v43, %v5094_v43  ;;  %11004 = vmatprep.mubr.msk.f32.mxu0 %vm4342_vm5, %v5094_v43  ;;  %v15690_v55 = vadd.f32 %v15610_v28, %v4659_v59  ;;  %v15710_v33 = vld [vmem:[#allocation2] sm:$0xfe] }
 0x6ce   : > { %12621 = vpow2.f32 %v10239_v53  ;;  %v10970_v10 = vpop.f32.mrb[5].mxu1  ;;  %11005 = vmatmul.mubr.msk.f32.vlgmr.msra.gmra.mrb[6].mxu0 %vm4342_vm5, %v5094_v43  ;;  %v15694_v25 = vadd.f32 %v15610_v28, %v4661_v47  ;;  %v10243_v31 = vmul.f32 -1.442695, %v15683_v4  ;;  %v4663_v53 = vmul.f32 %v15607_v40, %v15660_v32  ;;  %v15726_v32 = vld [vmem:[#allocation2 + $0x130] sm:$0x1] }
 0x6cf   : > { %v12604_v23 = vpop.eup %12603  ;;  %12623 = vpow2.f32 %v10241_v36  ;;  %v10971_v41 = vadd.f32 %v10970_v10, %v10969_v2  ;;  %v10245_v38 = vmul.f32 -1.442695, %v15686_v13  ;;  %v10247_v22 = vmul.f32 -1.442695, %v15690_v55  ;;  %v15730_v10 = vld [vmem:[#allocation2 + $0x120] sm:$0xfc] }
 0x6d0   : > { %v12606_v34 = vpop.eup %12605  ;;  %v4739_v39 = vadd.f32 1.0, %v12604_v23  ;;  %v10249_v18 = vmul.f32 -1.442695, %v15694_v25  ;;  %v15715_v23 = vld [vmem:[#allocation2 + $0x10] sm:$0x1]  ;;  %v5641_v40 = vrot.slane %v15710_v33, 1 }
 0x6d1   : > { %v12608_v3 = vpop.eup %12607  ;;  %v4741_v14 = vadd.f32 1.0, %v12606_v34  ;;  %v5095_v20 = vmul.f32 0.001953125, %v10971_v41  ;;  %v5642_v43 = vrot.slane %v15715_v23, 1 }
 0x6d2   : > { %v12610_v63 = vpop.eup %12609  ;;  %v4743_v48 = vadd.f32 1.0, %v12608_v3  ;;  %12625 = vrcp.f32 %v4739_v39  ;;  %v15720_v39 = vld [vmem:[#allocation2 + $0x10] sm:$0x3] }
 0x6d3   : > { %v12612_v6 = vpop.eup %12611  ;;  %v4745_v54 = vadd.f32 1.0, %v12610_v63  ;;  %12627 = vrcp.f32 %v4741_v14  ;;  %v5097_v8 = vsub.f32 %v5095_v20, %v5096_v60  ;;  %v15735_v63 = vadd.f32 %v15610_v28, %v4663_v53 }
 0x6d4   : > { %v12614_v21 = vpop.eup %12613  ;;  %v4747_v37 = vadd.f32 1.0, %v12612_v6  ;;  %12629 = vrcp.f32 %v4743_v48  ;;  %v6469_v20 = vrot.slane %v15730_v10, 2 }
 0x6d5   : > { %v12616_v19 = vpop.eup %12615  ;;  %v4749_v52 = vadd.f32 1.0, %v12614_v21  ;;  %12631 = vrcp.f32 %v4745_v54  ;;  %v5098_v15 = vmax.f32 %v5097_v8, 0.0 }
 0x6d6   : > { %v12618_v62 = vpop.eup %12617  ;;  %v4751_v12 = vadd.f32 1.0, %v12616_v19  ;;  %12633 = vrcp.f32 %v4747_v37  ;;  %v5787_v37 = vrot.slane %v15720_v39, 2 }
 0x6d7   : > { %v4753_v0 = vadd.f32 1.0, %v12618_v62  ;;  %12635 = vrcp.f32 %v4749_v52  ;;  %v15699_v50 = vpop.eup %12619  ;;  %11038 = vmatprep.mubr.msk.f32.mxu1 %vm4342_vm5, %v5098_v15 }
 0x6d8   : > { %12637 = vrcp.f32 %v4751_v12  ;;  %v15702_v11 = vpop.eup %12621  ;;  %11039 = vmatmul.mubr.msk.f32.vlgmr.msra.gmra.mrb[6].mxu1 %vm4342_vm5, %v5098_v15 }
 0x6d9   : > { %12639 = vrcp.f32 %v4753_v0  ;;  %v15704_v17 = vpop.eup %12623  ;;  %v10251_v0 = vmul.f32 -1.442695, %v15735_v63  ;;  %v15750_v8 = vadd.f32 1.0, %v15702_v11 }
 0x6da   : > { %12641 = vpow2.f32 %v10243_v31 }
 0x6db   : > { %12643 = vpow2.f32 %v10245_v38  ;;  %v15747_v38 = vadd.f32 1.0, %v15699_v50 }
 0x6dc   : > { %v12626_v24 = vpop.eup %12625  ;;  %12645 = vpow2.f32 %v10247_v22 }
 0x6dd   : > { %v12628_v61 = vpop.eup %12627  ;;  %v4787_v1 = vmul.f32 %v12626_v24, %v15635_v46  ;;  %12647 = vpow2.f32 %v10249_v18  ;;  %v15718_v46 = vld [vmem:[#allocation2] sm:$0xfc]  ;;  %v15753_v18 = vadd.f32 1.0, %v15704_v17 }
 0x6de   : > { %v12630_v30 = vpop.eup %12629  ;;  %v4789_v51 = vmul.f32 %v12628_v61, %v15637_v27  ;;  %12649 = vpow2.f32 %v10251_v0 }
 0x6df   : > { %v12632_v36 = vpop.eup %12631  ;;  %v4791_v42 = vmul.f32 %v12630_v30, %v15639_v7  ;;  %v4819_v57 = vrot.slane %v4787_v1, 7  ;;  %v15724_v7 = vld [vmem:[#allocation2 + $0x120] sm:$0xfe]  ;;  %12651 = vrcp.f32 %v15747_v38 }
 0x6e0   : > { %v12634_v56 = vpop.eup %12633  ;;  %v4793_v2 = vmul.f32 %v12632_v36, %v15641_v45  ;;  %v4821_v34 = vrot.slane %v4789_v51, 7  ;;  %v6325_v28 = vrot.slane %v15724_v7, 1  ;;  %12653 = vrcp.f32 %v15750_v8 }
 0x6e1   : > { %v12636_v27 = vpop.eup %12635  ;;  %v4795_v59 = vmul.f32 %v12634_v56, %v15645_v29  ;;  %v4823_v3 = vrot.slane %v4791_v42, 7  ;;  %4852 = vst [vmem:[#allocation2 + $0x20] sm:$0xfe] %v4819_v57  ;;  %4854 = vst [vmem:[#allocation2 + $0x30] sm:$0x1] %v4819_v57  ;;  %12655 = vrcp.f32 %v15753_v18 }
 0x6e2   : > { %v12638_v14 = vpop.eup %12637  ;;  %v4797_v45 = vmul.f32 %v12636_v27, %v15647_v9  ;;  %v4825_v47 = vrot.slane %v4793_v2, 7  ;;  %4856 = vst [vmem:[#allocation2 + $0x40] sm:$0xfe] %v4821_v34  ;;  %4858 = vst [vmem:[#allocation2 + $0x50] sm:$0x1] %v4821_v34  ;;  %v5786_v9 = vrot.slane %v15718_v46, 2  ;;  %v5643_v2 = vsel %vm5640_vm7, %v5641_v40, %v5642_v43 }
 0x6e3   : > { %v15732_v29 = vld [vmem:[#allocation2 + $0x130] sm:$0x3]  ;;  %v12640_v48 = vpop.eup %12639  ;;  %v4799_v41 = vmul.f32 %v12638_v14, %v15649_v35  ;;  %v4827_v6 = vrot.slane %v4795_v59, 7  ;;  %4860 = vst [vmem:[#allocation2 + $0x60] sm:$0xfe] %v4823_v3  ;;  %v6326_v35 = vrot.slane %v15726_v32, 1 }
 0x6e4   : > { %4862 = vst [vmem:[#allocation2 + $0x70] sm:$0x1] %v4823_v3  ;;  %v12642_v54 = vpop.eup %12641  ;;  %v4801_v60 = vmul.f32 %v12640_v48, %v15654_v44  ;;  %v4829_v21 = vrot.slane %v4797_v45, 7  ;;  %4864 = vst [vmem:[#allocation2 + $0x80] sm:$0xfe] %v4825_v47  ;;  %v6470_v62 = vrot.slane %v15732_v29, 2 }
 0x6e5   : > { %4866 = vst [vmem:[#allocation2 + $0x90] sm:$0x1] %v4825_v47  ;;  %v12644_v19 = vpop.eup %12643  ;;  %v4831_v52 = vrot.slane %v4799_v41, 7  ;;  %4868 = vst [vmem:[#allocation2 + $0xa0] sm:$0xfe] %v4827_v6  ;;  %v5544_v44 = vld [vmem:[#allocation2] sm:$0xff] }
 0x6e6   : > { %4870 = vst [vmem:[#allocation2 + $0xb0] sm:$0x1] %v4827_v6  ;;  %v12646_v12 = vpop.eup %12645  ;;  %v4833_v31 = vrot.slane %v4801_v60, 7  ;;  %4872 = vst [vmem:[#allocation2 + $0xc0] sm:$0xfe] %v4829_v21  ;;  %v15755_v15 = vadd.f32 1.0, %v12642_v54 }
 0x6e7   : > { %4874 = vst [vmem:[#allocation2 + $0xd0] sm:$0x1] %v4829_v21  ;;  %v12648_v22 = vpop.eup %12647  ;;  %4876 = vst [vmem:[#allocation2 + $0xe0] sm:$0xfe] %v4831_v52  ;;  %v15757_v24 = vadd.f32 1.0, %v12644_v19  ;;  %v15759_v61 = vadd.f32 1.0, %v12646_v12 }
 0x6e8   : > { %4878 = vst [vmem:[#allocation2 + $0xf0] sm:$0x1] %v4831_v52  ;;  %4880 = vst [vmem:[#allocation2 + $0x100] sm:$0xfe] %v4833_v31  ;;  %v5546_v1 = vld [vmem:[#allocation2 + $0x20] sm:$0xff]  ;;  %v15761_v51 = vadd.f32 1.0, %v12648_v22  ;;  %12657 = vrcp.f32 %v15755_v15 }
 0x6e9   : > { %4882 = vst [vmem:[#allocation2 + $0x110] sm:$0x1] %v4833_v31  ;;  %v5580_v50 = vld [vmem:[#allocation2 + $0x20] sm:$0xfe]  ;;  %v5582_v30 = vld [vmem:[#allocation2 + $0x30] sm:$0x1]  ;;  %v5560_v53 = vpack.c.bf16 %v5546_v1, %v5544_v44  ;;  %12659 = vrcp.f32 %v15757_v24 }
 0x6ea   : > { %v5548_v11 = vld [vmem:[#allocation2 + $0x40] sm:$0xff]  ;;  %v5586_v42 = vld [vmem:[#allocation2 + $0x50] sm:$0x1]  ;;  %v5647_v57 = vrot.slane %v5580_v50, 1  ;;  %v5648_v34 = vrot.slane %v5582_v30, 1  ;;  %12661 = vrcp.f32 %v15759_v61  ;;  %v15817_v61 = vsel %vm5785_vm8, %v6469_v20, %v6470_v62 }
 0x6eb   : > { %v5584_v36 = vld [vmem:[#allocation2 + $0x40] sm:$0xfe]  ;;  %v5590_v56 = vld [vmem:[#allocation2 + $0x70] sm:$0x1]  ;;  %v5882_v27 = vpack.c.bf16 %v5548_v11, %v5546_v1  ;;  %5568 = vst [vmem:[#allocation3] sm:$0xff] %v5560_v53  ;;  %v5654_v60 = vrot.slane %v5586_v42, 1  ;;  %12663 = vrcp.f32 %v15761_v51 }
 0x6ec   : > { %v5550_v17 = vld [vmem:[#allocation2 + $0x60] sm:$0xff]  ;;  %v5594_v45 = vld [vmem:[#allocation2 + $0x90] sm:$0x1]  ;;  %v5653_v47 = vrot.slane %v5584_v36, 1  ;;  %v5649_v54 = vsel %vm5640_vm7, %v5647_v57, %v5648_v34  ;;  %v5660_v50 = vrot.slane %v5590_v56, 1 }
 0x6ed   : > { %v5588_v23 = vld [vmem:[#allocation2 + $0x60] sm:$0xfe]  ;;  %v5562_v3 = vpack.c.bf16 %v5550_v17, %v5548_v11  ;;  %v5598_v6 = vld [vmem:[#allocation2 + $0xb0] sm:$0x1]  ;;  %5890 = vst [vmem:[#allocation3 + $0x30] sm:$0xff] %v5882_v27  ;;  %v5705_v12 = vpack.c.bf16 %v5649_v54, %v5643_v2  ;;  %v5666_v36 = vrot.slane %v5594_v45, 1 }
 0x6ee   : > { %v5552_v59 = vld [vmem:[#allocation2 + $0x80] sm:$0xff]  ;;  %v5602_v43 = vld [vmem:[#allocation2 + $0xd0] sm:$0x1]  ;;  %v5659_v52 = vrot.slane %v5588_v23, 1  ;;  %v5655_v1 = vsel %vm5640_vm7, %v5653_v47, %v5654_v60  ;;  %v5672_v2 = vrot.slane %v5598_v6, 1 }
 0x6ef   : > { %v5592_v14 = vld [vmem:[#allocation2 + $0x80] sm:$0xfe]  ;;  %v5884_v21 = vpack.c.bf16 %v5552_v59, %v5550_v17  ;;  %5570 = vst [vmem:[#allocation3 + $0x90] sm:$0xff] %v5562_v3  ;;  %6211 = vst [vmem:[#allocation3 + $0x60] sm:$0xff] %v5562_v3  ;;  %v5606_v22 = vld [vmem:[#allocation2 + $0xf0] sm:$0x1] }
 0x6f0   : > { %v5554_v48 = vld [vmem:[#allocation2 + $0xa0] sm:$0xff]  ;;  %v5665_v53 = vrot.slane %v5592_v14, 1  ;;  %5713 = vst [vmem:[#allocation3 + $0x10] sm:$0xff] %v5705_v12  ;;  %v5661_v23 = vsel %vm5640_vm7, %v5659_v52, %v5660_v50  ;;  %v5678_v27 = vrot.slane %v5602_v43, 1  ;;  %v5684_v3 = vrot.slane %v5606_v22, 1 }
 0x6f1   : > { %v5596_v41 = vld [vmem:[#allocation2 + $0xa0] sm:$0xfe]  ;;  %v5564_v33 = vpack.c.bf16 %v5554_v48, %v5552_v59  ;;  %5892 = vst [vmem:[#allocation3 + $0xc0] sm:$0xff] %v5884_v21  ;;  %v5707_v47 = vpack.c.bf16 %v5661_v23, %v5655_v1  ;;  %v5727_v14 = vld [vmem:[#allocation2 + $0x30] sm:$0x3] }
 0x6f2   : > { %v5556_v19 = vld [vmem:[#allocation2 + $0xc0] sm:$0xff]  ;;  %v5671_v42 = vrot.slane %v5596_v41, 1  ;;  %v5667_v56 = vsel %vm5640_vm7, %v5665_v53, %v5666_v36  ;;  %v5731_v54 = vld [vmem:[#allocation2 + $0x50] sm:$0x3]  ;;  %v5793_v53 = vrot.slane %v5727_v14, 2 }
 0x6f3   : > { %v5600_v40 = vld [vmem:[#allocation2 + $0xc0] sm:$0xfe]  ;;  %v5886_v30 = vpack.c.bf16 %v5556_v19, %v5554_v48  ;;  %5572 = vst [vmem:[#allocation3 + $0x120] sm:$0xff] %v5564_v33  ;;  %6213 = vst [vmem:[#allocation3 + $0xf0] sm:$0xff] %v5564_v33  ;;  %v5735_v6 = vld [vmem:[#allocation2 + $0x70] sm:$0x3] }
 0x6f4   : > { %v5558_v31 = vld [vmem:[#allocation2 + $0xe0] sm:$0xff]  ;;  %v5677_v34 = vrot.slane %v5600_v40, 1  ;;  %v5673_v48 = vsel %vm5640_vm7, %v5671_v42, %v5672_v2  ;;  %5715 = vst [vmem:[#allocation3 + $0xa0] sm:$0xff] %v5707_v47  ;;  %v5739_v52 = vld [vmem:[#allocation2 + $0x90] sm:$0x3]  ;;  %v5799_v38 = vrot.slane %v5731_v54, 2 }
 0x6f5   : > { %v5604_v44 = vld [vmem:[#allocation2 + $0xe0] sm:$0xfe]  ;;  %v5566_v11 = vpack.c.bf16 %v5558_v31, %v5556_v19  ;;  %5894 = vst [vmem:[#allocation3 + $0x150] sm:$0xff] %v5886_v30  ;;  %v5709_v40 = vpack.c.bf16 %v5673_v48, %v5667_v56  ;;  %v5743_v22 = vld [vmem:[#allocation2 + $0xb0] sm:$0x3]  ;;  %v5811_v39 = vrot.slane %v5739_v52, 2 }
 0x6f6   : > { %v5880_v57 = vld [vmem:[#allocation2 + $0x100] sm:$0xff]  ;;  %v5683_v0 = vrot.slane %v5604_v44, 1  ;;  %v5679_v41 = vsel %vm5640_vm7, %v5677_v34, %v5678_v27  ;;  %v5747_v50 = vld [vmem:[#allocation2 + $0xd0] sm:$0x3]  ;;  %v5817_v2 = vrot.slane %v5743_v22, 2  ;;  %v15782_v34 = vpop.eup %12649 }
 0x6f7   : > { %v6201_v17 = vld [vmem:[#allocation2 + $0x120] sm:$0xff]  ;;  %5574 = vst [vmem:[#allocation3 + $0x1b0] sm:$0xff] %v5566_v11  ;;  %6215 = vst [vmem:[#allocation3 + $0x180] sm:$0xff] %v5566_v11  ;;  %v5888_v21 = vpack.c.bf16 %v5880_v57, %v5558_v31  ;;  %v5788_v31 = vsel %vm5785_vm8, %v5786_v9, %v5787_v37  ;;  %v5751_v42 = vld [vmem:[#allocation2 + $0xf0] sm:$0x3]  ;;  %v5823_v56 = vrot.slane %v5747_v50, 2 }
 0x6f8   : > { %v5725_v59 = vld [vmem:[#allocation2 + $0x20] sm:$0xfc]  ;;  %v6209_v19 = vpack.c.bf16 %v6201_v17, %v5880_v57  ;;  %v5685_v33 = vsel %vm5640_vm7, %v5683_v0, %v5684_v3  ;;  %5717 = vst [vmem:[#allocation3 + $0x130] sm:$0xff] %v5709_v40  ;;  %v5805_v17 = vrot.slane %v5735_v6, 2  ;;  %v5900_v3 = vld [vmem:[#allocation2 + $0x30] sm:$0x1] }
 0x6f9   : > { %v5729_v45 = vld [vmem:[#allocation2 + $0x40] sm:$0xfc]  ;;  %v5711_v44 = vpack.c.bf16 %v5685_v33, %v5679_v41  ;;  %5896 = vst [vmem:[#allocation3 + $0x1e0] sm:$0xff] %v5888_v21  ;;  %v5792_v11 = vrot.slane %v5725_v59, 2  ;;  %v5904_v54 = vld [vmem:[#allocation2 + $0x50] sm:$0x1] }
 0x6fa   : > { %v5733_v60 = vld [vmem:[#allocation2 + $0x60] sm:$0xfc]  ;;  %6217 = vst [vmem:[#allocation3 + $0x210] sm:$0xff] %v6209_v19  ;;  %v5798_v36 = vrot.slane %v5729_v45, 2  ;;  %v5829_v45 = vrot.slane %v5751_v42, 2 }
 0x6fb   : > { %v5737_v43 = vld [vmem:[#allocation2 + $0x80] sm:$0xfc]  ;;  %5719 = vst [vmem:[#allocation3 + $0x1c0] sm:$0xff] %v5711_v44  ;;  %v5804_v57 = vrot.slane %v5733_v60, 2  ;;  %v5794_v46 = vsel %vm5785_vm8, %v5792_v11, %v5793_v53  ;;  %v5908_v33 = vld [vmem:[#allocation2 + $0x70] sm:$0x1] }
 0x6fc   : > { %v5741_v12 = vld [vmem:[#allocation2 + $0xa0] sm:$0xfc]  ;;  %v5810_v23 = vrot.slane %v5737_v43, 2  ;;  %v5800_v9 = vsel %vm5785_vm8, %v5798_v36, %v5799_v38  ;;  %v5850_v48 = vpack.c.bf16 %v5794_v46, %v5788_v31  ;;  %v5912_v52 = vld [vmem:[#allocation2 + $0x90] sm:$0x1]  ;;  %v5963_v53 = vrot.slane %v5900_v3, 1 }
 0x6fd   : > { %v5745_v1 = vld [vmem:[#allocation2 + $0xc0] sm:$0xfc]  ;;  %v5816_v37 = vrot.slane %v5741_v12, 2  ;;  %v5806_v8 = vsel %vm5785_vm8, %v5804_v57, %v5805_v17  ;;  %v5916_v44 = vld [vmem:[#allocation2 + $0xb0] sm:$0x1]  ;;  %v5969_v38 = vrot.slane %v5904_v54, 1 }
 0x6fe   : > { %v5749_v30 = vld [vmem:[#allocation2 + $0xe0] sm:$0xfc]  ;;  %v5812_v27 = vsel %vm5785_vm8, %v5810_v23, %v5811_v39  ;;  %v5822_v59 = vrot.slane %v5745_v1, 2  ;;  %v5852_v6 = vpack.c.bf16 %v5806_v8, %v5800_v9  ;;  %5858 = vst [vmem:[#allocation3 + $0x20] sm:$0xff] %v5850_v48  ;;  %v5920_v50 = vld [vmem:[#allocation2 + $0xd0] sm:$0x1] }
 0x6ff   : > { %v5898_v0 = vld [vmem:[#allocation2 + $0x20] sm:$0xfe]  ;;  %v5818_v47 = vsel %vm5785_vm8, %v5816_v37, %v5817_v2  ;;  %v5828_v14 = vrot.slane %v5749_v30, 2  ;;  %v15792_v30 = vpop.eup %12651  ;;  %v5924_v11 = vld [vmem:[#allocation2 + $0xf0] sm:$0x1]  ;;  %v5975_v17 = vrot.slane %v5908_v33, 1 }
 0x700   : > { %v5902_v41 = vld [vmem:[#allocation2 + $0x40] sm:$0xfe]  ;;  %v5824_v60 = vsel %vm5785_vm8, %v5822_v59, %v5823_v56  ;;  %v5854_v21 = vpack.c.bf16 %v5818_v47, %v5812_v27  ;;  %5860 = vst [vmem:[#allocation3 + $0xb0] sm:$0xff] %v5852_v6  ;;  %v5962_v18 = vrot.slane %v5898_v0, 1  ;;  %v15794_v42 = vpop.eup %12653  ;;  %v5981_v39 = vrot.slane %v5912_v52, 1 }
 0x701   : > { %v5906_v19 = vld [vmem:[#allocation2 + $0x60] sm:$0xfe]  ;;  %v5830_v43 = vsel %vm5785_vm8, %v5828_v14, %v5829_v45  ;;  %v5968_v36 = vrot.slane %v5902_v41, 1  ;;  %v5928_v46 = vld [vmem:[#allocation2 + $0x110] sm:$0x1]  ;;  %v5987_v2 = vrot.slane %v5916_v44, 1 }
 0x702   : > { %v5910_v40 = vld [vmem:[#allocation2 + $0x80] sm:$0xfe]  ;;  %v5856_v22 = vpack.c.bf16 %v5830_v43, %v5824_v60  ;;  %5862 = vst [vmem:[#allocation3 + $0x140] sm:$0xff] %v5854_v21  ;;  %v5974_v15 = vrot.slane %v5906_v19, 1  ;;  %v5964_v9 = vsel %vm5640_vm7, %v5962_v18, %v5963_v53  ;;  %v5993_v56 = vrot.slane %v5920_v50, 1  ;;  %v12656_v50 = vpop.eup %12655 }
 0x703   : > { %v5914_v12 = vld [vmem:[#allocation2 + $0xa0] sm:$0xfe]  ;;  %v5980_v23 = vrot.slane %v5910_v40, 1  ;;  %v5970_v24 = vsel %vm5640_vm7, %v5968_v36, %v5969_v38  ;;  %v6044_v3 = vld [vmem:[#allocation2 + $0x30] sm:$0x3]  ;;  %v5999_v48 = vrot.slane %v5924_v11, 1  ;;  %v15810_v36 = vsel %vm5640_vm7, %v6325_v28, %v6326_v35  ;;  %v12658_v38 = vpop.eup %12657 }
 0x704   : > { %v5918_v1 = vld [vmem:[#allocation2 + $0xc0] sm:$0xfe]  ;;  %5864 = vst [vmem:[#allocation3 + $0x1d0] sm:$0xff] %v5856_v22  ;;  %v5986_v37 = vrot.slane %v5914_v12, 1  ;;  %v5976_v8 = vsel %vm5640_vm7, %v5974_v15, %v5975_v17  ;;  %v6048_v54 = vld [vmem:[#allocation2 + $0x50] sm:$0x3]  ;;  %v6026_v19 = vpack.c.bf16 %v5970_v24, %v5964_v9  ;;  %v15820_v7 = vpop.eup %12659 }
 0x705   : > { %v5922_v31 = vld [vmem:[#allocation2 + $0xe0] sm:$0xfe]  ;;  %v5982_v27 = vsel %vm5640_vm7, %v5980_v23, %v5981_v39  ;;  %v5992_v59 = vrot.slane %v5918_v1, 1  ;;  %v6005_v21 = vrot.slane %v5928_v46, 1  ;;  %v6052_v40 = vld [vmem:[#allocation2 + $0x70] sm:$0x3] }
 0x706   : > { %v5926_v57 = vld [vmem:[#allocation2 + $0x100] sm:$0xfe]  ;;  %v5988_v14 = vsel %vm5640_vm7, %v5986_v37, %v5987_v2  ;;  %v5998_v45 = vrot.slane %v5922_v31, 1  ;;  %v6028_v33 = vpack.c.bf16 %v5982_v27, %v5976_v8  ;;  %v6056_v44 = vld [vmem:[#allocation2 + $0x90] sm:$0x3]  ;;  %6034 = vst [vmem:[#allocation3 + $0x40] sm:$0xff] %v6026_v19 }
 0x707   : > { %v6042_v0 = vld [vmem:[#allocation2 + $0x20] sm:$0xfc]  ;;  %v6004_v41 = vrot.slane %v5926_v57, 1  ;;  %v5994_v6 = vsel %vm5640_vm7, %v5992_v59, %v5993_v56  ;;  %v6060_v1 = vld [vmem:[#allocation2 + $0xb0] sm:$0x3]  ;;  %v6107_v32 = vrot.slane %v6044_v3, 2 }
 0x708   : > { %v6046_v47 = vld [vmem:[#allocation2 + $0x40] sm:$0xfc]  ;;  %v6000_v52 = vsel %vm5640_vm7, %v5998_v45, %v5999_v48  ;;  %v6030_v12 = vpack.c.bf16 %v5994_v6, %v5988_v14  ;;  %6036 = vst [vmem:[#allocation3 + $0xd0] sm:$0xff] %v6028_v33  ;;  %v6064_v18 = vld [vmem:[#allocation2 + $0xd0] sm:$0x3]  ;;  %v6106_v17 = vrot.slane %v6042_v0, 2 }
 0x709   : > { %v6050_v60 = vld [vmem:[#allocation2 + $0x60] sm:$0xfc]  ;;  %v6006_v31 = vsel %vm5640_vm7, %v6004_v41, %v6005_v21  ;;  %v6068_v15 = vld [vmem:[#allocation2 + $0xf0] sm:$0x3]  ;;  %v6112_v23 = vrot.slane %v6046_v47, 2  ;;  %v6113_v35 = vrot.slane %v6048_v54, 2 }
 0x70a   : > { %v6054_v43 = vld [vmem:[#allocation2 + $0x80] sm:$0xfc]  ;;  %v6032_v57 = vpack.c.bf16 %v6006_v31, %v6000_v52  ;;  %6038 = vst [vmem:[#allocation3 + $0x160] sm:$0xff] %v6030_v12  ;;  %v6118_v39 = vrot.slane %v6050_v60, 2  ;;  %v6119_v29 = vrot.slane %v6052_v40, 2  ;;  %v6108_v20 = vsel %vm5785_vm8, %v6106_v17, %v6107_v32 }
 0x70b   : > { %v6058_v22 = vld [vmem:[#allocation2 + $0xa0] sm:$0xfc]  ;;  %v6124_v46 = vrot.slane %v6054_v43, 2  ;;  %v6072_v10 = vld [vmem:[#allocation2 + $0x110] sm:$0x3]  ;;  %v6125_v62 = vrot.slane %v6056_v44, 2  ;;  %v6114_v24 = vsel %vm5785_vm8, %v6112_v23, %v6113_v35  ;;  %v15831_v44 = vmul.f32 %v15792_v30, %v15667_v5 }
 0x70c   : > { %v6062_v11 = vld [vmem:[#allocation2 + $0xc0] sm:$0xfc]  ;;  %6040 = vst [vmem:[#allocation3 + $0x1f0] sm:$0xff] %v6032_v57  ;;  %v6130_v51 = vrot.slane %v6058_v22, 2  ;;  %v6131_v9 = vrot.slane %v6060_v1, 2  ;;  %v6120_v37 = vsel %vm5785_vm8, %v6118_v39, %v6119_v29  ;;  %v6137_v8 = vrot.slane %v6064_v18, 2 }
 0x70d   : > { %v6066_v53 = vld [vmem:[#allocation2 + $0xe0] sm:$0xfc]  ;;  %v6136_v2 = vrot.slane %v6062_v11, 2  ;;  %v6221_v59 = vld [vmem:[#allocation2 + $0x50] sm:$0x1]  ;;  %v6126_v56 = vsel %vm5785_vm8, %v6124_v46, %v6125_v62  ;;  %v6143_v47 = vrot.slane %v6068_v15, 2  ;;  %v6170_v60 = vpack.c.bf16 %v6114_v24, %v6108_v20  ;;  %v12662_v15 = vpop.eup %12661 }
 0x70e   : > { %v6070_v28 = vld [vmem:[#allocation2 + $0x100] sm:$0xfc]  ;;  %v6132_v0 = vsel %vm5785_vm8, %v6130_v51, %v6131_v9  ;;  %v6142_v3 = vrot.slane %v6066_v53, 2  ;;  %v6225_v45 = vld [vmem:[#allocation2 + $0x70] sm:$0x1]  ;;  %v6149_v54 = vrot.slane %v6072_v10, 2  ;;  %v6172_v33 = vpack.c.bf16 %v6126_v56, %v6120_v37 }
 0x70f   : > { %v6219_v27 = vld [vmem:[#allocation2 + $0x40] sm:$0xfe]  ;;  %v6138_v48 = vsel %vm5785_vm8, %v6136_v2, %v6137_v8  ;;  %v6148_v41 = vrot.slane %v6070_v28, 2  ;;  %v6229_v21 = vld [vmem:[#allocation2 + $0x90] sm:$0x1]  ;;  %6178 = vst [vmem:[#allocation3 + $0x50] sm:$0xff] %v6170_v60  ;;  %v15836_v18 = vmul.f32 %v15794_v42, %v15670_v58  ;;  %v15839_v53 = vmul.f32 %v12656_v50, %v15673_v49  ;;  %v12664_v28 = vpop.eup %12663 }
 0x710   : > { %v6223_v14 = vld [vmem:[#allocation2 + $0x60] sm:$0xfe]  ;;  %v6144_v19 = vsel %vm5785_vm8, %v6142_v3, %v6143_v47  ;;  %v6174_v40 = vpack.c.bf16 %v6138_v48, %v6132_v0  ;;  %v6233_v52 = vld [vmem:[#allocation2 + $0xb0] sm:$0x1]  ;;  %v15842_v57 = vmul.f32 %v12658_v38, %v15683_v4  ;;  %6180 = vst [vmem:[#allocation3 + $0xe0] sm:$0xff] %v6172_v33  ;;  %v6283_v30 = vrot.slane %v6219_v27, 1 }
 0x711   : > { %v6227_v6 = vld [vmem:[#allocation2 + $0x80] sm:$0xfe]  ;;  %v6150_v22 = vsel %vm5785_vm8, %v6148_v41, %v6149_v54  ;;  %v6237_v1 = vld [vmem:[#allocation2 + $0xd0] sm:$0x1]  ;;  %v6284_v32 = vrot.slane %v6221_v59, 1  ;;  %v6289_v23 = vrot.slane %v6223_v14, 1  ;;  %v15852_v54 = vmul.f32 %v15820_v7, %v15686_v13 }
 0x712   : > { %v6231_v43 = vld [vmem:[#allocation2 + $0xa0] sm:$0xfe]  ;;  %v6241_v11 = vld [vmem:[#allocation2 + $0xf0] sm:$0x1]  ;;  %v6176_v17 = vpack.c.bf16 %v6150_v22, %v6144_v19  ;;  %6182 = vst [vmem:[#allocation3 + $0x170] sm:$0xff] %v6174_v40  ;;  %v6290_v39 = vrot.slane %v6225_v45, 1  ;;  %v4798_v40 = vmul.f32 %v12662_v15, %v15690_v55 }
 0x713   : > { %v6235_v12 = vld [vmem:[#allocation2 + $0xc0] sm:$0xfe]  ;;  %v6245_v35 = vld [vmem:[#allocation2 + $0x110] sm:$0x1]  ;;  %v6295_v29 = vrot.slane %v6227_v6, 1  ;;  %v6296_v58 = vrot.slane %v6229_v21, 1  ;;  %v6285_v49 = vsel %vm5640_vm7, %v6283_v30, %v6284_v32 }
 0x714   : > { %v6239_v31 = vld [vmem:[#allocation2 + $0xe0] sm:$0xfe]  ;;  %v6301_v42 = vrot.slane %v6231_v43, 1  ;;  %6184 = vst [vmem:[#allocation3 + $0x200] sm:$0xff] %v6176_v17  ;;  %v6302_v50 = vrot.slane %v6233_v52, 1  ;;  %v6307_v4 = vrot.slane %v6235_v12, 1  ;;  %v6291_v20 = vsel %vm5640_vm7, %v6289_v23, %v6290_v39 }
 0x715   : > { %v6243_v5 = vld [vmem:[#allocation2 + $0x100] sm:$0xfe]  ;;  %v6308_v38 = vrot.slane %v6237_v1, 1  ;;  %v6365_v10 = vld [vmem:[#allocation2 + $0x50] sm:$0x3]  ;;  %v6297_v62 = vsel %vm5640_vm7, %v6295_v29, %v6296_v58  ;;  %v6313_v51 = vrot.slane %v6239_v31, 1  ;;  %v6347_v47 = vpack.c.bf16 %v6291_v20, %v6285_v49 }
 0x716   : > { %v6363_v46 = vld [vmem:[#allocation2 + $0x40] sm:$0xfc]  ;;  %v6314_v9 = vrot.slane %v6241_v11, 1  ;;  %v6369_v37 = vld [vmem:[#allocation2 + $0x70] sm:$0x3]  ;;  %v6303_v2 = vsel %vm5640_vm7, %v6301_v42, %v6302_v50  ;;  %v6319_v27 = vrot.slane %v6243_v5, 1  ;;  %v4800_v43 = vmul.f32 %v12664_v28, %v15694_v25 }
 0x717   : > { %v6367_v24 = vld [vmem:[#allocation2 + $0x60] sm:$0xfc]  ;;  %v6309_v8 = vsel %vm5640_vm7, %v6307_v4, %v6308_v38  ;;  %v6320_v59 = vrot.slane %v6245_v35, 1  ;;  %v6373_v0 = vld [vmem:[#allocation2 + $0x90] sm:$0x3]  ;;  %v6349_v14 = vpack.c.bf16 %v6303_v2, %v6297_v62  ;;  %6355 = vst [vmem:[#allocation3 + $0x70] sm:$0xff] %v6347_v47 }
 0x718   : > { %v6371_v56 = vld [vmem:[#allocation2 + $0x80] sm:$0xfc]  ;;  %v6315_v3 = vsel %vm5640_vm7, %v6313_v51, %v6314_v9  ;;  %v6377_v48 = vld [vmem:[#allocation2 + $0xb0] sm:$0x3]  ;;  %v6427_v22 = vrot.slane %v6363_v46, 2  ;;  %v6428_v1 = vrot.slane %v6365_v10, 2 }
 0x719   : > { %v6375_v45 = vld [vmem:[#allocation2 + $0xa0] sm:$0xfc]  ;;  %v6321_v60 = vsel %vm5640_vm7, %v6319_v27, %v6320_v59  ;;  %v6351_v6 = vpack.c.bf16 %v6315_v3, %v6309_v8  ;;  %v6381_v21 = vld [vmem:[#allocation2 + $0xd0] sm:$0x3]  ;;  %6357 = vst [vmem:[#allocation3 + $0x100] sm:$0xff] %v6349_v14  ;;  %v6433_v31 = vrot.slane %v6367_v24, 2 }
 0x71a   : > { %v6379_v41 = vld [vmem:[#allocation2 + $0xc0] sm:$0xfc]  ;;  %v6385_v33 = vld [vmem:[#allocation2 + $0xf0] sm:$0x3]  ;;  %v6353_v52 = vpack.c.bf16 %v15810_v36, %v6321_v60  ;;  %v6434_v7 = vrot.slane %v6369_v37, 2  ;;  %v6439_v11 = vrot.slane %v6371_v56, 2  ;;  %v6429_v30 = vsel %vm5785_vm8, %v6427_v22, %v6428_v1 }
 0x71b   : > { %v6383_v19 = vld [vmem:[#allocation2 + $0xe0] sm:$0xfc]  ;;  %6359 = vst [vmem:[#allocation3 + $0x190] sm:$0xff] %v6351_v6  ;;  %v6389_v13 = vld [vmem:[#allocation2 + $0x110] sm:$0x3]  ;;  %v6440_v17 = vrot.slane %v6373_v0, 2 }
 0x71c   : > { %v6387_v12 = vld [vmem:[#allocation2 + $0x100] sm:$0xfc]  ;;  %v6445_v5 = vrot.slane %v6375_v45, 2  ;;  %6361 = vst [vmem:[#allocation3 + $0x220] sm:$0xff] %v6353_v52  ;;  %v6446_v55 = vrot.slane %v6377_v48, 2  ;;  %v6451_v15 = vrot.slane %v6379_v41, 2  ;;  %v6435_v36 = vsel %vm5785_vm8, %v6433_v31, %v6434_v7 }
 0x71d   : > { %v6452_v25 = vrot.slane %v6381_v21, 2  ;;  %v6441_v32 = vsel %vm5785_vm8, %v6439_v11, %v6440_v17  ;;  %v6457_v23 = vrot.slane %v6383_v19, 2  ;;  %v6458_v28 = vrot.slane %v6385_v33, 2  ;;  %v5577_v24 = vld [vmem:[#allocation2 + $0x8] sm:$0xfe] }
 0x71e   : > { %v6447_v35 = vsel %vm5785_vm8, %v6445_v5, %v6446_v55  ;;  %v6463_v29 = vrot.slane %v6387_v12, 2  ;;  %v6464_v58 = vrot.slane %v6389_v13, 2  ;;  %v6491_v49 = vpack.c.bf16 %v6435_v36, %v6429_v30  ;;  %v15876_v8 = vld [vmem:[#allocation2 + $0x128] sm:$0xfe]  ;;  %v15878_v27 = vld [vmem:[#allocation2 + $0x138] sm:$0x1] }
 0x71f   : > { %v6453_v39 = vsel %vm5785_vm8, %v6451_v15, %v6452_v25  ;;  %v6459_v42 = vsel %vm5785_vm8, %v6457_v23, %v6458_v28  ;;  %v6493_v50 = vpack.c.bf16 %v6447_v35, %v6441_v32  ;;  %v4754_v4 = vadd.f32 1.0, %v15782_v34  ;;  %v5545_v59 = vld [vmem:[#allocation2 + $0x8] sm:$0xff]  ;;  %v15884_v47 = vld [vmem:[#allocation2 + $0x138] sm:$0x3] }
 0x720   : > { %v6465_v38 = vsel %vm5785_vm8, %v6463_v29, %v6464_v58  ;;  %v6495_v46 = vpack.c.bf16 %v6459_v42, %v6453_v39  ;;  %v4820_v10 = vrot.slane %v15831_v44, 7  ;;  %v4822_v20 = vrot.slane %v15836_v18, 7  ;;  %6499 = vst [vmem:[#allocation3 + $0x80] sm:$0xff] %v6491_v49  ;;  %v5579_v44 = vld [vmem:[#allocation2 + $0x18] sm:$0x1] }
 0x721   : > { %v6497_v62 = vpack.c.bf16 %v15817_v61, %v6465_v38  ;;  %6501 = vst [vmem:[#allocation3 + $0x110] sm:$0xff] %v6493_v50  ;;  %12665 = vrcp.f32 %v4754_v4  ;;  %v4824_v51 = vrot.slane %v15839_v53, 7  ;;  %v4826_v9 = vrot.slane %v15842_v57, 7  ;;  %v15872_v53 = vld [vmem:[#allocation2 + $0x8] sm:$0xfc] }
 0x722   : > { %6503 = vst [vmem:[#allocation3 + $0x1a0] sm:$0xff] %v6495_v46  ;;  %v4828_v34 = vrot.slane %v15852_v54, 7  ;;  %v4830_v37 = vrot.slane %v4798_v40, 7  ;;  %v4832_v2 = vrot.slane %v4800_v43, 7  ;;  %4853 = vst [vmem:[#allocation2 + $0x28] sm:$0xfe] %v4820_v10 }
 0x723   : > { %4855 = vst [vmem:[#allocation2 + $0x38] sm:$0x1] %v4820_v10  ;;  %4857 = vst [vmem:[#allocation2 + $0x48] sm:$0xfe] %v4822_v20  ;;  %v5644_v61 = vrot.slane %v5577_v24, 1  ;;  %v5645_v18 = vrot.slane %v5579_v44, 1 }
 0x724   : > { %4859 = vst [vmem:[#allocation2 + $0x58] sm:$0x1] %v4822_v20  ;;  %6505 = vst [vmem:[#allocation3 + $0x230] sm:$0xff] %v6497_v62  ;;  %v15874_v57 = vld [vmem:[#allocation2 + $0x18] sm:$0x3]  ;;  %v5789_v0 = vrot.slane %v15872_v53, 2 }
 0x725   : > { %4861 = vst [vmem:[#allocation2 + $0x68] sm:$0xfe] %v4824_v51  ;;  %4863 = vst [vmem:[#allocation2 + $0x78] sm:$0x1] %v4824_v51  ;;  %v15880_v56 = vld [vmem:[#allocation2 + $0x128] sm:$0xfc]  ;;  %v5646_v41 = vsel %vm5640_vm7, %v5644_v61, %v5645_v18 }
 0x726   : > { %4865 = vst [vmem:[#allocation2 + $0x88] sm:$0xfe] %v4826_v9  ;;  %4867 = vst [vmem:[#allocation2 + $0x98] sm:$0x1] %v4826_v9  ;;  %v5790_v3 = vrot.slane %v15874_v57, 2  ;;  %v6328_v54 = vrot.slane %v15876_v8, 1 }
 0x727   : > { %4869 = vst [vmem:[#allocation2 + $0xa8] sm:$0xfe] %v4828_v34  ;;  %4871 = vst [vmem:[#allocation2 + $0xb8] sm:$0x1] %v4828_v34  ;;  %v6329_v60 = vrot.slane %v15878_v27, 1  ;;  %v6472_v52 = vrot.slane %v15880_v56, 2 }
 0x728   : > { %4873 = vst [vmem:[#allocation2 + $0xc8] sm:$0xfe] %v4830_v37  ;;  %4875 = vst [vmem:[#allocation2 + $0xd8] sm:$0x1] %v4830_v37  ;;  %v6473_v17 = vrot.slane %v15884_v47, 2 }
 0x729   : > { %4877 = vst [vmem:[#allocation2 + $0xe8] sm:$0xfe] %v4832_v2  ;;  %4879 = vst [vmem:[#allocation2 + $0xf8] sm:$0x1] %v4832_v2  ;;  %v5547_v14 = vld [vmem:[#allocation2 + $0x28] sm:$0xff] }
 0x72a   : > { %v5549_v45 = vld [vmem:[#allocation2 + $0x48] sm:$0xff]  ;;  %v5561_v19 = vpack.c.bf16 %v5547_v14, %v5545_v59  ;;  %v5583_v33 = vld [vmem:[#allocation2 + $0x38] sm:$0x1] }
 0x72b   : > { %v5581_v48 = vld [vmem:[#allocation2 + $0x28] sm:$0xfe]  ;;  %v5883_v43 = vpack.c.bf16 %v5549_v45, %v5547_v14  ;;  %v12666_v12 = vpop.eup %12665  ;;  %v5651_v7 = vrot.slane %v5583_v33, 1  ;;  %v5587_v25 = vld [vmem:[#allocation2 + $0x58] sm:$0x1] }
 0x72c   : > { %v5551_v6 = vld [vmem:[#allocation2 + $0x68] sm:$0xff]  ;;  %v5650_v40 = vrot.slane %v5581_v48, 1  ;;  %v4802_v5 = vmul.f32 %v12666_v12, %v15735_v63  ;;  %5569 = vst [vmem:[#allocation3 + $0x8] sm:$0xff] %v5561_v19  ;;  %v5591_v23 = vld [vmem:[#allocation2 + $0x78] sm:$0x1]  ;;  %v5657_v10 = vrot.slane %v5587_v25, 1 }
 0x72d   : > { %v5553_v21 = vld [vmem:[#allocation2 + $0x88] sm:$0xff]  ;;  %v5563_v13 = vpack.c.bf16 %v5551_v6, %v5549_v45  ;;  %5891 = vst [vmem:[#allocation3 + $0x38] sm:$0xff] %v5883_v43  ;;  %v5595_v35 = vld [vmem:[#allocation2 + $0x98] sm:$0x1]  ;;  %v5663_v62 = vrot.slane %v5591_v23, 1 }
 0x72e   : > { %v5555_v22 = vld [vmem:[#allocation2 + $0xa8] sm:$0xff]  ;;  %v5885_v11 = vpack.c.bf16 %v5553_v21, %v5551_v6  ;;  %v5652_v39 = vsel %vm5640_vm7, %v5650_v40, %v5651_v7  ;;  %v4834_v29 = vrot.slane %v4802_v5, 7  ;;  %v5599_v58 = vld [vmem:[#allocation2 + $0xb8] sm:$0x1]  ;;  %v5669_v9 = vrot.slane %v5595_v35, 1 }
 0x72f   : > { %v5557_v1 = vld [vmem:[#allocation2 + $0xc8] sm:$0xff]  ;;  %v5565_v30 = vpack.c.bf16 %v5555_v22, %v5553_v21  ;;  %5571 = vst [vmem:[#allocation3 + $0x98] sm:$0xff] %v5563_v13  ;;  %6212 = vst [vmem:[#allocation3 + $0x68] sm:$0xff] %v5563_v13  ;;  %v5706_v49 = vpack.c.bf16 %v5652_v39, %v5646_v41  ;;  %v5603_v4 = vld [vmem:[#allocation2 + $0xd8] sm:$0x1]  ;;  %v5675_v34 = vrot.slane %v5599_v58, 1 }
 0x730   : > { %v15890_v31 = vld [vmem:[#allocation2 + $0xe8] sm:$0xff]  ;;  %v5887_v32 = vpack.c.bf16 %v5557_v1, %v5555_v22  ;;  %5893 = vst [vmem:[#allocation3 + $0xc8] sm:$0xff] %v5885_v11  ;;  %4881 = vst [vmem:[#allocation2 + $0x108] sm:$0xfe] %v4834_v29  ;;  %v5607_v46 = vld [vmem:[#allocation2 + $0xf8] sm:$0x1] }
 0x731   : > { %v5567_v55 = vpack.c.bf16 %v15890_v31, %v5557_v1  ;;  %v5585_v15 = vld [vmem:[#allocation2 + $0x48] sm:$0xfe]  ;;  %5573 = vst [vmem:[#allocation3 + $0x128] sm:$0xff] %v5565_v30  ;;  %6214 = vst [vmem:[#allocation3 + $0xf8] sm:$0xff] %v5565_v30  ;;  %v5681_v61 = vrot.slane %v5603_v4, 1  ;;  %v5687_v48 = vrot.slane %v5607_v46, 1 }
 0x732   : > { %v5589_v36 = vld [vmem:[#allocation2 + $0x68] sm:$0xfe]  ;;  %v5656_v42 = vrot.slane %v5585_v15, 1  ;;  %5895 = vst [vmem:[#allocation3 + $0x158] sm:$0xff] %v5887_v32  ;;  %4883 = vst [vmem:[#allocation2 + $0x118] sm:$0x1] %v4834_v29  ;;  %v5791_v15 = vsel %vm5785_vm8, %v5789_v0, %v5790_v3 }
 0x733   : > { %v5593_v28 = vld [vmem:[#allocation2 + $0x88] sm:$0xfe]  ;;  %5575 = vst [vmem:[#allocation3 + $0x1b8] sm:$0xff] %v5567_v55  ;;  %6216 = vst [vmem:[#allocation3 + $0x188] sm:$0xff] %v5567_v55  ;;  %v5662_v20 = vrot.slane %v5589_v36, 1 }
 0x734   : > { %v5597_v63 = vld [vmem:[#allocation2 + $0xa8] sm:$0xfe]  ;;  %v5668_v51 = vrot.slane %v5593_v28, 1  ;;  %5714 = vst [vmem:[#allocation3 + $0x18] sm:$0xff] %v5706_v49  ;;  %v5658_v2 = vsel %vm5640_vm7, %v5656_v42, %v5657_v10  ;;  %v5728_v6 = vld [vmem:[#allocation2 + $0x38] sm:$0x3] }
 0x735   : > { %v5601_v50 = vld [vmem:[#allocation2 + $0xc8] sm:$0xfe]  ;;  %v5674_v24 = vrot.slane %v5597_v63, 1  ;;  %v5664_v44 = vsel %vm5640_vm7, %v5662_v20, %v5663_v62  ;;  %v5732_v40 = vld [vmem:[#allocation2 + $0x58] sm:$0x3]  ;;  %v5796_v32 = vrot.slane %v5728_v6, 2 }
 0x736   : > { %v5605_v38 = vld [vmem:[#allocation2 + $0xe8] sm:$0xfe]  ;;  %v5680_v37 = vrot.slane %v5601_v50, 1  ;;  %v5670_v14 = vsel %vm5640_vm7, %v5668_v51, %v5669_v9  ;;  %v5708_v41 = vpack.c.bf16 %v5664_v44, %v5658_v2  ;;  %v5736_v12 = vld [vmem:[#allocation2 + $0x78] sm:$0x3]  ;;  %v5802_v28 = vrot.slane %v5732_v40, 2 }
 0x737   : > { %v5686_v18 = vrot.slane %v5605_v38, 1  ;;  %v5726_v59 = vld [vmem:[#allocation2 + $0x28] sm:$0xfc]  ;;  %v5676_v45 = vsel %vm5640_vm7, %v5674_v24, %v5675_v34  ;;  %v5740_v13 = vld [vmem:[#allocation2 + $0x98] sm:$0x3]  ;;  %v5808_v29 = vrot.slane %v5736_v12, 2 }
 0x738   : > { %v5730_v21 = vld [vmem:[#allocation2 + $0x48] sm:$0xfc]  ;;  %v5682_v19 = vsel %vm5640_vm7, %v5680_v37, %v5681_v61  ;;  %v5710_v33 = vpack.c.bf16 %v5676_v45, %v5670_v14  ;;  %5716 = vst [vmem:[#allocation3 + $0xa8] sm:$0xff] %v5708_v41  ;;  %v5744_v5 = vld [vmem:[#allocation2 + $0xb8] sm:$0x3]  ;;  %v5795_v36 = vrot.slane %v5726_v59, 2 }
 0x739   : > { %v5734_v43 = vld [vmem:[#allocation2 + $0x68] sm:$0xfc]  ;;  %v5688_v22 = vsel %vm5640_vm7, %v5686_v18, %v5687_v48  ;;  %v5748_v55 = vld [vmem:[#allocation2 + $0xd8] sm:$0x3]  ;;  %v5801_v23 = vrot.slane %v5730_v21, 2  ;;  %v5814_v58 = vrot.slane %v5740_v13, 2 }
 0x73a   : > { %v5738_v1 = vld [vmem:[#allocation2 + $0x88] sm:$0xfc]  ;;  %v5712_v11 = vpack.c.bf16 %v5688_v22, %v5682_v19  ;;  %5718 = vst [vmem:[#allocation3 + $0x138] sm:$0xff] %v5710_v33  ;;  %v5752_v35 = vld [vmem:[#allocation2 + $0xf8] sm:$0x3]  ;;  %v5807_v39 = vrot.slane %v5734_v43, 2  ;;  %v5797_v42 = vsel %vm5785_vm8, %v5795_v36, %v5796_v32 }
 0x73b   : > { %v5742_v7 = vld [vmem:[#allocation2 + $0xa8] sm:$0xfc]  ;;  %v5813_v63 = vrot.slane %v5738_v1, 2  ;;  %v5803_v49 = vsel %vm5785_vm8, %v5801_v23, %v5802_v28  ;;  %v5820_v50 = vrot.slane %v5744_v5, 2  ;;  %v5826_v46 = vrot.slane %v5748_v55, 2 }
 0x73c   : > { %v5746_v30 = vld [vmem:[#allocation2 + $0xc8] sm:$0xfc]  ;;  %5720 = vst [vmem:[#allocation3 + $0x1c8] sm:$0xff] %v5712_v11  ;;  %v5819_v57 = vrot.slane %v5742_v7, 2  ;;  %v5809_v0 = vsel %vm5785_vm8, %v5807_v39, %v5808_v29  ;;  %v5901_v20 = vld [vmem:[#allocation2 + $0x38] sm:$0x1]  ;;  %v5851_v24 = vpack.c.bf16 %v5797_v42, %v5791_v15 }
 0x73d   : > { %v5750_v25 = vld [vmem:[#allocation2 + $0xe8] sm:$0xfc]  ;;  %v5815_v3 = vsel %vm5785_vm8, %v5813_v63, %v5814_v58  ;;  %v5825_v38 = vrot.slane %v5746_v30, 2  ;;  %v5832_v9 = vrot.slane %v5752_v35, 2  ;;  %v5905_v37 = vld [vmem:[#allocation2 + $0x58] sm:$0x1]  ;;  %v5853_v44 = vpack.c.bf16 %v5809_v0, %v5803_v49 }
 0x73e   : > { %v5881_v53 = vld [vmem:[#allocation2 + $0x108] sm:$0xff]  ;;  %v5821_v62 = vsel %vm5785_vm8, %v5819_v57, %v5820_v50  ;;  %v5831_v51 = vrot.slane %v5750_v25, 2  ;;  %v5909_v14 = vld [vmem:[#allocation2 + $0x78] sm:$0x1]  ;;  %5859 = vst [vmem:[#allocation3 + $0x28] sm:$0xff] %v5851_v24  ;;  %v5972_v7 = vrot.slane %v5905_v37, 1 }
 0x73f   : > { %v6202_v4 = vld [vmem:[#allocation2 + $0x128] sm:$0xff]  ;;  %v5827_v2 = vsel %vm5785_vm8, %v5825_v38, %v5826_v46  ;;  %v5855_v61 = vpack.c.bf16 %v5821_v62, %v5815_v3  ;;  %v5889_v18 = vpack.c.bf16 %v5881_v53, %v15890_v31  ;;  %v5913_v41 = vld [vmem:[#allocation2 + $0x98] sm:$0x1]  ;;  %5861 = vst [vmem:[#allocation3 + $0xb8] sm:$0xff] %v5853_v44  ;;  %v5966_v31 = vrot.slane %v5901_v20, 1 }
 0x740   : > { %v5899_v10 = vld [vmem:[#allocation2 + $0x28] sm:$0xfe]  ;;  %v5833_v48 = vsel %vm5785_vm8, %v5831_v51, %v5832_v9  ;;  %v5917_v21 = vld [vmem:[#allocation2 + $0xb8] sm:$0x1]  ;;  %v6210_v19 = vpack.c.bf16 %v6202_v4, %v5881_v53  ;;  %v5978_v30 = vrot.slane %v5909_v14, 1  ;;  %v5984_v15 = vrot.slane %v5913_v41, 1 }
 0x741   : > { %v5903_v34 = vld [vmem:[#allocation2 + $0x48] sm:$0xfe]  ;;  %v5857_v33 = vpack.c.bf16 %v5833_v48, %v5827_v2  ;;  %5863 = vst [vmem:[#allocation3 + $0x148] sm:$0xff] %v5855_v61  ;;  %5897 = vst [vmem:[#allocation3 + $0x1e8] sm:$0xff] %v5889_v18  ;;  %v5921_v43 = vld [vmem:[#allocation2 + $0xd8] sm:$0x1] }
 0x742   : > { %v5907_v59 = vld [vmem:[#allocation2 + $0x68] sm:$0xfe]  ;;  %v5925_v22 = vld [vmem:[#allocation2 + $0xf8] sm:$0x1]  ;;  %v5965_v1 = vrot.slane %v5899_v10, 1  ;;  %v5971_v13 = vrot.slane %v5903_v34, 1 }
 0x743   : > { %v5911_v45 = vld [vmem:[#allocation2 + $0x88] sm:$0xfe]  ;;  %6218 = vst [vmem:[#allocation3 + $0x218] sm:$0xff] %v6210_v19  ;;  %5865 = vst [vmem:[#allocation3 + $0x1d8] sm:$0xff] %v5857_v33  ;;  %v5977_v5 = vrot.slane %v5907_v59, 1  ;;  %v5990_v28 = vrot.slane %v5917_v21, 1 }
 0x744   : > { %v5915_v6 = vld [vmem:[#allocation2 + $0xa8] sm:$0xfe]  ;;  %v5983_v55 = vrot.slane %v5911_v45, 1  ;;  %v5929_v25 = vld [vmem:[#allocation2 + $0x118] sm:$0x1]  ;;  %v5967_v36 = vsel %vm5640_vm7, %v5965_v1, %v5966_v31  ;;  %v5973_v32 = vsel %vm5640_vm7, %v5971_v13, %v5972_v7  ;;  %v5996_v63 = vrot.slane %v5921_v43, 1 }
 0x745   : > { %v5919_v40 = vld [vmem:[#allocation2 + $0xc8] sm:$0xfe]  ;;  %v5989_v23 = vrot.slane %v5915_v6, 1  ;;  %v5979_v35 = vsel %vm5640_vm7, %v5977_v5, %v5978_v30  ;;  %v6045_v42 = vld [vmem:[#allocation2 + $0x38] sm:$0x3]  ;;  %v6002_v53 = vrot.slane %v5925_v22, 1  ;;  %v6027_v10 = vpack.c.bf16 %v5973_v32, %v5967_v36 }
 0x746   : > { %v5923_v12 = vld [vmem:[#allocation2 + $0xe8] sm:$0xfe]  ;;  %v5985_v39 = vsel %vm5640_vm7, %v5983_v55, %v5984_v15  ;;  %v5995_v29 = vrot.slane %v5919_v40, 1  ;;  %v6049_v0 = vld [vmem:[#allocation2 + $0x58] sm:$0x3]  ;;  %v6008_v46 = vrot.slane %v5929_v25, 1 }
 0x747   : > { %v5927_v11 = vld [vmem:[#allocation2 + $0x108] sm:$0xfe]  ;;  %v5991_v57 = vsel %vm5640_vm7, %v5989_v23, %v5990_v28  ;;  %v6001_v50 = vrot.slane %v5923_v12, 1  ;;  %v6029_v20 = vpack.c.bf16 %v5985_v39, %v5979_v35  ;;  %v6053_v62 = vld [vmem:[#allocation2 + $0x78] sm:$0x3]  ;;  %6035 = vst [vmem:[#allocation3 + $0x48] sm:$0xff] %v6027_v10 }
 0x748   : > { %v6043_v58 = vld [vmem:[#allocation2 + $0x28] sm:$0xfc]  ;;  %v6007_v4 = vrot.slane %v5927_v11, 1  ;;  %v5997_v38 = vsel %vm5640_vm7, %v5995_v29, %v5996_v63  ;;  %v6057_v34 = vld [vmem:[#allocation2 + $0x98] sm:$0x3]  ;;  %v6110_v41 = vrot.slane %v6045_v42, 2 }
 0x749   : > { %v6047_v49 = vld [vmem:[#allocation2 + $0x48] sm:$0xfc]  ;;  %v6003_v9 = vsel %vm5640_vm7, %v6001_v50, %v6002_v53  ;;  %v6031_v24 = vpack.c.bf16 %v5997_v38, %v5991_v57  ;;  %v6061_v2 = vld [vmem:[#allocation2 + $0xb8] sm:$0x3]  ;;  %6037 = vst [vmem:[#allocation3 + $0xd8] sm:$0xff] %v6029_v20  ;;  %v6109_v48 = vrot.slane %v6043_v58, 2 }
 0x74a   : > { %v6051_v3 = vld [vmem:[#allocation2 + $0x68] sm:$0xfc]  ;;  %v6009_v44 = vsel %vm5640_vm7, %v6007_v4, %v6008_v46  ;;  %v6065_v18 = vld [vmem:[#allocation2 + $0xd8] sm:$0x3]  ;;  %v6115_v6 = vrot.slane %v6047_v49, 2  ;;  %v6116_v19 = vrot.slane %v6049_v0, 2 }
 0x74b   : > { %v6055_v51 = vld [vmem:[#allocation2 + $0x88] sm:$0xfc]  ;;  %v6033_v14 = vpack.c.bf16 %v6009_v44, %v6003_v9  ;;  %6039 = vst [vmem:[#allocation3 + $0x168] sm:$0xff] %v6031_v24  ;;  %v6069_v45 = vld [vmem:[#allocation2 + $0xf8] sm:$0x3]  ;;  %v6121_v33 = vrot.slane %v6051_v3, 2  ;;  %v6111_v22 = vsel %vm5785_vm8, %v6109_v48, %v6110_v41 }
 0x74c   : > { %v6059_v37 = vld [vmem:[#allocation2 + $0xa8] sm:$0xfc]  ;;  %v6122_v40 = vrot.slane %v6053_v62, 2  ;;  %v6127_v43 = vrot.slane %v6055_v51, 2  ;;  %v6073_v12 = vld [vmem:[#allocation2 + $0x118] sm:$0x3]  ;;  %v6117_v7 = vsel %vm5785_vm8, %v6115_v6, %v6116_v19  ;;  %v6330_v62 = vsel %vm5640_vm7, %v6328_v54, %v6329_v60 }
 0x74d   : > { %v6063_v61 = vld [vmem:[#allocation2 + $0xc8] sm:$0xfc]  ;;  %6041 = vst [vmem:[#allocation3 + $0x1f8] sm:$0xff] %v6033_v14  ;;  %v6128_v1 = vrot.slane %v6057_v34, 2  ;;  %v6133_v31 = vrot.slane %v6059_v37, 2  ;;  %v6134_v13 = vrot.slane %v6061_v2, 2  ;;  %v6171_v58 = vpack.c.bf16 %v6117_v7, %v6111_v22 }
 0x74e   : > { %v6067_v59 = vld [vmem:[#allocation2 + $0xe8] sm:$0xfc]  ;;  %v6123_v11 = vsel %vm5785_vm8, %v6121_v33, %v6122_v40  ;;  %v6139_v5 = vrot.slane %v6063_v61, 2  ;;  %v6140_v30 = vrot.slane %v6065_v18, 2  ;;  %v6222_v15 = vld [vmem:[#allocation2 + $0x58] sm:$0x1] }
 0x74f   : > { %v6071_v21 = vld [vmem:[#allocation2 + $0x108] sm:$0xfc]  ;;  %v6129_v25 = vsel %vm5785_vm8, %v6127_v43, %v6128_v1  ;;  %v6135_v36 = vsel %vm5785_vm8, %v6133_v31, %v6134_v13  ;;  %v6145_v32 = vrot.slane %v6067_v59, 2  ;;  %v6146_v23 = vrot.slane %v6069_v45, 2  ;;  %v6226_v35 = vld [vmem:[#allocation2 + $0x78] sm:$0x1] }
 0x750   : > { %v6220_v55 = vld [vmem:[#allocation2 + $0x48] sm:$0xfe]  ;;  %v6141_v39 = vsel %vm5785_vm8, %v6139_v5, %v6140_v30  ;;  %v6151_v29 = vrot.slane %v6071_v21, 2  ;;  %v6152_v63 = vrot.slane %v6073_v12, 2  ;;  %v6230_v49 = vld [vmem:[#allocation2 + $0x98] sm:$0x1]  ;;  %v6173_v50 = vpack.c.bf16 %v6129_v25, %v6123_v11 }
 0x751   : > { %v6224_v28 = vld [vmem:[#allocation2 + $0x68] sm:$0xfe]  ;;  %v6147_v57 = vsel %vm5785_vm8, %v6145_v32, %v6146_v23  ;;  %v6175_v53 = vpack.c.bf16 %v6141_v39, %v6135_v36  ;;  %v6234_v0 = vld [vmem:[#allocation2 + $0xb8] sm:$0x1]  ;;  %6179 = vst [vmem:[#allocation3 + $0x58] sm:$0xff] %v6171_v58  ;;  %v6286_v24 = vrot.slane %v6220_v55, 1 }
 0x752   : > { %v6228_v42 = vld [vmem:[#allocation2 + $0x88] sm:$0xfe]  ;;  %v6153_v38 = vsel %vm5785_vm8, %v6151_v29, %v6152_v63  ;;  %v6238_v46 = vld [vmem:[#allocation2 + $0xd8] sm:$0x1]  ;;  %6181 = vst [vmem:[#allocation3 + $0xe8] sm:$0xff] %v6173_v50  ;;  %v6287_v34 = vrot.slane %v6222_v15, 1 }
 0x753   : > { %v6232_v4 = vld [vmem:[#allocation2 + $0xa8] sm:$0xfe]  ;;  %v6242_v20 = vld [vmem:[#allocation2 + $0xf8] sm:$0x1]  ;;  %v6177_v51 = vpack.c.bf16 %v6153_v38, %v6147_v57  ;;  %6183 = vst [vmem:[#allocation3 + $0x178] sm:$0xff] %v6175_v53  ;;  %v6292_v37 = vrot.slane %v6224_v28, 1  ;;  %v6474_v28 = vsel %vm5785_vm8, %v6472_v52, %v6473_v17 }
 0x754   : > { %v6236_v3 = vld [vmem:[#allocation2 + $0xc8] sm:$0xfe]  ;;  %v6246_v2 = vld [vmem:[#allocation2 + $0x118] sm:$0x1]  ;;  %v6293_v44 = vrot.slane %v6226_v35, 1  ;;  %v6298_v61 = vrot.slane %v6228_v42, 1  ;;  %v6288_v14 = vsel %vm5640_vm7, %v6286_v24, %v6287_v34 }
 0x755   : > { %v6240_v10 = vld [vmem:[#allocation2 + $0xe8] sm:$0xfe]  ;;  %v6299_v18 = vrot.slane %v6230_v49, 1  ;;  %v6304_v59 = vrot.slane %v6232_v4, 1  ;;  %6185 = vst [vmem:[#allocation3 + $0x208] sm:$0xff] %v6177_v51  ;;  %v6305_v27 = vrot.slane %v6234_v0, 1 }
 0x756   : > { %v6244_v9 = vld [vmem:[#allocation2 + $0x108] sm:$0xfe]  ;;  %v6310_v45 = vrot.slane %v6236_v3, 1  ;;  %v6311_v8 = vrot.slane %v6238_v46, 1  ;;  %v6366_v54 = vld [vmem:[#allocation2 + $0x58] sm:$0x3]  ;;  %v6294_v60 = vsel %vm5640_vm7, %v6292_v37, %v6293_v44 }
 0x757   : > { %v6364_v48 = vld [vmem:[#allocation2 + $0x48] sm:$0xfc]  ;;  %v6300_v41 = vsel %vm5640_vm7, %v6298_v61, %v6299_v18  ;;  %v6316_v6 = vrot.slane %v6240_v10, 1  ;;  %v6317_v21 = vrot.slane %v6242_v20, 1  ;;  %v6370_v33 = vld [vmem:[#allocation2 + $0x78] sm:$0x3]  ;;  %v6306_v40 = vsel %vm5640_vm7, %v6304_v59, %v6305_v27 }
 0x758   : > { %v6368_v19 = vld [vmem:[#allocation2 + $0x68] sm:$0xfc]  ;;  %v6312_v43 = vsel %vm5640_vm7, %v6310_v45, %v6311_v8  ;;  %v6322_v12 = vrot.slane %v6244_v9, 1  ;;  %v6323_v22 = vrot.slane %v6246_v2, 1  ;;  %v6374_v31 = vld [vmem:[#allocation2 + $0x98] sm:$0x3]  ;;  %v6348_v7 = vpack.c.bf16 %v6294_v60, %v6288_v14 }
 0x759   : > { %v6372_v1 = vld [vmem:[#allocation2 + $0x88] sm:$0xfc]  ;;  %v6318_v13 = vsel %vm5640_vm7, %v6316_v6, %v6317_v21  ;;  %v6350_v11 = vpack.c.bf16 %v6306_v40, %v6300_v41  ;;  %v6378_v30 = vld [vmem:[#allocation2 + $0xb8] sm:$0x3]  ;;  %v6430_v29 = vrot.slane %v6364_v48, 2  ;;  %v6431_v63 = vrot.slane %v6366_v54, 2 }
 0x75a   : > { %v6376_v5 = vld [vmem:[#allocation2 + $0xa8] sm:$0xfc]  ;;  %v6324_v15 = vsel %vm5640_vm7, %v6322_v12, %v6323_v22  ;;  %v6352_v25 = vpack.c.bf16 %v6318_v13, %v6312_v43  ;;  %v6382_v36 = vld [vmem:[#allocation2 + $0xd8] sm:$0x3]  ;;  %6356 = vst [vmem:[#allocation3 + $0x78] sm:$0xff] %v6348_v7  ;;  %v6436_v58 = vrot.slane %v6368_v19, 2 }
 0x75b   : > { %v6380_v55 = vld [vmem:[#allocation2 + $0xc8] sm:$0xfc]  ;;  %v6386_v23 = vld [vmem:[#allocation2 + $0xf8] sm:$0x3]  ;;  %v6354_v35 = vpack.c.bf16 %v6330_v62, %v6324_v15  ;;  %6358 = vst [vmem:[#allocation3 + $0x108] sm:$0xff] %v6350_v11  ;;  %v6437_v49 = vrot.slane %v6370_v33, 2  ;;  %v6432_v47 = vsel %vm5785_vm8, %v6430_v29, %v6431_v63 }
 0x75c   : > { %v6384_v32 = vld [vmem:[#allocation2 + $0xe8] sm:$0xfc]  ;;  %6360 = vst [vmem:[#allocation3 + $0x198] sm:$0xff] %v6352_v25  ;;  %v6390_v42 = vld [vmem:[#allocation2 + $0x118] sm:$0x3]  ;;  %v6442_v57 = vrot.slane %v6372_v1, 2 }
 0x75d   : > { %v6388_v39 = vld [vmem:[#allocation2 + $0x108] sm:$0xfc]  ;;  %v6443_v50 = vrot.slane %v6374_v31, 2  ;;  %v6448_v53 = vrot.slane %v6376_v5, 2  ;;  %6362 = vst [vmem:[#allocation3 + $0x228] sm:$0xff] %v6354_v35  ;;  %v6449_v4 = vrot.slane %v6378_v30, 2  ;;  %v6438_v52 = vsel %vm5785_vm8, %v6436_v58, %v6437_v49 }
 0x75e   : > { %v6454_v56 = vrot.slane %v6380_v55, 2  ;;  %v6455_v0 = vrot.slane %v6382_v36, 2  ;;  %v6460_v3 = vrot.slane %v6384_v32, 2  ;;  %v6461_v38 = vrot.slane %v6386_v23, 2  ;;  %v4884_v8 = vld [vmem:[%s13791_s19] sm:$0x3] }
 0x75f   : > { %v6444_v17 = vsel %vm5785_vm8, %v6442_v57, %v6443_v50  ;;  %v6450_v46 = vsel %vm5785_vm8, %v6448_v53, %v6449_v4  ;;  %v6466_v20 = vrot.slane %v6388_v39, 2  ;;  %v6467_v62 = vrot.slane %v6390_v42, 2  ;;  %v4885_v48 = vld [vmem:[%s13800_s23] sm:$0x3]  ;;  %v12735_v41 = vld [vmem:[#allocation4 + $0x40] sm:$0xff]  ;;  %v12737_v12 = vld [vmem:[#allocation4 + $0x50] sm:$0xff] }
 0x760   : > { %v6456_v10 = vsel %vm5785_vm8, %v6454_v56, %v6455_v0  ;;  %v6462_v51 = vsel %vm5785_vm8, %v6460_v3, %v6461_v38  ;;  %v6492_v9 = vpack.c.bf16 %v6438_v52, %v6432_v47  ;;  %v6494_v24 = vpack.c.bf16 %v6450_v46, %v6444_v17  ;;  %v12736_v40 = vld [vmem:[#allocation4 + $0x48] sm:$0xff]  ;;  %v12738_v1 = vld [vmem:[#allocation4 + $0x58] sm:$0xff]  ;;  %v12739_v13 = vld [vmem:[#allocation4 + $0x60] sm:$0xff] }
 0x761   : > { %v6468_v34 = vsel %vm5785_vm8, %v6466_v20, %v6467_v62  ;;  %v6496_v37 = vpack.c.bf16 %v6462_v51, %v6456_v10  ;;  %v5301_v60 = vrot.slane %v4884_v8, %v15593_v26  ;;  %v15963_v21 = vrot.slane %v4885_v48, %v15593_v26  ;;  %v12740_v5 = vld [vmem:[#allocation4 + $0x68] sm:$0xff]  ;;  %v12741_v55 = vld [vmem:[#allocation4 + $0x70] sm:$0xff]  ;;  %v12742_v25 = vld [vmem:[#allocation4 + $0x78] sm:$0xff] }
 0x762   : > { %v6498_v2 = vpack.c.bf16 %v6474_v28, %v6468_v34  ;;  %6500 = vst [vmem:[#allocation3 + $0x88] sm:$0xff] %v6492_v9  ;;  %6502 = vst [vmem:[#allocation3 + $0x118] sm:$0xff] %v6494_v24  ;;  %v15966_v19 = vrot.slane %v4884_v8, %v15596_v16  ;;  %v15969_v33 = vrot.slane %v4885_v48, %v15596_v16  ;;  %v12743_v32 = vld [vmem:[#allocation4 + $0xc0] sm:$0xff]  ;;  %v12744_v28 = vld [vmem:[#allocation4 + $0xc8] sm:$0xff] }
 0x763   : > { %6504 = vst [vmem:[#allocation3 + $0x1a8] sm:$0xff] %v6496_v37  ;;  %v12745_v39 = vld [vmem:[#allocation4 + $0xd0] sm:$0xff]  ;;  %v12746_v63 = vld [vmem:[#allocation4 + $0xd8] sm:$0xff]  ;;  %v12747_v49 = vld [vmem:[#allocation4 + $0xe0] sm:$0xff] }
 0x764   : > { %6506 = vst [vmem:[#allocation3 + $0x238] sm:$0xff] %v6498_v2  ;;  %v12748_v50 = vld [vmem:[#allocation4 + $0xe8] sm:$0xff]  ;;  %v12749_v47 = vld [vmem:[#allocation4 + $0xf0] sm:$0xff] }
 0x7a1   : > { %v5168_v44 = vpop.f32.mrb[6].mxu0 }
 0x7a2   : > { %v5170_v61 = vpop.f32.mrb[7].mxu0  ;;  %v5176_v45 = vrot.slane %v5168_v44, %v15593_v26 }
 0x7a3   : > { %v15959_v54 = vrot.slane %v5170_v61, %v15593_v26 }
 0x7a4   : > { %v5181_v6 = vsub.f32 %v12735_v41, %v5176_v45  ;;  %v5183_v43 = vsub.f32 %v12736_v40, %v5176_v45  ;;  %v5185_v22 = vsub.f32 %v12737_v12, %v5176_v45  ;;  %v5187_v31 = vsub.f32 %v12738_v1, %v5176_v45 }
 0x7a5   : > { %v5189_v7 = vsub.f32 %v12739_v13, %v5176_v45  ;;  %v5191_v30 = vsub.f32 %v12740_v5, %v5176_v45  ;;  %v5193_v15 = vsub.f32 %v12741_v55, %v5176_v45  ;;  %v5195_v36 = vsub.f32 %v12742_v25, %v5176_v45 }
 0x7a6   : > { %v5182_v23 = vsub.f32 %v12743_v32, %v15959_v54  ;;  %v5184_v35 = vsub.f32 %v12744_v28, %v15959_v54  ;;  %v5186_v29 = vsub.f32 %v12745_v39, %v15959_v54  ;;  %v5188_v58 = vsub.f32 %v12746_v63, %v15959_v54 }
 0x7a7   : > { %v5190_v57 = vsub.f32 %v12747_v49, %v15959_v54  ;;  %v5192_v53 = vsub.f32 %v12748_v50, %v15959_v54  ;;  %v5194_v4 = vsub.f32 %v12749_v47, %v15959_v54 }
 0x7ab   : > { %v5266_v18 = vpop.f32.mrb[6].mxu1 }
 0x7ac   : > { %v5267_v59 = vadd.f32 1e-05, %v5266_v18  ;;  %v5268_v14 = vpop.f32.mrb[7].mxu1 }
 0x7ad   : > { %v5269_v27 = vadd.f32 1e-05, %v5268_v14  ;;  %v12750_v14 = vld [vmem:[#allocation4 + $0xf8] sm:$0xff] }
 0x7ae   : > { %12667 = vrsqrt.f32 %v5267_v59 }
 0x7af   : > { %12669 = vrsqrt.f32 %v5269_v27  ;;  %v5196_v27 = vsub.f32 %v12750_v14, %v15959_v54 }
 0x7b8   : > { %v12668_v11 = vpop.eup %12667 }
 0x7b9   : > { %v12670_v16 = vpop.eup %12669  ;;  %v5276_v42 = vrot.slane %v12668_v11, %v15593_v26 }
 0x7ba   : > { %v5280_v56 = vrot.slane %v12670_v16, %v15593_v26 }
 0x7bb   : > { %v5281_v0 = vmul.f32 %v5276_v42, %v5181_v6  ;;  %v5283_v52 = vmul.f32 %v5276_v42, %v5183_v43  ;;  %v5285_v17 = vmul.f32 %v5276_v42, %v5185_v22  ;;  %v5287_v3 = vmul.f32 %v5276_v42, %v5187_v31 }
 0x7bc   : > { %v5289_v38 = vmul.f32 %v5276_v42, %v5189_v7  ;;  %v5291_v46 = vmul.f32 %v5276_v42, %v5191_v30  ;;  %v5293_v10 = vmul.f32 %v5276_v42, %v5193_v15  ;;  %v5295_v20 = vmul.f32 %v5276_v42, %v5195_v36 }
 0x7bd   : > { %v5308_v62 = vmul.f32 %v5301_v60, %v5281_v0  ;;  %v5310_v51 = vmul.f32 %v5301_v60, %v5283_v52  ;;  %v5312_v9 = vmul.f32 %v5301_v60, %v5285_v17  ;;  %v5314_v24 = vmul.f32 %v5301_v60, %v5287_v3 }
 0x7be   : > { %v5316_v34 = vmul.f32 %v5301_v60, %v5289_v38  ;;  %v5318_v37 = vmul.f32 %v5301_v60, %v5291_v46  ;;  %v5320_v2 = vmul.f32 %v5301_v60, %v5293_v10  ;;  %v5322_v44 = vmul.f32 %v5301_v60, %v5295_v20 }
 0x7bf   : > { %v15981_v61 = vadd.f32 %v15963_v21, %v5308_v62  ;;  %v15984_v26 = vadd.f32 %v15963_v21, %v5310_v51  ;;  %v15987_v18 = vadd.f32 %v15963_v21, %v5312_v9  ;;  %v15990_v59 = vadd.f32 %v15963_v21, %v5314_v24 }
 0x7c0   : > { %v15994_v45 = vadd.f32 %v15963_v21, %v5316_v34  ;;  %v15997_v8 = vadd.f32 %v15963_v21, %v5318_v37  ;;  %v16000_v48 = vadd.f32 %v15963_v21, %v5320_v2  ;;  %v5282_v40 = vmul.f32 %v5280_v56, %v5182_v23 }
 0x7c1   : > { %v10318_v60 = vmul.f32 -1.442695, %v15981_v61  ;;  %v10320_v41 = vmul.f32 -1.442695, %v15984_v26  ;;  %v10322_v6 = vmul.f32 -1.442695, %v15987_v18  ;;  %v16006_v43 = vadd.f32 %v15963_v21, %v5322_v44 }
 0x7c2   : > { %v10324_v54 = vmul.f32 -1.442695, %v15990_v59  ;;  %v10326_v12 = vmul.f32 -1.442695, %v15994_v45  ;;  %v5284_v22 = vmul.f32 %v5280_v56, %v5184_v35  ;;  %v10328_v1 = vmul.f32 -1.442695, %v15997_v8 }
 0x7c3   : > { %12671 = vpow2.f32 %v10318_v60  ;;  %v10330_v31 = vmul.f32 -1.442695, %v16000_v48  ;;  %v5286_v13 = vmul.f32 %v5280_v56, %v5186_v29  ;;  %v5288_v7 = vmul.f32 %v5280_v56, %v5188_v58 }
 0x7c4   : > { %12673 = vpow2.f32 %v10320_v41  ;;  %v5290_v11 = vmul.f32 %v5280_v56, %v5190_v57  ;;  %v5292_v5 = vmul.f32 %v5280_v56, %v5192_v53  ;;  %v5294_v30 = vmul.f32 %v5280_v56, %v5194_v4 }
 0x7c5   : > { %12675 = vpow2.f32 %v10322_v6  ;;  %v16012_v55 = vmul.f32 %v5280_v56, %v5196_v27  ;;  %v5309_v21 = vmul.f32 %v15966_v19, %v5282_v40  ;;  %v10332_v15 = vmul.f32 -1.442695, %v16006_v43 }
 0x7c6   : > { %12677 = vpow2.f32 %v10324_v54  ;;  %v5311_v25 = vmul.f32 %v15966_v19, %v5284_v22  ;;  %v5313_v36 = vmul.f32 %v15966_v19, %v5286_v13  ;;  %v5315_v29 = vmul.f32 %v15966_v19, %v5288_v7 }
 0x7c7   : > { %12679 = vpow2.f32 %v10326_v12  ;;  %v16019_v32 = vadd.f32 %v15969_v33, %v5309_v21  ;;  %v5317_v58 = vmul.f32 %v15966_v19, %v5290_v11  ;;  %v5319_v57 = vmul.f32 %v15966_v19, %v5292_v5  ;;  %v16061_v11 = vld [vmem:[#allocation2 + $0x140] sm:$0xfe]  ;;  %v16063_v5 = vld [vmem:[#allocation2 + $0x150] sm:$0x1] }
 0x7c8   : > { %12681 = vpow2.f32 %v10328_v1  ;;  %v16022_v23 = vadd.f32 %v15969_v33, %v5311_v25  ;;  %v16025_v16 = vadd.f32 %v15969_v33, %v5313_v36  ;;  %v5321_v47 = vmul.f32 %v15966_v19, %v5294_v30  ;;  %v16068_v25 = vld [vmem:[#allocation2 + $0x150] sm:$0x3] }
 0x7c9   : > { %12683 = vpow2.f32 %v10330_v31  ;;  %v10319_v28 = vmul.f32 -1.442695, %v16019_v32  ;;  %v16035_v0 = vadd.f32 %v15969_v33, %v5315_v29  ;;  %v16038_v3 = vadd.f32 %v15969_v33, %v5317_v58  ;;  %v16077_v29 = vld [vmem:[#allocation2 + $0x260] sm:$0xfc] }
 0x7ca   : > { %12685 = vpow2.f32 %v10332_v15  ;;  %v10321_v35 = vmul.f32 -1.442695, %v16022_v23  ;;  %v10323_v39 = vmul.f32 -1.442695, %v16025_v16  ;;  %v16041_v10 = vadd.f32 %v15969_v33, %v5319_v57 }
 0x7cb   : > { %12687 = vpow2.f32 %v10319_v28  ;;  %v16044_v51 = vadd.f32 %v15969_v33, %v5321_v47  ;;  %v10325_v34 = vmul.f32 -1.442695, %v16035_v0  ;;  %v10327_v2 = vmul.f32 -1.442695, %v16038_v3 }
 0x7cc   : > { %12689 = vpow2.f32 %v10321_v35  ;;  %v10329_v44 = vmul.f32 -1.442695, %v16041_v10  ;;  %v5323_v1 = vmul.f32 %v15966_v19, %v16012_v55  ;;  %v16073_v55 = vld [vmem:[#allocation2 + $0x270] sm:$0x1] }
 0x7cd   : > { %v12672_v63 = vpop.eup %12671  ;;  %12691 = vpow2.f32 %v10323_v39  ;;  %v10331_v27 = vmul.f32 -1.442695, %v16044_v51 }
 0x7ce   : > { %v12674_v42 = vpop.eup %12673  ;;  %v5399_v49 = vadd.f32 1.0, %v12672_v63  ;;  %v16079_v63 = vld [vmem:[#allocation2 + $0x270] sm:$0x3] }
 0x7cf   : > { %v12676_v50 = vpop.eup %12675  ;;  %v5401_v53 = vadd.f32 1.0, %v12674_v42 }
 0x7d0   : > { %v12678_v4 = vpop.eup %12677  ;;  %v5403_v56 = vadd.f32 1.0, %v12676_v50  ;;  %12693 = vrcp.f32 %v5399_v49 }
 0x7d1   : > { %v12680_v52 = vpop.eup %12679  ;;  %v5405_v17 = vadd.f32 1.0, %v12678_v4  ;;  %12695 = vrcp.f32 %v5401_v53  ;;  %v6749_v4 = vrot.slane %v16068_v25, 2 }
 0x7d2   : > { %v12682_v38 = vpop.eup %12681  ;;  %v5407_v46 = vadd.f32 1.0, %v12680_v52  ;;  %12697 = vrcp.f32 %v5403_v56 }
 0x7d3   : > { %v12684_v20 = vpop.eup %12683  ;;  %v5409_v62 = vadd.f32 1.0, %v12682_v38  ;;  %12699 = vrcp.f32 %v5405_v17  ;;  %v7431_v17 = vrot.slane %v16077_v29, 2  ;;  %v7432_v38 = vrot.slane %v16079_v63, 2 }
 0x7d4   : > { %v12686_v9 = vpop.eup %12685  ;;  %v5411_v24 = vadd.f32 1.0, %v12684_v20  ;;  %12701 = vrcp.f32 %v5407_v46 }
 0x7d5   : > { %v5413_v37 = vadd.f32 1.0, %v12686_v9  ;;  %12703 = vrcp.f32 %v5409_v62  ;;  %v16049_v14 = vpop.eup %12687 }
 0x7d6   : > { %12705 = vrcp.f32 %v5411_v24  ;;  %v16052_v60 = vpop.eup %12689  ;;  %v16095_v9 = vadd.f32 1.0, %v16049_v14 }
 0x7d7   : > { %12707 = vrcp.f32 %v5413_v37  ;;  %v16054_v41 = vpop.eup %12691  ;;  %v16098_v24 = vadd.f32 1.0, %v16052_v60 }
 0x7d8   : > { %12709 = vpow2.f32 %v10325_v34  ;;  %v16101_v37 = vadd.f32 1.0, %v16054_v41 }
 0x7d9   : > { %12711 = vpow2.f32 %v10327_v2 }
 0x7da   : > { %v12694_v6 = vpop.eup %12693  ;;  %12713 = vpow2.f32 %v10329_v44 }
 0x7db   : > { %v12696_v40 = vpop.eup %12695  ;;  %v5447_v54 = vmul.f32 %v12694_v6, %v15981_v61  ;;  %12715 = vpow2.f32 %v10331_v27  ;;  %v16066_v61 = vld [vmem:[#allocation2 + $0x140] sm:$0xfc] }
 0x7dc   : > { %v12698_v12 = vpop.eup %12697  ;;  %v5449_v22 = vmul.f32 %v12696_v40, %v15984_v26  ;;  %v6748_v57 = vrot.slane %v16066_v61, 2 }
 0x7dd   : > { %v12700_v31 = vpop.eup %12699  ;;  %v5451_v13 = vmul.f32 %v12698_v12, %v15987_v18  ;;  %v5479_v7 = vrot.slane %v5447_v54, 7  ;;  %v16071_v18 = vld [vmem:[#allocation2 + $0x260] sm:$0xfe] }
 0x7de   : > { %v12702_v30 = vpop.eup %12701  ;;  %v5453_v21 = vmul.f32 %v12700_v31, %v15990_v59  ;;  %v5481_v15 = vrot.slane %v5449_v22, 7  ;;  %v6604_v59 = vrot.slane %v16061_v11, 1 }
 0x7df   : > { %v12704_v26 = vpop.eup %12703  ;;  %v5455_v36 = vmul.f32 %v12702_v30, %v15994_v45  ;;  %v5483_v19 = vrot.slane %v5451_v13, 7  ;;  %5512 = vst [vmem:[#allocation2 + $0x160] sm:$0xfe] %v5479_v7  ;;  %5514 = vst [vmem:[#allocation2 + $0x170] sm:$0x1] %v5479_v7  ;;  %v16082_v45 = vadd.f32 %v15969_v33, %v5323_v1  ;;  %v7287_v33 = vrot.slane %v16071_v18, 1 }
 0x7e0   : > { %v12706_v28 = vpop.eup %12705  ;;  %v5457_v35 = vmul.f32 %v12704_v26, %v15997_v8  ;;  %v5485_v39 = vrot.slane %v5453_v21, 7  ;;  %5516 = vst [vmem:[#allocation2 + $0x180] sm:$0xfe] %v5481_v15  ;;  %5518 = vst [vmem:[#allocation2 + $0x190] sm:$0x1] %v5481_v15  ;;  %v6605_v8 = vrot.slane %v16063_v5, 1 }
 0x7e1   : > { %v12708_v58 = vpop.eup %12707  ;;  %v5459_v42 = vmul.f32 %v12706_v28, %v16000_v48  ;;  %v5487_v49 = vrot.slane %v5455_v36, 7  ;;  %5520 = vst [vmem:[#allocation2 + $0x1a0] sm:$0xfe] %v5483_v19  ;;  %5522 = vst [vmem:[#allocation2 + $0x1b0] sm:$0x1] %v5483_v19  ;;  %v7288_v48 = vrot.slane %v16073_v55, 1 }
 0x7e2   : > { %v12710_v50 = vpop.eup %12709  ;;  %v5461_v53 = vmul.f32 %v12708_v58, %v16006_v43  ;;  %v5489_v47 = vrot.slane %v5457_v35, 7  ;;  %5524 = vst [vmem:[#allocation2 + $0x1c0] sm:$0xfe] %v5485_v39  ;;  %5526 = vst [vmem:[#allocation2 + $0x1d0] sm:$0x1] %v5485_v39  ;;  %v6508_v43 = vld [vmem:[#allocation2 + $0x140] sm:$0xff]  ;;  %v6606_v11 = vsel %vm5640_vm7, %v6604_v59, %v6605_v8 }
 0x7e3   : > { %v12712_v56 = vpop.eup %12711  ;;  %v5491_v52 = vrot.slane %v5459_v42, 7  ;;  %5528 = vst [vmem:[#allocation2 + $0x1e0] sm:$0xfe] %v5487_v49  ;;  %5530 = vst [vmem:[#allocation2 + $0x1f0] sm:$0x1] %v5487_v49  ;;  %v16103_v2 = vadd.f32 1.0, %v12710_v50 }
 0x7e4   : > { %v12714_v46 = vpop.eup %12713  ;;  %v5493_v20 = vrot.slane %v5461_v53, 7  ;;  %5532 = vst [vmem:[#allocation2 + $0x200] sm:$0xfe] %v5489_v47  ;;  %5534 = vst [vmem:[#allocation2 + $0x210] sm:$0x1] %v5489_v47  ;;  %v16105_v44 = vadd.f32 1.0, %v12712_v56 }
 0x7e5   : > { %v10333_v62 = vmul.f32 -1.442695, %v16082_v45  ;;  %v12716_v34 = vpop.eup %12715  ;;  %5536 = vst [vmem:[#allocation2 + $0x220] sm:$0xfe] %v5491_v52  ;;  %5538 = vst [vmem:[#allocation2 + $0x230] sm:$0x1] %v5491_v52 }
 0x7e6   : > { %v16107_v27 = vadd.f32 1.0, %v12714_v46  ;;  %5540 = vst [vmem:[#allocation2 + $0x240] sm:$0xfe] %v5493_v20  ;;  %5542 = vst [vmem:[#allocation2 + $0x250] sm:$0x1] %v5493_v20  ;;  %v6510_v6 = vld [vmem:[#allocation2 + $0x160] sm:$0xff] }
 0x7e7   : > { %v6544_v14 = vld [vmem:[#allocation2 + $0x160] sm:$0xfe]  ;;  %v6546_v40 = vld [vmem:[#allocation2 + $0x170] sm:$0x1]  ;;  %v16109_v54 = vadd.f32 1.0, %v12716_v34  ;;  %v6524_v12 = vpack.c.bf16 %v6510_v6, %v6508_v43  ;;  %12717 = vpow2.f32 %v10333_v62 }
 0x7e8   : > { %v6512_v60 = vld [vmem:[#allocation2 + $0x180] sm:$0xff]  ;;  %v6550_v1 = vld [vmem:[#allocation2 + $0x190] sm:$0x1]  ;;  %v6610_v31 = vrot.slane %v6544_v14, 1  ;;  %v6611_v5 = vrot.slane %v6546_v40, 1  ;;  %12719 = vrcp.f32 %v16095_v9 }
 0x7e9   : > { %v6548_v22 = vld [vmem:[#allocation2 + $0x180] sm:$0xfe]  ;;  %v6554_v7 = vld [vmem:[#allocation2 + $0x1b0] sm:$0x1]  ;;  %v6844_v30 = vpack.c.bf16 %v6512_v60, %v6510_v6  ;;  %6532 = vst [vmem:[#allocation3 + $0x240] sm:$0xff] %v6524_v12  ;;  %v6617_v42 = vrot.slane %v6550_v1, 1  ;;  %12721 = vrcp.f32 %v16098_v24 }
 0x7ea   : > { %v6514_v41 = vld [vmem:[#allocation2 + $0x1a0] sm:$0xff]  ;;  %v6558_v36 = vld [vmem:[#allocation2 + $0x1d0] sm:$0x1]  ;;  %v6616_v19 = vrot.slane %v6548_v22, 1  ;;  %v6612_v58 = vsel %vm5640_vm7, %v6610_v31, %v6611_v5  ;;  %v6623_v34 = vrot.slane %v6554_v7, 1  ;;  %12723 = vrcp.f32 %v16101_v37 }
 0x7eb   : > { %v6552_v13 = vld [vmem:[#allocation2 + $0x1a0] sm:$0xfe]  ;;  %v6526_v15 = vpack.c.bf16 %v6514_v41, %v6512_v60  ;;  %v6562_v39 = vld [vmem:[#allocation2 + $0x1f0] sm:$0x1]  ;;  %6852 = vst [vmem:[#allocation3 + $0x270] sm:$0xff] %v6844_v30  ;;  %v6668_v56 = vpack.c.bf16 %v6612_v58, %v6606_v11  ;;  %v6629_v60 = vrot.slane %v6558_v36, 1  ;;  %12725 = vrcp.f32 %v16103_v2 }
 0x7ec   : > { %v6516_v21 = vld [vmem:[#allocation2 + $0x1c0] sm:$0xff]  ;;  %v6566_v8 = vld [vmem:[#allocation2 + $0x210] sm:$0x1]  ;;  %v6622_v47 = vrot.slane %v6552_v13, 1  ;;  %v6618_v43 = vsel %vm5640_vm7, %v6616_v19, %v6617_v42  ;;  %12727 = vrcp.f32 %v16105_v44 }
 0x7ed   : > { %v6556_v26 = vld [vmem:[#allocation2 + $0x1c0] sm:$0xfe]  ;;  %v6846_v49 = vpack.c.bf16 %v6516_v21, %v6514_v41  ;;  %6534 = vst [vmem:[#allocation3 + $0x2d0] sm:$0xff] %v6526_v15  ;;  %7173 = vst [vmem:[#allocation3 + $0x2a0] sm:$0xff] %v6526_v15  ;;  %v6570_v20 = vld [vmem:[#allocation2 + $0x230] sm:$0x1]  ;;  %12729 = vrcp.f32 %v16107_v27  ;;  %v16163_v27 = vsel %vm5785_vm8, %v7431_v17, %v7432_v38 }
 0x7ee   : > { %v6518_v28 = vld [vmem:[#allocation2 + $0x1e0] sm:$0xff]  ;;  %v6628_v40 = vrot.slane %v6556_v26, 1  ;;  %6676 = vst [vmem:[#allocation3 + $0x250] sm:$0xff] %v6668_v56  ;;  %v6624_v31 = vsel %vm5640_vm7, %v6622_v47, %v6623_v34  ;;  %v6635_v41 = vrot.slane %v6562_v39, 1  ;;  %v6641_v11 = vrot.slane %v6566_v8, 1 }
 0x7ef   : > { %v6560_v35 = vld [vmem:[#allocation2 + $0x1e0] sm:$0xfe]  ;;  %v6528_v53 = vpack.c.bf16 %v6518_v28, %v6516_v21  ;;  %6854 = vst [vmem:[#allocation3 + $0x300] sm:$0xff] %v6846_v49  ;;  %v6647_v30 = vrot.slane %v6570_v20, 1  ;;  %v6670_v21 = vpack.c.bf16 %v6624_v31, %v6618_v43  ;;  %v6690_v15 = vld [vmem:[#allocation2 + $0x170] sm:$0x3]  ;;  %12731 = vrcp.f32 %v16109_v54 }
 0x7f0   : > { %v6520_v50 = vld [vmem:[#allocation2 + $0x200] sm:$0xff]  ;;  %v6634_v12 = vrot.slane %v6560_v35, 1  ;;  %v6630_v7 = vsel %vm5640_vm7, %v6628_v40, %v6629_v60  ;;  %v6698_v39 = vld [vmem:[#allocation2 + $0x1b0] sm:$0x3] }
 0x7f1   : > { %v6564_v59 = vld [vmem:[#allocation2 + $0x200] sm:$0xfe]  ;;  %v6848_v6 = vpack.c.bf16 %v6520_v50, %v6518_v28  ;;  %6536 = vst [vmem:[#allocation3 + $0x360] sm:$0xff] %v6528_v53  ;;  %7175 = vst [vmem:[#allocation3 + $0x330] sm:$0xff] %v6528_v53  ;;  %v6694_v28 = vld [vmem:[#allocation2 + $0x190] sm:$0x3]  ;;  %v16128_v31 = vpop.eup %12717 }
 0x7f2   : > { %v6522_v52 = vld [vmem:[#allocation2 + $0x220] sm:$0xff]  ;;  %v6640_v13 = vrot.slane %v6564_v59, 1  ;;  %v6636_v36 = vsel %vm5640_vm7, %v6634_v12, %v6635_v41  ;;  %6678 = vst [vmem:[#allocation3 + $0x2e0] sm:$0xff] %v6670_v21  ;;  %v6702_v59 = vld [vmem:[#allocation2 + $0x1d0] sm:$0x3]  ;;  %v6761_v9 = vrot.slane %v6694_v28, 2 }
 0x7f3   : > { %v6568_v46 = vld [vmem:[#allocation2 + $0x220] sm:$0xfe]  ;;  %v6530_v14 = vpack.c.bf16 %v6522_v52, %v6520_v50  ;;  %6856 = vst [vmem:[#allocation3 + $0x390] sm:$0xff] %v6848_v6  ;;  %v6672_v50 = vpack.c.bf16 %v6636_v36, %v6630_v7  ;;  %v6706_v56 = vld [vmem:[#allocation2 + $0x1f0] sm:$0x3]  ;;  %v6755_v6 = vrot.slane %v6690_v15, 2 }
 0x7f4   : > { %v6842_v22 = vld [vmem:[#allocation2 + $0x240] sm:$0xff]  ;;  %v6646_v62 = vrot.slane %v6568_v46, 1  ;;  %v6642_v19 = vsel %vm5640_vm7, %v6640_v13, %v6641_v11  ;;  %v6710_v20 = vld [vmem:[#allocation2 + $0x210] sm:$0x3]  ;;  %v6767_v12 = vrot.slane %v6698_v39, 2  ;;  %v6773_v25 = vrot.slane %v6702_v59, 2 }
 0x7f5   : > { %v7163_v1 = vld [vmem:[#allocation2 + $0x260] sm:$0xff]  ;;  %6538 = vst [vmem:[#allocation3 + $0x3f0] sm:$0xff] %v6530_v14  ;;  %7177 = vst [vmem:[#allocation3 + $0x3c0] sm:$0xff] %v6530_v14  ;;  %v6850_v58 = vpack.c.bf16 %v6842_v22, %v6522_v52  ;;  %v6750_v52 = vsel %vm5785_vm8, %v6748_v57, %v6749_v4  ;;  %v6714_v40 = vld [vmem:[#allocation2 + $0x230] sm:$0x3]  ;;  %v6785_v11 = vrot.slane %v6710_v20, 2  ;;  %v16138_v20 = vpop.eup %12719 }
 0x7f6   : > { %v6688_v5 = vld [vmem:[#allocation2 + $0x160] sm:$0xfc]  ;;  %v7171_v42 = vpack.c.bf16 %v7163_v1, %v6842_v22  ;;  %v6648_v49 = vsel %vm5640_vm7, %v6646_v62, %v6647_v30  ;;  %6680 = vst [vmem:[#allocation3 + $0x370] sm:$0xff] %v6672_v50  ;;  %v6779_v1 = vrot.slane %v6706_v56, 2  ;;  %v6862_v7 = vld [vmem:[#allocation2 + $0x170] sm:$0x1] }
 0x7f7   : > { %v6692_v26 = vld [vmem:[#allocation2 + $0x180] sm:$0xfc]  ;;  %v6674_v47 = vpack.c.bf16 %v6648_v49, %v6642_v19  ;;  %6858 = vst [vmem:[#allocation3 + $0x420] sm:$0xff] %v6850_v58  ;;  %v6754_v34 = vrot.slane %v6688_v5, 2  ;;  %v6791_v21 = vrot.slane %v6714_v40, 2 }
 0x7f8   : > { %v6696_v35 = vld [vmem:[#allocation2 + $0x1a0] sm:$0xfc]  ;;  %7179 = vst [vmem:[#allocation3 + $0x450] sm:$0xff] %v7171_v42  ;;  %v6760_v14 = vrot.slane %v6692_v26, 2  ;;  %v6866_v36 = vld [vmem:[#allocation2 + $0x190] sm:$0x1] }
 0x7f9   : > { %v6700_v53 = vld [vmem:[#allocation2 + $0x1c0] sm:$0xfc]  ;;  %6682 = vst [vmem:[#allocation3 + $0x400] sm:$0xff] %v6674_v47  ;;  %v6766_v60 = vrot.slane %v6696_v35, 2  ;;  %v6756_v61 = vsel %vm5785_vm8, %v6754_v34, %v6755_v6  ;;  %v6870_v58 = vld [vmem:[#allocation2 + $0x1b0] sm:$0x1] }
 0x7fa   : > { %v6704_v8 = vld [vmem:[#allocation2 + $0x1e0] sm:$0xfc]  ;;  %v6772_v22 = vrot.slane %v6700_v53, 2  ;;  %v6762_v57 = vsel %vm5785_vm8, %v6760_v14, %v6761_v9  ;;  %v6812_v15 = vpack.c.bf16 %v6756_v61, %v6750_v52  ;;  %v6874_v50 = vld [vmem:[#allocation2 + $0x1d0] sm:$0x1]  ;;  %v6931_v6 = vrot.slane %v6866_v36, 1  ;;  %v16140_v14 = vpop.eup %12721 }
 0x7fb   : > { %v6708_v46 = vld [vmem:[#allocation2 + $0x200] sm:$0xfc]  ;;  %v6778_v4 = vrot.slane %v6704_v8, 2  ;;  %v6768_v24 = vsel %vm5785_vm8, %v6766_v60, %v6767_v12  ;;  %v6878_v59 = vld [vmem:[#allocation2 + $0x1f0] sm:$0x1]  ;;  %v6937_v40 = vrot.slane %v6870_v58, 1 }
 0x7fc   : > { %v6712_v43 = vld [vmem:[#allocation2 + $0x220] sm:$0xfc]  ;;  %v6774_v41 = vsel %vm5785_vm8, %v6772_v22, %v6773_v25  ;;  %v6784_v13 = vrot.slane %v6708_v46, 2  ;;  %v6814_v28 = vpack.c.bf16 %v6768_v24, %v6762_v57  ;;  %6820 = vst [vmem:[#allocation3 + $0x260] sm:$0xff] %v6812_v15  ;;  %v6882_v56 = vld [vmem:[#allocation2 + $0x210] sm:$0x1] }
 0x7fd   : > { %v6860_v5 = vld [vmem:[#allocation2 + $0x160] sm:$0xfe]  ;;  %v6780_v62 = vsel %vm5785_vm8, %v6778_v4, %v6779_v1  ;;  %v6790_v30 = vrot.slane %v6712_v43, 2  ;;  %v6886_v52 = vld [vmem:[#allocation2 + $0x230] sm:$0x1]  ;;  %v6925_v43 = vrot.slane %v6862_v7, 1 }
 0x7fe   : > { %v6864_v26 = vld [vmem:[#allocation2 + $0x180] sm:$0xfe]  ;;  %v6786_v19 = vsel %vm5785_vm8, %v6784_v13, %v6785_v11  ;;  %v6816_v35 = vpack.c.bf16 %v6780_v62, %v6774_v41  ;;  %6822 = vst [vmem:[#allocation3 + $0x2f0] sm:$0xff] %v6814_v28  ;;  %v6924_v37 = vrot.slane %v6860_v5, 1  ;;  %v6943_v12 = vrot.slane %v6874_v50, 1 }
 0x7ff   : > { %v6868_v39 = vld [vmem:[#allocation2 + $0x1a0] sm:$0xfe]  ;;  %v6792_v49 = vsel %vm5785_vm8, %v6790_v30, %v6791_v21  ;;  %v6930_v34 = vrot.slane %v6864_v26, 1  ;;  %v6890_v22 = vld [vmem:[#allocation2 + $0x250] sm:$0x1]  ;;  %v6949_v57 = vrot.slane %v6878_v59, 1 }
 0x800   : > { %v6872_v42 = vld [vmem:[#allocation2 + $0x1c0] sm:$0xfe]  ;;  %v6818_v8 = vpack.c.bf16 %v6792_v49, %v6786_v19  ;;  %6824 = vst [vmem:[#allocation3 + $0x380] sm:$0xff] %v6816_v35  ;;  %v6936_v2 = vrot.slane %v6868_v39, 1  ;;  %v6926_v25 = vsel %vm5640_vm7, %v6924_v37, %v6925_v43  ;;  %v6955_v41 = vrot.slane %v6882_v56, 1 }
 0x801   : > { %v6876_v53 = vld [vmem:[#allocation2 + $0x1e0] sm:$0xfe]  ;;  %v6942_v60 = vrot.slane %v6872_v42, 1  ;;  %v6932_v44 = vsel %vm5640_vm7, %v6930_v34, %v6931_v6  ;;  %v7006_v11 = vld [vmem:[#allocation2 + $0x170] sm:$0x3]  ;;  %v6961_v30 = vrot.slane %v6886_v52, 1  ;;  %v16156_v37 = vsel %vm5640_vm7, %v7287_v33, %v7288_v48 }
 0x802   : > { %v6880_v47 = vld [vmem:[#allocation2 + $0x200] sm:$0xfe]  ;;  %6826 = vst [vmem:[#allocation3 + $0x410] sm:$0xff] %v6818_v8  ;;  %v6948_v61 = vrot.slane %v6876_v53, 1  ;;  %v6938_v4 = vsel %vm5640_vm7, %v6936_v2, %v6937_v40  ;;  %v7010_v15 = vld [vmem:[#allocation2 + $0x190] sm:$0x3]  ;;  %v6988_v28 = vpack.c.bf16 %v6932_v44, %v6926_v25  ;;  %v12724_v8 = vpop.eup %12723 }
 0x803   : > { %v6884_v46 = vld [vmem:[#allocation2 + $0x220] sm:$0xfe]  ;;  %v6944_v1 = vsel %vm5640_vm7, %v6942_v60, %v6943_v12  ;;  %v6954_v24 = vrot.slane %v6880_v47, 1  ;;  %v6967_v19 = vrot.slane %v6890_v22, 1  ;;  %v7014_v39 = vld [vmem:[#allocation2 + $0x1b0] sm:$0x3]  ;;  %v12726_v43 = vpop.eup %12725 }
 0x804   : > { %v6888_v9 = vld [vmem:[#allocation2 + $0x240] sm:$0xfe]  ;;  %v6950_v7 = vsel %vm5640_vm7, %v6948_v61, %v6949_v57  ;;  %v6960_v62 = vrot.slane %v6884_v46, 1  ;;  %v6990_v35 = vpack.c.bf16 %v6944_v1, %v6938_v4  ;;  %v7018_v50 = vld [vmem:[#allocation2 + $0x1d0] sm:$0x3]  ;;  %6996 = vst [vmem:[#allocation3 + $0x280] sm:$0xff] %v6988_v28  ;;  %v16166_v18 = vpop.eup %12727 }
 0x805   : > { %v7004_v13 = vld [vmem:[#allocation2 + $0x160] sm:$0xfc]  ;;  %v6966_v21 = vrot.slane %v6888_v9, 1  ;;  %v6956_v36 = vsel %vm5640_vm7, %v6954_v24, %v6955_v41  ;;  %v7022_v59 = vld [vmem:[#allocation2 + $0x1f0] sm:$0x3]  ;;  %v7069_v55 = vrot.slane %v7006_v11, 2 }
 0x806   : > { %v7008_v5 = vld [vmem:[#allocation2 + $0x180] sm:$0xfc]  ;;  %v6962_v42 = vsel %vm5640_vm7, %v6960_v62, %v6961_v30  ;;  %v6992_v49 = vpack.c.bf16 %v6956_v36, %v6950_v7  ;;  %6998 = vst [vmem:[#allocation3 + $0x310] sm:$0xff] %v6990_v35  ;;  %v7026_v46 = vld [vmem:[#allocation2 + $0x210] sm:$0x3]  ;;  %v7068_v9 = vrot.slane %v7004_v13, 2 }
 0x807   : > { %v7012_v26 = vld [vmem:[#allocation2 + $0x1a0] sm:$0xfc]  ;;  %v6968_v47 = vsel %vm5640_vm7, %v6966_v21, %v6967_v19  ;;  %v7030_v6 = vld [vmem:[#allocation2 + $0x230] sm:$0x3]  ;;  %v7074_v2 = vrot.slane %v7008_v5, 2  ;;  %v7075_v48 = vrot.slane %v7010_v15, 2 }
 0x808   : > { %v7016_v58 = vld [vmem:[#allocation2 + $0x1c0] sm:$0xfc]  ;;  %v6994_v34 = vpack.c.bf16 %v6968_v47, %v6962_v42  ;;  %7000 = vst [vmem:[#allocation3 + $0x3a0] sm:$0xff] %v6992_v49  ;;  %v7080_v40 = vrot.slane %v7012_v26, 2  ;;  %v7081_v63 = vrot.slane %v7014_v39, 2  ;;  %v7070_v17 = vsel %vm5785_vm8, %v7068_v9, %v7069_v55 }
 0x809   : > { %v7020_v53 = vld [vmem:[#allocation2 + $0x1e0] sm:$0xfc]  ;;  %v7086_v60 = vrot.slane %v7016_v58, 2  ;;  %v7034_v29 = vld [vmem:[#allocation2 + $0x250] sm:$0x3]  ;;  %v7087_v38 = vrot.slane %v7018_v50, 2  ;;  %v7076_v22 = vsel %vm5785_vm8, %v7074_v2, %v7075_v48  ;;  %v16177_v42 = vmul.f32 %v16138_v20, %v16019_v32 }
 0x80a   : > { %v7024_v56 = vld [vmem:[#allocation2 + $0x200] sm:$0xfc]  ;;  %7002 = vst [vmem:[#allocation3 + $0x430] sm:$0xff] %v6994_v34  ;;  %v7092_v54 = vrot.slane %v7020_v53, 2  ;;  %v7093_v12 = vrot.slane %v7022_v59, 2  ;;  %v7082_v25 = vsel %vm5785_vm8, %v7080_v40, %v7081_v63  ;;  %v7099_v61 = vrot.slane %v7026_v46, 2 }
 0x80b   : > { %v7028_v52 = vld [vmem:[#allocation2 + $0x220] sm:$0xfc]  ;;  %v7098_v44 = vrot.slane %v7024_v56, 2  ;;  %v7183_v4 = vld [vmem:[#allocation2 + $0x190] sm:$0x1]  ;;  %v7088_v1 = vsel %vm5785_vm8, %v7086_v60, %v7087_v38  ;;  %v7105_v13 = vrot.slane %v7030_v6, 2  ;;  %v7132_v21 = vpack.c.bf16 %v7076_v22, %v7070_v17 }
 0x80c   : > { %v7032_v33 = vld [vmem:[#allocation2 + $0x240] sm:$0xfc]  ;;  %v7094_v24 = vsel %vm5785_vm8, %v7092_v54, %v7093_v12  ;;  %v7104_v41 = vrot.slane %v7028_v52, 2  ;;  %v7187_v5 = vld [vmem:[#allocation2 + $0x1b0] sm:$0x1]  ;;  %v7111_v30 = vrot.slane %v7034_v29, 2  ;;  %v7134_v19 = vpack.c.bf16 %v7088_v1, %v7082_v25  ;;  %v12730_v52 = vpop.eup %12729 }
 0x80d   : > { %v7181_v57 = vld [vmem:[#allocation2 + $0x180] sm:$0xfe]  ;;  %v7100_v7 = vsel %vm5785_vm8, %v7098_v44, %v7099_v61  ;;  %v7110_v62 = vrot.slane %v7032_v33, 2  ;;  %v7191_v26 = vld [vmem:[#allocation2 + $0x1d0] sm:$0x1]  ;;  %7140 = vst [vmem:[#allocation3 + $0x290] sm:$0xff] %v7132_v21  ;;  %v16182_v47 = vmul.f32 %v16140_v14, %v16022_v23  ;;  %v16185_v56 = vmul.f32 %v12724_v8, %v16025_v16  ;;  %v12732_v55 = vpop.eup %12731 }
 0x80e   : > { %v7185_v11 = vld [vmem:[#allocation2 + $0x1a0] sm:$0xfe]  ;;  %v7106_v36 = vsel %vm5785_vm8, %v7104_v41, %v7105_v13  ;;  %v7136_v28 = vpack.c.bf16 %v7100_v7, %v7094_v24  ;;  %v7195_v39 = vld [vmem:[#allocation2 + $0x1f0] sm:$0x1]  ;;  %v16188_v46 = vmul.f32 %v12726_v43, %v16035_v0  ;;  %7142 = vst [vmem:[#allocation3 + $0x320] sm:$0xff] %v7134_v19  ;;  %v7245_v20 = vrot.slane %v7181_v57, 1 }
 0x80f   : > { %v7189_v15 = vld [vmem:[#allocation2 + $0x1c0] sm:$0xfe]  ;;  %v7112_v49 = vsel %vm5785_vm8, %v7110_v62, %v7111_v30  ;;  %v7199_v50 = vld [vmem:[#allocation2 + $0x210] sm:$0x1]  ;;  %v7246_v6 = vrot.slane %v7183_v4, 1  ;;  %v7251_v9 = vrot.slane %v7185_v11, 1  ;;  %v16198_v7 = vmul.f32 %v16166_v18, %v16038_v3 }
 0x810   : > { %v7193_v35 = vld [vmem:[#allocation2 + $0x1e0] sm:$0xfe]  ;;  %v7203_v59 = vld [vmem:[#allocation2 + $0x230] sm:$0x1]  ;;  %v7138_v34 = vpack.c.bf16 %v7112_v49, %v7106_v36  ;;  %7144 = vst [vmem:[#allocation3 + $0x3b0] sm:$0xff] %v7136_v28  ;;  %v7252_v33 = vrot.slane %v7187_v5, 1  ;;  %v5458_v36 = vmul.f32 %v12730_v52, %v16041_v10  ;;  %v5460_v19 = vmul.f32 %v12732_v55, %v16044_v51 }
 0x811   : > { %v7197_v58 = vld [vmem:[#allocation2 + $0x200] sm:$0xfe]  ;;  %v7207_v2 = vld [vmem:[#allocation2 + $0x250] sm:$0x1]  ;;  %v7257_v48 = vrot.slane %v7189_v15, 1  ;;  %v7258_v23 = vrot.slane %v7191_v26, 1  ;;  %v7247_v16 = vsel %vm5640_vm7, %v7245_v20, %v7246_v6 }
 0x812   : > { %v7201_v53 = vld [vmem:[#allocation2 + $0x220] sm:$0xfe]  ;;  %v7263_v14 = vrot.slane %v7193_v35, 1  ;;  %7146 = vst [vmem:[#allocation3 + $0x440] sm:$0xff] %v7138_v34  ;;  %v7264_v8 = vrot.slane %v7195_v39, 1  ;;  %v7269_v0 = vrot.slane %v7197_v58, 1  ;;  %v7253_v60 = vsel %vm5640_vm7, %v7251_v9, %v7252_v33 }
 0x813   : > { %v7205_v32 = vld [vmem:[#allocation2 + $0x240] sm:$0xfe]  ;;  %v7270_v43 = vrot.slane %v7199_v50, 1  ;;  %v7327_v63 = vld [vmem:[#allocation2 + $0x190] sm:$0x3]  ;;  %v7259_v29 = vsel %vm5640_vm7, %v7257_v48, %v7258_v23  ;;  %v7275_v17 = vrot.slane %v7201_v53, 1  ;;  %v7309_v24 = vpack.c.bf16 %v7253_v60, %v7247_v16 }
 0x814   : > { %v7325_v40 = vld [vmem:[#allocation2 + $0x180] sm:$0xfc]  ;;  %v7276_v38 = vrot.slane %v7203_v59, 1  ;;  %v7331_v12 = vld [vmem:[#allocation2 + $0x1b0] sm:$0x3]  ;;  %v7265_v22 = vsel %vm5640_vm7, %v7263_v14, %v7264_v8  ;;  %v7281_v44 = vrot.slane %v7205_v32, 1 }
 0x815   : > { %v7329_v54 = vld [vmem:[#allocation2 + $0x1a0] sm:$0xfc]  ;;  %v7271_v25 = vsel %vm5640_vm7, %v7269_v0, %v7270_v43  ;;  %v7282_v61 = vrot.slane %v7207_v2, 1  ;;  %v7335_v4 = vld [vmem:[#allocation2 + $0x1d0] sm:$0x3]  ;;  %v7311_v41 = vpack.c.bf16 %v7265_v22, %v7259_v29  ;;  %7317 = vst [vmem:[#allocation3 + $0x2b0] sm:$0xff] %v7309_v24 }
 0x816   : > { %v7333_v57 = vld [vmem:[#allocation2 + $0x1c0] sm:$0xfc]  ;;  %v7277_v1 = vsel %vm5640_vm7, %v7275_v17, %v7276_v38  ;;  %v7339_v11 = vld [vmem:[#allocation2 + $0x1f0] sm:$0x3]  ;;  %v7389_v39 = vrot.slane %v7325_v40, 2  ;;  %v7390_v58 = vrot.slane %v7327_v63, 2 }
 0x817   : > { %v7337_v13 = vld [vmem:[#allocation2 + $0x1e0] sm:$0xfc]  ;;  %v7283_v62 = vsel %vm5640_vm7, %v7281_v44, %v7282_v61  ;;  %v7313_v30 = vpack.c.bf16 %v7277_v1, %v7271_v25  ;;  %v7343_v21 = vld [vmem:[#allocation2 + $0x210] sm:$0x3]  ;;  %7319 = vst [vmem:[#allocation3 + $0x340] sm:$0xff] %v7311_v41  ;;  %v7395_v49 = vrot.slane %v7329_v54, 2 }
 0x818   : > { %v7341_v5 = vld [vmem:[#allocation2 + $0x200] sm:$0xfc]  ;;  %v7347_v26 = vld [vmem:[#allocation2 + $0x230] sm:$0x3]  ;;  %v7315_v28 = vpack.c.bf16 %v16156_v37, %v7283_v62  ;;  %v7396_v18 = vrot.slane %v7331_v12, 2  ;;  %v7401_v50 = vrot.slane %v7333_v57, 2  ;;  %v7391_v34 = vsel %vm5785_vm8, %v7389_v39, %v7390_v58 }
 0x819   : > { %v7345_v15 = vld [vmem:[#allocation2 + $0x220] sm:$0xfc]  ;;  %7321 = vst [vmem:[#allocation3 + $0x3d0] sm:$0xff] %v7313_v30  ;;  %v7351_v3 = vld [vmem:[#allocation2 + $0x250] sm:$0x3]  ;;  %v7402_v53 = vrot.slane %v7335_v4, 2 }
 0x81a   : > { %v7349_v35 = vld [vmem:[#allocation2 + $0x240] sm:$0xfc]  ;;  %v7407_v59 = vrot.slane %v7337_v13, 2  ;;  %7323 = vst [vmem:[#allocation3 + $0x460] sm:$0xff] %v7315_v28  ;;  %v7408_v10 = vrot.slane %v7339_v11, 2  ;;  %v7413_v52 = vrot.slane %v7341_v5, 2  ;;  %v7397_v37 = vsel %vm5785_vm8, %v7395_v49, %v7396_v18 }
 0x81b   : > { %v7414_v51 = vrot.slane %v7343_v21, 2  ;;  %v7403_v32 = vsel %vm5785_vm8, %v7401_v50, %v7402_v53  ;;  %v7419_v20 = vrot.slane %v7345_v15, 2  ;;  %v7420_v6 = vrot.slane %v7347_v26, 2  ;;  %v6541_v17 = vld [vmem:[#allocation2 + $0x148] sm:$0xfe] }
 0x81c   : > { %v7409_v9 = vsel %vm5785_vm8, %v7407_v59, %v7408_v10  ;;  %v7425_v2 = vrot.slane %v7349_v35, 2  ;;  %v7426_v33 = vrot.slane %v7351_v3, 2  ;;  %v7453_v23 = vpack.c.bf16 %v7397_v37, %v7391_v34  ;;  %v16222_v12 = vld [vmem:[#allocation2 + $0x268] sm:$0xfe]  ;;  %v16224_v22 = vld [vmem:[#allocation2 + $0x278] sm:$0x1] }
 0x81d   : > { %v7415_v55 = vsel %vm5785_vm8, %v7413_v52, %v7414_v51  ;;  %v7421_v48 = vsel %vm5785_vm8, %v7419_v20, %v7420_v6  ;;  %v7455_v14 = vpack.c.bf16 %v7409_v9, %v7403_v32  ;;  %v5414_v16 = vadd.f32 1.0, %v16128_v31  ;;  %v6509_v25 = vld [vmem:[#allocation2 + $0x148] sm:$0xff]  ;;  %v16230_v4 = vld [vmem:[#allocation2 + $0x278] sm:$0x3] }
 0x81e   : > { %v7427_v8 = vsel %vm5785_vm8, %v7425_v2, %v7426_v33  ;;  %v7457_v0 = vpack.c.bf16 %v7421_v48, %v7415_v55  ;;  %v5480_v43 = vrot.slane %v16177_v42, 7  ;;  %v5482_v40 = vrot.slane %v16182_v47, 7  ;;  %7461 = vst [vmem:[#allocation3 + $0x2c0] sm:$0xff] %v7453_v23  ;;  %v6543_v42 = vld [vmem:[#allocation2 + $0x158] sm:$0x1] }
 0x81f   : > { %v7459_v63 = vpack.c.bf16 %v16163_v27, %v7427_v8  ;;  %7463 = vst [vmem:[#allocation3 + $0x350] sm:$0xff] %v7455_v14  ;;  %12733 = vrcp.f32 %v5414_v16  ;;  %v5484_v60 = vrot.slane %v16185_v56, 7  ;;  %v5486_v29 = vrot.slane %v16188_v46, 7  ;;  %v16218_v56 = vld [vmem:[#allocation2 + $0x148] sm:$0xfc] }
 0x820   : > { %7465 = vst [vmem:[#allocation3 + $0x3e0] sm:$0xff] %v7457_v0  ;;  %v5488_v31 = vrot.slane %v16198_v7, 7  ;;  %v5490_v38 = vrot.slane %v5458_v36, 7  ;;  %v5492_v54 = vrot.slane %v5460_v19, 7  ;;  %5513 = vst [vmem:[#allocation2 + $0x168] sm:$0xfe] %v5480_v43 }
 0x821   : > { %5515 = vst [vmem:[#allocation2 + $0x178] sm:$0x1] %v5480_v43  ;;  %5517 = vst [vmem:[#allocation2 + $0x188] sm:$0xfe] %v5482_v40  ;;  %v6607_v27 = vrot.slane %v6541_v17, 1  ;;  %v6608_v47 = vrot.slane %v6543_v42, 1 }
 0x822   : > { %5519 = vst [vmem:[#allocation2 + $0x198] sm:$0x1] %v5482_v40  ;;  %7467 = vst [vmem:[#allocation3 + $0x470] sm:$0xff] %v7459_v63  ;;  %v16220_v46 = vld [vmem:[#allocation2 + $0x158] sm:$0x3]  ;;  %v6751_v61 = vrot.slane %v16218_v56, 2 }
 0x823   : > { %5521 = vst [vmem:[#allocation2 + $0x1a8] sm:$0xfe] %v5484_v60  ;;  %5523 = vst [vmem:[#allocation2 + $0x1b8] sm:$0x1] %v5484_v60  ;;  %v16226_v44 = vld [vmem:[#allocation2 + $0x268] sm:$0xfc]  ;;  %v6609_v13 = vsel %vm5640_vm7, %v6607_v27, %v6608_v47 }
 0x824   : > { %5525 = vst [vmem:[#allocation2 + $0x1c8] sm:$0xfe] %v5486_v29  ;;  %5527 = vst [vmem:[#allocation2 + $0x1d8] sm:$0x1] %v5486_v29  ;;  %v6752_v57 = vrot.slane %v16220_v46, 2  ;;  %v7290_v11 = vrot.slane %v16222_v12, 1 }
 0x825   : > { %5529 = vst [vmem:[#allocation2 + $0x1e8] sm:$0xfe] %v5488_v31  ;;  %5531 = vst [vmem:[#allocation2 + $0x1f8] sm:$0x1] %v5488_v31  ;;  %v7291_v5 = vrot.slane %v16224_v22, 1  ;;  %v7434_v36 = vrot.slane %v16226_v44, 2 }
 0x826   : > { %5533 = vst [vmem:[#allocation2 + $0x208] sm:$0xfe] %v5490_v38  ;;  %5535 = vst [vmem:[#allocation2 + $0x218] sm:$0x1] %v5490_v38  ;;  %v7435_v18 = vrot.slane %v16230_v4, 2 }
 0x827   : > { %5537 = vst [vmem:[#allocation2 + $0x228] sm:$0xfe] %v5492_v54  ;;  %5539 = vst [vmem:[#allocation2 + $0x238] sm:$0x1] %v5492_v54  ;;  %v6511_v1 = vld [vmem:[#allocation2 + $0x168] sm:$0xff] }
 0x828   : > { %v6513_v24 = vld [vmem:[#allocation2 + $0x188] sm:$0xff]  ;;  %v6525_v30 = vpack.c.bf16 %v6511_v1, %v6509_v25  ;;  %v6547_v21 = vld [vmem:[#allocation2 + $0x178] sm:$0x1] }
 0x829   : > { %v6545_v41 = vld [vmem:[#allocation2 + $0x168] sm:$0xfe]  ;;  %v6845_v26 = vpack.c.bf16 %v6513_v24, %v6511_v1  ;;  %v12734_v19 = vpop.eup %12733  ;;  %v6614_v49 = vrot.slane %v6547_v21, 1  ;;  %v6551_v10 = vld [vmem:[#allocation2 + $0x198] sm:$0x1] }
 0x82a   : > { %v6515_v7 = vld [vmem:[#allocation2 + $0x1a8] sm:$0xff]  ;;  %v6613_v15 = vrot.slane %v6545_v41, 1  ;;  %v5462_v50 = vmul.f32 %v12734_v19, %v16082_v45  ;;  %6533 = vst [vmem:[#allocation3 + $0x248] sm:$0xff] %v6525_v30  ;;  %v6555_v37 = vld [vmem:[#allocation2 + $0x1b8] sm:$0x1]  ;;  %v6620_v8 = vrot.slane %v6551_v10, 1 }
 0x82b   : > { %v6517_v62 = vld [vmem:[#allocation2 + $0x1c8] sm:$0xff]  ;;  %v6527_v58 = vpack.c.bf16 %v6515_v7, %v6513_v24  ;;  %6853 = vst [vmem:[#allocation3 + $0x278] sm:$0xff] %v6845_v26  ;;  %v6559_v20 = vld [vmem:[#allocation2 + $0x1d8] sm:$0x1]  ;;  %v6626_v43 = vrot.slane %v6555_v37, 1 }
 0x82c   : > { %v6519_v28 = vld [vmem:[#allocation2 + $0x1e8] sm:$0xff]  ;;  %v6847_v3 = vpack.c.bf16 %v6517_v62, %v6515_v7  ;;  %v6615_v6 = vsel %vm5640_vm7, %v6613_v15, %v6614_v49  ;;  %v5494_v9 = vrot.slane %v5462_v50, 7  ;;  %v6563_v55 = vld [vmem:[#allocation2 + $0x1f8] sm:$0x1]  ;;  %v6632_v63 = vrot.slane %v6559_v20, 1 }
 0x82d   : > { %v6521_v35 = vld [vmem:[#allocation2 + $0x208] sm:$0xff]  ;;  %v6529_v53 = vpack.c.bf16 %v6519_v28, %v6517_v62  ;;  %6535 = vst [vmem:[#allocation3 + $0x2d8] sm:$0xff] %v6527_v58  ;;  %7174 = vst [vmem:[#allocation3 + $0x2a8] sm:$0xff] %v6527_v58  ;;  %v6669_v33 = vpack.c.bf16 %v6615_v6, %v6609_v13  ;;  %v6567_v23 = vld [vmem:[#allocation2 + $0x218] sm:$0x1]  ;;  %v6638_v29 = vrot.slane %v6563_v55, 1 }
 0x82e   : > { %v16236_v39 = vld [vmem:[#allocation2 + $0x228] sm:$0xff]  ;;  %v6849_v51 = vpack.c.bf16 %v6521_v35, %v6519_v28  ;;  %6855 = vst [vmem:[#allocation3 + $0x308] sm:$0xff] %v6847_v3  ;;  %5541 = vst [vmem:[#allocation2 + $0x248] sm:$0xfe] %v5494_v9  ;;  %v6571_v16 = vld [vmem:[#allocation2 + $0x238] sm:$0x1] }
 0x82f   : > { %v6531_v59 = vpack.c.bf16 %v16236_v39, %v6521_v35  ;;  %v6549_v34 = vld [vmem:[#allocation2 + $0x188] sm:$0xfe]  ;;  %6537 = vst [vmem:[#allocation3 + $0x368] sm:$0xff] %v6529_v53  ;;  %7176 = vst [vmem:[#allocation3 + $0x338] sm:$0xff] %v6529_v53  ;;  %v6644_v54 = vrot.slane %v6567_v23, 1  ;;  %v6650_v1 = vrot.slane %v6571_v16, 1  ;;  %v6753_v53 = vsel %vm5785_vm8, %v6751_v61, %v6752_v57 }
 0x830   : > { %v6553_v52 = vld [vmem:[#allocation2 + $0x1a8] sm:$0xfe]  ;;  %v6619_v2 = vrot.slane %v6549_v34, 1  ;;  %6857 = vst [vmem:[#allocation3 + $0x398] sm:$0xff] %v6849_v51  ;;  %5543 = vst [vmem:[#allocation2 + $0x258] sm:$0x1] %v5494_v9 }
 0x831   : > { %v6557_v32 = vld [vmem:[#allocation2 + $0x1c8] sm:$0xfe]  ;;  %6539 = vst [vmem:[#allocation3 + $0x3f8] sm:$0xff] %v6531_v59  ;;  %7178 = vst [vmem:[#allocation3 + $0x3c8] sm:$0xff] %v6531_v59  ;;  %v6625_v0 = vrot.slane %v6553_v52, 1 }
 0x832   : > { %v6561_v45 = vld [vmem:[#allocation2 + $0x1e8] sm:$0xfe]  ;;  %v6631_v40 = vrot.slane %v6557_v32, 1  ;;  %6677 = vst [vmem:[#allocation3 + $0x258] sm:$0xff] %v6669_v33  ;;  %v6621_v31 = vsel %vm5640_vm7, %v6619_v2, %v6620_v8  ;;  %v6691_v41 = vld [vmem:[#allocation2 + $0x178] sm:$0x3] }
 0x833   : > { %v6565_v48 = vld [vmem:[#allocation2 + $0x208] sm:$0xfe]  ;;  %v6637_v60 = vrot.slane %v6561_v45, 1  ;;  %v6627_v38 = vsel %vm5640_vm7, %v6625_v0, %v6626_v43  ;;  %v6695_v30 = vld [vmem:[#allocation2 + $0x198] sm:$0x3]  ;;  %v6758_v10 = vrot.slane %v6691_v41, 2 }
 0x834   : > { %v6569_v14 = vld [vmem:[#allocation2 + $0x228] sm:$0xfe]  ;;  %v6643_v17 = vrot.slane %v6565_v48, 1  ;;  %v6633_v47 = vsel %vm5640_vm7, %v6631_v40, %v6632_v63  ;;  %v6671_v24 = vpack.c.bf16 %v6627_v38, %v6621_v31  ;;  %v6699_v15 = vld [vmem:[#allocation2 + $0x1b8] sm:$0x3]  ;;  %v6764_v51 = vrot.slane %v6695_v30, 2 }
 0x835   : > { %v6649_v42 = vrot.slane %v6569_v14, 1  ;;  %v6689_v27 = vld [vmem:[#allocation2 + $0x168] sm:$0xfc]  ;;  %v6639_v25 = vsel %vm5640_vm7, %v6637_v60, %v6638_v29  ;;  %v6703_v28 = vld [vmem:[#allocation2 + $0x1d8] sm:$0x3]  ;;  %v6770_v20 = vrot.slane %v6699_v15, 2 }
 0x836   : > { %v6693_v13 = vld [vmem:[#allocation2 + $0x188] sm:$0xfc]  ;;  %v6645_v7 = vsel %vm5640_vm7, %v6643_v17, %v6644_v54  ;;  %v6673_v62 = vpack.c.bf16 %v6639_v25, %v6633_v47  ;;  %6679 = vst [vmem:[#allocation3 + $0x2e8] sm:$0xff] %v6671_v24  ;;  %v6707_v49 = vld [vmem:[#allocation2 + $0x1f8] sm:$0x3]  ;;  %v6757_v34 = vrot.slane %v6689_v27, 2 }
 0x837   : > { %v6697_v21 = vld [vmem:[#allocation2 + $0x1a8] sm:$0xfc]  ;;  %v6651_v26 = vsel %vm5640_vm7, %v6649_v42, %v6650_v1  ;;  %v6711_v50 = vld [vmem:[#allocation2 + $0x218] sm:$0x3]  ;;  %v6763_v52 = vrot.slane %v6693_v13, 2  ;;  %v6776_v9 = vrot.slane %v6703_v28, 2 }
 0x838   : > { %v6701_v19 = vld [vmem:[#allocation2 + $0x1c8] sm:$0xfc]  ;;  %v6675_v58 = vpack.c.bf16 %v6651_v26, %v6645_v7  ;;  %6681 = vst [vmem:[#allocation3 + $0x378] sm:$0xff] %v6673_v62  ;;  %v6715_v37 = vld [vmem:[#allocation2 + $0x238] sm:$0x3]  ;;  %v6769_v32 = vrot.slane %v6697_v21, 2  ;;  %v6759_v45 = vsel %vm5785_vm8, %v6757_v34, %v6758_v10 }
 0x839   : > { %v6705_v35 = vld [vmem:[#allocation2 + $0x1e8] sm:$0xfc]  ;;  %v6775_v6 = vrot.slane %v6701_v19, 2  ;;  %v6765_v55 = vsel %vm5785_vm8, %v6763_v52, %v6764_v51  ;;  %v6782_v2 = vrot.slane %v6707_v49, 2  ;;  %v6788_v23 = vrot.slane %v6711_v50, 2 }
 0x83a   : > { %v6709_v3 = vld [vmem:[#allocation2 + $0x208] sm:$0xfc]  ;;  %6683 = vst [vmem:[#allocation3 + $0x408] sm:$0xff] %v6675_v58  ;;  %v6781_v46 = vrot.slane %v6705_v35, 2  ;;  %v6771_v61 = vsel %vm5785_vm8, %v6769_v32, %v6770_v20  ;;  %v6863_v16 = vld [vmem:[#allocation2 + $0x178] sm:$0x1]  ;;  %v6813_v40 = vpack.c.bf16 %v6759_v45, %v6753_v53 }
 0x83b   : > { %v6713_v59 = vld [vmem:[#allocation2 + $0x228] sm:$0xfc]  ;;  %v6777_v57 = vsel %vm5785_vm8, %v6775_v6, %v6776_v9  ;;  %v6787_v48 = vrot.slane %v6709_v3, 2  ;;  %v6794_v43 = vrot.slane %v6715_v37, 2  ;;  %v6867_v60 = vld [vmem:[#allocation2 + $0x198] sm:$0x1]  ;;  %v6815_v17 = vpack.c.bf16 %v6771_v61, %v6765_v55 }
 0x83c   : > { %v6843_v56 = vld [vmem:[#allocation2 + $0x248] sm:$0xff]  ;;  %v6783_v8 = vsel %vm5785_vm8, %v6781_v46, %v6782_v2  ;;  %v6793_v0 = vrot.slane %v6713_v59, 2  ;;  %v6871_v42 = vld [vmem:[#allocation2 + $0x1b8] sm:$0x1]  ;;  %6821 = vst [vmem:[#allocation3 + $0x268] sm:$0xff] %v6813_v40  ;;  %v6934_v19 = vrot.slane %v6867_v60, 1 }
 0x83d   : > { %v7164_v33 = vld [vmem:[#allocation2 + $0x268] sm:$0xff]  ;;  %v6789_v29 = vsel %vm5785_vm8, %v6787_v48, %v6788_v23  ;;  %v6817_v31 = vpack.c.bf16 %v6783_v8, %v6777_v57  ;;  %v6851_v38 = vpack.c.bf16 %v6843_v56, %v16236_v39  ;;  %v6875_v25 = vld [vmem:[#allocation2 + $0x1d8] sm:$0x1]  ;;  %6823 = vst [vmem:[#allocation3 + $0x2f8] sm:$0xff] %v6815_v17  ;;  %v6928_v39 = vrot.slane %v6863_v16, 1 }
 0x83e   : > { %v6861_v14 = vld [vmem:[#allocation2 + $0x168] sm:$0xfe]  ;;  %v6795_v47 = vsel %vm5785_vm8, %v6793_v0, %v6794_v43  ;;  %v6879_v24 = vld [vmem:[#allocation2 + $0x1f8] sm:$0x1]  ;;  %v7172_v41 = vpack.c.bf16 %v7164_v33, %v6843_v56  ;;  %v6940_v58 = vrot.slane %v6871_v42, 1  ;;  %v6946_v3 = vrot.slane %v6875_v25, 1 }
 0x83f   : > { %v6865_v63 = vld [vmem:[#allocation2 + $0x188] sm:$0xfe]  ;;  %v6819_v13 = vpack.c.bf16 %v6795_v47, %v6789_v29  ;;  %6825 = vst [vmem:[#allocation3 + $0x388] sm:$0xff] %v6817_v31  ;;  %6859 = vst [vmem:[#allocation3 + $0x428] sm:$0xff] %v6851_v38  ;;  %v6883_v62 = vld [vmem:[#allocation2 + $0x218] sm:$0x1] }
 0x840   : > { %v6869_v54 = vld [vmem:[#allocation2 + $0x1a8] sm:$0xfe]  ;;  %v6887_v21 = vld [vmem:[#allocation2 + $0x238] sm:$0x1]  ;;  %v6927_v15 = vrot.slane %v6861_v14, 1  ;;  %v6933_v26 = vrot.slane %v6865_v63, 1 }
 0x841   : > { %v6873_v27 = vld [vmem:[#allocation2 + $0x1c8] sm:$0xfe]  ;;  %7180 = vst [vmem:[#allocation3 + $0x458] sm:$0xff] %v7172_v41  ;;  %6827 = vst [vmem:[#allocation3 + $0x418] sm:$0xff] %v6819_v13  ;;  %v6939_v35 = vrot.slane %v6869_v54, 1  ;;  %v6952_v10 = vrot.slane %v6879_v24, 1 }
 0x842   : > { %v6877_v1 = vld [vmem:[#allocation2 + $0x1e8] sm:$0xfe]  ;;  %v6945_v49 = vrot.slane %v6873_v27, 1  ;;  %v6891_v50 = vld [vmem:[#allocation2 + $0x258] sm:$0x1]  ;;  %v6929_v53 = vsel %vm5640_vm7, %v6927_v15, %v6928_v39  ;;  %v6935_v59 = vsel %vm5640_vm7, %v6933_v26, %v6934_v19  ;;  %v6958_v32 = vrot.slane %v6883_v62, 1 }
 0x843   : > { %v6881_v7 = vld [vmem:[#allocation2 + $0x208] sm:$0xfe]  ;;  %v6951_v34 = vrot.slane %v6877_v1, 1  ;;  %v6941_v52 = vsel %vm5640_vm7, %v6939_v35, %v6940_v58  ;;  %v7007_v6 = vld [vmem:[#allocation2 + $0x178] sm:$0x3]  ;;  %v6964_v46 = vrot.slane %v6887_v21, 1  ;;  %v6989_v48 = vpack.c.bf16 %v6935_v59, %v6929_v53 }
 0x844   : > { %v6885_v30 = vld [vmem:[#allocation2 + $0x228] sm:$0xfe]  ;;  %v6947_v51 = vsel %vm5640_vm7, %v6945_v49, %v6946_v3  ;;  %v6957_v37 = vrot.slane %v6881_v7, 1  ;;  %v7011_v56 = vld [vmem:[#allocation2 + $0x198] sm:$0x3]  ;;  %v6970_v57 = vrot.slane %v6891_v50, 1 }
 0x845   : > { %v6889_v28 = vld [vmem:[#allocation2 + $0x248] sm:$0xfe]  ;;  %v6953_v45 = vsel %vm5640_vm7, %v6951_v34, %v6952_v10  ;;  %v6963_v55 = vrot.slane %v6885_v30, 1  ;;  %v6991_v23 = vpack.c.bf16 %v6947_v51, %v6941_v52  ;;  %v7015_v14 = vld [vmem:[#allocation2 + $0x1b8] sm:$0x3]  ;;  %6997 = vst [vmem:[#allocation3 + $0x288] sm:$0xff] %v6989_v48  ;;  %v7292_v48 = vsel %vm5640_vm7, %v7290_v11, %v7291_v5 }
 0x846   : > { %v7005_v20 = vld [vmem:[#allocation2 + $0x168] sm:$0xfc]  ;;  %v6969_v2 = vrot.slane %v6889_v28, 1  ;;  %v6959_v61 = vsel %vm5640_vm7, %v6957_v37, %v6958_v32  ;;  %v7019_v43 = vld [vmem:[#allocation2 + $0x1d8] sm:$0x3]  ;;  %v7072_v27 = vrot.slane %v7007_v6, 2 }
 0x847   : > { %v7009_v9 = vld [vmem:[#allocation2 + $0x188] sm:$0xfc]  ;;  %v6965_v8 = vsel %vm5640_vm7, %v6963_v55, %v6964_v46  ;;  %v6993_v0 = vpack.c.bf16 %v6959_v61, %v6953_v45  ;;  %v7023_v63 = vld [vmem:[#allocation2 + $0x1f8] sm:$0x3]  ;;  %6999 = vst [vmem:[#allocation3 + $0x318] sm:$0xff] %v6991_v23  ;;  %v7071_v42 = vrot.slane %v7005_v20, 2 }
 0x848   : > { %v7013_v33 = vld [vmem:[#allocation2 + $0x1a8] sm:$0xfc]  ;;  %v6971_v60 = vsel %vm5640_vm7, %v6969_v2, %v6970_v57  ;;  %v7027_v17 = vld [vmem:[#allocation2 + $0x218] sm:$0x3]  ;;  %v7077_v47 = vrot.slane %v7009_v9, 2  ;;  %v7078_v1 = vrot.slane %v7011_v56, 2 }
 0x849   : > { %v7017_v16 = vld [vmem:[#allocation2 + $0x1c8] sm:$0xfc]  ;;  %v6995_v38 = vpack.c.bf16 %v6971_v60, %v6965_v8  ;;  %7001 = vst [vmem:[#allocation3 + $0x3a8] sm:$0xff] %v6993_v0  ;;  %v7031_v54 = vld [vmem:[#allocation2 + $0x238] sm:$0x3]  ;;  %v7083_v24 = vrot.slane %v7013_v33, 2  ;;  %v7073_v62 = vsel %vm5785_vm8, %v7071_v42, %v7072_v27 }
 0x84a   : > { %v7021_v40 = vld [vmem:[#allocation2 + $0x1e8] sm:$0xfc]  ;;  %v7084_v41 = vrot.slane %v7015_v14, 2  ;;  %v7089_v13 = vrot.slane %v7017_v16, 2  ;;  %v7035_v7 = vld [vmem:[#allocation2 + $0x258] sm:$0x3]  ;;  %v7079_v39 = vsel %vm5785_vm8, %v7077_v47, %v7078_v1 }
 0x84b   : > { %v7025_v29 = vld [vmem:[#allocation2 + $0x208] sm:$0xfc]  ;;  %7003 = vst [vmem:[#allocation3 + $0x438] sm:$0xff] %v6995_v38  ;;  %v7090_v30 = vrot.slane %v7019_v43, 2  ;;  %v7095_v21 = vrot.slane %v7021_v40, 2  ;;  %v7096_v15 = vrot.slane %v7023_v63, 2  ;;  %v7133_v37 = vpack.c.bf16 %v7079_v39, %v7073_v62 }
 0x84c   : > { %v7029_v31 = vld [vmem:[#allocation2 + $0x228] sm:$0xfc]  ;;  %v7085_v26 = vsel %vm5785_vm8, %v7083_v24, %v7084_v41  ;;  %v7101_v19 = vrot.slane %v7025_v29, 2  ;;  %v7102_v28 = vrot.slane %v7027_v17, 2  ;;  %v7184_v58 = vld [vmem:[#allocation2 + $0x198] sm:$0x1] }
 0x84d   : > { %v7033_v25 = vld [vmem:[#allocation2 + $0x248] sm:$0xfc]  ;;  %v7091_v49 = vsel %vm5785_vm8, %v7089_v13, %v7090_v30  ;;  %v7097_v3 = vsel %vm5785_vm8, %v7095_v21, %v7096_v15  ;;  %v7107_v50 = vrot.slane %v7029_v31, 2  ;;  %v7108_v53 = vrot.slane %v7031_v54, 2  ;;  %v7188_v34 = vld [vmem:[#allocation2 + $0x1b8] sm:$0x1] }
 0x84e   : > { %v7182_v35 = vld [vmem:[#allocation2 + $0x188] sm:$0xfe]  ;;  %v7103_v10 = vsel %vm5785_vm8, %v7101_v19, %v7102_v28  ;;  %v7113_v52 = vrot.slane %v7033_v25, 2  ;;  %v7114_v51 = vrot.slane %v7035_v7, 2  ;;  %v7192_v20 = vld [vmem:[#allocation2 + $0x1d8] sm:$0x1]  ;;  %v7135_v9 = vpack.c.bf16 %v7091_v49, %v7085_v26 }
 0x84f   : > { %v7186_v59 = vld [vmem:[#allocation2 + $0x1a8] sm:$0xfe]  ;;  %v7109_v6 = vsel %vm5785_vm8, %v7107_v50, %v7108_v53  ;;  %v7137_v45 = vpack.c.bf16 %v7103_v10, %v7097_v3  ;;  %v7196_v46 = vld [vmem:[#allocation2 + $0x1f8] sm:$0x1]  ;;  %7141 = vst [vmem:[#allocation3 + $0x298] sm:$0xff] %v7133_v37  ;;  %v7248_v16 = vrot.slane %v7182_v35, 1  ;;  %v7436_v50 = vsel %vm5785_vm8, %v7434_v36, %v7435_v18 }
 0x850   : > { %v7190_v32 = vld [vmem:[#allocation2 + $0x1c8] sm:$0xfe]  ;;  %v7115_v56 = vsel %vm5785_vm8, %v7113_v52, %v7114_v51  ;;  %v7200_v33 = vld [vmem:[#allocation2 + $0x218] sm:$0x1]  ;;  %7143 = vst [vmem:[#allocation3 + $0x328] sm:$0xff] %v7135_v9  ;;  %v7249_v8 = vrot.slane %v7184_v58, 1 }
 0x851   : > { %v7194_v55 = vld [vmem:[#allocation2 + $0x1e8] sm:$0xfe]  ;;  %v7204_v57 = vld [vmem:[#allocation2 + $0x238] sm:$0x1]  ;;  %v7139_v23 = vpack.c.bf16 %v7115_v56, %v7109_v6  ;;  %7145 = vst [vmem:[#allocation3 + $0x3b8] sm:$0xff] %v7137_v45  ;;  %v7254_v0 = vrot.slane %v7186_v59, 1 }
 0x852   : > { %v7198_v2 = vld [vmem:[#allocation2 + $0x208] sm:$0xfe]  ;;  %v7208_v43 = vld [vmem:[#allocation2 + $0x258] sm:$0x1]  ;;  %v7255_v40 = vrot.slane %v7188_v34, 1  ;;  %v7260_v63 = vrot.slane %v7190_v32, 1  ;;  %v7250_v17 = vsel %vm5640_vm7, %v7248_v16, %v7249_v8 }
 0x853   : > { %v7202_v61 = vld [vmem:[#allocation2 + $0x228] sm:$0xfe]  ;;  %v7261_v60 = vrot.slane %v7192_v20, 1  ;;  %v7266_v29 = vrot.slane %v7194_v55, 1  ;;  %7147 = vst [vmem:[#allocation3 + $0x448] sm:$0xff] %v7139_v23  ;;  %v7267_v22 = vrot.slane %v7196_v46, 1 }
 0x854   : > { %v7206_v14 = vld [vmem:[#allocation2 + $0x248] sm:$0xfe]  ;;  %v7272_v31 = vrot.slane %v7198_v2, 1  ;;  %v7273_v12 = vrot.slane %v7200_v33, 1  ;;  %v7328_v11 = vld [vmem:[#allocation2 + $0x198] sm:$0x3]  ;;  %v7256_v5 = vsel %vm5640_vm7, %v7254_v0, %v7255_v40 }
 0x855   : > { %v7326_v38 = vld [vmem:[#allocation2 + $0x188] sm:$0xfc]  ;;  %v7262_v54 = vsel %vm5640_vm7, %v7260_v63, %v7261_v60  ;;  %v7278_v42 = vrot.slane %v7202_v61, 1  ;;  %v7279_v27 = vrot.slane %v7204_v57, 1  ;;  %v7332_v25 = vld [vmem:[#allocation2 + $0x1b8] sm:$0x3]  ;;  %v7268_v1 = vsel %vm5640_vm7, %v7266_v29, %v7267_v22 }
 0x856   : > { %v7330_v47 = vld [vmem:[#allocation2 + $0x1a8] sm:$0xfc]  ;;  %v7274_v24 = vsel %vm5640_vm7, %v7272_v31, %v7273_v12  ;;  %v7284_v41 = vrot.slane %v7206_v14, 1  ;;  %v7285_v13 = vrot.slane %v7208_v43, 1  ;;  %v7336_v62 = vld [vmem:[#allocation2 + $0x1d8] sm:$0x3]  ;;  %v7310_v21 = vpack.c.bf16 %v7256_v5, %v7250_v17 }
 0x857   : > { %v7334_v7 = vld [vmem:[#allocation2 + $0x1c8] sm:$0xfc]  ;;  %v7280_v30 = vsel %vm5640_vm7, %v7278_v42, %v7279_v27  ;;  %v7312_v15 = vpack.c.bf16 %v7268_v1, %v7262_v54  ;;  %v7340_v26 = vld [vmem:[#allocation2 + $0x1f8] sm:$0x3]  ;;  %v7392_v34 = vrot.slane %v7326_v38, 2  ;;  %v7393_v10 = vrot.slane %v7328_v11, 2 }
 0x858   : > { %v7338_v39 = vld [vmem:[#allocation2 + $0x1e8] sm:$0xfc]  ;;  %v7286_v28 = vsel %vm5640_vm7, %v7284_v41, %v7285_v13  ;;  %v7314_v35 = vpack.c.bf16 %v7280_v30, %v7274_v24  ;;  %v7344_v58 = vld [vmem:[#allocation2 + $0x218] sm:$0x3]  ;;  %7318 = vst [vmem:[#allocation3 + $0x2b8] sm:$0xff] %v7310_v21  ;;  %v7398_v52 = vrot.slane %v7330_v47, 2 }
 0x859   : > { %v7342_v19 = vld [vmem:[#allocation2 + $0x208] sm:$0xfc]  ;;  %v7348_v3 = vld [vmem:[#allocation2 + $0x238] sm:$0x3]  ;;  %v7316_v53 = vpack.c.bf16 %v7292_v48, %v7286_v28  ;;  %7320 = vst [vmem:[#allocation3 + $0x348] sm:$0xff] %v7312_v15  ;;  %v7399_v37 = vrot.slane %v7332_v25, 2  ;;  %v7394_v4 = vsel %vm5785_vm8, %v7392_v34, %v7393_v10 }
 0x85a   : > { %v7346_v49 = vld [vmem:[#allocation2 + $0x228] sm:$0xfc]  ;;  %7322 = vst [vmem:[#allocation3 + $0x3d8] sm:$0xff] %v7314_v35  ;;  %v7352_v51 = vld [vmem:[#allocation2 + $0x258] sm:$0x3]  ;;  %v7404_v32 = vrot.slane %v7334_v7, 2 }
 0x85b   : > { %v7350_v59 = vld [vmem:[#allocation2 + $0x248] sm:$0xfc]  ;;  %v7405_v20 = vrot.slane %v7336_v62, 2  ;;  %v7410_v6 = vrot.slane %v7338_v39, 2  ;;  %7324 = vst [vmem:[#allocation3 + $0x468] sm:$0xff] %v7316_v53  ;;  %v7411_v9 = vrot.slane %v7340_v26, 2  ;;  %v7400_v36 = vsel %vm5785_vm8, %v7398_v52, %v7399_v37 }
 0x85c   : > { %v7416_v44 = vrot.slane %v7342_v19, 2  ;;  %v7417_v45 = vrot.slane %v7344_v58, 2  ;;  %v7422_v55 = vrot.slane %v7346_v49, 2  ;;  %v7423_v46 = vrot.slane %v7348_v3, 2 }
 0x85d   : > { %v7406_v18 = vsel %vm5785_vm8, %v7404_v32, %v7405_v20  ;;  %v7412_v2 = vsel %vm5785_vm8, %v7410_v6, %v7411_v9  ;;  %v7428_v33 = vrot.slane %v7350_v59, 2  ;;  %v7429_v61 = vrot.slane %v7352_v51, 2 }
 0x85e   : > { %v7418_v56 = vsel %vm5785_vm8, %v7416_v44, %v7417_v45  ;;  %v7424_v57 = vsel %vm5785_vm8, %v7422_v55, %v7423_v46  ;;  %v7454_v48 = vpack.c.bf16 %v7400_v36, %v7394_v4  ;;  %v7456_v23 = vpack.c.bf16 %v7412_v2, %v7406_v18 }
 0x85f   : > { %v7430_v14 = vsel %vm5785_vm8, %v7428_v33, %v7429_v61  ;;  %v7458_v16 = vpack.c.bf16 %v7424_v57, %v7418_v56 }
 0x860   : > { %v7460_v8 = vpack.c.bf16 %v7436_v50, %v7430_v14  ;;  %7462 = vst [vmem:[#allocation3 + $0x2c8] sm:$0xff] %v7454_v48  ;;  %7464 = vst [vmem:[#allocation3 + $0x358] sm:$0xff] %v7456_v23 }
 0x861   : > { %7466 = vst [vmem:[#allocation3 + $0x3e8] sm:$0xff] %v7458_v16 }
 0x862   : > { %7468 = vst [vmem:[#allocation3 + $0x478] sm:$0xff] %v7460_v8 }
 0x863 PF: > { %v12751_v0 = vld [vmem:[%s13802_s7 + $0x40] sm:$0xff]   ;;  %v12753_v40 = vld [vmem:[%s13802_s7 + $0x48] sm:$0xff]   ;;  %v12755_v60 = vld [vmem:[%s13802_s7 + $0x50] sm:$0xff]   ;;  %s17103_s19 = sld [smem:[#allocation29_spill]] }
 0x864   : > { %v12752_v43 = vld [vmem:[%s13802_s7] sm:$0xff]   ;;  %11040 = vmatprep.subr.bf16.mxu0 %v12751_v0  ;;  %12256 = vmatprep.subr.bf16.mxu1 %v12751_v0  ;;  %v12754_v63 = vld [vmem:[%s13802_s7 + $0x8] sm:$0xff]   ;;  %v12756_v29 = vld [vmem:[%s13802_s7 + $0x10] sm:$0xff]  }
 0x865   : > { %11041 = vmatpush3.bf16.msra.mxu0 %v12752_v43  ;;  %12264 = vmatpush3.bf16.msra.mxu1 %v12752_v43  ;;  %v12757_v17 = vld [vmem:[%s13802_s7 + $0x58] sm:$0xff]   ;;  %v12759_v31 = vld [vmem:[%s13802_s7 + $0x60] sm:$0xff]   ;;  %v12761_v38 = vld [vmem:[%s13802_s7 + $0x68] sm:$0xff]  }
 0x866   : > { %11042 = vmatprep.subr.bf16.mxu0 %v12753_v40  ;;  %12257 = vmatprep.subr.bf16.mxu1 %v12753_v40  ;;  %v12758_v22 = vld [vmem:[%s13802_s7 + $0x18] sm:$0xff]   ;;  %v12760_v12 = vld [vmem:[%s13802_s7 + $0x20] sm:$0xff]   ;;  %v12762_v54 = vld [vmem:[%s13802_s7 + $0x28] sm:$0xff]  }
 0x867   : > { %v7758_v11 = vld [vmem:[#allocation3 + $0x8] sm:$0xff]  ;;  %v12763_v42 = vld [vmem:[%s13802_s7 + $0x70] sm:$0xff]   ;;  %v12771_v30 = vld [vmem:[%s13802_s7 + $0xc8] sm:$0xff]  }
 0x868   : > { %v7830_v5 = vld [vmem:[#allocation3 + $0x248] sm:$0xff]  ;;  %8804 = vmatprep.mubr.bf16.mxu0 %v7758_v11  ;;  %v12764_v27 = vld [vmem:[%s13802_s7 + $0x30] sm:$0xff]   ;;  %v12772_v21 = vld [vmem:[%s13802_s7 + $0x148] sm:$0xff]  }
 0x869   : > { %11043 = vmatpush3.bf16.msra.mxu0 %v12754_v63  ;;  %12265 = vmatpush3.bf16.msra.mxu1 %v12754_v63  ;;  %v12765_v47 = vld [vmem:[%s13802_s7 + $0x78] sm:$0xff]   ;;  %v12767_v1 = vld [vmem:[%s13802_s7 + $0xc0] sm:$0xff]   ;;  %v7776_v15 = vld [vmem:[#allocation3 + $0x98] sm:$0xff]  ;;  %p10479_p4 = scmp.ne.s32.totalorder %s17103_s19, 0 }
 0x86a   : > { %11044 = vmatprep.subr.bf16.mxu0 %v12755_v60  ;;  %12258 = vmatprep.subr.bf16.mxu1 %v12755_v60  ;;  %v12766_v25 = vld [vmem:[%s13802_s7 + $0x38] sm:$0xff]   ;;  %v12768_v24 = vld [vmem:[%s13802_s7 + $0x140] sm:$0xff]   ;;  %v7848_v39 = vld [vmem:[#allocation3 + $0x2d8] sm:$0xff]  ;;  %s17104_s8 = sld [smem:[#allocation28_spill]] (!%p10479_p4) }
 0x86b   : > { %8836 = vmatprep.mubr.bf16.mxu1 %v7830_v5  ;;  %v7757_v41 = vld [vmem:[#allocation3] sm:$0xff]  ;;  %v12769_v7 = vld [vmem:[%s13802_s7 + $0x80] sm:$0xff]   ;;  %v12773_v26 = vld [vmem:[%s13802_s7 + $0x88] sm:$0xff]  }
 0x86c   : > { %v7829_v13 = vld [vmem:[#allocation3 + $0x240] sm:$0xff]  ;;  %v12770_v62 = vld [vmem:[%s13802_s7 + $0x100] sm:$0xff]   ;;  %v12774_v19 = vld [vmem:[%s13802_s7 + $0x108] sm:$0xff]  }
 0x86d   : > { %11045 = vmatpush3.bf16.msra.mxu0 %v12756_v29  ;;  %12266 = vmatpush3.bf16.msra.mxu1 %v12756_v29  ;;  %v12775_v28 = vld [vmem:[%s13802_s7 + $0xd0] sm:$0xff]   ;;  %v7775_v58 = vld [vmem:[#allocation3 + $0x90] sm:$0xff]  ;;  %v12779_v53 = vld [vmem:[%s13802_s7 + $0xd8] sm:$0xff]  }
 0x86e   : > { %11046 = vmatprep.subr.bf16.mxu0 %v12757_v17  ;;  %12259 = vmatprep.subr.bf16.mxu1 %v12757_v17  ;;  %v12776_v35 = vld [vmem:[%s13802_s7 + $0x150] sm:$0xff]   ;;  %v7847_v49 = vld [vmem:[#allocation3 + $0x2d0] sm:$0xff]  ;;  %v12780_v59 = vld [vmem:[%s13802_s7 + $0x158] sm:$0xff]  }
 0x86f   : > { %v12777_v3 = vld [vmem:[%s13802_s7 + $0x90] sm:$0xff]   ;;  %v12781_v34 = vld [vmem:[%s13802_s7 + $0x98] sm:$0xff]   ;;  %v12783_v37 = vld [vmem:[%s13802_s7 + $0xe0] sm:$0xff]  }
 0x870   : > { %v12778_v50 = vld [vmem:[%s13802_s7 + $0x110] sm:$0xff]   ;;  %v7794_v10 = vld [vmem:[#allocation3 + $0x128] sm:$0xff]  ;;  %v12787_v44 = vld [vmem:[%s13802_s7 + $0xe8] sm:$0xff]   ;;  %s10480_s11 = sshll.u32 (!%p10479_p4), %s17104_s8, 7 }
 0x871   : > { %11047 = vmatpush3.bf16.msra.mxu0 %v12758_v22  ;;  %12267 = vmatpush3.bf16.msra.mxu1 %v12758_v22  ;;  %v7866_v52 = vld [vmem:[#allocation3 + $0x368] sm:$0xff]  ;;  %v7793_v20 = vld [vmem:[#allocation3 + $0x120] sm:$0xff]  ;;  %v12788_v45 = vld [vmem:[%s13802_s7 + $0x168] sm:$0xff]  }
 0x872   : > { %11048 = vmatprep.subr.bf16.mxu0 %v12759_v31  ;;  %12260 = vmatprep.subr.bf16.mxu1 %v12759_v31  ;;  %v12782_v51 = vld [vmem:[%s13802_s7 + $0x118] sm:$0xff]   ;;  %v12784_v32 = vld [vmem:[%s13802_s7 + $0x160] sm:$0xff]   ;;  %v12789_v36 = vld [vmem:[%s13802_s7 + $0xa8] sm:$0xff]  }
 0x873   : > { %v7865_v6 = vld [vmem:[#allocation3 + $0x360] sm:$0xff]  ;;  %v12785_v4 = vld [vmem:[%s13802_s7 + $0xa0] sm:$0xff]   ;;  %v12790_v18 = vld [vmem:[%s13802_s7 + $0x128] sm:$0xff]  }
 0x874   : > { %v12786_v9 = vld [vmem:[%s13802_s7 + $0x120] sm:$0xff]   ;;  %v7812_v55 = vld [vmem:[#allocation3 + $0x1b8] sm:$0xff]  ;;  %v12795_v23 = vld [vmem:[%s13802_s7 + $0xf8] sm:$0xff]  }
 0x875   : > { %11049 = vmatpush3.bf16.msra.mxu0 %v12760_v12  ;;  %12268 = vmatpush3.bf16.msra.mxu1 %v12760_v12  ;;  %v7884_v46 = vld [vmem:[#allocation3 + $0x3f8] sm:$0xff]  ;;  %v7811_v33 = vld [vmem:[#allocation3 + $0x1b0] sm:$0xff]  ;;  %v12796_v14 = vld [vmem:[%s13802_s7 + $0x178] sm:$0xff]  }
 0x876   : > { %11050 = vmatprep.subr.bf16.mxu0 %v12761_v38  ;;  %12261 = vmatprep.subr.bf16.mxu1 %v12761_v38  ;;  %v12791_v2 = vld [vmem:[%s13802_s7 + $0xf0] sm:$0xff]   ;;  %v7883_v61 = vld [vmem:[#allocation3 + $0x3f0] sm:$0xff]  ;;  %v7762_v8 = vld [vmem:[#allocation3 + $0x28] sm:$0xff] }
 0x877   : > { %v12792_v56 = vld [vmem:[%s13802_s7 + $0x170] sm:$0xff]   ;;  %v12797_v0 = vld [vmem:[%s13802_s7 + $0xb8] sm:$0xff]   ;;  %v12799_v40 = vld [vmem:[%s13802_s7 + $0x1c0] sm:$0xff]  }
 0x878   : > { %v12793_v57 = vld [vmem:[%s13802_s7 + $0xb0] sm:$0xff]   ;;  %v12798_v43 = vld [vmem:[%s13802_s7 + $0x138] sm:$0xff]   ;;  %v12801_v63 = vld [vmem:[%s13802_s7 + $0x240] sm:$0xff]  }
 0x879   : > { %11051 = vmatpush3.bf16.msra.mxu0 %v12762_v54  ;;  %12269 = vmatpush3.bf16.msra.mxu1 %v12762_v54  ;;  %v12794_v48 = vld [vmem:[%s13802_s7 + $0x130] sm:$0xff]   ;;  %v7759_v60 = vld [vmem:[#allocation3 + $0x10] sm:$0xff]  ;;  %v7778_v31 = vld [vmem:[#allocation3 + $0xa8] sm:$0xff] }
 0x87a   : > { %11052 = vmatprep.subr.bf16.mxu0 %v12763_v42  ;;  %12262 = vmatprep.subr.bf16.mxu1 %v12763_v42  ;;  %v7760_v16 = vld [vmem:[#allocation3 + $0x18] sm:$0xff]  ;;  %v7761_v29 = vld [vmem:[#allocation3 + $0x20] sm:$0xff]  ;;  %v12800_v17 = vld [vmem:[%s13802_s7 + $0x180] sm:$0xff]  }
 0x87b   : > { %v12802_v22 = vld [vmem:[%s13802_s7 + $0x200] sm:$0xff]   ;;  %v7780_v12 = vld [vmem:[#allocation3 + $0xb8] sm:$0xff] }
 0x87c   : > { %v12803_v38 = vld [vmem:[%s13802_s7 + $0x1c8] sm:$0xff]   ;;  %v12807_v42 = vld [vmem:[%s13802_s7 + $0x1d0] sm:$0xff]  }
 0x87d   : > { %11053 = vmatpush3.bf16.msra.mxu0 %v12764_v27  ;;  %12270 = vmatpush3.bf16.msra.mxu1 %v12764_v27  ;;  %v12804_v11 = vld [vmem:[%s13802_s7 + $0x188] sm:$0xff]   ;;  %v12809_v27 = vld [vmem:[%s13802_s7 + $0x250] sm:$0xff]  }
 0x87e   : > { %11054 = vmatprep.subr.bf16.mxu0 %v12765_v47  ;;  %12263 = vmatprep.subr.bf16.mxu1 %v12765_v47  ;;  %v12805_v5 = vld [vmem:[%s13802_s7 + $0x248] sm:$0xff]   ;;  %v7777_v47 = vld [vmem:[#allocation3 + $0xa0] sm:$0xff] }
 0x87f   : > { %v12806_v54 = vld [vmem:[%s13802_s7 + $0x208] sm:$0xff]  }
 0x881   : > { %11055 = vmatpush3.bf16.msra.mxu0 %v12766_v25  ;;  %12271 = vmatpush3.bf16.msra.mxu1 %v12766_v25  ;;  %v7779_v25 = vld [vmem:[#allocation3 + $0xb0] sm:$0xff] }
 0x882   : > { %11104 = vmatprep.subr.bf16.mxu1 %v12767_v1  ;;  %11168 = vmatprep.subr.bf16.mxu0 %v12768_v24  ;;  %v7796_v1 = vld [vmem:[#allocation3 + $0x138] sm:$0xff]  ;;  %v7798_v24 = vld [vmem:[#allocation3 + $0x148] sm:$0xff] }
 0x884   : > { %8805 = vmatmul.mubr.bf16.vlgmr.msra.gmra.mrb[0].mxu0 %v7757_v41  ;;  %8837 = vmatmul.mubr.bf16.vlgmr.msra.gmra.mrb[0].mxu1 %v7829_v13  ;;  %v12808_v41 = vld [vmem:[%s13802_s7 + $0x190] sm:$0xff]  }
 0x885   : > { %11105 = vmatpush3.bf16.msra.mxu1 %v12769_v7  ;;  %11169 = vmatpush3.bf16.msra.mxu0 %v12770_v62  ;;  %v12810_v13 = vld [vmem:[%s13802_s7 + $0x210] sm:$0xff]   ;;  %v12811_v7 = vld [vmem:[%s13802_s7 + $0x1d8] sm:$0xff]  }
 0x886   : > { %11106 = vmatprep.subr.bf16.mxu1 %v12771_v30  ;;  %11170 = vmatprep.subr.bf16.mxu0 %v12772_v21  ;;  %v12813_v62 = vld [vmem:[%s13802_s7 + $0x258] sm:$0xff]  }
 0x887   : > { %8812 = vmatprep.mubr.bf16.mxu0 %v7776_v15  ;;  %8844 = vmatprep.mubr.bf16.mxu1 %v7848_v39  ;;  %v12812_v30 = vld [vmem:[%s13802_s7 + $0x198] sm:$0xff]   ;;  %v7795_v15 = vld [vmem:[#allocation3 + $0x130] sm:$0xff] }
 0x888   : > { %v12814_v21 = vld [vmem:[%s13802_s7 + $0x218] sm:$0xff]  }
 0x889   : > { %11107 = vmatpush3.bf16.msra.mxu1 %v12773_v26  ;;  %11171 = vmatpush3.bf16.msra.mxu0 %v12774_v19  ;;  %v7797_v39 = vld [vmem:[#allocation3 + $0x140] sm:$0xff]  ;;  %v12815_v26 = vld [vmem:[%s13802_s7 + $0x1e0] sm:$0xff]  }
 0x88a   : > { %11108 = vmatprep.subr.bf16.mxu1 %v12775_v28  ;;  %11172 = vmatprep.subr.bf16.mxu0 %v12776_v35  ;;  %v12817_v19 = vld [vmem:[%s13802_s7 + $0x260] sm:$0xff]   ;;  %v7816_v35 = vld [vmem:[#allocation3 + $0x1d8] sm:$0xff] }
 0x88b   : > { %v7814_v28 = vld [vmem:[#allocation3 + $0x1c8] sm:$0xff] }
 0x88c   : > { %8813 = vmatmul.mubr.bf16.gmra.mrb[4].mxu0 %v7775_v58  ;;  %8845 = vmatmul.mubr.bf16.gmra.mrb[4].mxu1 %v7847_v49  ;;  %v12816_v58 = vld [vmem:[%s13802_s7 + $0x1a0] sm:$0xff]  }
 0x88d   : > { %11109 = vmatpush3.bf16.msra.mxu1 %v12777_v3  ;;  %11173 = vmatpush3.bf16.msra.mxu0 %v12778_v50  ;;  %v12818_v49 = vld [vmem:[%s13802_s7 + $0x220] sm:$0xff]   ;;  %v12819_v3 = vld [vmem:[%s13802_s7 + $0x1e8] sm:$0xff]  }
 0x88e   : > { %11110 = vmatprep.subr.bf16.mxu1 %v12779_v53  ;;  %11174 = vmatprep.subr.bf16.mxu0 %v12780_v59  ;;  %v12820_v50 = vld [vmem:[%s13802_s7 + $0x1a8] sm:$0xff]   ;;  %v7813_v59 = vld [vmem:[#allocation3 + $0x1c0] sm:$0xff] }
 0x88f   : > { %8820 = vmatprep.mubr.bf16.mxu0 %v7794_v10  ;;  %8852 = vmatprep.mubr.bf16.mxu1 %v7866_v52  ;;  %v12821_v53 = vld [vmem:[%s13802_s7 + $0x268] sm:$0xff]  }
 0x890   : > { %v12822_v10 = vld [vmem:[%s13802_s7 + $0x228] sm:$0xff]  }
 0x891   : > { %11111 = vmatpush3.bf16.msra.mxu1 %v12781_v34  ;;  %11175 = vmatpush3.bf16.msra.mxu0 %v12782_v51  ;;  %v7815_v34 = vld [vmem:[#allocation3 + $0x1d0] sm:$0xff]  ;;  %v7832_v52 = vld [vmem:[#allocation3 + $0x258] sm:$0xff]  ;;  %v7834_v51 = vld [vmem:[#allocation3 + $0x268] sm:$0xff] }
 0x892   : > { %11112 = vmatprep.subr.bf16.mxu1 %v12783_v37  ;;  %11176 = vmatprep.subr.bf16.mxu0 %v12784_v32  ;;  %v12823_v37 = vld [vmem:[%s13802_s7 + $0x1f0] sm:$0xff]  }
 0x893   : > { %v12824_v32 = vld [vmem:[%s13802_s7 + $0x1b0] sm:$0xff]  }
 0x894   : > { %8821 = vmatmul.mubr.bf16.gmra.mrb[8].mxu0 %v7793_v20  ;;  %8853 = vmatmul.mubr.bf16.gmra.mrb[8].mxu1 %v7865_v6  ;;  %v12825_v20 = vld [vmem:[%s13802_s7 + $0x270] sm:$0xff]  }
 0x895   : > { %11113 = vmatpush3.bf16.msra.mxu1 %v12785_v4  ;;  %11177 = vmatpush3.bf16.msra.mxu0 %v12786_v9  ;;  %v12826_v6 = vld [vmem:[%s13802_s7 + $0x230] sm:$0xff]   ;;  %v12827_v4 = vld [vmem:[%s13802_s7 + $0x1f8] sm:$0xff]   ;;  %v7831_v9 = vld [vmem:[#allocation3 + $0x250] sm:$0xff] }
 0x896   : > { %11114 = vmatprep.subr.bf16.mxu1 %v12787_v44  ;;  %11178 = vmatprep.subr.bf16.mxu0 %v12788_v45  ;;  %v7833_v44 = vld [vmem:[#allocation3 + $0x260] sm:$0xff] }
 0x897   : > { %8828 = vmatprep.mubr.bf16.mxu0 %v7812_v55  ;;  %8860 = vmatprep.mubr.bf16.mxu1 %v7884_v46  ;;  %v12828_v45 = vld [vmem:[%s13802_s7 + $0x1b8] sm:$0xff]   ;;  %v7852_v46 = vld [vmem:[#allocation3 + $0x2f8] sm:$0xff] }
 0x898   : > { %v7850_v55 = vld [vmem:[#allocation3 + $0x2e8] sm:$0xff] }
 0x899   : > { %11115 = vmatpush3.bf16.msra.mxu1 %v12789_v36  ;;  %11179 = vmatpush3.bf16.msra.mxu0 %v12790_v18  ;;  %v12829_v36 = vld [vmem:[%s13802_s7 + $0x278] sm:$0xff]  }
 0x89a   : > { %11116 = vmatprep.subr.bf16.mxu1 %v12791_v2  ;;  %11180 = vmatprep.subr.bf16.mxu0 %v12792_v56  ;;  %v12830_v18 = vld [vmem:[%s13802_s7 + $0x238] sm:$0xff]   ;;  %v12831_v2 = vld [vmem:[%s13802_s7 + $0x2c0] sm:$0xff]  }
 0x89b   : > { %v12833_v56 = vld [vmem:[%s13802_s7 + $0x340] sm:$0xff]  }
 0x89c   : > { %8829 = vmatmul.mubr.bf16.gmra.mrb[12].mxu0 %v7811_v33  ;;  %8861 = vmatmul.mubr.bf16.gmra.mrb[12].mxu1 %v7883_v61  ;;  %v7849_v33 = vld [vmem:[#allocation3 + $0x2e0] sm:$0xff]  ;;  %v7851_v61 = vld [vmem:[#allocation3 + $0x2f0] sm:$0xff] }
 0x89d   : > { %11117 = vmatpush3.bf16.msra.mxu1 %v12793_v57  ;;  %11181 = vmatpush3.bf16.msra.mxu0 %v12794_v48  ;;  %v7868_v57 = vld [vmem:[#allocation3 + $0x378] sm:$0xff]  ;;  %v7870_v48 = vld [vmem:[#allocation3 + $0x388] sm:$0xff] }
 0x89e   : > { %11118 = vmatprep.subr.bf16.mxu1 %v12795_v23  ;;  %11182 = vmatprep.subr.bf16.mxu0 %v12796_v14  ;;  %v7867_v23 = vld [vmem:[#allocation3 + $0x370] sm:$0xff]  ;;  %v7869_v14 = vld [vmem:[#allocation3 + $0x380] sm:$0xff] }
 0x89f   : > { %8901 = vmatprep.mubr.bf16.mxu1 %v7760_v16  ;;  %8998 = vmatprep.mubr.bf16.mxu0 %v7762_v8  ;;  %v7886_v16 = vld [vmem:[#allocation3 + $0x408] sm:$0xff]  ;;  %v7888_v8 = vld [vmem:[#allocation3 + $0x418] sm:$0xff] }
 0x8a1   : > { %11119 = vmatpush3.bf16.msra.mxu1 %v12797_v0  ;;  %11183 = vmatpush3.bf16.msra.mxu0 %v12798_v43  ;;  %v7885_v0 = vld [vmem:[#allocation3 + $0x400] sm:$0xff]  ;;  %v7887_v43 = vld [vmem:[#allocation3 + $0x410] sm:$0xff] }
 0x8a2   : > { %11232 = vmatprep.subr.bf16.mxu1 %v12799_v40  ;;  %11296 = vmatprep.subr.bf16.mxu0 %v12801_v63  ;;  %v7764_v40 = vld [vmem:[#allocation3 + $0x38] sm:$0xff]  ;;  %v7766_v63 = vld [vmem:[#allocation3 + $0x48] sm:$0xff] }
 0x8a4   : > { %8902 = vmatmul.mubr.bf16.vlgmr.msra.gmra.mrb[16].mxu1 %v7759_v60  ;;  %8999 = vmatmul.mubr.bf16.vlgmr.msra.gmra.mrb[16].mxu0 %v7761_v29  ;;  %v7763_v60 = vld [vmem:[#allocation3 + $0x30] sm:$0xff]  ;;  %v7765_v29 = vld [vmem:[#allocation3 + $0x40] sm:$0xff] }
 0x8a5   : > { %11233 = vmatpush3.bf16.msra.mxu1 %v12800_v17  ;;  %11297 = vmatpush3.bf16.msra.mxu0 %v12802_v22  ;;  %v12832_v17 = vld [vmem:[%s13802_s7 + $0x280] sm:$0xff]  }
 0x8a6   : > { %8909 = vmatprep.mubr.bf16.mxu1 %v7778_v31  ;;  %9006 = vmatprep.mubr.bf16.mxu0 %v7780_v12  ;;  %v12834_v22 = vld [vmem:[%s13802_s7 + $0x300] sm:$0xff]   ;;  %v7784_v12 = vld [vmem:[#allocation3 + $0xd8] sm:$0xff] }
 0x8a7   : > { %11234 = vmatprep.subr.bf16.mxu1 %v12803_v38  ;;  %11298 = vmatprep.subr.bf16.mxu0 %v12805_v5  ;;  %v7782_v31 = vld [vmem:[#allocation3 + $0xc8] sm:$0xff]  ;;  %v12835_v38 = vld [vmem:[%s13802_s7 + $0x2c8] sm:$0xff]  }
 0x8a8   : > { %v12837_v5 = vld [vmem:[%s13802_s7 + $0x348] sm:$0xff]  }
 0x8a9   : > { %11235 = vmatpush3.bf16.msra.mxu1 %v12804_v11  ;;  %11299 = vmatpush3.bf16.msra.mxu0 %v12806_v54  ;;  %v12836_v11 = vld [vmem:[%s13802_s7 + $0x288] sm:$0xff]  }
 0x8aa   : > { %11236 = vmatprep.subr.bf16.mxu1 %v12807_v42  ;;  %11300 = vmatprep.subr.bf16.mxu0 %v12809_v27  ;;  %v12838_v54 = vld [vmem:[%s13802_s7 + $0x308] sm:$0xff]   ;;  %v12839_v42 = vld [vmem:[%s13802_s7 + $0x2d0] sm:$0xff]  }
 0x8ab   : > { %v12841_v27 = vld [vmem:[%s13802_s7 + $0x350] sm:$0xff]  }
 0x8ac   : > { %8910 = vmatmul.mubr.bf16.gmra.mrb[20].mxu1 %v7777_v47  ;;  %9007 = vmatmul.mubr.bf16.gmra.mrb[20].mxu0 %v7779_v25  ;;  %v7781_v47 = vld [vmem:[#allocation3 + $0xc0] sm:$0xff]  ;;  %v7783_v25 = vld [vmem:[#allocation3 + $0xd0] sm:$0xff] }
 0x8ad   : > { %8917 = vmatprep.mubr.bf16.mxu1 %v7796_v1  ;;  %9014 = vmatprep.mubr.bf16.mxu0 %v7798_v24  ;;  %v7800_v1 = vld [vmem:[#allocation3 + $0x158] sm:$0xff]  ;;  %v7802_v24 = vld [vmem:[#allocation3 + $0x168] sm:$0xff] }
 0x8ae   : > { %11237 = vmatpush3.bf16.msra.mxu1 %v12808_v41  ;;  %11301 = vmatpush3.bf16.msra.mxu0 %v12810_v13  ;;  %v12840_v41 = vld [vmem:[%s13802_s7 + $0x290] sm:$0xff]  }
 0x8af   : > { %11238 = vmatprep.subr.bf16.mxu1 %v12811_v7  ;;  %11302 = vmatprep.subr.bf16.mxu0 %v12813_v62  ;;  %v12842_v13 = vld [vmem:[%s13802_s7 + $0x310] sm:$0xff]   ;;  %v12843_v7 = vld [vmem:[%s13802_s7 + $0x2d8] sm:$0xff]  }
 0x8b0   : > { %v12845_v62 = vld [vmem:[%s13802_s7 + $0x358] sm:$0xff]  }
 0x8b2   : > { %11239 = vmatpush3.bf16.msra.mxu1 %v12812_v30  ;;  %11303 = vmatpush3.bf16.msra.mxu0 %v12814_v21  ;;  %v12844_v30 = vld [vmem:[%s13802_s7 + $0x298] sm:$0xff]  }
 0x8b3   : > { %11240 = vmatprep.subr.bf16.mxu1 %v12815_v26  ;;  %11304 = vmatprep.subr.bf16.mxu0 %v12817_v19  ;;  %v12846_v21 = vld [vmem:[%s13802_s7 + $0x318] sm:$0xff]   ;;  %v12849_v19 = vld [vmem:[%s13802_s7 + $0x360] sm:$0xff]  }
 0x8b4   : > { %8918 = vmatmul.mubr.bf16.gmra.mrb[24].mxu1 %v7795_v15  ;;  %9015 = vmatmul.mubr.bf16.gmra.mrb[24].mxu0 %v7797_v39  ;;  %v12847_v15 = vld [vmem:[%s13802_s7 + $0x2e0] sm:$0xff]   ;;  %v7801_v26 = vld [vmem:[#allocation3 + $0x160] sm:$0xff] }
 0x8b5   : > { %8925 = vmatprep.mubr.bf16.mxu1 %v7814_v28  ;;  %9022 = vmatprep.mubr.bf16.mxu0 %v7816_v35  ;;  %v7799_v39 = vld [vmem:[#allocation3 + $0x150] sm:$0xff]  ;;  %v7818_v28 = vld [vmem:[#allocation3 + $0x1e8] sm:$0xff]  ;;  %v7820_v35 = vld [vmem:[#allocation3 + $0x1f8] sm:$0xff] }
 0x8b6   : > { %11241 = vmatpush3.bf16.msra.mxu1 %v12816_v58  ;;  %11305 = vmatpush3.bf16.msra.mxu0 %v12818_v49  ;;  %v12848_v58 = vld [vmem:[%s13802_s7 + $0x2a0] sm:$0xff]  }
 0x8b7   : > { %11242 = vmatprep.subr.bf16.mxu1 %v12819_v3  ;;  %11306 = vmatprep.subr.bf16.mxu0 %v12821_v53  ;;  %v12850_v49 = vld [vmem:[%s13802_s7 + $0x320] sm:$0xff]   ;;  %v12851_v3 = vld [vmem:[%s13802_s7 + $0x2e8] sm:$0xff]  }
 0x8b8   : > { %v12852_v53 = vld [vmem:[%s13802_s7 + $0x2a8] sm:$0xff]  }
 0x8ba   : > { %11243 = vmatpush3.bf16.msra.mxu1 %v12820_v50  ;;  %11307 = vmatpush3.bf16.msra.mxu0 %v12822_v10  ;;  %v12853_v50 = vld [vmem:[%s13802_s7 + $0x368] sm:$0xff]  }
 0x8bb   : > { %11244 = vmatprep.subr.bf16.mxu1 %v12823_v37  ;;  %11308 = vmatprep.subr.bf16.mxu0 %v12825_v20  ;;  %v7819_v10 = vld [vmem:[#allocation3 + $0x1f0] sm:$0xff]  ;;  %v7836_v37 = vld [vmem:[#allocation3 + $0x278] sm:$0xff] }
 0x8bc   : > { %8926 = vmatmul.mubr.bf16.gmra.mrb[28].mxu1 %v7813_v59  ;;  %9023 = vmatmul.mubr.bf16.gmra.mrb[28].mxu0 %v7815_v34  ;;  %v12854_v59 = vld [vmem:[%s13802_s7 + $0x328] sm:$0xff]   ;;  %v7817_v34 = vld [vmem:[#allocation3 + $0x1e0] sm:$0xff] }
 0x8bd   : > { %8933 = vmatprep.mubr.bf16.mxu1 %v7832_v52  ;;  %9030 = vmatprep.mubr.bf16.mxu0 %v7834_v51  ;;  %v12855_v52 = vld [vmem:[%s13802_s7 + $0x2f0] sm:$0xff]  }
 0x8be   : > { %11245 = vmatpush3.bf16.msra.mxu1 %v12824_v32  ;;  %11309 = vmatpush3.bf16.msra.mxu0 %v12826_v6  ;;  %v12857_v51 = vld [vmem:[%s13802_s7 + $0x370] sm:$0xff]   ;;  %v7838_v32 = vld [vmem:[#allocation3 + $0x288] sm:$0xff] }
 0x8bf   : > { %11246 = vmatprep.subr.bf16.mxu1 %v12827_v4  ;;  %11310 = vmatprep.subr.bf16.mxu0 %v12829_v36  ;;  %v12856_v20 = vld [vmem:[%s13802_s7 + $0x2b0] sm:$0xff]   ;;  %v12859_v4 = vld [vmem:[%s13802_s7 + $0x2f8] sm:$0xff]   ;;  %v12863_v36 = vld [vmem:[%s13802_s7 + $0x3c0] sm:$0xff]  }
 0x8c0   : > { %v12858_v6 = vld [vmem:[%s13802_s7 + $0x330] sm:$0xff]  }
 0x8c2   : > { %11247 = vmatpush3.bf16.msra.mxu1 %v12828_v45  ;;  %11311 = vmatpush3.bf16.msra.mxu0 %v12830_v18  ;;  %v12862_v45 = vld [vmem:[%s13802_s7 + $0x338] sm:$0xff]   ;;  %v12865_v18 = vld [vmem:[%s13802_s7 + $0x440] sm:$0xff]  }
 0x8c3   : > { %11360 = vmatprep.subr.bf16.mxu1 %v12831_v2  ;;  %11424 = vmatprep.subr.bf16.mxu0 %v12833_v56  ;;  %v7854_v2 = vld [vmem:[#allocation3 + $0x308] sm:$0xff]  ;;  %v7856_v56 = vld [vmem:[#allocation3 + $0x318] sm:$0xff] }
 0x8c4   : > { %8934 = vmatmul.mubr.bf16.gmra.mrb[32].mxu1 %v7831_v9  ;;  %9031 = vmatmul.mubr.bf16.gmra.mrb[32].mxu0 %v7833_v44  ;;  %v12861_v9 = vld [vmem:[%s13802_s7 + $0x378] sm:$0xff]  }
 0x8c5   : > { %8941 = vmatprep.mubr.bf16.mxu1 %v7850_v55  ;;  %9038 = vmatprep.mubr.bf16.mxu0 %v7852_v46  ;;  %v12860_v44 = vld [vmem:[%s13802_s7 + $0x2b8] sm:$0xff]   ;;  %v7835_v55 = vld [vmem:[#allocation3 + $0x270] sm:$0xff] }
 0x8c6   : > { %v7837_v46 = vld [vmem:[#allocation3 + $0x280] sm:$0xff] }
 0x8cc   : > { %8942 = vmatmul.mubr.bf16.gmra.mrb[36].mxu1 %v7849_v33  ;;  %9039 = vmatmul.mubr.bf16.gmra.mrb[36].mxu0 %v7851_v61  ;;  %v7853_v33 = vld [vmem:[#allocation3 + $0x300] sm:$0xff]  ;;  %v7855_v61 = vld [vmem:[#allocation3 + $0x310] sm:$0xff] }
 0x8cd   : > { %8949 = vmatprep.mubr.bf16.mxu1 %v7868_v57  ;;  %9046 = vmatprep.mubr.bf16.mxu0 %v7870_v48  ;;  %v7872_v57 = vld [vmem:[#allocation3 + $0x398] sm:$0xff]  ;;  %v7874_v48 = vld [vmem:[#allocation3 + $0x3a8] sm:$0xff] }
 0x8d4   : > { %8950 = vmatmul.mubr.bf16.gmra.mrb[40].mxu1 %v7867_v23  ;;  %9047 = vmatmul.mubr.bf16.gmra.mrb[40].mxu0 %v7869_v14  ;;  %v7871_v23 = vld [vmem:[#allocation3 + $0x390] sm:$0xff]  ;;  %v7873_v14 = vld [vmem:[#allocation3 + $0x3a0] sm:$0xff] }
 0x8d5   : > { %8957 = vmatprep.mubr.bf16.mxu1 %v7886_v16  ;;  %9054 = vmatprep.mubr.bf16.mxu0 %v7888_v8  ;;  %v7890_v16 = vld [vmem:[#allocation3 + $0x428] sm:$0xff]  ;;  %v7892_v8 = vld [vmem:[#allocation3 + $0x438] sm:$0xff] }
 0x8dc   : > { %8958 = vmatmul.mubr.bf16.gmra.mrb[44].mxu1 %v7885_v0  ;;  %9055 = vmatmul.mubr.bf16.gmra.mrb[44].mxu0 %v7887_v43  ;;  %v7889_v0 = vld [vmem:[#allocation3 + $0x420] sm:$0xff]  ;;  %v7891_v43 = vld [vmem:[#allocation3 + $0x430] sm:$0xff] }
 0x8dd   : > { %9095 = vmatprep.mubr.bf16.mxu1 %v7764_v40  ;;  %9192 = vmatprep.mubr.bf16.mxu0 %v7766_v63  ;;  %v7768_v40 = vld [vmem:[#allocation3 + $0x58] sm:$0xff]  ;;  %v7770_v63 = vld [vmem:[#allocation3 + $0x68] sm:$0xff] }
 0x8e4   : > { %9096 = vmatmul.mubr.bf16.vlgmr.msra.gmra.mrb[48].mxu1 %v7763_v60  ;;  %9193 = vmatmul.mubr.bf16.vlgmr.msra.gmra.mrb[48].mxu0 %v7765_v29  ;;  %v7767_v60 = vld [vmem:[#allocation3 + $0x50] sm:$0xff]  ;;  %v7769_v29 = vld [vmem:[#allocation3 + $0x60] sm:$0xff] }
 0x8e5   : > { %11361 = vmatpush3.bf16.msra.mxu1 %v12832_v17  ;;  %11425 = vmatpush3.bf16.msra.mxu0 %v12834_v22  ;;  %v12864_v17 = vld [vmem:[%s13802_s7 + $0x380] sm:$0xff]  }
 0x8e6   : > { %9103 = vmatprep.mubr.bf16.mxu1 %v7782_v31  ;;  %9200 = vmatprep.mubr.bf16.mxu0 %v7784_v12  ;;  %v12866_v22 = vld [vmem:[%s13802_s7 + $0x400] sm:$0xff]   ;;  %v7788_v12 = vld [vmem:[#allocation3 + $0xf8] sm:$0xff] }
 0x8e7   : > { %11362 = vmatprep.subr.bf16.mxu1 %v12835_v38  ;;  %11426 = vmatprep.subr.bf16.mxu0 %v12837_v5  ;;  %v7786_v31 = vld [vmem:[#allocation3 + $0xe8] sm:$0xff]  ;;  %v12867_v38 = vld [vmem:[%s13802_s7 + $0x3c8] sm:$0xff]  }
 0x8e8   : > { %v12868_v5 = vld [vmem:[%s13802_s7 + $0x388] sm:$0xff]  }
 0x8e9   : > { %11363 = vmatpush3.bf16.msra.mxu1 %v12836_v11  ;;  %11427 = vmatpush3.bf16.msra.mxu0 %v12838_v54  ;;  %v12869_v11 = vld [vmem:[%s13802_s7 + $0x448] sm:$0xff]  }
 0x8ea   : > { %11364 = vmatprep.subr.bf16.mxu1 %v12839_v42  ;;  %11428 = vmatprep.subr.bf16.mxu0 %v12841_v27  ;;  %v12870_v54 = vld [vmem:[%s13802_s7 + $0x408] sm:$0xff]   ;;  %v12871_v42 = vld [vmem:[%s13802_s7 + $0x3d0] sm:$0xff]  }
 0x8eb   : > { %v12873_v27 = vld [vmem:[%s13802_s7 + $0x450] sm:$0xff]  }
 0x8ec   : > { %9104 = vmatmul.mubr.bf16.gmra.mrb[52].mxu1 %v7781_v47  ;;  %9201 = vmatmul.mubr.bf16.gmra.mrb[52].mxu0 %v7783_v25  ;;  %v7785_v47 = vld [vmem:[#allocation3 + $0xe0] sm:$0xff]  ;;  %v7787_v25 = vld [vmem:[#allocation3 + $0xf0] sm:$0xff] }
 0x8ed   : > { %9111 = vmatprep.mubr.bf16.mxu1 %v7800_v1  ;;  %9208 = vmatprep.mubr.bf16.mxu0 %v7802_v24  ;;  %v7804_v1 = vld [vmem:[#allocation3 + $0x178] sm:$0xff]  ;;  %v7806_v24 = vld [vmem:[#allocation3 + $0x188] sm:$0xff] }
 0x8ee   : > { %11365 = vmatpush3.bf16.msra.mxu1 %v12840_v41  ;;  %11429 = vmatpush3.bf16.msra.mxu0 %v12842_v13  ;;  %v12872_v41 = vld [vmem:[%s13802_s7 + $0x390] sm:$0xff]  }
 0x8ef   : > { %11366 = vmatprep.subr.bf16.mxu1 %v12843_v7  ;;  %11430 = vmatprep.subr.bf16.mxu0 %v12845_v62  ;;  %v12874_v13 = vld [vmem:[%s13802_s7 + $0x410] sm:$0xff]   ;;  %v12875_v7 = vld [vmem:[%s13802_s7 + $0x3d8] sm:$0xff]  }
 0x8f0   : > { %v12877_v62 = vld [vmem:[%s13802_s7 + $0x458] sm:$0xff]  }
 0x8f2   : > { %11367 = vmatpush3.bf16.msra.mxu1 %v12844_v30  ;;  %11431 = vmatpush3.bf16.msra.mxu0 %v12846_v21  ;;  %v12876_v30 = vld [vmem:[%s13802_s7 + $0x398] sm:$0xff]  }
 0x8f3   : > { %11368 = vmatprep.subr.bf16.mxu1 %v12847_v15  ;;  %11432 = vmatprep.subr.bf16.mxu0 %v12849_v19  ;;  %v12878_v21 = vld [vmem:[%s13802_s7 + $0x418] sm:$0xff]   ;;  %v12879_v15 = vld [vmem:[%s13802_s7 + $0x3e0] sm:$0xff]  }
 0x8f4   : > { %9112 = vmatmul.mubr.bf16.gmra.mrb[56].mxu1 %v7799_v39  ;;  %9209 = vmatmul.mubr.bf16.gmra.mrb[56].mxu0 %v7801_v26  ;;  %v12881_v39 = vld [vmem:[%s13802_s7 + $0x460] sm:$0xff]   ;;  %v7805_v19 = vld [vmem:[#allocation3 + $0x180] sm:$0xff] }
 0x8f5   : > { %9119 = vmatprep.mubr.bf16.mxu1 %v7818_v28  ;;  %9216 = vmatprep.mubr.bf16.mxu0 %v7820_v35  ;;  %v7803_v26 = vld [vmem:[#allocation3 + $0x170] sm:$0xff]  ;;  %v7822_v28 = vld [vmem:[#allocation3 + $0x208] sm:$0xff]  ;;  %v7824_v35 = vld [vmem:[#allocation3 + $0x218] sm:$0xff] }
 0x8f6   : > { %11369 = vmatpush3.bf16.msra.mxu1 %v12848_v58  ;;  %11433 = vmatpush3.bf16.msra.mxu0 %v12850_v49  ;;  %v12880_v58 = vld [vmem:[%s13802_s7 + $0x3a0] sm:$0xff]  }
 0x8f7   : > { %11370 = vmatprep.subr.bf16.mxu1 %v12851_v3  ;;  %11434 = vmatprep.subr.bf16.mxu0 %v12853_v50  ;;  %v12882_v49 = vld [vmem:[%s13802_s7 + $0x420] sm:$0xff]   ;;  %v12883_v3 = vld [vmem:[%s13802_s7 + $0x3e8] sm:$0xff]  }
 0x8f8   : > { %v12885_v50 = vld [vmem:[%s13802_s7 + $0x468] sm:$0xff]  }
 0x8fa   : > { %11371 = vmatpush3.bf16.msra.mxu1 %v12852_v53  ;;  %11435 = vmatpush3.bf16.msra.mxu0 %v12854_v59  ;;  %v12884_v53 = vld [vmem:[%s13802_s7 + $0x3a8] sm:$0xff]  }
 0x8fb   : > { %11372 = vmatprep.subr.bf16.mxu1 %v12855_v52  ;;  %11436 = vmatprep.subr.bf16.mxu0 %v12857_v51  ;;  %v12886_v59 = vld [vmem:[%s13802_s7 + $0x428] sm:$0xff]   ;;  %v7821_v52 = vld [vmem:[#allocation3 + $0x200] sm:$0xff] }
 0x8fc   : > { %9120 = vmatmul.mubr.bf16.gmra.mrb[60].mxu1 %v7817_v34  ;;  %9217 = vmatmul.mubr.bf16.gmra.mrb[60].mxu0 %v7819_v10  ;;  %v12887_v34 = vld [vmem:[%s13802_s7 + $0x3f0] sm:$0xff]   ;;  %v7823_v51 = vld [vmem:[#allocation3 + $0x210] sm:$0xff] }
 0x8fd   : > { %9127 = vmatprep.mubr.bf16.mxu1 %v7836_v37  ;;  %9224 = vmatprep.mubr.bf16.mxu0 %v7838_v32  ;;  %v12889_v10 = vld [vmem:[%s13802_s7 + $0x470] sm:$0xff]   ;;  %v7842_v32 = vld [vmem:[#allocation3 + $0x2a8] sm:$0xff] }
 0x8fe   : > { %11373 = vmatpush3.bf16.msra.mxu1 %v12856_v20  ;;  %11437 = vmatpush3.bf16.msra.mxu0 %v12858_v6  ;;  %v7840_v37 = vld [vmem:[#allocation3 + $0x298] sm:$0xff] }
 0x8ff   : > { %11374 = vmatprep.subr.bf16.mxu1 %v12859_v4  ;;  %11438 = vmatprep.subr.bf16.mxu0 %v12861_v9  ;;  %v12888_v20 = vld [vmem:[%s13802_s7 + $0x3b0] sm:$0xff]   ;;  %v12891_v4 = vld [vmem:[%s13802_s7 + $0x3f8] sm:$0xff]  }
 0x900   : > { %v12890_v6 = vld [vmem:[%s13802_s7 + $0x430] sm:$0xff]   ;;  %v12893_v9 = vld [vmem:[%s13802_s7 + $0x478] sm:$0xff]  }
 0x902   : > { %11375 = vmatpush3.bf16.msra.mxu1 %v12860_v44  ;;  %11439 = vmatpush3.bf16.msra.mxu0 %v12862_v45  ;;  %v12892_v44 = vld [vmem:[%s13802_s7 + $0x3b8] sm:$0xff]  }
 0x903   : > { %11488 = vmatprep.subr.bf16.mxu1 %v12863_v36  ;;  %11552 = vmatprep.subr.bf16.mxu0 %v12865_v18  ;;  %v12894_v45 = vld [vmem:[%s13802_s7 + $0x438] sm:$0xff]   ;;  %v7839_v36 = vld [vmem:[#allocation3 + $0x290] sm:$0xff] }
 0x904   : > { %9128 = vmatmul.mubr.bf16.gmra.mrb[64].mxu1 %v7835_v55  ;;  %9225 = vmatmul.mubr.bf16.gmra.mrb[64].mxu0 %v7837_v46  ;;  %v7841_v18 = vld [vmem:[#allocation3 + $0x2a0] sm:$0xff]  ;;  %v7858_v55 = vld [vmem:[#allocation3 + $0x328] sm:$0xff]  ;;  %v7860_v46 = vld [vmem:[#allocation3 + $0x338] sm:$0xff] }
 0x905   : > { %9135 = vmatprep.mubr.bf16.mxu1 %v7854_v2  ;;  %9232 = vmatprep.mubr.bf16.mxu0 %v7856_v56  ;;  %v7857_v2 = vld [vmem:[#allocation3 + $0x320] sm:$0xff]  ;;  %v7859_v56 = vld [vmem:[#allocation3 + $0x330] sm:$0xff] }
 0x90c   : > { %9136 = vmatmul.mubr.bf16.gmra.mrb[68].mxu1 %v7853_v33  ;;  %9233 = vmatmul.mubr.bf16.gmra.mrb[68].mxu0 %v7855_v61  ;;  %v7876_v33 = vld [vmem:[#allocation3 + $0x3b8] sm:$0xff]  ;;  %v7878_v61 = vld [vmem:[#allocation3 + $0x3c8] sm:$0xff] }
 0x90d   : > { %9143 = vmatprep.mubr.bf16.mxu1 %v7872_v57  ;;  %9240 = vmatprep.mubr.bf16.mxu0 %v7874_v48  ;;  %v7875_v57 = vld [vmem:[#allocation3 + $0x3b0] sm:$0xff]  ;;  %v7877_v48 = vld [vmem:[#allocation3 + $0x3c0] sm:$0xff] }
 0x914   : > { %9144 = vmatmul.mubr.bf16.gmra.mrb[72].mxu1 %v7871_v23  ;;  %9241 = vmatmul.mubr.bf16.gmra.mrb[72].mxu0 %v7873_v14  ;;  %v7894_v23 = vld [vmem:[#allocation3 + $0x448] sm:$0xff]  ;;  %v7896_v14 = vld [vmem:[#allocation3 + $0x458] sm:$0xff] }
 0x915   : > { %9151 = vmatprep.mubr.bf16.mxu1 %v7890_v16  ;;  %9248 = vmatprep.mubr.bf16.mxu0 %v7892_v8 }
 0x91c   : > { %9152 = vmatmul.mubr.bf16.gmra.mrb[76].mxu1 %v7889_v0  ;;  %9249 = vmatmul.mubr.bf16.gmra.mrb[76].mxu0 %v7891_v43 }
 0x91d   : > { %9289 = vmatprep.mubr.bf16.mxu1 %v7768_v40  ;;  %9386 = vmatprep.mubr.bf16.mxu0 %v7770_v63 }
 0x924   : > { %9290 = vmatmul.mubr.bf16.vlgmr.msra.gmra.mrb[80].mxu1 %v7767_v60  ;;  %9387 = vmatmul.mubr.bf16.vlgmr.msra.gmra.mrb[80].mxu0 %v7769_v29 }
 0x925   : > { %11489 = vmatpush3.bf16.msra.mxu1 %v12864_v17  ;;  %11553 = vmatpush3.bf16.msra.mxu0 %v12866_v22  ;;  %v7893_v17 = vld [vmem:[#allocation3 + $0x440] sm:$0xff]  ;;  %v7895_v22 = vld [vmem:[#allocation3 + $0x450] sm:$0xff] }
 0x926   : > { %9297 = vmatprep.mubr.bf16.mxu1 %v7786_v31  ;;  %9394 = vmatprep.mubr.bf16.mxu0 %v7788_v12 }
 0x927   : > { %11490 = vmatprep.subr.bf16.mxu1 %v12867_v38  ;;  %11554 = vmatprep.subr.bf16.mxu0 %v12869_v11  ;;  %v7772_v38 = vld [vmem:[#allocation3 + $0x78] sm:$0xff]  ;;  %v7774_v11 = vld [vmem:[#allocation3 + $0x88] sm:$0xff] }
 0x929   : > { %11491 = vmatpush3.bf16.msra.mxu1 %v12868_v5  ;;  %11555 = vmatpush3.bf16.msra.mxu0 %v12870_v54 }
 0x92a   : > { %11492 = vmatprep.subr.bf16.mxu1 %v12871_v42  ;;  %11556 = vmatprep.subr.bf16.mxu0 %v12873_v27 }
 0x92c   : > { %9298 = vmatmul.mubr.bf16.gmra.mrb[84].mxu1 %v7785_v47  ;;  %9395 = vmatmul.mubr.bf16.gmra.mrb[84].mxu0 %v7787_v25 }
 0x92d   : > { %9305 = vmatprep.mubr.bf16.mxu1 %v7804_v1  ;;  %9402 = vmatprep.mubr.bf16.mxu0 %v7806_v24 }
 0x92e   : > { %11493 = vmatpush3.bf16.msra.mxu1 %v12872_v41  ;;  %11557 = vmatpush3.bf16.msra.mxu0 %v12874_v13 }
 0x92f   : > { %11494 = vmatprep.subr.bf16.mxu1 %v12875_v7  ;;  %11558 = vmatprep.subr.bf16.mxu0 %v12877_v62  ;;  %v7771_v7 = vld [vmem:[#allocation3 + $0x70] sm:$0xff]  ;;  %v7773_v62 = vld [vmem:[#allocation3 + $0x80] sm:$0xff] }
 0x932   : > { %11495 = vmatpush3.bf16.msra.mxu1 %v12876_v30  ;;  %11559 = vmatpush3.bf16.msra.mxu0 %v12878_v21 }
 0x933   : > { %11496 = vmatprep.subr.bf16.mxu1 %v12879_v15  ;;  %11560 = vmatprep.subr.bf16.mxu0 %v12881_v39  ;;  %v7790_v15 = vld [vmem:[#allocation3 + $0x108] sm:$0xff]  ;;  %v7792_v39 = vld [vmem:[#allocation3 + $0x118] sm:$0xff] }
 0x934   : > { %9306 = vmatmul.mubr.bf16.gmra.mrb[88].mxu1 %v7803_v26  ;;  %9403 = vmatmul.mubr.bf16.gmra.mrb[88].mxu0 %v7805_v19 }
 0x935   : > { %9313 = vmatprep.mubr.bf16.mxu1 %v7822_v28  ;;  %9410 = vmatprep.mubr.bf16.mxu0 %v7824_v35 }
 0x936   : > { %11497 = vmatpush3.bf16.msra.mxu1 %v12880_v58  ;;  %11561 = vmatpush3.bf16.msra.mxu0 %v12882_v49 }
 0x937   : > { %11498 = vmatprep.subr.bf16.mxu1 %v12883_v3  ;;  %11562 = vmatprep.subr.bf16.mxu0 %v12885_v50 }
 0x93a   : > { %11499 = vmatpush3.bf16.msra.mxu1 %v12884_v53  ;;  %11563 = vmatpush3.bf16.msra.mxu0 %v12886_v59 }
 0x93b   : > { %11500 = vmatprep.subr.bf16.mxu1 %v12887_v34  ;;  %11564 = vmatprep.subr.bf16.mxu0 %v12889_v10  ;;  %v7789_v34 = vld [vmem:[#allocation3 + $0x100] sm:$0xff]  ;;  %v7791_v10 = vld [vmem:[#allocation3 + $0x110] sm:$0xff] }
 0x93c   : > { %9314 = vmatmul.mubr.bf16.gmra.mrb[92].mxu1 %v7821_v52  ;;  %9411 = vmatmul.mubr.bf16.gmra.mrb[92].mxu0 %v7823_v51 }
 0x93d   : > { %9321 = vmatprep.mubr.bf16.mxu1 %v7840_v37  ;;  %9418 = vmatprep.mubr.bf16.mxu0 %v7842_v32  ;;  %v7808_v37 = vld [vmem:[#allocation3 + $0x198] sm:$0xff]  ;;  %v7810_v32 = vld [vmem:[#allocation3 + $0x1a8] sm:$0xff] }
 0x93e   : > { %11501 = vmatpush3.bf16.msra.mxu1 %v12888_v20  ;;  %11565 = vmatpush3.bf16.msra.mxu0 %v12890_v6 }
 0x93f   : > { %11502 = vmatprep.subr.bf16.mxu1 %v12891_v4  ;;  %11566 = vmatprep.subr.bf16.mxu0 %v12893_v9 }
 0x942   : > { %11503 = vmatpush3.bf16.msra.mxu1 %v12892_v44  ;;  %11567 = vmatpush3.bf16.msra.mxu0 %v12894_v45 }
 0x944   : > { %9322 = vmatmul.mubr.bf16.gmra.mrb[96].mxu1 %v7839_v36  ;;  %9419 = vmatmul.mubr.bf16.gmra.mrb[96].mxu0 %v7841_v18 }
 0x945   : > { %9329 = vmatprep.mubr.bf16.mxu1 %v7858_v55  ;;  %9426 = vmatprep.mubr.bf16.mxu0 %v7860_v46 }
 0x94c   : > { %9330 = vmatmul.mubr.bf16.gmra.mrb[100].mxu1 %v7857_v2  ;;  %9427 = vmatmul.mubr.bf16.gmra.mrb[100].mxu0 %v7859_v56  ;;  %v7807_v2 = vld [vmem:[#allocation3 + $0x190] sm:$0xff]  ;;  %v7809_v56 = vld [vmem:[#allocation3 + $0x1a0] sm:$0xff] }
 0x94d   : > { %9337 = vmatprep.mubr.bf16.mxu1 %v7876_v33  ;;  %9434 = vmatprep.mubr.bf16.mxu0 %v7878_v61 }
 0x954   : > { %9338 = vmatmul.mubr.bf16.gmra.mrb[104].mxu1 %v7875_v57  ;;  %9435 = vmatmul.mubr.bf16.gmra.mrb[104].mxu0 %v7877_v48  ;;  %v7826_v57 = vld [vmem:[#allocation3 + $0x228] sm:$0xff]  ;;  %v7828_v48 = vld [vmem:[#allocation3 + $0x238] sm:$0xff] }
 0x955   : > { %9345 = vmatprep.mubr.bf16.mxu1 %v7894_v23  ;;  %9442 = vmatprep.mubr.bf16.mxu0 %v7896_v14 }
 0x957   : > { %v11056_v16 = vpop.f32.mrb[0].mxu0  ;;  %v11080_v8 = vpop.f32.mrb[0].mxu1 }
 0x958   : > { %v11057_v0 = vpop.f32.mrb[1].mxu0  ;;  %v11081_v43 = vpop.f32.mrb[1].mxu1 }
 0x959   : > { %v16445_v40 = vadd.f32 %v11057_v0, %v11056_v16  ;;  %v16447_v63 = vadd.f32 %v11081_v43, %v11080_v8  ;;  %v11059_v60 = vpop.f32.mrb[2].mxu0  ;;  %v11083_v29 = vpop.f32.mrb[2].mxu1  ;;  %v16478_v16 = vld [vmem:[%s13970_s21] ss:$0 sm:$0xff] }
 0x95a   : > { %v11060_v31 = vpop.f32.mrb[3].mxu0  ;;  %v11084_v12 = vpop.f32.mrb[3].mxu1 }
 0x95b   : > { %v16449_v5 = vadd.f32 %v11060_v31, %v11059_v60  ;;  %v16451_v54 = vadd.f32 %v11084_v12, %v11083_v29  ;;  %v8807_v29 = vadd.f32 %v16445_v40, %v16478_v16 }
 0x95c   : > { %9346 = vmatmul.mubr.bf16.gmra.mrb[108].mxu1 %v7893_v17  ;;  %9443 = vmatmul.mubr.bf16.gmra.mrb[108].mxu0 %v7895_v22 }
 0x95d   : > { %9483 = vmatprep.mubr.bf16.mxu1 %v7772_v38  ;;  %9580 = vmatprep.mubr.bf16.mxu0 %v7774_v11  ;;  %v7825_v38 = vld [vmem:[#allocation3 + $0x220] sm:$0xff]  ;;  %v7827_v11 = vld [vmem:[#allocation3 + $0x230] sm:$0xff] }
 0x95f   : > { %v11062_v42 = vpop.f32.mrb[4].mxu0  ;;  %v11086_v27 = vpop.f32.mrb[4].mxu1 }
 0x960   : > { %v11063_v47 = vpop.f32.mrb[5].mxu0  ;;  %v11087_v25 = vpop.f32.mrb[5].mxu1 }
 0x961   : > { %v16453_v1 = vadd.f32 %v11063_v47, %v11062_v42  ;;  %v16455_v24 = vadd.f32 %v11087_v25, %v11086_v27  ;;  %v11065_v41 = vpop.f32.mrb[6].mxu0  ;;  %v11089_v13 = vpop.f32.mrb[6].mxu1  ;;  %v7844_v47 = vld [vmem:[#allocation3 + $0x2b8] sm:$0xff]  ;;  %v7846_v25 = vld [vmem:[#allocation3 + $0x2c8] sm:$0xff] }
 0x962   : > { %v11066_v30 = vpop.f32.mrb[7].mxu0  ;;  %v11090_v21 = vpop.f32.mrb[7].mxu1 }
 0x963   : > { %v16457_v26 = vadd.f32 %v11066_v30, %v11065_v41  ;;  %v16459_v19 = vadd.f32 %v11090_v21, %v11089_v13  ;;  %v8810_v41 = vadd.f32 %v16449_v5, %v16478_v16 }
 0x964   : > { %9484 = vmatmul.mubr.bf16.vlgmr.msra.gmra.mrb[112].mxu1 %v7771_v7  ;;  %9581 = vmatmul.mubr.bf16.vlgmr.msra.gmra.mrb[112].mxu0 %v7773_v62 }
 0x965   : > { %9491 = vmatprep.mubr.bf16.mxu1 %v7790_v15  ;;  %9588 = vmatprep.mubr.bf16.mxu0 %v7792_v39 }
 0x967   : > { %v11068_v28 = vpop.f32.mrb[8].mxu0  ;;  %v11092_v35 = vpop.f32.mrb[8].mxu1 }
 0x968   : > { %v11069_v58 = vpop.f32.mrb[9].mxu0  ;;  %v11093_v49 = vpop.f32.mrb[9].mxu1 }
 0x969   : > { %v16461_v3 = vadd.f32 %v11069_v58, %v11068_v28  ;;  %v16463_v50 = vadd.f32 %v11093_v49, %v11092_v35  ;;  %v11071_v53 = vpop.f32.mrb[10].mxu0  ;;  %v11095_v59 = vpop.f32.mrb[10].mxu1  ;;  %v8815_v58 = vadd.f32 %v16453_v1, %v16478_v16 }
 0x96a   : > { %v11072_v52 = vpop.f32.mrb[11].mxu0  ;;  %v11096_v51 = vpop.f32.mrb[11].mxu1 }
 0x96b   : > { %v16465_v20 = vadd.f32 %v11072_v52, %v11071_v53  ;;  %v16467_v6 = vadd.f32 %v11096_v51, %v11095_v59 }
 0x96c   : > { %9492 = vmatmul.mubr.bf16.gmra.mrb[116].mxu1 %v7789_v34  ;;  %9589 = vmatmul.mubr.bf16.gmra.mrb[116].mxu0 %v7791_v10  ;;  %v7843_v34 = vld [vmem:[#allocation3 + $0x2b0] sm:$0xff]  ;;  %v7845_v10 = vld [vmem:[#allocation3 + $0x2c0] sm:$0xff] }
 0x96d   : > { %9499 = vmatprep.mubr.bf16.mxu1 %v7808_v37  ;;  %9596 = vmatprep.mubr.bf16.mxu0 %v7810_v32  ;;  %v7862_v37 = vld [vmem:[#allocation3 + $0x348] sm:$0xff]  ;;  %v7864_v32 = vld [vmem:[#allocation3 + $0x358] sm:$0xff] }
 0x96f   : > { %v11074_v4 = vpop.f32.mrb[12].mxu0  ;;  %v11098_v9 = vpop.f32.mrb[12].mxu1 }
 0x970   : > { %v11075_v44 = vpop.f32.mrb[13].mxu0  ;;  %v11099_v45 = vpop.f32.mrb[13].mxu1 }
 0x971   : > { %v16469_v36 = vadd.f32 %v11075_v44, %v11074_v4  ;;  %v16471_v18 = vadd.f32 %v11099_v45, %v11098_v9  ;;  %v11077_v55 = vpop.f32.mrb[14].mxu0  ;;  %v11101_v46 = vpop.f32.mrb[14].mxu1  ;;  %v8818_v4 = vadd.f32 %v16457_v26, %v16478_v16 }
 0x972   : > { %v11078_v33 = vpop.f32.mrb[15].mxu0  ;;  %v11102_v61 = vpop.f32.mrb[15].mxu1 }
 0x973   : > { %v16473_v23 = vadd.f32 %v11078_v33, %v11077_v55  ;;  %v16475_v14 = vadd.f32 %v11102_v61, %v11101_v46 }
 0x974   : > { %9500 = vmatmul.mubr.bf16.gmra.mrb[120].mxu1 %v7807_v2  ;;  %9597 = vmatmul.mubr.bf16.gmra.mrb[120].mxu0 %v7809_v56 }
 0x975   : > { %9507 = vmatprep.mubr.bf16.mxu1 %v7826_v57  ;;  %9604 = vmatprep.mubr.bf16.mxu0 %v7828_v48  ;;  %v8823_v57 = vadd.f32 %v16461_v3, %v16478_v16 }
 0x977   : > { %v11120_v8 = vpop.f32.mrb[16].mxu1  ;;  %v11184_v0 = vpop.f32.mrb[16].mxu0 }
 0x978   : > { %v11121_v43 = vpop.f32.mrb[17].mxu1  ;;  %v11185_v60 = vpop.f32.mrb[17].mxu0 }
 0x979   : > { %v11122_v17 = vadd.f32 %v11121_v43, %v11120_v8  ;;  %v11186_v22 = vadd.f32 %v11185_v60, %v11184_v0  ;;  %v11123_v31 = vpop.f32.mrb[18].mxu1  ;;  %v11187_v12 = vpop.f32.mrb[18].mxu0  ;;  %v7861_v43 = vld [vmem:[#allocation3 + $0x340] sm:$0xff]  ;;  %v7863_v60 = vld [vmem:[#allocation3 + $0x350] sm:$0xff] }
 0x97a   : > { %v11124_v42 = vpop.f32.mrb[19].mxu1  ;;  %v11188_v27 = vpop.f32.mrb[19].mxu0 }
 0x97b   : > { %v8904_v13 = vadd.f32 %v11122_v17, %v8807_v29  ;;  %v11125_v7 = vadd.f32 %v11124_v42, %v11123_v31  ;;  %v11189_v62 = vadd.f32 %v11188_v27, %v11187_v12  ;;  %v7882_v31 = vld [vmem:[#allocation3 + $0x3e8] sm:$0xff]  ;;  %v8826_v12 = vadd.f32 %v16465_v20, %v16478_v16 }
 0x97c   : > { %9508 = vmatmul.mubr.bf16.gmra.mrb[124].mxu1 %v7825_v38  ;;  %9605 = vmatmul.mubr.bf16.gmra.mrb[124].mxu0 %v7827_v11 }
 0x97d   : > { %v16484_v30 = vadd.f32 %v11186_v22, %v8904_v13  ;;  %v8907_v40 = vadd.f32 %v11125_v7, %v8810_v41  ;;  %9515 = vmatprep.mubr.bf16.mxu1 %v7844_v47  ;;  %9612 = vmatprep.mubr.bf16.mxu0 %v7846_v25  ;;  %v7880_v22 = vld [vmem:[#allocation3 + $0x3d8] sm:$0xff] }
 0x97f   : > { %v16486_v21 = vadd.f32 %v11189_v62, %v8907_v40  ;;  %v11126_v15 = vpop.f32.mrb[20].mxu1  ;;  %v11190_v39 = vpop.f32.mrb[20].mxu0  ;;  %v8831_v62 = vadd.f32 %v16469_v36, %v16478_v16 }
 0x980   : > { %v11127_v28 = vpop.f32.mrb[21].mxu1  ;;  %v11191_v35 = vpop.f32.mrb[21].mxu0 }
 0x981   : > { %v11128_v5 = vadd.f32 %v11127_v28, %v11126_v15  ;;  %v11192_v49 = vadd.f32 %v11191_v35, %v11190_v39  ;;  %v11129_v53 = vpop.f32.mrb[22].mxu1  ;;  %v11193_v59 = vpop.f32.mrb[22].mxu0  ;;  %v7879_v28 = vld [vmem:[#allocation3 + $0x3d0] sm:$0xff]  ;;  %v7881_v35 = vld [vmem:[#allocation3 + $0x3e0] sm:$0xff] }
 0x982   : > { %v11130_v52 = vpop.f32.mrb[23].mxu1  ;;  %v11194_v51 = vpop.f32.mrb[23].mxu0 }
 0x983   : > { %v8912_v9 = vadd.f32 %v11128_v5, %v8815_v58  ;;  %v11131_v44 = vadd.f32 %v11130_v52, %v11129_v53  ;;  %v11195_v45 = vadd.f32 %v11194_v51, %v11193_v59  ;;  %v7900_v53 = vld [vmem:[#allocation3 + $0x478] sm:$0xff]  ;;  %v8834_v59 = vadd.f32 %v16473_v23, %v16478_v16 }
 0x984   : > { %9516 = vmatmul.mubr.bf16.gmra.mrb[128].mxu1 %v7843_v34  ;;  %9613 = vmatmul.mubr.bf16.gmra.mrb[128].mxu0 %v7845_v10 }
 0x985   : > { %v16492_v55 = vadd.f32 %v11192_v49, %v8912_v9  ;;  %v8915_v1 = vadd.f32 %v11131_v44, %v8818_v4  ;;  %9523 = vmatprep.mubr.bf16.mxu1 %v7862_v37  ;;  %9620 = vmatprep.mubr.bf16.mxu0 %v7864_v32  ;;  %v7898_v49 = vld [vmem:[#allocation3 + $0x468] sm:$0xff] }
 0x987   : > { %v16494_v46 = vadd.f32 %v11195_v45, %v8915_v1  ;;  %v11132_v2 = vpop.f32.mrb[24].mxu1  ;;  %v11196_v56 = vpop.f32.mrb[24].mxu0  ;;  %v8839_v45 = vadd.f32 %v16447_v63, %v16478_v16 }
 0x988   : > { %v11133_v33 = vpop.f32.mrb[25].mxu1  ;;  %v11197_v61 = vpop.f32.mrb[25].mxu0 }
 0x989   : > { %v11134_v26 = vadd.f32 %v11133_v33, %v11132_v2  ;;  %v11198_v48 = vadd.f32 %v11197_v61, %v11196_v56  ;;  %v11135_v8 = vpop.f32.mrb[26].mxu1  ;;  %v11199_v0 = vpop.f32.mrb[26].mxu0  ;;  %v7897_v33 = vld [vmem:[#allocation3 + $0x460] sm:$0xff]  ;;  %v7899_v61 = vld [vmem:[#allocation3 + $0x470] sm:$0xff] }
 0x98a   : > { %v11136_v29 = vpop.f32.mrb[27].mxu1  ;;  %v11200_v17 = vpop.f32.mrb[27].mxu0 }
 0x98b   : > { %v8920_v38 = vadd.f32 %v11134_v26, %v8823_v57  ;;  %v11137_v11 = vadd.f32 %v11136_v29, %v11135_v8  ;;  %v11201_v42 = vadd.f32 %v11200_v17, %v11199_v0 }
 0x98c   : > { %9524 = vmatmul.mubr.bf16.gmra.mrb[132].mxu1 %v7861_v43  ;;  %9621 = vmatmul.mubr.bf16.gmra.mrb[132].mxu0 %v7863_v60 }
 0x98d   : > { %v16500_v27 = vadd.f32 %v11198_v48, %v8920_v38  ;;  %v8923_v3 = vadd.f32 %v11137_v11, %v8826_v12  ;;  %9531 = vmatprep.mubr.bf16.mxu1 %v7880_v22  ;;  %9628 = vmatprep.mubr.bf16.mxu0 %v7882_v31  ;;  %v8842_v48 = vadd.f32 %v16451_v54, %v16478_v16 }
 0x98e   : > { %v8847_v38 = vadd.f32 %v16455_v24, %v16478_v16 }
 0x98f   : > { %v16502_v47 = vadd.f32 %v11201_v42, %v8923_v3  ;;  %v11138_v25 = vpop.f32.mrb[28].mxu1  ;;  %v11202_v41 = vpop.f32.mrb[28].mxu0 }
 0x990   : > { %v11139_v13 = vpop.f32.mrb[29].mxu1  ;;  %v11203_v7 = vpop.f32.mrb[29].mxu0 }
 0x991   : > { %v11140_v20 = vadd.f32 %v11139_v13, %v11138_v25  ;;  %v11204_v40 = vadd.f32 %v11203_v7, %v11202_v41  ;;  %v11141_v15 = vpop.f32.mrb[30].mxu1  ;;  %v11205_v39 = vpop.f32.mrb[30].mxu0  ;;  %v8850_v13 = vadd.f32 %v16459_v19, %v16478_v16 }
 0x992   : > { %v11142_v58 = vpop.f32.mrb[31].mxu1  ;;  %v11206_v5 = vpop.f32.mrb[31].mxu0 }
 0x993   : > { %v8928_v34 = vadd.f32 %v11140_v20, %v8831_v62  ;;  %v11143_v10 = vadd.f32 %v11142_v58, %v11141_v15  ;;  %v11207_v52 = vadd.f32 %v11206_v5, %v11205_v39  ;;  %v8855_v5 = vadd.f32 %v16463_v50, %v16478_v16 }
 0x994   : > { %9532 = vmatmul.mubr.bf16.gmra.mrb[136].mxu1 %v7879_v28  ;;  %9629 = vmatmul.mubr.bf16.gmra.mrb[136].mxu0 %v7881_v35 }
 0x995   : > { %v16508_v51 = vadd.f32 %v11204_v40, %v8928_v34  ;;  %v8931_v36 = vadd.f32 %v11143_v10, %v8834_v59  ;;  %9539 = vmatprep.mubr.bf16.mxu1 %v7898_v49  ;;  %9636 = vmatprep.mubr.bf16.mxu0 %v7900_v53 }
 0x997   : > { %v16510_v37 = vadd.f32 %v11207_v52, %v8931_v36  ;;  %v11144_v32 = vpop.f32.mrb[32].mxu1  ;;  %v11208_v4 = vpop.f32.mrb[32].mxu0  ;;  %v8858_v52 = vadd.f32 %v16467_v6, %v16478_v16 }
 0x998   : > { %v11145_v9 = vpop.f32.mrb[33].mxu1  ;;  %v11209_v44 = vpop.f32.mrb[33].mxu0 }
 0x999   : > { %v11146_v23 = vadd.f32 %v11145_v9, %v11144_v32  ;;  %v11210_v1 = vadd.f32 %v11209_v44, %v11208_v4  ;;  %v11147_v2 = vpop.f32.mrb[34].mxu1  ;;  %v11211_v56 = vpop.f32.mrb[34].mxu0 }
 0x99a   : > { %v11148_v57 = vpop.f32.mrb[35].mxu1  ;;  %v11212_v26 = vpop.f32.mrb[35].mxu0 }
 0x99b   : > { %v8936_v8 = vadd.f32 %v11146_v23, %v8839_v45  ;;  %v11149_v0 = vadd.f32 %v11148_v57, %v11147_v2  ;;  %v11213_v43 = vadd.f32 %v11212_v26, %v11211_v56  ;;  %v8863_v56 = vadd.f32 %v16471_v18, %v16478_v16 }
 0x99c   : > { %9540 = vmatmul.mubr.bf16.gmra.mrb[140].mxu1 %v7897_v33  ;;  %9637 = vmatmul.mubr.bf16.gmra.mrb[140].mxu0 %v7899_v61 }
 0x99d   : > { %v16516_v60 = vadd.f32 %v11210_v1, %v8936_v8  ;;  %v8939_v29 = vadd.f32 %v11149_v0, %v8842_v48  ;;  %v8866_v8 = vadd.f32 %v16475_v14, %v16478_v16 }
 0x99f   : > { %v16518_v63 = vadd.f32 %v11213_v43, %v8939_v29  ;;  %v11150_v17 = vpop.f32.mrb[36].mxu1  ;;  %v11214_v22 = vpop.f32.mrb[36].mxu0 }
 0x9a0   : > { %v11151_v31 = vpop.f32.mrb[37].mxu1  ;;  %v11215_v12 = vpop.f32.mrb[37].mxu0 }
 0x9a1   : > { %v11152_v11 = vadd.f32 %v11151_v31, %v11150_v17  ;;  %v11216_v42 = vadd.f32 %v11215_v12, %v11214_v22  ;;  %v11153_v54 = vpop.f32.mrb[38].mxu1  ;;  %v11217_v3 = vpop.f32.mrb[38].mxu0 }
 0x9a2   : > { %v11154_v25 = vpop.f32.mrb[39].mxu1  ;;  %v11218_v41 = vpop.f32.mrb[39].mxu0 }
 0x9a3   : > { %v8944_v7 = vadd.f32 %v11152_v11, %v8847_v38  ;;  %v11155_v62 = vadd.f32 %v11154_v25, %v11153_v54  ;;  %v11219_v20 = vadd.f32 %v11218_v41, %v11217_v3 }
 0x9a5   : > { %v16524_v40 = vadd.f32 %v11216_v42, %v8944_v7  ;;  %v8947_v15 = vadd.f32 %v11155_v62, %v8850_v13 }
 0x9a7   : > { %v16526_v39 = vadd.f32 %v11219_v20, %v8947_v15  ;;  %v11156_v28 = vpop.f32.mrb[40].mxu1  ;;  %v11220_v35 = vpop.f32.mrb[40].mxu0 }
 0x9a8   : > { %v11157_v24 = vpop.f32.mrb[41].mxu1  ;;  %v11221_v58 = vpop.f32.mrb[41].mxu0 }
 0x9a9   : > { %v11158_v49 = vadd.f32 %v11157_v24, %v11156_v28  ;;  %v11222_v53 = vadd.f32 %v11221_v58, %v11220_v35  ;;  %v11159_v59 = vpop.f32.mrb[42].mxu1  ;;  %v11223_v34 = vpop.f32.mrb[42].mxu0 }
 0x9aa   : > { %v11160_v19 = vpop.f32.mrb[43].mxu1  ;;  %v11224_v10 = vpop.f32.mrb[43].mxu0 }
 0x9ab   : > { %v8952_v36 = vadd.f32 %v11158_v49, %v8855_v5  ;;  %v11161_v32 = vadd.f32 %v11160_v19, %v11159_v59  ;;  %v11225_v4 = vadd.f32 %v11224_v10, %v11223_v34 }
 0x9ad   : > { %v16532_v9 = vadd.f32 %v11222_v53, %v8952_v36  ;;  %v8955_v44 = vadd.f32 %v11161_v32, %v8858_v52 }
 0x9af   : > { %v16534_v45 = vadd.f32 %v11225_v4, %v8955_v44  ;;  %v11162_v23 = vpop.f32.mrb[44].mxu1  ;;  %v11226_v1 = vpop.f32.mrb[44].mxu0 }
 0x9b0   : > { %v11163_v50 = vpop.f32.mrb[45].mxu1  ;;  %v11227_v2 = vpop.f32.mrb[45].mxu0 }
 0x9b1   : > { %v11164_v33 = vadd.f32 %v11163_v50, %v11162_v23  ;;  %v11228_v61 = vadd.f32 %v11227_v2, %v11226_v1  ;;  %v11165_v57 = vpop.f32.mrb[46].mxu1  ;;  %v11229_v26 = vpop.f32.mrb[46].mxu0 }
 0x9b2   : > { %v11166_v6 = vpop.f32.mrb[47].mxu1  ;;  %v11230_v48 = vpop.f32.mrb[47].mxu0 }
 0x9b3   : > { %v8960_v0 = vadd.f32 %v11164_v33, %v8863_v56  ;;  %v11167_v43 = vadd.f32 %v11166_v6, %v11165_v57  ;;  %v11231_v29 = vadd.f32 %v11230_v48, %v11229_v26 }
 0x9b5   : > { %v16540_v17 = vadd.f32 %v11228_v61, %v8960_v0  ;;  %v8963_v22 = vadd.f32 %v11167_v43, %v8866_v8 }
 0x9b7   : > { %v16542_v31 = vadd.f32 %v11231_v29, %v8963_v22  ;;  %v11248_v12 = vpop.f32.mrb[48].mxu1  ;;  %v11312_v38 = vpop.f32.mrb[48].mxu0 }
 0x9b8   : > { %v11249_v18 = vpop.f32.mrb[49].mxu1  ;;  %v11313_v11 = vpop.f32.mrb[49].mxu0 }
 0x9b9   : > { %v11250_v42 = vadd.f32 %v11249_v18, %v11248_v12  ;;  %v11314_v54 = vadd.f32 %v11313_v11, %v11312_v38  ;;  %v11251_v3 = vpop.f32.mrb[50].mxu1  ;;  %v11315_v25 = vpop.f32.mrb[50].mxu0 }
 0x9ba   : > { %v11252_v41 = vpop.f32.mrb[51].mxu1  ;;  %v11316_v13 = vpop.f32.mrb[51].mxu0 }
 0x9bb   : > { %v9098_v14 = vadd.f32 %v11250_v42, %v16484_v30  ;;  %v11253_v16 = vadd.f32 %v11252_v41, %v11251_v3  ;;  %v11317_v7 = vadd.f32 %v11316_v13, %v11315_v25 }
 0x9bd   : > { %v16545_v62 = vadd.f32 %v11314_v54, %v9098_v14  ;;  %v9101_v20 = vadd.f32 %v11253_v16, %v16486_v21 }
 0x9bf   : > { %v16548_v15 = vadd.f32 %v11317_v7, %v9101_v20  ;;  %v11254_v28 = vpop.f32.mrb[52].mxu1  ;;  %v11318_v35 = vpop.f32.mrb[52].mxu0 }
 0x9c0   : > { %v11255_v24 = vpop.f32.mrb[53].mxu1  ;;  %v11319_v58 = vpop.f32.mrb[53].mxu0 }
 0x9c1   : > { %v11256_v5 = vadd.f32 %v11255_v24, %v11254_v28  ;;  %v11320_v49 = vadd.f32 %v11319_v58, %v11318_v35  ;;  %v11257_v53 = vpop.f32.mrb[54].mxu1  ;;  %v11321_v59 = vpop.f32.mrb[54].mxu0 }
 0x9c2   : > { %v11258_v34 = vpop.f32.mrb[55].mxu1  ;;  %v11322_v19 = vpop.f32.mrb[55].mxu0 }
 0x9c3   : > { %v9106_v30 = vadd.f32 %v11256_v5, %v16492_v55  ;;  %v11259_v10 = vadd.f32 %v11258_v34, %v11257_v53  ;;  %v11323_v52 = vadd.f32 %v11322_v19, %v11321_v59 }
 0x9c5   : > { %v16551_v36 = vadd.f32 %v11320_v49, %v9106_v30  ;;  %v9109_v21 = vadd.f32 %v11259_v10, %v16494_v46 }
 0x9c7   : > { %v16554_v32 = vadd.f32 %v11323_v52, %v9109_v21  ;;  %v11260_v4 = vpop.f32.mrb[56].mxu1  ;;  %v11324_v44 = vpop.f32.mrb[56].mxu0 }
 0x9c8   : > { %v11261_v23 = vpop.f32.mrb[57].mxu1  ;;  %v11325_v1 = vpop.f32.mrb[57].mxu0 }
 0x9c9   : > { %v11262_v50 = vadd.f32 %v11261_v23, %v11260_v4  ;;  %v11326_v2 = vadd.f32 %v11325_v1, %v11324_v44  ;;  %v11263_v56 = vpop.f32.mrb[58].mxu1  ;;  %v11327_v33 = vpop.f32.mrb[58].mxu0 }
 0x9ca   : > { %v11264_v61 = vpop.f32.mrb[59].mxu1  ;;  %v11328_v57 = vpop.f32.mrb[59].mxu0 }
 0x9cb   : > { %v9114_v55 = vadd.f32 %v11262_v50, %v16500_v27  ;;  %v11265_v26 = vadd.f32 %v11264_v61, %v11263_v56  ;;  %v11329_v6 = vadd.f32 %v11328_v57, %v11327_v33 }
 0x9cd   : > { %v16557_v48 = vadd.f32 %v11326_v2, %v9114_v55  ;;  %v9117_v46 = vadd.f32 %v11265_v26, %v16502_v47 }
 0x9cf   : > { %v16560_v8 = vadd.f32 %v11329_v6, %v9117_v46  ;;  %v11266_v0 = vpop.f32.mrb[60].mxu1  ;;  %v11330_v43 = vpop.f32.mrb[60].mxu0 }
 0x9d0   : > { %v11267_v29 = vpop.f32.mrb[61].mxu1  ;;  %v11331_v22 = vpop.f32.mrb[61].mxu0 }
 0x9d1   : > { %v11268_v12 = vadd.f32 %v11267_v29, %v11266_v0  ;;  %v11332_v38 = vadd.f32 %v11331_v22, %v11330_v43  ;;  %v11269_v18 = vpop.f32.mrb[62].mxu1  ;;  %v11333_v11 = vpop.f32.mrb[62].mxu0 }
 0x9d2   : > { %v11270_v42 = vpop.f32.mrb[63].mxu1  ;;  %v11334_v54 = vpop.f32.mrb[63].mxu0 }
 0x9d3   : > { %v9122_v27 = vadd.f32 %v11268_v12, %v16508_v51  ;;  %v11271_v3 = vadd.f32 %v11270_v42, %v11269_v18  ;;  %v11335_v25 = vadd.f32 %v11334_v54, %v11333_v11 }
 0x9d5   : > { %v16563_v41 = vadd.f32 %v11332_v38, %v9122_v27  ;;  %v9125_v47 = vadd.f32 %v11271_v3, %v16510_v37 }
 0x9d7   : > { %v16566_v13 = vadd.f32 %v11335_v25, %v9125_v47  ;;  %v11272_v14 = vpop.f32.mrb[64].mxu1  ;;  %v11336_v16 = vpop.f32.mrb[64].mxu0 }
 0x9d8   : > { %v11273_v7 = vpop.f32.mrb[65].mxu1  ;;  %v11337_v20 = vpop.f32.mrb[65].mxu0 }
 0x9d9   : > { %v11274_v28 = vadd.f32 %v11273_v7, %v11272_v14  ;;  %v11338_v35 = vadd.f32 %v11337_v20, %v11336_v16  ;;  %v11275_v24 = vpop.f32.mrb[66].mxu1  ;;  %v11339_v58 = vpop.f32.mrb[66].mxu0 }
 0x9da   : > { %v11276_v5 = vpop.f32.mrb[67].mxu1  ;;  %v11340_v49 = vpop.f32.mrb[67].mxu0 }
 0x9db   : > { %v9130_v51 = vadd.f32 %v11274_v28, %v16516_v60  ;;  %v11277_v53 = vadd.f32 %v11276_v5, %v11275_v24  ;;  %v11341_v59 = vadd.f32 %v11340_v49, %v11339_v58 }
 0x9dd   : > { %v16569_v34 = vadd.f32 %v11338_v35, %v9130_v51  ;;  %v9133_v37 = vadd.f32 %v11277_v53, %v16518_v63 }
 0x9df   : > { %v16572_v19 = vadd.f32 %v11341_v59, %v9133_v37  ;;  %v11278_v30 = vpop.f32.mrb[68].mxu1  ;;  %v11342_v10 = vpop.f32.mrb[68].mxu0 }
 0x9e0   : > { %v11279_v52 = vpop.f32.mrb[69].mxu1  ;;  %v11343_v21 = vpop.f32.mrb[69].mxu0 }
 0x9e1   : > { %v11280_v4 = vadd.f32 %v11279_v52, %v11278_v30  ;;  %v11344_v44 = vadd.f32 %v11343_v21, %v11342_v10  ;;  %v11281_v23 = vpop.f32.mrb[70].mxu1  ;;  %v11345_v1 = vpop.f32.mrb[70].mxu0 }
 0x9e2   : > { %v11282_v50 = vpop.f32.mrb[71].mxu1  ;;  %v11346_v2 = vpop.f32.mrb[71].mxu0 }
 0x9e3   : > { %v9138_v60 = vadd.f32 %v11280_v4, %v16524_v40  ;;  %v11283_v56 = vadd.f32 %v11282_v50, %v11281_v23  ;;  %v11347_v33 = vadd.f32 %v11346_v2, %v11345_v1 }
 0x9e5   : > { %v16575_v61 = vadd.f32 %v11344_v44, %v9138_v60  ;;  %v9141_v63 = vadd.f32 %v11283_v56, %v16526_v39 }
 0x9e7   : > { %v16578_v57 = vadd.f32 %v11347_v33, %v9141_v63  ;;  %v11284_v55 = vpop.f32.mrb[72].mxu1  ;;  %v11348_v26 = vpop.f32.mrb[72].mxu0 }
 0x9e8   : > { %v11285_v6 = vpop.f32.mrb[73].mxu1  ;;  %v11349_v46 = vpop.f32.mrb[73].mxu0 }
 0x9e9   : > { %v11286_v0 = vadd.f32 %v11285_v6, %v11284_v55  ;;  %v11350_v43 = vadd.f32 %v11349_v46, %v11348_v26  ;;  %v11287_v29 = vpop.f32.mrb[74].mxu1  ;;  %v11351_v22 = vpop.f32.mrb[74].mxu0 }
 0x9ea   : > { %v11288_v12 = vpop.f32.mrb[75].mxu1  ;;  %v11352_v38 = vpop.f32.mrb[75].mxu0 }
 0x9eb   : > { %v9146_v40 = vadd.f32 %v11286_v0, %v16532_v9  ;;  %v11289_v18 = vadd.f32 %v11288_v12, %v11287_v29  ;;  %v11353_v11 = vadd.f32 %v11352_v38, %v11351_v22 }
 0x9ed   : > { %v16581_v42 = vadd.f32 %v11350_v43, %v9146_v40  ;;  %v9149_v39 = vadd.f32 %v11289_v18, %v16534_v45 }
 0x9ef   : > { %v16584_v54 = vadd.f32 %v11353_v11, %v9149_v39  ;;  %v11290_v27 = vpop.f32.mrb[76].mxu1  ;;  %v11354_v3 = vpop.f32.mrb[76].mxu0 }
 0x9f0   : > { %v11291_v25 = vpop.f32.mrb[77].mxu1  ;;  %v11355_v47 = vpop.f32.mrb[77].mxu0 }
 0x9f1   : > { %v11292_v14 = vadd.f32 %v11291_v25, %v11290_v27  ;;  %v11356_v16 = vadd.f32 %v11355_v47, %v11354_v3  ;;  %v11293_v7 = vpop.f32.mrb[78].mxu1  ;;  %v11357_v20 = vpop.f32.mrb[78].mxu0 }
 0x9f2   : > { %v11294_v28 = vpop.f32.mrb[79].mxu1  ;;  %v11358_v35 = vpop.f32.mrb[79].mxu0 }
 0x9f3   : > { %v9154_v9 = vadd.f32 %v11292_v14, %v16540_v17  ;;  %v11295_v24 = vadd.f32 %v11294_v28, %v11293_v7  ;;  %v11359_v58 = vadd.f32 %v11358_v35, %v11357_v20 }
 0x9f5   : > { %v16587_v5 = vadd.f32 %v11356_v16, %v9154_v9  ;;  %v9157_v45 = vadd.f32 %v11295_v24, %v16542_v31 }
 0x9f7   : > { %v16590_v49 = vadd.f32 %v11359_v58, %v9157_v45  ;;  %v11376_v51 = vpop.f32.mrb[80].mxu1  ;;  %v11440_v53 = vpop.f32.mrb[80].mxu0 }
 0x9f8   : > { %v11377_v59 = vpop.f32.mrb[81].mxu1  ;;  %v11441_v37 = vpop.f32.mrb[81].mxu0 }
 0x9f9   : > { %v11378_v30 = vadd.f32 %v11377_v59, %v11376_v51  ;;  %v11442_v10 = vadd.f32 %v11441_v37, %v11440_v53  ;;  %v11379_v52 = vpop.f32.mrb[82].mxu1  ;;  %v11443_v21 = vpop.f32.mrb[82].mxu0 }
 0x9fa   : > { %v11380_v4 = vpop.f32.mrb[83].mxu1  ;;  %v11444_v44 = vpop.f32.mrb[83].mxu0 }
 0x9fb   : > { %v9292_v17 = vadd.f32 %v11378_v30, %v16545_v62  ;;  %v11381_v23 = vadd.f32 %v11380_v4, %v11379_v52  ;;  %v11445_v1 = vadd.f32 %v11444_v44, %v11443_v21 }
 0x9fd   : > { %v16593_v50 = vadd.f32 %v11442_v10, %v9292_v17  ;;  %v9295_v31 = vadd.f32 %v11381_v23, %v16548_v15 }
 0x9ff   : > { %v16596_v2 = vadd.f32 %v11445_v1, %v9295_v31  ;;  %v11382_v60 = vpop.f32.mrb[84].mxu1  ;;  %v11446_v56 = vpop.f32.mrb[84].mxu0 }
 0xa00   : > { %v11383_v33 = vpop.f32.mrb[85].mxu1  ;;  %v11447_v63 = vpop.f32.mrb[85].mxu0 }
 0xa01   : > { %v11384_v55 = vadd.f32 %v11383_v33, %v11382_v60  ;;  %v11448_v26 = vadd.f32 %v11447_v63, %v11446_v56  ;;  %v11385_v6 = vpop.f32.mrb[86].mxu1  ;;  %v11449_v46 = vpop.f32.mrb[86].mxu0 }
 0xa02   : > { %v11386_v0 = vpop.f32.mrb[87].mxu1  ;;  %v11450_v43 = vpop.f32.mrb[87].mxu0 }
 0xa03   : > { %v9300_v62 = vadd.f32 %v11384_v55, %v16551_v36  ;;  %v11387_v29 = vadd.f32 %v11386_v0, %v11385_v6  ;;  %v11451_v22 = vadd.f32 %v11450_v43, %v11449_v46 }
 0xa05   : > { %v16599_v12 = vadd.f32 %v11448_v26, %v9300_v62  ;;  %v9303_v15 = vadd.f32 %v11387_v29, %v16554_v32 }
 0xa07   : > { %v16602_v38 = vadd.f32 %v11451_v22, %v9303_v15  ;;  %v11388_v40 = vpop.f32.mrb[88].mxu1  ;;  %v11452_v18 = vpop.f32.mrb[88].mxu0 }
 0xa08   : > { %v11389_v11 = vpop.f32.mrb[89].mxu1  ;;  %v11453_v39 = vpop.f32.mrb[89].mxu0 }
 0xa09   : > { %v11390_v27 = vadd.f32 %v11389_v11, %v11388_v40  ;;  %v11454_v3 = vadd.f32 %v11453_v39, %v11452_v18  ;;  %v11391_v25 = vpop.f32.mrb[90].mxu1  ;;  %v11455_v47 = vpop.f32.mrb[90].mxu0 }
 0xa0a   : > { %v11392_v14 = vpop.f32.mrb[91].mxu1  ;;  %v11456_v16 = vpop.f32.mrb[91].mxu0 }
 0xa0b   : > { %v9308_v36 = vadd.f32 %v11390_v27, %v16557_v48  ;;  %v11393_v7 = vadd.f32 %v11392_v14, %v11391_v25  ;;  %v11457_v20 = vadd.f32 %v11456_v16, %v11455_v47 }
 0xa0d   : > { %v16605_v28 = vadd.f32 %v11454_v3, %v9308_v36  ;;  %v9311_v32 = vadd.f32 %v11393_v7, %v16560_v8 }
 0xa0f   : > { %v16608_v35 = vadd.f32 %v11457_v20, %v9311_v32  ;;  %v11394_v9 = vpop.f32.mrb[92].mxu1  ;;  %v11458_v24 = vpop.f32.mrb[92].mxu0 }
 0xa10   : > { %v11395_v58 = vpop.f32.mrb[93].mxu1  ;;  %v11459_v45 = vpop.f32.mrb[93].mxu0 }
 0xa11   : > { %v11396_v51 = vadd.f32 %v11395_v58, %v11394_v9  ;;  %v11460_v53 = vadd.f32 %v11459_v45, %v11458_v24  ;;  %v11397_v59 = vpop.f32.mrb[94].mxu1  ;;  %v11461_v37 = vpop.f32.mrb[94].mxu0 }
 0xa12   : > { %v11398_v30 = vpop.f32.mrb[95].mxu1  ;;  %v11462_v10 = vpop.f32.mrb[95].mxu0 }
 0xa13   : > { %v9316_v48 = vadd.f32 %v11396_v51, %v16563_v41  ;;  %v11399_v52 = vadd.f32 %v11398_v30, %v11397_v59  ;;  %v11463_v21 = vadd.f32 %v11462_v10, %v11461_v37 }
 0xa15   : > { %v16611_v4 = vadd.f32 %v11460_v53, %v9316_v48  ;;  %v9319_v8 = vadd.f32 %v11399_v52, %v16566_v13 }
 0xa17   : > { %v16614_v44 = vadd.f32 %v11463_v21, %v9319_v8  ;;  %v11400_v17 = vpop.f32.mrb[96].mxu1  ;;  %v11464_v23 = vpop.f32.mrb[96].mxu0 }
 0xa18   : > { %v11401_v1 = vpop.f32.mrb[97].mxu1  ;;  %v11465_v31 = vpop.f32.mrb[97].mxu0 }
 0xa19   : > { %v11402_v60 = vadd.f32 %v11401_v1, %v11400_v17  ;;  %v11466_v56 = vadd.f32 %v11465_v31, %v11464_v23  ;;  %v11403_v33 = vpop.f32.mrb[98].mxu1  ;;  %v11467_v63 = vpop.f32.mrb[98].mxu0 }
 0xa1a   : > { %v11404_v55 = vpop.f32.mrb[99].mxu1  ;;  %v11468_v26 = vpop.f32.mrb[99].mxu0 }
 0xa1b   : > { %v9324_v41 = vadd.f32 %v11402_v60, %v16569_v34  ;;  %v11405_v6 = vadd.f32 %v11404_v55, %v11403_v33  ;;  %v11469_v46 = vadd.f32 %v11468_v26, %v11467_v63 }
 0xa1d   : > { %v16617_v0 = vadd.f32 %v11466_v56, %v9324_v41  ;;  %v9327_v13 = vadd.f32 %v11405_v6, %v16572_v19 }
 0xa1f   : > { %v16620_v43 = vadd.f32 %v11469_v46, %v9327_v13  ;;  %v11406_v62 = vpop.f32.mrb[100].mxu1  ;;  %v11470_v29 = vpop.f32.mrb[100].mxu0 }
 0xa20   : > { %v11407_v22 = vpop.f32.mrb[101].mxu1  ;;  %v11471_v15 = vpop.f32.mrb[101].mxu0 }
 0xa21   : > { %v11408_v40 = vadd.f32 %v11407_v22, %v11406_v62  ;;  %v11472_v18 = vadd.f32 %v11471_v15, %v11470_v29  ;;  %v11409_v11 = vpop.f32.mrb[102].mxu1  ;;  %v11473_v39 = vpop.f32.mrb[102].mxu0 }
 0xa22   : > { %v11410_v27 = vpop.f32.mrb[103].mxu1  ;;  %v11474_v3 = vpop.f32.mrb[103].mxu0 }
 0xa23   : > { %v9332_v34 = vadd.f32 %v11408_v40, %v16575_v61  ;;  %v11411_v25 = vadd.f32 %v11410_v27, %v11409_v11  ;;  %v11475_v47 = vadd.f32 %v11474_v3, %v11473_v39 }
 0xa25   : > { %v16623_v14 = vadd.f32 %v11472_v18, %v9332_v34  ;;  %v9335_v19 = vadd.f32 %v11411_v25, %v16578_v57 }
 0xa27   : > { %v16626_v16 = vadd.f32 %v11475_v47, %v9335_v19  ;;  %v11412_v36 = vpop.f32.mrb[104].mxu1  ;;  %v11476_v7 = vpop.f32.mrb[104].mxu0 }
 0xa28   : > { %v11413_v20 = vpop.f32.mrb[105].mxu1  ;;  %v11477_v32 = vpop.f32.mrb[105].mxu0 }
 0xa29   : > { %v11414_v9 = vadd.f32 %v11413_v20, %v11412_v36  ;;  %v11478_v24 = vadd.f32 %v11477_v32, %v11476_v7  ;;  %v11415_v58 = vpop.f32.mrb[106].mxu1  ;;  %v11479_v45 = vpop.f32.mrb[106].mxu0 }
 0xa2a   : > { %v11416_v51 = vpop.f32.mrb[107].mxu1  ;;  %v11480_v53 = vpop.f32.mrb[107].mxu0 }
 0xa2b   : > { %v9340_v61 = vadd.f32 %v11414_v9, %v16581_v42  ;;  %v11417_v59 = vadd.f32 %v11416_v51, %v11415_v58  ;;  %v11481_v37 = vadd.f32 %v11480_v53, %v11479_v45 }
 0xa2d   : > { %v16629_v30 = vadd.f32 %v11478_v24, %v9340_v61  ;;  %v9343_v57 = vadd.f32 %v11417_v59, %v16584_v54 }
 0xa2f   : > { %v16632_v10 = vadd.f32 %v11481_v37, %v9343_v57  ;;  %v11418_v48 = vpop.f32.mrb[108].mxu1  ;;  %v11482_v52 = vpop.f32.mrb[108].mxu0 }
 0xa30   : > { %v11419_v21 = vpop.f32.mrb[109].mxu1  ;;  %v11483_v8 = vpop.f32.mrb[109].mxu0 }
 0xa31   : > { %v11420_v17 = vadd.f32 %v11419_v21, %v11418_v48  ;;  %v11484_v23 = vadd.f32 %v11483_v8, %v11482_v52  ;;  %v11421_v1 = vpop.f32.mrb[110].mxu1  ;;  %v11485_v31 = vpop.f32.mrb[110].mxu0 }
 0xa32   : > { %v11422_v60 = vpop.f32.mrb[111].mxu1  ;;  %v11486_v56 = vpop.f32.mrb[111].mxu0 }
 0xa33   : > { %v9348_v42 = vadd.f32 %v11420_v17, %v16587_v5  ;;  %v11423_v33 = vadd.f32 %v11422_v60, %v11421_v1  ;;  %v11487_v63 = vadd.f32 %v11486_v56, %v11485_v31 }
 0xa35   : > { %v16635_v55 = vadd.f32 %v11484_v23, %v9348_v42  ;;  %v9351_v54 = vadd.f32 %v11423_v33, %v16590_v49 }
 0xa37   : > { %v16638_v26 = vadd.f32 %v11487_v63, %v9351_v54  ;;  %v11504_v41 = vpop.f32.mrb[112].mxu1  ;;  %v11568_v6 = vpop.f32.mrb[112].mxu0 }
 0xa38   : > { %v11505_v46 = vpop.f32.mrb[113].mxu1  ;;  %v11569_v13 = vpop.f32.mrb[113].mxu0 }
 0xa39   : > { %v11506_v62 = vadd.f32 %v11505_v46, %v11504_v41  ;;  %v11570_v29 = vadd.f32 %v11569_v13, %v11568_v6  ;;  %v11507_v22 = vpop.f32.mrb[114].mxu1  ;;  %v11571_v15 = vpop.f32.mrb[114].mxu0 }
 0xa3a   : > { %v11508_v40 = vpop.f32.mrb[115].mxu1  ;;  %v11572_v18 = vpop.f32.mrb[115].mxu0 }
 0xa3b   : > { %v9486_v5 = vadd.f32 %v11506_v62, %v16593_v50  ;;  %v11509_v11 = vadd.f32 %v11508_v40, %v11507_v22  ;;  %v11573_v39 = vadd.f32 %v11572_v18, %v11571_v15 }
 0xa3d   : > { %v16641_v27 = vadd.f32 %v11570_v29, %v9486_v5  ;;  %v9489_v49 = vadd.f32 %v11509_v11, %v16596_v2 }
 0xa3f   : > { %v16644_v3 = vadd.f32 %v11573_v39, %v9489_v49  ;;  %v11510_v34 = vpop.f32.mrb[116].mxu1  ;;  %v11574_v25 = vpop.f32.mrb[116].mxu0 }
 0xa40   : > { %v11511_v47 = vpop.f32.mrb[117].mxu1  ;;  %v11575_v19 = vpop.f32.mrb[117].mxu0 }
 0xa41   : > { %v11512_v36 = vadd.f32 %v11511_v47, %v11510_v34  ;;  %v11576_v7 = vadd.f32 %v11575_v19, %v11574_v25  ;;  %v11513_v20 = vpop.f32.mrb[118].mxu1  ;;  %v11577_v32 = vpop.f32.mrb[118].mxu0 }
 0xa42   : > { %v11514_v9 = vpop.f32.mrb[119].mxu1  ;;  %v11578_v24 = vpop.f32.mrb[119].mxu0 }
 0xa43   : > { %v9494_v50 = vadd.f32 %v11512_v36, %v16599_v12  ;;  %v11515_v58 = vadd.f32 %v11514_v9, %v11513_v20  ;;  %v11579_v45 = vadd.f32 %v11578_v24, %v11577_v32 }
 0xa45   : > { %v16647_v51 = vadd.f32 %v11576_v7, %v9494_v50  ;;  %v9497_v2 = vadd.f32 %v11515_v58, %v16602_v38 }
 0xa47   : > { %v16650_v53 = vadd.f32 %v11579_v45, %v9497_v2  ;;  %v11516_v61 = vpop.f32.mrb[120].mxu1  ;;  %v11580_v59 = vpop.f32.mrb[120].mxu0 }
 0xa48   : > { %v11517_v37 = vpop.f32.mrb[121].mxu1  ;;  %v11581_v57 = vpop.f32.mrb[121].mxu0 }
 0xa49   : > { %v11518_v48 = vadd.f32 %v11517_v37, %v11516_v61  ;;  %v11582_v52 = vadd.f32 %v11581_v57, %v11580_v59  ;;  %v11519_v21 = vpop.f32.mrb[122].mxu1  ;;  %v11583_v8 = vpop.f32.mrb[122].mxu0 }
 0xa4a   : > { %v11520_v17 = vpop.f32.mrb[123].mxu1  ;;  %v11584_v23 = vpop.f32.mrb[123].mxu0 }
 0xa4b   : > { %v9502_v12 = vadd.f32 %v11518_v48, %v16605_v28  ;;  %v11521_v1 = vadd.f32 %v11520_v17, %v11519_v21  ;;  %v11585_v31 = vadd.f32 %v11584_v23, %v11583_v8 }
 0xa4d   : > { %v16653_v60 = vadd.f32 %v11582_v52, %v9502_v12  ;;  %v9505_v38 = vadd.f32 %v11521_v1, %v16608_v35 }
 0xa4f   : > { %v16656_v56 = vadd.f32 %v11585_v31, %v9505_v38  ;;  %v11522_v42 = vpop.f32.mrb[124].mxu1  ;;  %v11586_v33 = vpop.f32.mrb[124].mxu0 }
 0xa50   : > { %v11523_v63 = vpop.f32.mrb[125].mxu1  ;;  %v11587_v54 = vpop.f32.mrb[125].mxu0 }
 0xa51   : > { %v11524_v41 = vadd.f32 %v11523_v63, %v11522_v42  ;;  %v11588_v6 = vadd.f32 %v11587_v54, %v11586_v33  ;;  %v11525_v46 = vpop.f32.mrb[126].mxu1  ;;  %v11589_v13 = vpop.f32.mrb[126].mxu0 }
 0xa52   : > { %v11526_v62 = vpop.f32.mrb[127].mxu1  ;;  %v11590_v29 = vpop.f32.mrb[127].mxu0 }
 0xa53   : > { %v9510_v28 = vadd.f32 %v11524_v41, %v16611_v4  ;;  %v11527_v22 = vadd.f32 %v11526_v62, %v11525_v46  ;;  %v11591_v15 = vadd.f32 %v11590_v29, %v11589_v13 }
 0xa55   : > { %v16659_v40 = vadd.f32 %v11588_v6, %v9510_v28  ;;  %v9513_v35 = vadd.f32 %v11527_v22, %v16614_v44 }
 0xa57   : > { %v16662_v18 = vadd.f32 %v11591_v15, %v9513_v35  ;;  %v11528_v5 = vpop.f32.mrb[128].mxu1  ;;  %v11592_v11 = vpop.f32.mrb[128].mxu0 }
 0xa58   : > { %v11529_v39 = vpop.f32.mrb[129].mxu1  ;;  %v11593_v49 = vpop.f32.mrb[129].mxu0 }
 0xa59   : > { %v11530_v34 = vadd.f32 %v11529_v39, %v11528_v5  ;;  %v11594_v25 = vadd.f32 %v11593_v49, %v11592_v11  ;;  %v11531_v47 = vpop.f32.mrb[130].mxu1  ;;  %v11595_v19 = vpop.f32.mrb[130].mxu0 }
 0xa5a   : > { %v11532_v36 = vpop.f32.mrb[131].mxu1  ;;  %v11596_v7 = vpop.f32.mrb[131].mxu0 }
 0xa5b   : > { %v9518_v4 = vadd.f32 %v11530_v34, %v16617_v0  ;;  %v11533_v20 = vadd.f32 %v11532_v36, %v11531_v47  ;;  %v11597_v32 = vadd.f32 %v11596_v7, %v11595_v19 }
 0xa5d   : > { %v16665_v9 = vadd.f32 %v11594_v25, %v9518_v4  ;;  %v9521_v44 = vadd.f32 %v11533_v20, %v16620_v43  ;;  %v9650_v4 = vlaneseq (!%p10479_p4) }
 0xa5f   : > { %v16668_v24 = vadd.f32 %v11597_v32, %v9521_v44  ;;  %v11534_v50 = vpop.f32.mrb[132].mxu1  ;;  %v11598_v58 = vpop.f32.mrb[132].mxu0  ;;  %v9651_v20 = vshrl.u32 (!%p10479_p4), %v9650_v4, 7  ;;  %v9649_v32 = vld [vmem:[%s13789_s24] sm:$0x3] (!%p10479_p4)  ;;  %s16699_s24 = scalar_lea.vmem (!%p10479_p4), [#allocation4], %s10480_s11 }
 0xa60   : > { %v11535_v45 = vpop.f32.mrb[133].mxu1  ;;  %v11599_v2 = vpop.f32.mrb[133].mxu0 }
 0xa61   : > { %v11536_v61 = vadd.f32 %v11535_v45, %v11534_v50  ;;  %v11600_v59 = vadd.f32 %v11599_v2, %v11598_v58  ;;  %v11537_v37 = vpop.f32.mrb[134].mxu1  ;;  %v11601_v57 = vpop.f32.mrb[134].mxu0  ;;  %v9652_v44 = vsub.s32 (!%p10479_p4), 0, %v9651_v20 }
 0xa62   : > { %v11538_v48 = vpop.f32.mrb[135].mxu1  ;;  %v11602_v52 = vpop.f32.mrb[135].mxu0 }
 0xa63   : > { %v9526_v0 = vadd.f32 %v11536_v61, %v16623_v14  ;;  %v11539_v21 = vadd.f32 %v11538_v48, %v11537_v37  ;;  %v11603_v8 = vadd.f32 %v11602_v52, %v11601_v57  ;;  %v9653_v50 = vrot.slane (!%p10479_p4), %v9649_v32, %v9652_v44 }
 0xa65   : > { %v16671_v17 = vadd.f32 %v11600_v59, %v9526_v0  ;;  %v9529_v43 = vadd.f32 %v11539_v21, %v16626_v16  ;;  %v9659_v45 = vadd.f32 (!%p10479_p4), %v9653_v50, %v16644_v3  ;;  %v9660_v2 = vadd.f32 (!%p10479_p4), %v9653_v50, %v16647_v51 }
 0xa66   : > { %v9661_v61 = vadd.f32 (!%p10479_p4), %v9653_v50, %v16650_v53  ;;  %v9662_v59 = vadd.f32 (!%p10479_p4), %v9653_v50, %v16653_v60  ;;  %v9663_v37 = vadd.f32 (!%p10479_p4), %v9653_v50, %v16656_v56  ;;  %v9664_v57 = vadd.f32 (!%p10479_p4), %v9653_v50, %v16659_v40 }
 0xa67   : > { %v16674_v23 = vadd.f32 %v11603_v8, %v9529_v43  ;;  %v11540_v12 = vpop.f32.mrb[136].mxu1  ;;  %v11604_v1 = vpop.f32.mrb[136].mxu0  ;;  %v9665_v48 = vadd.f32 (!%p10479_p4), %v9653_v50, %v16662_v18  ;;  %9677 = vst [vmem:[%s16699_s24 + $0x8] sm:$0xff] (!%p10479_p4), %v9659_v45  ;;  %9693 = vst [vmem:[%s13974_s14 + $0x8] sm:$0xff] (!%p10479_p4), %v9659_v45 }
 0xa68   : > { %v11541_v31 = vpop.f32.mrb[137].mxu1  ;;  %v11605_v38 = vpop.f32.mrb[137].mxu0  ;;  %9678 = vst [vmem:[%s16699_s24 + $0x10] sm:$0xff] (!%p10479_p4), %v9660_v2  ;;  %9694 = vst [vmem:[%s13974_s14 + $0x10] sm:$0xff] (!%p10479_p4), %v9660_v2 }
 0xa69   : > { %v11542_v42 = vadd.f32 %v11541_v31, %v11540_v12  ;;  %v11606_v33 = vadd.f32 %v11605_v38, %v11604_v1  ;;  %v11543_v63 = vpop.f32.mrb[138].mxu1  ;;  %v11607_v54 = vpop.f32.mrb[138].mxu0  ;;  %9679 = vst [vmem:[%s16699_s24 + $0x18] sm:$0xff] (!%p10479_p4), %v9661_v61  ;;  %9695 = vst [vmem:[%s13974_s14 + $0x18] sm:$0xff] (!%p10479_p4), %v9661_v61 }
 0xa6a   : > { %v11544_v41 = vpop.f32.mrb[139].mxu1  ;;  %v11608_v6 = vpop.f32.mrb[139].mxu0  ;;  %9680 = vst [vmem:[%s16699_s24 + $0x20] sm:$0xff] (!%p10479_p4), %v9662_v59  ;;  %9696 = vst [vmem:[%s13974_s14 + $0x20] sm:$0xff] (!%p10479_p4), %v9662_v59 }
 0xa6b   : > { %v9534_v14 = vadd.f32 %v11542_v42, %v16629_v30  ;;  %v11545_v46 = vadd.f32 %v11544_v41, %v11543_v63  ;;  %v11609_v13 = vadd.f32 %v11608_v6, %v11607_v54  ;;  %9681 = vst [vmem:[%s16699_s24 + $0x28] sm:$0xff] (!%p10479_p4), %v9663_v37  ;;  %9697 = vst [vmem:[%s13974_s14 + $0x28] sm:$0xff] (!%p10479_p4), %v9663_v37 }
 0xa6c   : > { %9682 = vst [vmem:[%s16699_s24 + $0x30] sm:$0xff] (!%p10479_p4), %v9664_v57  ;;  %9698 = vst [vmem:[%s13974_s14 + $0x30] sm:$0xff] (!%p10479_p4), %v9664_v57 }
 0xa6d   : > { %v16677_v62 = vadd.f32 %v11606_v33, %v9534_v14  ;;  %v9537_v16 = vadd.f32 %v11545_v46, %v16632_v10  ;;  %9683 = vst [vmem:[%s16699_s24 + $0x38] sm:$0xff] (!%p10479_p4), %v9665_v48  ;;  %9699 = vst [vmem:[%s13974_s14 + $0x38] sm:$0xff] (!%p10479_p4), %v9665_v48 }
 0xa6f   : > { %v16680_v29 = vadd.f32 %v11609_v13, %v9537_v16  ;;  %v11546_v28 = vpop.f32.mrb[140].mxu1  ;;  %v11610_v22 = vpop.f32.mrb[140].mxu0 }
 0xa70   : > { %v11547_v15 = vpop.f32.mrb[141].mxu1  ;;  %v11611_v35 = vpop.f32.mrb[141].mxu0 }
 0xa71   : > { %v11548_v5 = vadd.f32 %v11547_v15, %v11546_v28  ;;  %v11612_v11 = vadd.f32 %v11611_v35, %v11610_v22  ;;  %v11549_v39 = vpop.f32.mrb[142].mxu1  ;;  %v11613_v49 = vpop.f32.mrb[142].mxu0  ;;  %9648 = sbr.rel (%p10479_p4) target bundleno = 2689 (0xa81), region = 96 }
 0xa72   : > { %v11550_v34 = vpop.f32.mrb[143].mxu1  ;;  %v11614_v25 = vpop.f32.mrb[143].mxu0 }
 0xa73   : > { %v9542_v30 = vadd.f32 %v11548_v5, %v16635_v55  ;;  %v11551_v47 = vadd.f32 %v11550_v34, %v11549_v39  ;;  %v11615_v19 = vadd.f32 %v11614_v25, %v11613_v49  ;;  %v9656_v55 = vsub.s32 (!%p10479_p4), 1, %v9651_v20 }
 0xa75   : > { %v16683_v36 = vadd.f32 %v11612_v11, %v9542_v30  ;;  %v9545_v10 = vadd.f32 %v11551_v47, %v16638_v26  ;;  %v9657_v58 = vrot.slane (!%p10479_p4), %v9649_v32, %v9656_v55  ;;  %v9658_v26 = vadd.f32 (!%p10479_p4), %v9653_v50, %v16641_v27 }
 0xa77   : > { %v16686_v7 = vadd.f32 %v11615_v19, %v9545_v10  ;;  %9676 = vst [vmem:[%s16699_s24] sm:$0xff] (!%p10479_p4), %v9658_v26  ;;  %9692 = vst [vmem:[%s13974_s14] sm:$0xff] (!%p10479_p4), %v9658_v26  ;;  %v9666_v52 = vadd.f32 (!%p10479_p4), %v9657_v58, %v16665_v9  ;;  %v9667_v0 = vadd.f32 (!%p10479_p4), %v9657_v58, %v16668_v24 }
 0xa78   : > { %v9668_v21 = vadd.f32 %v9657_v58, %v16671_v17  ;;  %v9669_v8 = vadd.f32 %v9657_v58, %v16674_v23  ;;  %v9670_v43 = vadd.f32 %v9657_v58, %v16677_v62  ;;  %v9671_v12 = vadd.f32 %v9657_v58, %v16680_v29 }
 0xa79   : > { %v9672_v1 = vadd.f32 %v9657_v58, %v16683_v36  ;;  %v9673_v31 = vadd.f32 %v9657_v58, %v16686_v7  ;;  %9684 = vst [vmem:[%s16699_s24 + $0x40] sm:$0xff] %v9666_v52  ;;  %9700 = vst [vmem:[%s13974_s14 + $0x40] sm:$0xff] %v9666_v52 }
 0xa7a   : > { %9685 = vst [vmem:[%s16699_s24 + $0x48] sm:$0xff] %v9667_v0  ;;  %9701 = vst [vmem:[%s13974_s14 + $0x48] sm:$0xff] %v9667_v0 }
 0xa7b   : > { %9686 = vst [vmem:[%s16699_s24 + $0x50] sm:$0xff] %v9668_v21  ;;  %9702 = vst [vmem:[%s13974_s14 + $0x50] sm:$0xff] %v9668_v21 }
 0xa7c   : > { %9687 = vst [vmem:[%s16699_s24 + $0x58] sm:$0xff] %v9669_v8  ;;  %9703 = vst [vmem:[%s13974_s14 + $0x58] sm:$0xff] %v9669_v8 }
 0xa7d   : > { %9688 = vst [vmem:[%s16699_s24 + $0x60] sm:$0xff] %v9670_v43  ;;  %9704 = vst [vmem:[%s13974_s14 + $0x60] sm:$0xff] %v9670_v43 }
 0xa7e   : > { %9689 = vst [vmem:[%s16699_s24 + $0x68] sm:$0xff] %v9671_v12  ;;  %9705 = vst [vmem:[%s13974_s14 + $0x68] sm:$0xff] %v9671_v12 }
 0xa7f   : > { %9690 = vst [vmem:[%s16699_s24 + $0x70] sm:$0xff] %v9672_v1  ;;  %9706 = vst [vmem:[%s13974_s14 + $0x70] sm:$0xff] %v9672_v1 }
 0xa80   : > { %9691 = vst [vmem:[%s16699_s24 + $0x78] sm:$0xff] %v9673_v31  ;;  %9707 = vst [vmem:[%s13974_s14 + $0x78] sm:$0xff] %v9673_v31 }
 0xa81 PF: > { %s17105_s23 = sld [smem:[#allocation29_spill]] }
 0xa87   : > { %p10481_p11 = scmp.ne.s32.totalorder %s17105_s23, 1 }
 0xa88   : > { %v9712_v38 = vld [vmem:[%s13781_s15] sm:$0xff] (!%p10481_p11)  ;;  %v9713_v42 = vld [vmem:[%s13781_s15 + $0x8] sm:$0xff] (!%p10481_p11)  ;;  %v9714_v33 = vld [vmem:[%s13781_s15 + $0x10] sm:$0xff] (!%p10481_p11) }
 0xa89   : > { %9711 = sbr.rel (%p10481_p11) target bundleno = 2707 (0xa93), region = 100  ;;  %v9728_v63 = vadd.f32 (!%p10481_p11), %v9712_v38, %v16641_v27  ;;  %v9729_v54 = vadd.f32 (!%p10481_p11), %v9713_v42, %v16644_v3  ;;  %v9730_v41 = vadd.f32 (!%p10481_p11), %v9714_v33, %v16647_v51  ;;  %v9715_v6 = vld [vmem:[%s13781_s15 + $0x18] sm:$0xff] (!%p10481_p11)  ;;  %v9716_v14 = vld [vmem:[%s13781_s15 + $0x20] sm:$0xff] (!%p10481_p11)  ;;  %v9717_v46 = vld [vmem:[%s13781_s15 + $0x28] sm:$0xff] (!%p10481_p11) }
 0xa8a   : > { %v9731_v13 = vadd.f32 (!%p10481_p11), %v9715_v6, %v16650_v53  ;;  %v9732_v16 = vadd.f32 (!%p10481_p11), %v9716_v14, %v16653_v60  ;;  %v9733_v28 = vadd.f32 (!%p10481_p11), %v9717_v46, %v16656_v56  ;;  %v9718_v27 = vld [vmem:[%s13781_s15 + $0x30] sm:$0xff] (!%p10481_p11)  ;;  %v9719_v22 = vld [vmem:[%s13781_s15 + $0x38] sm:$0xff] (!%p10481_p11)  ;;  %v9720_v3 = vld [vmem:[%s13781_s15 + $0x40] sm:$0xff] (!%p10481_p11) }
 0xa8b   : > { %9744 = vst [vmem:[%s13974_s14] sm:$0xff] (!%p10481_p11), %v9728_v63  ;;  %9745 = vst [vmem:[%s13974_s14 + $0x8] sm:$0xff] (!%p10481_p11), %v9729_v54  ;;  %v9734_v51 = vadd.f32 (!%p10481_p11), %v9718_v27, %v16659_v40  ;;  %v9735_v53 = vadd.f32 (!%p10481_p11), %v9719_v22, %v16662_v18  ;;  %v9736_v60 = vadd.f32 (!%p10481_p11), %v9720_v3, %v16665_v9  ;;  %v9721_v15 = vld [vmem:[%s13781_s15 + $0x48] sm:$0xff] (!%p10481_p11)  ;;  %v9722_v56 = vld [vmem:[%s13781_s15 + $0x50] sm:$0xff] (!%p10481_p11) }
 0xa8c   : > { %9746 = vst [vmem:[%s13974_s14 + $0x10] sm:$0xff] (!%p10481_p11), %v9730_v41  ;;  %v9723_v35 = vld [vmem:[%s13781_s15 + $0x58] sm:$0xff] (!%p10481_p11)  ;;  %9747 = vst [vmem:[%s13974_s14 + $0x18] sm:$0xff] (!%p10481_p11), %v9731_v13  ;;  %v9737_v5 = vadd.f32 (!%p10481_p11), %v9721_v15, %v16668_v24  ;;  %v9738_v40 = vadd.f32 (!%p10481_p11), %v9722_v56, %v16671_v17  ;;  %v9724_v11 = vld [vmem:[%s13781_s15 + $0x60] sm:$0xff] (!%p10481_p11) }
 0xa8d   : > { %9748 = vst [vmem:[%s13974_s14 + $0x20] sm:$0xff] (!%p10481_p11), %v9732_v16  ;;  %9749 = vst [vmem:[%s13974_s14 + $0x28] sm:$0xff] (!%p10481_p11), %v9733_v28  ;;  %v9739_v18 = vadd.f32 (!%p10481_p11), %v9723_v35, %v16674_v23  ;;  %v9725_v9 = vld [vmem:[%s13781_s15 + $0x68] sm:$0xff] (!%p10481_p11)  ;;  %v9726_v39 = vld [vmem:[%s13781_s15 + $0x70] sm:$0xff] (!%p10481_p11)  ;;  %v9740_v49 = vadd.f32 (!%p10481_p11), %v9724_v11, %v16677_v62 }
 0xa8e   : > { %9750 = vst [vmem:[%s13974_s14 + $0x30] sm:$0xff] (!%p10481_p11), %v9734_v51  ;;  %9751 = vst [vmem:[%s13974_s14 + $0x38] sm:$0xff] (!%p10481_p11), %v9735_v53  ;;  %v9741_v34 = vadd.f32 (!%p10481_p11), %v9725_v9, %v16680_v29  ;;  %v9742_v24 = vadd.f32 (!%p10481_p11), %v9726_v39, %v16683_v36  ;;  %v9727_v25 = vld [vmem:[%s13781_s15 + $0x78] sm:$0xff] (!%p10481_p11) }
 0xa8f   : > { %9752 = vst [vmem:[%s13974_s14 + $0x40] sm:$0xff] (!%p10481_p11), %v9736_v60  ;;  %9753 = vst [vmem:[%s13974_s14 + $0x48] sm:$0xff] (!%p10481_p11), %v9737_v5  ;;  %v9743_v17 = vadd.f32 (!%p10481_p11), %v9727_v25, %v16686_v7 }
 0xa90   : > { %9754 = vst [vmem:[%s13974_s14 + $0x50] sm:$0xff] %v9738_v40  ;;  %9755 = vst [vmem:[%s13974_s14 + $0x58] sm:$0xff] %v9739_v18 }
 0xa91   : > { %9756 = vst [vmem:[%s13974_s14 + $0x60] sm:$0xff] %v9740_v49  ;;  %9757 = vst [vmem:[%s13974_s14 + $0x68] sm:$0xff] %v9741_v34 }
 0xa92   : > { %9758 = vst [vmem:[%s13974_s14 + $0x70] sm:$0xff] %v9742_v24  ;;  %9759 = vst [vmem:[%s13974_s14 + $0x78] sm:$0xff] %v9743_v17 }
 0xa93 PF: > { %s17106_s7 = sld [smem:[#allocation28_spill]]  ;;  %s17107_s28 = sld [smem:[#allocation37_spill]] }
 0xa94   : > { %s17108_s13 = sld [smem:[#allocation74_spill]]  ;;  %s9773_s15 = sshll.u32 %s13974_s14, 4  ;;  %s16797_s15 = int_to_ptr.vmem [resolvable:$true] %s9773_s15 }
 0xa95   : > { %s9761_s27 = scalar_lea.sflag [#allocation7], %s13776_s1  ;;  %s13103_s21 = scalar_lea.vmem %s16797_s15, 2048 }
 0xa96   : > { %p13104_p2 = scmp.ne.s32.totalorder %s16797_s15, %s13103_s21  ;;  %s13277_s3 = smov [#allocation17]  }
 0xa97   : > { %s13107_s20 = sshll.u32 %s13277_s3, 4  ;;  %s13108_s20 = int_to_ptr.vmem [resolvable:$false] %s13107_s20 }
 0xa98   : > { %s13109_s30 = scalar_lea.vmem %s13108_s20, 4096  ;;  %p13110_p8 = scmp.lt.s32.totalorder %s16797_s15, %s13108_s20 }
 0xa99   : > { %s10483_s9 = sshll.u32 %s17106_s7, 7  ;;  %p17110_p9 = scmp.ne.s32.totalorder %s17107_s28, 0 }
 0xa9a   : > { %s17109_s25 = smov %s17108_s13  ;;  %s16794_s10 = scalar_lea.hbm %s17108_s13, %s10483_s9 }
 0xa9b   : > { %p13105_p13 = pnand %p13104_p2, %p17110_p9  ;;  %p13111_p7 = scmp.lt.s32.totalorder %s13109_s30, %s13103_s21 }
 0xa9d   : > { %p13106_p10 = pneg %p13105_p13  ;;  %p13112_p0 = por %p13111_p7, %p13110_p8 }
 0xa9f   : > { %p13113_p3 = pnand %p13112_p0, %p13106_p10 }
 0xaa1   : > { %13116 = shalt.err (!%p13113_p3)
}
 0xaa2   : > { %s13117_s14 = scalar_lea.hbm %s16794_s10, 2048  ;;  %s13121_s11 = scalar_lea.hbm %s17109_s25, 4096 }
 0xaa3   : > { %p13118_p1 = scmp.ne.s32.totalorder %s16794_s10, %s13117_s14  ;;  %p13122_p6 = scmp.lt.u32.totalorder %s16794_s10, %s17109_s25 }
 0xaa4   : > { %p13123_p4 = scmp.lt.u32.totalorder %s13121_s11, %s13117_s14  ;;  %p13125_p2 = scmp.lt.u32.totalorder %s13117_s14, %s16794_s10 }
 0xaa5   : > { %p13119_p5 = pnand %p13118_p1, %p17110_p9 }
 0xaa6   : > { %p13124_p11 = por %p13123_p4, %p13122_p6 }
 0xaa7   : > { %p13120_p12 = pneg %p13119_p5 }
 0xaa8   : > { %p13126_p13 = por %p13125_p2, %p13124_p11 }
 0xaaa   : > { %p13127_p10 = pnand %p13126_p13, %p13120_p12 }
 0xaac   : > { %13130 = shalt.err (!%p13127_p10)
}
 0xaad   : > { %s13278_s7 = smov 128   ;;  %s13279_s9 = smov 256  }
 0xaae   : > { %s13280_s5 = smov 8  }
 0xaaf   : > { %12291 = dma.vmem_to_hbm [thread:$0]  (%p17110_p9), %s16797_s15, 2048, %s16794_s10, %s9761_s27, %s13278_s7, %s13279_s9, %s13280_s5  }
 0xab0 PF: > { %s17111_s26 = sld [smem:[#allocation26_spill]]  ;;  %s17112_s13 = sld [smem:[#allocation30_spill]] }
 0xab1   : > { %p12323_p8 = scmp.ge.s32.totalorder %s13261_s18, 2 }
 0xab6   : > { %s9788_s21 = sand.u32 1, %s17111_s26   ;;  %p17113_p7 = scmp.ne.s32.totalorder %s17112_s13, 0 }
 0xab7   : > { %s9789_s3 = scalar_lea.sflag [#allocation7], %s9788_s21 }
 0xab8   : > { %p12317_p0 = pnand %p12323_p8, %p17113_p7 }
 0xaba   : > { %13204 = dma.done.wait (!%p12317_p0), %s9789_s3, 2048  }
 0xabb   : > { %13206 = vsyncadd (!%p12317_p0), %s9789_s3, 4294965248  ;;  %s31_s18 = sadd.s32 1, %s13261_s18   ;;  %s17115_s27 = sld [smem:[#allocation23_spill]] }
 0xabc   : > { %p16828_p3 = scmp.ge.s32.totalorder %s31_s18, 6   ;;  %s17116_s1 = sld [smem:[#allocation38_spill]] }
 0xabd   : > { %s17117_s30 = sld [smem:[#allocation24_spill]]  ;;  %s17118_s9 = sld [smem:[#allocation25_spill]] }
 0xabe   : > { %s17119_s10 = sld [smem:[#allocation36_spill]]  ;;  %s17120_s15 = sld [smem:[#allocation27_spill]] }
 0xabf   : > { %s17121_s13 = sld [smem:[#allocation34_spill]]  ;;  %s17122_s19 = sld [smem:[#allocation31_spill]] }
 0xac0   : > { %s17123_s8 = sld [smem:[#allocation33_spill]]  ;;  %s17124_s28 = smov %s13217_s29 }
 0xac1   : > { %s17126_s11 = smov %s13237_s12  ;;  %s17128_s14 = smov %s13253_s16 }
 0xac2   : > { %s17125_s29 = smov %s17116_s1  ;;  %30 = sbr.rel (!%p16828_p3) target bundleno = 21 (0x15), region = 233 }
 0xac4   : > { %s17127_s12 = smov %s17120_s15  ;;  %s17129_s15 = smov %s13257_s17 }
 0xac5   : > { %s17130_s16 = smov %s17122_s19 }
 0xac6   : > { %s17131_s17 = smov %s17123_s8 }
 0xac9   :  { %9794 = vsyncpa [#allocation6], 1 }
 0xaca   :  { %9796 = vsyncpa [#allocation6 + $0x1], 1 }
 0xacb   :  { %9797 = vsyncpa [#allocation9], 1 }
 0xacc   :  { %9799 = vsyncpa [#allocation9 + $0x1], 1 }
 0xacd   :  { %9800 = vsyncpa [#allocation12], 1 }
 0xace   :  { %9802 = vsyncpa [#allocation12 + $0x1], 1 }
 0xacf   :  { %9803 = vsyncpa [#allocation15], 1 }
 0xad0   :  { %9805 = vsyncpa [#allocation15 + $0x1], 1 }
 0xad1   :  { %9806 = vsyncpa [#allocation7], 1 }
 0xad2   :  { %9808 = vsyncpa [#allocation7 + $0x1], 1 }

</bundles_post_ra>
